<compile_context>
chip_gen: v7x
topology: tpu7x:2x2x1
jax: 0.10.0
libtpu: 0.0.40
codegen_flags: <defaults>
</compile_context>

<pallas_src>
import functools

import jax
import jax.numpy as jnp
from jax import lax
from jax.experimental import pallas as pl
from jax.experimental.pallas import tpu as pltpu


_CONV_CHANNELS = (16, 32, 64, 64, 128, 256, 512, 1024, 512, 512)
_BN_EPS = 1e-5


def _default_vmem_limit():
    """Generation-dependent VMEM budget: v5e/v6e have 128 MiB, v7x only 64 MiB."""
    try:
        cap = getattr(pltpu.get_tpu_info(), "vmem_capacity_bytes", None)
        if cap is not None and cap >= 96 * 1024 * 1024:
            return 80 * 1024 * 1024          # v5e / v6e: plenty of headroom
    except Exception:
        pass
    return 40 * 1024 * 1024                  # v7x / unknown: stay under 64 MiB


_VMEM_LIMIT = _default_vmem_limit()
_TM_PREF = 1024 if _VMEM_LIMIT >= 64 * 1024 * 1024 else 512
_TN_PREF = 256
_TK_PREF = 2304                              # multiple of 9*128; divides every 9*Cin here


def _pick_tile(dim, pref, *, unit=8, must_divide=False):
    """Largest tile <= pref dividing dim (or the full dim when dim <= pref).

    must_divide=True  (reduction / lane axes): fall back to the full dim so we
                      never accumulate garbage from a padded partial block.
    must_divide=False (row axes): fall back to `pref`; partial last blocks have
                      their out-of-range rows masked on store.
    """
    if dim <= pref:
        return dim
    t = pref
    while t >= unit:
        if dim % t == 0:
            return t
        t //= 2
    return dim if must_divide else pref


# ---------------------------------------------------------------------------
# Conv block: im2col (XLA) + fused Pallas [bf16 matmul -> BN shift -> LeakyReLU]
# ---------------------------------------------------------------------------

def _conv_block_kernel(p_ref, w_ref, t_ref, o_ref, acc_ref):
    # p_ref: (tm, tk) bf16 patches     w_ref: (tk, tn) bf16 (BN scale folded in)
    # t_ref: (1, tn)  f32 shift        o_ref: (tm, tn) bf16   acc_ref: (tm, tn) f32
    @pl.when(pl.program_id(2) == 0)
    def _():
        acc_ref[...] = jnp.zeros_like(acc_ref)

    acc_ref[...] += jnp.dot(p_ref[...], w_ref[...],
                            preferred_element_type=jnp.float32)

    @pl.when(pl.program_id(2) == pl.num_programs(2) - 1)
    def _():
        y = acc_ref[...] + t_ref[...]
        o_ref[...] = jnp.where(y > 0, y, 0.1 * y).astype(o_ref.dtype)   # LeakyReLU(0.1)


def _im2col_3x3(x, stride):
    """x: (B, H, W, C) -> patches (B*Ho*Wo, 9*C) for a 3x3 / pad=1 conv."""
    B, H, W, C = x.shape
    Ho = (H + 2 - 3) // stride + 1
    Wo = (W + 2 - 3) // stride + 1
    xp = jnp.pad(x, ((0, 0), (1, 1), (1, 1), (0, 0)))
    cols = []
    for di in range(3):
        for dj in range(3):
            cols.append(lax.slice(
                xp,
                (0, di, dj, 0),
                (B, di + (Ho - 1) * stride + 1, dj + (Wo - 1) * stride + 1, C),
                (1, stride, stride, 1)))
    patches = jnp.concatenate(cols, axis=-1)         # (B,Ho,Wo,9*C), (di,dj)-major, C minor
    return patches.reshape(B * Ho * Wo, 9 * C), (B, Ho, Wo)


def conv_bn_lrelu(x, w_hwio, conv_b, gamma, beta, mean, var, *, stride=2):
    """Conv2d(3x3, stride, pad=1) + eval-mode BatchNorm2d + LeakyReLU(0.1).

    x is an NHWC bf16 feature map; returns an NHWC bf16 feature map.
    """
    B, H, W, Cin = x.shape
    Cout = w_hwio.shape[-1]
    s = gamma * lax.rsqrt(var + _BN_EPS)                         # BN scale (f32)
    t = (beta + s * (conv_b - mean)).reshape(1, Cout)            # conv bias + BN shift (f32)

    if H == 1 and W == 1:
        # Fast path: a 3x3/pad=1 conv on a 1x1 map only reads the centre tap
        # (the other 8 taps see padding zeros) -> exact, 9x smaller K.
        patches = x.reshape(B, Cin)
        w2d = w_hwio[1, 1]                                       # (Cin, Cout)
        Ho = Wo = 1
    else:
        patches, (B, Ho, Wo) = _im2col_3x3(x, stride)
        w2d = w_hwio.reshape(9 * Cin, Cout)                      # same (di,dj,Cin)-major order

    M, K = patches.shape
    w_bf = (w2d * s[None, :]).astype(jnp.bfloat16)               # fold BN scale, f32 -> bf16
    p_bf = patches.astype(jnp.bfloat16)

    tm = _pick_tile(M, _TM_PREF)
    tn = _pick_tile(Cout, _TN_PREF, unit=128, must_divide=True)
    tk = _pick_tile(K, _TK_PREF, unit=128, must_divide=True)

    out = pl.pallas_call(
        _conv_block_kernel,
        out_shape=jax.ShapeDtypeStruct((M, Cout), jnp.bfloat16),
        grid=(pl.cdiv(M, tm), pl.cdiv(Cout, tn), pl.cdiv(K, tk)),
        in_specs=[
            pl.BlockSpec((tm, tk), lambda i, j, k: (i, k)),
            pl.BlockSpec((tk, tn), lambda i, j, k: (k, j)),
            pl.BlockSpec((1, tn), lambda i, j, k: (0, j)),
        ],
        out_specs=pl.BlockSpec((tm, tn), lambda i, j, k: (i, j)),
        scratch_shapes=[pltpu.VMEM((tm, tn), jnp.float32)],
        compiler_params=pltpu.CompilerParams(
            dimension_semantics=("parallel", "parallel", "arbitrary"),
            vmem_limit_bytes=_VMEM_LIMIT),
    )(p_bf, w_bf, t)
    return out.reshape(B, Ho, Wo, Cout)


def _max_pool_2x2(x):
    return lax.reduce_window(x, jnp.array(-jnp.inf, x.dtype), lax.max,
                             window_dimensions=(1, 2, 2, 1),
                             window_strides=(1, 2, 2, 1),
                             padding="VALID")


# ---------------------------------------------------------------------------
# Head: fused global-avg-pool + ClassBlock (Linear -> LeakyReLU -> Dropout(id) -> Linear)
# ---------------------------------------------------------------------------

def _head_kernel(feat_ref, w1_ref, b1_ref, w2_ref, b2_ref, out_ref, *, inv_hw):
    # feat_ref: (TB, HW, C) bf16       w1_ref: (C, NB)   bf16    b1_ref: (1, NB)  f32
    # w2_ref  : (NB, NCP)   bf16       b2_ref: (1, NCP)  f32     out_ref: (TB, NCP) f32
    pooled = jnp.sum(feat_ref[...].astype(jnp.float32), axis=1) * inv_hw   # avg-pool in f32
    h = jnp.dot(pooled.astype(jnp.bfloat16), w1_ref[...],
                preferred_element_type=jnp.float32) + b1_ref[...]
    h = jnp.where(h > 0, h, 0.1 * h)                  # LeakyReLU(0.1); Dropout = identity (eval)
    out_ref[...] = jnp.dot(h.astype(jnp.bfloat16), w2_ref[...],
                           preferred_element_type=jnp.float32) + b2_ref[...]


def class_block_head(feat_bhwc, w1, b1, w2, b2):
    """feat_bhwc: (B, Hf, Wf, C) NHWC bf16 feature map -> logits (B, num_classes) f32."""
    B, Hf, Wf, C = feat_bhwc.shape
    HW = Hf * Wf
    NB = w1.shape[1]
    NC = w2.shape[1]
    NCP = ((NC + 127) // 128) * 128                   # lane-dense output block

    feat = feat_bhwc.reshape(B, HW, C)                # pure view: channels stay on lanes
    w1_bf = w1.astype(jnp.bfloat16)
    w2_bf = jnp.zeros((NB, NCP), jnp.float32).at[:, :NC].set(w2).astype(jnp.bfloat16)
    b1_2d = b1.reshape(1, NB)
    b2_2d = jnp.zeros((1, NCP), jnp.float32).at[0, :NC].set(b2)

    TB = _pick_tile(B, 64)                            # <=64/step -> >=2 steps at B>=128 (v7x 2 TCs)
    kernel = functools.partial(_head_kernel, inv_hw=1.0 / HW)
    out = pl.pallas_call(
        kernel,
        out_shape=jax.ShapeDtypeStruct((B, NCP), jnp.float32),
        grid=(pl.cdiv(B, TB),),
        in_specs=[
            pl.BlockSpec((TB, HW, C), lambda i: (i, 0, 0)),
            pl.BlockSpec((C, NB), lambda i: (0, 0)),
            pl.BlockSpec((1, NB), lambda i: (0, 0)),
            pl.BlockSpec((NB, NCP), lambda i: (0, 0)),
            pl.BlockSpec((1, NCP), lambda i: (0, 0)),
        ],
        out_specs=pl.BlockSpec((TB, NCP), lambda i: (i, 0)),
        compiler_params=pltpu.CompilerParams(
            dimension_semantics=("parallel",),
            vmem_limit_bytes=_VMEM_LIMIT),
    )(feat, w1_bf, b1_2d, w2_bf, b2_2d)
    return out[:, :NC]


# ---------------------------------------------------------------------------
# Full forward, params, pure-JAX reference
# ---------------------------------------------------------------------------

def simple_10cnn_forward(x_nchw, params):
    """Inference forward of simple_10CNN. x_nchw: (B, 3, H, W) float32."""
    x = jnp.transpose(x_nchw, (0, 2, 3, 1)).astype(jnp.bfloat16)   # NHWC bf16 trunk
    for idx, (w, b, g, bta, mu, var) in enumerate(params["convs"]):
        x = conv_bn_lrelu(x, w, b, g, bta, mu, var, stride=2)
        if idx in (0, 1):                            # MaxPool2d(2,2) after conv1/conv2
            x = _max_pool_2x2(x)
    # x: (B, Hf, Wf, 512) — channels already on lanes; head fuses avgpool+MLP.
    return class_block_head(x, params["w1"], params["b1"], params["w2"], params["b2"])


forward = jax.jit(simple_10cnn_forward)


def init_params(key, num_classes):
    keys = jax.random.split(key, len(_CONV_CHANNELS) + 2)
    convs = []
    cin = 3
    for i, cout in enumerate(_CONV_CHANNELS):
        fan_in = 9 * cin
        w = jax.random.normal(keys[i], (3, 3, cin, cout), jnp.float32) * (2.0 / fan_in) ** 0.5
        convs.append((w,
                      jnp.zeros((cout,), jnp.float32),   # conv bias
                      jnp.ones((cout,), jnp.float32),    # BN gamma
                      jnp.zeros((cout,), jnp.float32),   # BN beta
                      jnp.zeros((cout,), jnp.float32),   # BN running_mean
                      jnp.ones((cout,), jnp.float32)))   # BN running_var
        cin = cout
    # ClassBlock: Linear(512,512) kaiming fan_out (std=sqrt(2/512), bias=0);
    #             classifier Linear(512, num_classes) std=0.001, bias=0.
    w1 = jax.random.normal(keys[-2], (512, 512), jnp.float32) * (2.0 / 512) ** 0.5
    b1 = jnp.zeros((512,), jnp.float32)
    w2 = jax.random.normal(keys[-1], (512, num_classes), jnp.float32) * 1e-3
    b2 = jnp.zeros((num_classes,), jnp.float32)
    return {"convs": convs, "w1": w1, "b1": b1, "w2": w2, "b2": b2}


def reference_forward(x_nchw, params):
    """Pure-JAX (XLA) reference with identical semantics, f32 throughout."""
    x = jnp.transpose(x_nchw, (0, 2, 3, 1))
    for idx, (w, b, g, bta, mu, var) in enumerate(params["convs"]):
        y = lax.conv_general_dilated(x, w, window_strides=(2, 2),
                                     padding=((1, 1), (1, 1)),
                                     dimension_numbers=("NHWC", "HWIO", "NHWC"))
        y = (y + b - mu) * (g * lax.rsqrt(var + _BN_EPS)) + bta
        x = jnp.where(y > 0, y, 0.1 * y)
        if idx in (0, 1):
            x = lax.reduce_window(x, -jnp.inf, lax.max,
                                  window_dimensions=(1, 2, 2, 1),
                                  window_strides=(1, 2, 2, 1),
                                  padding="VALID")
    pooled = jnp.mean(x, axis=(1, 2))
    h = pooled @ params["w1"] + params["b1"]
    h = jnp.where(h > 0, h, 0.1 * h)
    return h @ params["w2"] + params["b2"]


if __name__ == "__main__":
    key = jax.random.PRNGKey(0)
    k_x, k_p = jax.random.split(key)

    B, H, W = 2, 64, 64
    num_classes = 16
    # NOTE: for real throughput, batch many images per call (B >= 128) so MXU
    # rows and the per-call weight DMA amortize; B=2 is a correctness-sized test.
    x = jax.random.normal(k_x, (B, 3, H, W), jnp.float32)
    params = init_params(k_p, num_classes)

    y = forward(x, params)
    jax.block_until_ready(y)

    y_ref = reference_forward(x, params)
    assert y.shape == (B, num_classes)
    err = float(jnp.max(jnp.abs(y - y_ref)))
    # The Pallas path keeps activations/weights in bf16 (f32 accumulation) through
    # 10 conv layers + the head, so the tolerance is looser than pure f32 allows;
    # a real structural bug would produce errors on the order of the logits (~3e-2+).
    assert jnp.allclose(y, y_ref, atol=5e-3, rtol=5e-2), err

    print("KERNEL_OK")
</pallas_src>

<mosaic_0001>
module attributes {stable_mosaic.version = 11 : i64} {
  func.func @_conv_block_kernel(%arg0: i32, %arg1: i32, %arg2: i32, %arg3: memref<512x27xbf16, #tpu.memory_space<vmem>>, %arg4: memref<27x16xbf16, #tpu.memory_space<vmem>>, %arg5: memref<1x16xf32, #tpu.memory_space<vmem>>, %arg6: memref<512x16xbf16, #tpu.memory_space<vmem>>, %arg7: memref<512x16xf32, #tpu.memory_space<vmem>>) attributes {dimension_semantics = [#tpu.dimension_semantics<parallel>, #tpu.dimension_semantics<parallel>, #tpu.dimension_semantics<arbitrary>], iteration_bounds = array<i64: 4, 1, 1>, scalar_prefetch = 0 : i64, scratch_operands = 1 : i64, tpu.core_type = #tpu.core_type<tc>, window_params = [{transform_indices = @transform_0, window_bounds = array<i64: 512, 27>}, {transform_indices = @transform_1, window_bounds = array<i64: 27, 16>}, {transform_indices = @transform_2, window_bounds = array<i64: 1, 16>}, {transform_indices = @transform_3, window_bounds = array<i64: 512, 16>}]} {
    %c0_i32 = arith.constant 0 : i32
    %0 = arith.cmpi eq, %arg2, %c0_i32 : i32
    %1 = arith.extui %0 : i1 to i32
    %c0_i32_0 = arith.constant 0 : i32
    %2 = arith.cmpi ne, %1, %c0_i32_0 : i32
    scf.if %2 {
      %cst_10 = arith.constant 0.000000e+00 : f32
      %12 = vector.broadcast %cst_10 : f32 to vector<512x16xf32>
      %c0_11 = arith.constant 0 : index
      %c0_12 = arith.constant 0 : index
      %13 = vector.load %arg7[%c0_11, %c0_12] : memref<512x16xf32, #tpu.memory_space<vmem>>, vector<512x16xf32>
      tpu.vector_store %arg7[%c0_11, %c0_12], %12 {strides = array<i32>} : memref<512x16xf32, #tpu.memory_space<vmem>>, vector<512x16xf32>,
    } else {
    }
    %c0 = arith.constant 0 : index
    %c0_1 = arith.constant 0 : index
    %3 = vector.load %arg7[%c0, %c0_1] : memref<512x16xf32, #tpu.memory_space<vmem>>, vector<512x16xf32>
    %c0_2 = arith.constant 0 : index
    %c0_3 = arith.constant 0 : index
    %4 = vector.load %arg3[%c0_2, %c0_3] : memref<512x27xbf16, #tpu.memory_space<vmem>>, vector<512x27xbf16>
    %c0_4 = arith.constant 0 : index
    %c0_5 = arith.constant 0 : index
    %5 = vector.load %arg4[%c0_4, %c0_5] : memref<27x16xbf16, #tpu.memory_space<vmem>>, vector<27x16xbf16>
    %cst = arith.constant dense<0.000000e+00> : vector<512x16xf32>
    %6 = tpu.matmul %4, %5, %cst {dimension_numbers = #tpu.dot_dimension_numbers<[1], [0], [0], [1], [0, 0, 1, 1], [], []>} : vector<512x27xbf16>, vector<27x16xbf16>, vector<512x16xf32> -> vector<512x16xf32>
    %7 = arith.addf %3, %6 : vector<512x16xf32>
    %c0_6 = arith.constant 0 : index
    %c0_7 = arith.constant 0 : index
    %8 = vector.load %arg7[%c0_6, %c0_7] : memref<512x16xf32, #tpu.memory_space<vmem>>, vector<512x16xf32>
    tpu.vector_store %arg7[%c0_6, %c0_7], %7 {strides = array<i32>} : memref<512x16xf32, #tpu.memory_space<vmem>>, vector<512x16xf32>,
    %c0_i32_8 = arith.constant 0 : i32
    %9 = arith.cmpi eq, %arg2, %c0_i32_8 : i32
    %10 = arith.extui %9 : i1 to i32
    %c0_i32_9 = arith.constant 0 : i32
    %11 = arith.cmpi ne, %10, %c0_i32_9 : i32
    scf.if %11 {
      %c0_10 = arith.constant 0 : index
      %c0_11 = arith.constant 0 : index
      %12 = vector.load %arg7[%c0_10, %c0_11] : memref<512x16xf32, #tpu.memory_space<vmem>>, vector<512x16xf32>
      %c0_12 = arith.constant 0 : index
      %c0_13 = arith.constant 0 : index
      %13 = vector.load %arg5[%c0_12, %c0_13] : memref<1x16xf32, #tpu.memory_space<vmem>>, vector<1x16xf32>
      %14 = vector.broadcast %13 : vector<1x16xf32> to vector<512x16xf32>
      %15 = arith.addf %12, %14 : vector<512x16xf32>
      %cst_14 = arith.constant 0.000000e+00 : f32
      %16 = vector.broadcast %cst_14 : f32 to vector<512x16xf32>
      %17 = arith.cmpf ogt, %15, %16 : vector<512x16xf32>
      %cst_15 = arith.constant 1.000000e-01 : f32
      %18 = vector.broadcast %cst_15 : f32 to vector<512x16xf32>
      %19 = arith.mulf %18, %15 : vector<512x16xf32>
      %20 = arith.select %17, %15, %19 : vector<512x16xi1>, vector<512x16xf32>
      %21 = arith.truncf %20 : vector<512x16xf32> to vector<512x16xbf16>
      %c0_16 = arith.constant 0 : index
      %c0_17 = arith.constant 0 : index
      %22 = vector.load %arg6[%c0_16, %c0_17] : memref<512x16xbf16, #tpu.memory_space<vmem>>, vector<512x16xbf16>
      tpu.vector_store %arg6[%c0_16, %c0_17], %21 {strides = array<i32>} : memref<512x16xbf16, #tpu.memory_space<vmem>>, vector<512x16xbf16>,
    } else {
    }
    return
  }
  func.func @transform_0(%arg0: i32, %arg1: i32, %arg2: i32) -> (i32, i32) {
    %c0_i32 = arith.constant 0 : i32
    return %arg0, %arg2 : i32, i32
  }
  func.func @transform_1(%arg0: i32, %arg1: i32, %arg2: i32) -> (i32, i32) {
    %c0_i32 = arith.constant 0 : i32
    return %arg2, %arg1 : i32, i32
  }
  func.func @transform_2(%arg0: i32, %arg1: i32, %arg2: i32) -> (i32, i32) {
    %c0_i32 = arith.constant 0 : i32
    %c0_i32_0 = arith.constant 0 : i32
    return %c0_i32, %arg1 : i32, i32
  }
  func.func @transform_3(%arg0: i32, %arg1: i32, %arg2: i32) -> (i32, i32) {
    %c0_i32 = arith.constant 0 : i32
    return %arg0, %arg1 : i32, i32
  }
}

module attributes {stable_mosaic.version = 11 : i64} {
  func.func @_conv_block_kernel(%arg0: i32, %arg1: i32, %arg2: i32, %arg3: memref<128x144xbf16, #tpu.memory_space<vmem>>, %arg4: memref<144x32xbf16, #tpu.memory_space<vmem>>, %arg5: memref<1x32xf32, #tpu.memory_space<vmem>>, %arg6: memref<128x32xbf16, #tpu.memory_space<vmem>>, %arg7: memref<128x32xf32, #tpu.memory_space<vmem>>) attributes {dimension_semantics = [#tpu.dimension_semantics<parallel>, #tpu.dimension_semantics<parallel>, #tpu.dimension_semantics<arbitrary>], iteration_bounds = array<i64: 1, 1, 1>, scalar_prefetch = 0 : i64, scratch_operands = 1 : i64, tpu.core_type = #tpu.core_type<tc>, window_params = [{transform_indices = @transform_0, window_bounds = array<i64: 128, 144>}, {transform_indices = @transform_1, window_bounds = array<i64: 144, 32>}, {transform_indices = @transform_2, window_bounds = array<i64: 1, 32>}, {transform_indices = @transform_3, window_bounds = array<i64: 128, 32>}]} {
    %c0_i32 = arith.constant 0 : i32
    %0 = arith.cmpi eq, %arg2, %c0_i32 : i32
    %1 = arith.extui %0 : i1 to i32
    %c0_i32_0 = arith.constant 0 : i32
    %2 = arith.cmpi ne, %1, %c0_i32_0 : i32
    scf.if %2 {
      %cst_10 = arith.constant 0.000000e+00 : f32
      %12 = vector.broadcast %cst_10 : f32 to vector<128x32xf32>
      %c0_11 = arith.constant 0 : index
      %c0_12 = arith.constant 0 : index
      %13 = vector.load %arg7[%c0_11, %c0_12] : memref<128x32xf32, #tpu.memory_space<vmem>>, vector<128x32xf32>
      tpu.vector_store %arg7[%c0_11, %c0_12], %12 {strides = array<i32>} : memref<128x32xf32, #tpu.memory_space<vmem>>, vector<128x32xf32>,
    } else {
    }
    %c0 = arith.constant 0 : index
    %c0_1 = arith.constant 0 : index
    %3 = vector.load %arg7[%c0, %c0_1] : memref<128x32xf32, #tpu.memory_space<vmem>>, vector<128x32xf32>
    %c0_2 = arith.constant 0 : index
    %c0_3 = arith.constant 0 : index
    %4 = vector.load %arg3[%c0_2, %c0_3] : memref<128x144xbf16, #tpu.memory_space<vmem>>, vector<128x144xbf16>
    %c0_4 = arith.constant 0 : index
    %c0_5 = arith.constant 0 : index
    %5 = vector.load %arg4[%c0_4, %c0_5] : memref<144x32xbf16, #tpu.memory_space<vmem>>, vector<144x32xbf16>
    %cst = arith.constant dense<0.000000e+00> : vector<128x32xf32>
    %6 = tpu.matmul %4, %5, %cst {dimension_numbers = #tpu.dot_dimension_numbers<[1], [0], [0], [1], [0, 0, 1, 1], [], []>} : vector<128x144xbf16>, vector<144x32xbf16>, vector<128x32xf32> -> vector<128x32xf32>
    %7 = arith.addf %3, %6 : vector<128x32xf32>
    %c0_6 = arith.constant 0 : index
    %c0_7 = arith.constant 0 : index
    %8 = vector.load %arg7[%c0_6, %c0_7] : memref<128x32xf32, #tpu.memory_space<vmem>>, vector<128x32xf32>
    tpu.vector_store %arg7[%c0_6, %c0_7], %7 {strides = array<i32>} : memref<128x32xf32, #tpu.memory_space<vmem>>, vector<128x32xf32>,
    %c0_i32_8 = arith.constant 0 : i32
    %9 = arith.cmpi eq, %arg2, %c0_i32_8 : i32
    %10 = arith.extui %9 : i1 to i32
    %c0_i32_9 = arith.constant 0 : i32
    %11 = arith.cmpi ne, %10, %c0_i32_9 : i32
    scf.if %11 {
      %c0_10 = arith.constant 0 : index
      %c0_11 = arith.constant 0 : index
      %12 = vector.load %arg7[%c0_10, %c0_11] : memref<128x32xf32, #tpu.memory_space<vmem>>, vector<128x32xf32>
      %c0_12 = arith.constant 0 : index
      %c0_13 = arith.constant 0 : index
      %13 = vector.load %arg5[%c0_12, %c0_13] : memref<1x32xf32, #tpu.memory_space<vmem>>, vector<1x32xf32>
      %14 = vector.broadcast %13 : vector<1x32xf32> to vector<128x32xf32>
      %15 = arith.addf %12, %14 : vector<128x32xf32>
      %cst_14 = arith.constant 0.000000e+00 : f32
      %16 = vector.broadcast %cst_14 : f32 to vector<128x32xf32>
      %17 = arith.cmpf ogt, %15, %16 : vector<128x32xf32>
      %cst_15 = arith.constant 1.000000e-01 : f32
      %18 = vector.broadcast %cst_15 : f32 to vector<128x32xf32>
      %19 = arith.mulf %18, %15 : vector<128x32xf32>
      %20 = arith.select %17, %15, %19 : vector<128x32xi1>, vector<128x32xf32>
      %21 = arith.truncf %20 : vector<128x32xf32> to vector<128x32xbf16>
      %c0_16 = arith.constant 0 : index
      %c0_17 = arith.constant 0 : index
      %22 = vector.load %arg6[%c0_16, %c0_17] : memref<128x32xbf16, #tpu.memory_space<vmem>>, vector<128x32xbf16>
      tpu.vector_store %arg6[%c0_16, %c0_17], %21 {strides = array<i32>} : memref<128x32xbf16, #tpu.memory_space<vmem>>, vector<128x32xbf16>,
    } else {
    }
    return
  }
  func.func @transform_0(%arg0: i32, %arg1: i32, %arg2: i32) -> (i32, i32) {
    %c0_i32 = arith.constant 0 : i32
    return %arg0, %arg2 : i32, i32
  }
  func.func @transform_1(%arg0: i32, %arg1: i32, %arg2: i32) -> (i32, i32) {
    %c0_i32 = arith.constant 0 : i32
    return %arg2, %arg1 : i32, i32
  }
  func.func @transform_2(%arg0: i32, %arg1: i32, %arg2: i32) -> (i32, i32) {
    %c0_i32 = arith.constant 0 : i32
    %c0_i32_0 = arith.constant 0 : i32
    return %c0_i32, %arg1 : i32, i32
  }
  func.func @transform_3(%arg0: i32, %arg1: i32, %arg2: i32) -> (i32, i32) {
    %c0_i32 = arith.constant 0 : i32
    return %arg0, %arg1 : i32, i32
  }
}

module attributes {stable_mosaic.version = 11 : i64} {
  func.func @_conv_block_kernel(%arg0: i32, %arg1: i32, %arg2: i32, %arg3: memref<8x288xbf16, #tpu.memory_space<vmem>>, %arg4: memref<288x64xbf16, #tpu.memory_space<vmem>>, %arg5: memref<1x64xf32, #tpu.memory_space<vmem>>, %arg6: memref<8x64xbf16, #tpu.memory_space<vmem>>, %arg7: memref<8x64xf32, #tpu.memory_space<vmem>>) attributes {dimension_semantics = [#tpu.dimension_semantics<parallel>, #tpu.dimension_semantics<parallel>, #tpu.dimension_semantics<arbitrary>], iteration_bounds = array<i64: 1, 1, 1>, scalar_prefetch = 0 : i64, scratch_operands = 1 : i64, tpu.core_type = #tpu.core_type<tc>, window_params = [{transform_indices = @transform_0, window_bounds = array<i64: 8, 288>}, {transform_indices = @transform_1, window_bounds = array<i64: 288, 64>}, {transform_indices = @transform_2, window_bounds = array<i64: 1, 64>}, {transform_indices = @transform_3, window_bounds = array<i64: 8, 64>}]} {
    %c0_i32 = arith.constant 0 : i32
    %0 = arith.cmpi eq, %arg2, %c0_i32 : i32
    %1 = arith.extui %0 : i1 to i32
    %c0_i32_0 = arith.constant 0 : i32
    %2 = arith.cmpi ne, %1, %c0_i32_0 : i32
    scf.if %2 {
      %cst_10 = arith.constant 0.000000e+00 : f32
      %12 = vector.broadcast %cst_10 : f32 to vector<8x64xf32>
      %c0_11 = arith.constant 0 : index
      %c0_12 = arith.constant 0 : index
      %13 = vector.load %arg7[%c0_11, %c0_12] : memref<8x64xf32, #tpu.memory_space<vmem>>, vector<8x64xf32>
      tpu.vector_store %arg7[%c0_11, %c0_12], %12 {strides = array<i32>} : memref<8x64xf32, #tpu.memory_space<vmem>>, vector<8x64xf32>,
    } else {
    }
    %c0 = arith.constant 0 : index
    %c0_1 = arith.constant 0 : index
    %3 = vector.load %arg7[%c0, %c0_1] : memref<8x64xf32, #tpu.memory_space<vmem>>, vector<8x64xf32>
    %c0_2 = arith.constant 0 : index
    %c0_3 = arith.constant 0 : index
    %4 = vector.load %arg3[%c0_2, %c0_3] : memref<8x288xbf16, #tpu.memory_space<vmem>>, vector<8x288xbf16>
    %c0_4 = arith.constant 0 : index
    %c0_5 = arith.constant 0 : index
    %5 = vector.load %arg4[%c0_4, %c0_5] : memref<288x64xbf16, #tpu.memory_space<vmem>>, vector<288x64xbf16>
    %cst = arith.constant dense<0.000000e+00> : vector<8x64xf32>
    %6 = tpu.matmul %4, %5, %cst {dimension_numbers = #tpu.dot_dimension_numbers<[1], [0], [0], [1], [0, 0, 1, 1], [], []>} : vector<8x288xbf16>, vector<288x64xbf16>, vector<8x64xf32> -> vector<8x64xf32>
    %7 = arith.addf %3, %6 : vector<8x64xf32>
    %c0_6 = arith.constant 0 : index
    %c0_7 = arith.constant 0 : index
    %8 = vector.load %arg7[%c0_6, %c0_7] : memref<8x64xf32, #tpu.memory_space<vmem>>, vector<8x64xf32>
    tpu.vector_store %arg7[%c0_6, %c0_7], %7 {strides = array<i32>} : memref<8x64xf32, #tpu.memory_space<vmem>>, vector<8x64xf32>,
    %c0_i32_8 = arith.constant 0 : i32
    %9 = arith.cmpi eq, %arg2, %c0_i32_8 : i32
    %10 = arith.extui %9 : i1 to i32
    %c0_i32_9 = arith.constant 0 : i32
    %11 = arith.cmpi ne, %10, %c0_i32_9 : i32
    scf.if %11 {
      %c0_10 = arith.constant 0 : index
      %c0_11 = arith.constant 0 : index
      %12 = vector.load %arg7[%c0_10, %c0_11] : memref<8x64xf32, #tpu.memory_space<vmem>>, vector<8x64xf32>
      %c0_12 = arith.constant 0 : index
      %c0_13 = arith.constant 0 : index
      %13 = vector.load %arg5[%c0_12, %c0_13] : memref<1x64xf32, #tpu.memory_space<vmem>>, vector<1x64xf32>
      %14 = vector.broadcast %13 : vector<1x64xf32> to vector<8x64xf32>
      %15 = arith.addf %12, %14 : vector<8x64xf32>
      %cst_14 = arith.constant 0.000000e+00 : f32
      %16 = vector.broadcast %cst_14 : f32 to vector<8x64xf32>
      %17 = arith.cmpf ogt, %15, %16 : vector<8x64xf32>
      %cst_15 = arith.constant 1.000000e-01 : f32
      %18 = vector.broadcast %cst_15 : f32 to vector<8x64xf32>
      %19 = arith.mulf %18, %15 : vector<8x64xf32>
      %20 = arith.select %17, %15, %19 : vector<8x64xi1>, vector<8x64xf32>
      %21 = arith.truncf %20 : vector<8x64xf32> to vector<8x64xbf16>
      %c0_16 = arith.constant 0 : index
      %c0_17 = arith.constant 0 : index
      %22 = vector.load %arg6[%c0_16, %c0_17] : memref<8x64xbf16, #tpu.memory_space<vmem>>, vector<8x64xbf16>
      tpu.vector_store %arg6[%c0_16, %c0_17], %21 {strides = array<i32>} : memref<8x64xbf16, #tpu.memory_space<vmem>>, vector<8x64xbf16>,
    } else {
    }
    return
  }
  func.func @transform_0(%arg0: i32, %arg1: i32, %arg2: i32) -> (i32, i32) {
    %c0_i32 = arith.constant 0 : i32
    return %arg0, %arg2 : i32, i32
  }
  func.func @transform_1(%arg0: i32, %arg1: i32, %arg2: i32) -> (i32, i32) {
    %c0_i32 = arith.constant 0 : i32
    return %arg2, %arg1 : i32, i32
  }
  func.func @transform_2(%arg0: i32, %arg1: i32, %arg2: i32) -> (i32, i32) {
    %c0_i32 = arith.constant 0 : i32
    %c0_i32_0 = arith.constant 0 : i32
    return %c0_i32, %arg1 : i32, i32
  }
  func.func @transform_3(%arg0: i32, %arg1: i32, %arg2: i32) -> (i32, i32) {
    %c0_i32 = arith.constant 0 : i32
    return %arg0, %arg1 : i32, i32
  }
}

module attributes {stable_mosaic.version = 11 : i64} {
  func.func @_conv_block_kernel(%arg0: i32, %arg1: i32, %arg2: i32, %arg3: memref<2x576xbf16, #tpu.memory_space<vmem>>, %arg4: memref<576x64xbf16, #tpu.memory_space<vmem>>, %arg5: memref<1x64xf32, #tpu.memory_space<vmem>>, %arg6: memref<2x64xbf16, #tpu.memory_space<vmem>>, %arg7: memref<2x64xf32, #tpu.memory_space<vmem>>) attributes {dimension_semantics = [#tpu.dimension_semantics<parallel>, #tpu.dimension_semantics<parallel>, #tpu.dimension_semantics<arbitrary>], iteration_bounds = array<i64: 1, 1, 1>, scalar_prefetch = 0 : i64, scratch_operands = 1 : i64, tpu.core_type = #tpu.core_type<tc>, window_params = [{transform_indices = @transform_0, window_bounds = array<i64: 2, 576>}, {transform_indices = @transform_1, window_bounds = array<i64: 576, 64>}, {transform_indices = @transform_2, window_bounds = array<i64: 1, 64>}, {transform_indices = @transform_3, window_bounds = array<i64: 2, 64>}]} {
    %c0_i32 = arith.constant 0 : i32
    %0 = arith.cmpi eq, %arg2, %c0_i32 : i32
    %1 = arith.extui %0 : i1 to i32
    %c0_i32_0 = arith.constant 0 : i32
    %2 = arith.cmpi ne, %1, %c0_i32_0 : i32
    scf.if %2 {
      %cst_10 = arith.constant 0.000000e+00 : f32
      %12 = vector.broadcast %cst_10 : f32 to vector<2x64xf32>
      %c0_11 = arith.constant 0 : index
      %c0_12 = arith.constant 0 : index
      %13 = vector.load %arg7[%c0_11, %c0_12] : memref<2x64xf32, #tpu.memory_space<vmem>>, vector<2x64xf32>
      tpu.vector_store %arg7[%c0_11, %c0_12], %12 {strides = array<i32>} : memref<2x64xf32, #tpu.memory_space<vmem>>, vector<2x64xf32>,
    } else {
    }
    %c0 = arith.constant 0 : index
    %c0_1 = arith.constant 0 : index
    %3 = vector.load %arg7[%c0, %c0_1] : memref<2x64xf32, #tpu.memory_space<vmem>>, vector<2x64xf32>
    %c0_2 = arith.constant 0 : index
    %c0_3 = arith.constant 0 : index
    %4 = vector.load %arg3[%c0_2, %c0_3] : memref<2x576xbf16, #tpu.memory_space<vmem>>, vector<2x576xbf16>
    %c0_4 = arith.constant 0 : index
    %c0_5 = arith.constant 0 : index
    %5 = vector.load %arg4[%c0_4, %c0_5] : memref<576x64xbf16, #tpu.memory_space<vmem>>, vector<576x64xbf16>
    %cst = arith.constant dense<0.000000e+00> : vector<2x64xf32>
    %6 = tpu.matmul %4, %5, %cst {dimension_numbers = #tpu.dot_dimension_numbers<[1], [0], [0], [1], [0, 0, 1, 1], [], []>} : vector<2x576xbf16>, vector<576x64xbf16>, vector<2x64xf32> -> vector<2x64xf32>
    %7 = arith.addf %3, %6 : vector<2x64xf32>
    %c0_6 = arith.constant 0 : index
    %c0_7 = arith.constant 0 : index
    %8 = vector.load %arg7[%c0_6, %c0_7] : memref<2x64xf32, #tpu.memory_space<vmem>>, vector<2x64xf32>
    tpu.vector_store %arg7[%c0_6, %c0_7], %7 {strides = array<i32>} : memref<2x64xf32, #tpu.memory_space<vmem>>, vector<2x64xf32>,
    %c0_i32_8 = arith.constant 0 : i32
    %9 = arith.cmpi eq, %arg2, %c0_i32_8 : i32
    %10 = arith.extui %9 : i1 to i32
    %c0_i32_9 = arith.constant 0 : i32
    %11 = arith.cmpi ne, %10, %c0_i32_9 : i32
    scf.if %11 {
      %c0_10 = arith.constant 0 : index
      %c0_11 = arith.constant 0 : index
      %12 = vector.load %arg7[%c0_10, %c0_11] : memref<2x64xf32, #tpu.memory_space<vmem>>, vector<2x64xf32>
      %c0_12 = arith.constant 0 : index
      %c0_13 = arith.constant 0 : index
      %13 = vector.load %arg5[%c0_12, %c0_13] : memref<1x64xf32, #tpu.memory_space<vmem>>, vector<1x64xf32>
      %14 = vector.broadcast %13 : vector<1x64xf32> to vector<2x64xf32>
      %15 = arith.addf %12, %14 : vector<2x64xf32>
      %cst_14 = arith.constant 0.000000e+00 : f32
      %16 = vector.broadcast %cst_14 : f32 to vector<2x64xf32>
      %17 = arith.cmpf ogt, %15, %16 : vector<2x64xf32>
      %cst_15 = arith.constant 1.000000e-01 : f32
      %18 = vector.broadcast %cst_15 : f32 to vector<2x64xf32>
      %19 = arith.mulf %18, %15 : vector<2x64xf32>
      %20 = arith.select %17, %15, %19 : vector<2x64xi1>, vector<2x64xf32>
      %21 = arith.truncf %20 : vector<2x64xf32> to vector<2x64xbf16>
      %c0_16 = arith.constant 0 : index
      %c0_17 = arith.constant 0 : index
      %22 = vector.load %arg6[%c0_16, %c0_17] : memref<2x64xbf16, #tpu.memory_space<vmem>>, vector<2x64xbf16>
      tpu.vector_store %arg6[%c0_16, %c0_17], %21 {strides = array<i32>} : memref<2x64xbf16, #tpu.memory_space<vmem>>, vector<2x64xbf16>,
    } else {
    }
    return
  }
  func.func @transform_0(%arg0: i32, %arg1: i32, %arg2: i32) -> (i32, i32) {
    %c0_i32 = arith.constant 0 : i32
    return %arg0, %arg2 : i32, i32
  }
  func.func @transform_1(%arg0: i32, %arg1: i32, %arg2: i32) -> (i32, i32) {
    %c0_i32 = arith.constant 0 : i32
    return %arg2, %arg1 : i32, i32
  }
  func.func @transform_2(%arg0: i32, %arg1: i32, %arg2: i32) -> (i32, i32) {
    %c0_i32 = arith.constant 0 : i32
    %c0_i32_0 = arith.constant 0 : i32
    return %c0_i32, %arg1 : i32, i32
  }
  func.func @transform_3(%arg0: i32, %arg1: i32, %arg2: i32) -> (i32, i32) {
    %c0_i32 = arith.constant 0 : i32
    return %arg0, %arg1 : i32, i32
  }
}

module attributes {stable_mosaic.version = 11 : i64} {
  func.func @_conv_block_kernel(%arg0: i32, %arg1: i32, %arg2: i32, %arg3: memref<2x64xbf16, #tpu.memory_space<vmem>>, %arg4: memref<64x128xbf16, #tpu.memory_space<vmem>>, %arg5: memref<1x128xf32, #tpu.memory_space<vmem>>, %arg6: memref<2x128xbf16, #tpu.memory_space<vmem>>, %arg7: memref<2x128xf32, #tpu.memory_space<vmem>>) attributes {dimension_semantics = [#tpu.dimension_semantics<parallel>, #tpu.dimension_semantics<parallel>, #tpu.dimension_semantics<arbitrary>], iteration_bounds = array<i64: 1, 1, 1>, scalar_prefetch = 0 : i64, scratch_operands = 1 : i64, tpu.core_type = #tpu.core_type<tc>, window_params = [{transform_indices = @transform_0, window_bounds = array<i64: 2, 64>}, {transform_indices = @transform_1, window_bounds = array<i64: 64, 128>}, {transform_indices = @transform_2, window_bounds = array<i64: 1, 128>}, {transform_indices = @transform_3, window_bounds = array<i64: 2, 128>}]} {
    %c0_i32 = arith.constant 0 : i32
    %0 = arith.cmpi eq, %arg2, %c0_i32 : i32
    %1 = arith.extui %0 : i1 to i32
    %c0_i32_0 = arith.constant 0 : i32
    %2 = arith.cmpi ne, %1, %c0_i32_0 : i32
    scf.if %2 {
      %cst_10 = arith.constant 0.000000e+00 : f32
      %12 = vector.broadcast %cst_10 : f32 to vector<2x128xf32>
      %c0_11 = arith.constant 0 : index
      %c0_12 = arith.constant 0 : index
      %13 = vector.load %arg7[%c0_11, %c0_12] : memref<2x128xf32, #tpu.memory_space<vmem>>, vector<2x128xf32>
      tpu.vector_store %arg7[%c0_11, %c0_12], %12 {strides = array<i32>} : memref<2x128xf32, #tpu.memory_space<vmem>>, vector<2x128xf32>,
    } else {
    }
    %c0 = arith.constant 0 : index
    %c0_1 = arith.constant 0 : index
    %3 = vector.load %arg7[%c0, %c0_1] : memref<2x128xf32, #tpu.memory_space<vmem>>, vector<2x128xf32>
    %c0_2 = arith.constant 0 : index
    %c0_3 = arith.constant 0 : index
    %4 = vector.load %arg3[%c0_2, %c0_3] : memref<2x64xbf16, #tpu.memory_space<vmem>>, vector<2x64xbf16>
    %c0_4 = arith.constant 0 : index
    %c0_5 = arith.constant 0 : index
    %5 = vector.load %arg4[%c0_4, %c0_5] : memref<64x128xbf16, #tpu.memory_space<vmem>>, vector<64x128xbf16>
    %cst = arith.constant dense<0.000000e+00> : vector<2x128xf32>
    %6 = tpu.matmul %4, %5, %cst {dimension_numbers = #tpu.dot_dimension_numbers<[1], [0], [0], [1], [0, 0, 1, 1], [], []>} : vector<2x64xbf16>, vector<64x128xbf16>, vector<2x128xf32> -> vector<2x128xf32>
    %7 = arith.addf %3, %6 : vector<2x128xf32>
    %c0_6 = arith.constant 0 : index
    %c0_7 = arith.constant 0 : index
    %8 = vector.load %arg7[%c0_6, %c0_7] : memref<2x128xf32, #tpu.memory_space<vmem>>, vector<2x128xf32>
    tpu.vector_store %arg7[%c0_6, %c0_7], %7 {strides = array<i32>} : memref<2x128xf32, #tpu.memory_space<vmem>>, vector<2x128xf32>,
    %c0_i32_8 = arith.constant 0 : i32
    %9 = arith.cmpi eq, %arg2, %c0_i32_8 : i32
    %10 = arith.extui %9 : i1 to i32
    %c0_i32_9 = arith.constant 0 : i32
    %11 = arith.cmpi ne, %10, %c0_i32_9 : i32
    scf.if %11 {
      %c0_10 = arith.constant 0 : index
      %c0_11 = arith.constant 0 : index
      %12 = vector.load %arg7[%c0_10, %c0_11] : memref<2x128xf32, #tpu.memory_space<vmem>>, vector<2x128xf32>
      %c0_12 = arith.constant 0 : index
      %c0_13 = arith.constant 0 : index
      %13 = vector.load %arg5[%c0_12, %c0_13] : memref<1x128xf32, #tpu.memory_space<vmem>>, vector<1x128xf32>
      %14 = vector.broadcast %13 : vector<1x128xf32> to vector<2x128xf32>
      %15 = arith.addf %12, %14 : vector<2x128xf32>
      %cst_14 = arith.constant 0.000000e+00 : f32
      %16 = vector.broadcast %cst_14 : f32 to vector<2x128xf32>
      %17 = arith.cmpf ogt, %15, %16 : vector<2x128xf32>
      %cst_15 = arith.constant 1.000000e-01 : f32
      %18 = vector.broadcast %cst_15 : f32 to vector<2x128xf32>
      %19 = arith.mulf %18, %15 : vector<2x128xf32>
      %20 = arith.select %17, %15, %19 : vector<2x128xi1>, vector<2x128xf32>
      %21 = arith.truncf %20 : vector<2x128xf32> to vector<2x128xbf16>
      %c0_16 = arith.constant 0 : index
      %c0_17 = arith.constant 0 : index
      %22 = vector.load %arg6[%c0_16, %c0_17] : memref<2x128xbf16, #tpu.memory_space<vmem>>, vector<2x128xbf16>
      tpu.vector_store %arg6[%c0_16, %c0_17], %21 {strides = array<i32>} : memref<2x128xbf16, #tpu.memory_space<vmem>>, vector<2x128xbf16>,
    } else {
    }
    return
  }
  func.func @transform_0(%arg0: i32, %arg1: i32, %arg2: i32) -> (i32, i32) {
    %c0_i32 = arith.constant 0 : i32
    return %arg0, %arg2 : i32, i32
  }
  func.func @transform_1(%arg0: i32, %arg1: i32, %arg2: i32) -> (i32, i32) {
    %c0_i32 = arith.constant 0 : i32
    return %arg2, %arg1 : i32, i32
  }
  func.func @transform_2(%arg0: i32, %arg1: i32, %arg2: i32) -> (i32, i32) {
    %c0_i32 = arith.constant 0 : i32
    %c0_i32_0 = arith.constant 0 : i32
    return %c0_i32, %arg1 : i32, i32
  }
  func.func @transform_3(%arg0: i32, %arg1: i32, %arg2: i32) -> (i32, i32) {
    %c0_i32 = arith.constant 0 : i32
    return %arg0, %arg1 : i32, i32
  }
}

module attributes {stable_mosaic.version = 11 : i64} {
  func.func @_conv_block_kernel(%arg0: i32, %arg1: i32, %arg2: i32, %arg3: memref<2x128xbf16, #tpu.memory_space<vmem>>, %arg4: memref<128x256xbf16, #tpu.memory_space<vmem>>, %arg5: memref<1x256xf32, #tpu.memory_space<vmem>>, %arg6: memref<2x256xbf16, #tpu.memory_space<vmem>>, %arg7: memref<2x256xf32, #tpu.memory_space<vmem>>) attributes {dimension_semantics = [#tpu.dimension_semantics<parallel>, #tpu.dimension_semantics<parallel>, #tpu.dimension_semantics<arbitrary>], iteration_bounds = array<i64: 1, 1, 1>, scalar_prefetch = 0 : i64, scratch_operands = 1 : i64, tpu.core_type = #tpu.core_type<tc>, window_params = [{transform_indices = @transform_0, window_bounds = array<i64: 2, 128>}, {transform_indices = @transform_1, window_bounds = array<i64: 128, 256>}, {transform_indices = @transform_2, window_bounds = array<i64: 1, 256>}, {transform_indices = @transform_3, window_bounds = array<i64: 2, 256>}]} {
    %c0_i32 = arith.constant 0 : i32
    %0 = arith.cmpi eq, %arg2, %c0_i32 : i32
    %1 = arith.extui %0 : i1 to i32
    %c0_i32_0 = arith.constant 0 : i32
    %2 = arith.cmpi ne, %1, %c0_i32_0 : i32
    scf.if %2 {
      %cst_10 = arith.constant 0.000000e+00 : f32
      %12 = vector.broadcast %cst_10 : f32 to vector<2x256xf32>
      %c0_11 = arith.constant 0 : index
      %c0_12 = arith.constant 0 : index
      %13 = vector.load %arg7[%c0_11, %c0_12] : memref<2x256xf32, #tpu.memory_space<vmem>>, vector<2x256xf32>
      tpu.vector_store %arg7[%c0_11, %c0_12], %12 {strides = array<i32>} : memref<2x256xf32, #tpu.memory_space<vmem>>, vector<2x256xf32>,
    } else {
    }
    %c0 = arith.constant 0 : index
    %c0_1 = arith.constant 0 : index
    %3 = vector.load %arg7[%c0, %c0_1] : memref<2x256xf32, #tpu.memory_space<vmem>>, vector<2x256xf32>
    %c0_2 = arith.constant 0 : index
    %c0_3 = arith.constant 0 : index
    %4 = vector.load %arg3[%c0_2, %c0_3] : memref<2x128xbf16, #tpu.memory_space<vmem>>, vector<2x128xbf16>
    %c0_4 = arith.constant 0 : index
    %c0_5 = arith.constant 0 : index
    %5 = vector.load %arg4[%c0_4, %c0_5] : memref<128x256xbf16, #tpu.memory_space<vmem>>, vector<128x256xbf16>
    %cst = arith.constant dense<0.000000e+00> : vector<2x256xf32>
    %6 = tpu.matmul %4, %5, %cst {dimension_numbers = #tpu.dot_dimension_numbers<[1], [0], [0], [1], [0, 0, 1, 1], [], []>} : vector<2x128xbf16>, vector<128x256xbf16>, vector<2x256xf32> -> vector<2x256xf32>
    %7 = arith.addf %3, %6 : vector<2x256xf32>
    %c0_6 = arith.constant 0 : index
    %c0_7 = arith.constant 0 : index
    %8 = vector.load %arg7[%c0_6, %c0_7] : memref<2x256xf32, #tpu.memory_space<vmem>>, vector<2x256xf32>
    tpu.vector_store %arg7[%c0_6, %c0_7], %7 {strides = array<i32>} : memref<2x256xf32, #tpu.memory_space<vmem>>, vector<2x256xf32>,
    %c0_i32_8 = arith.constant 0 : i32
    %9 = arith.cmpi eq, %arg2, %c0_i32_8 : i32
    %10 = arith.extui %9 : i1 to i32
    %c0_i32_9 = arith.constant 0 : i32
    %11 = arith.cmpi ne, %10, %c0_i32_9 : i32
    scf.if %11 {
      %c0_10 = arith.constant 0 : index
      %c0_11 = arith.constant 0 : index
      %12 = vector.load %arg7[%c0_10, %c0_11] : memref<2x256xf32, #tpu.memory_space<vmem>>, vector<2x256xf32>
      %c0_12 = arith.constant 0 : index
      %c0_13 = arith.constant 0 : index
      %13 = vector.load %arg5[%c0_12, %c0_13] : memref<1x256xf32, #tpu.memory_space<vmem>>, vector<1x256xf32>
      %14 = vector.broadcast %13 : vector<1x256xf32> to vector<2x256xf32>
      %15 = arith.addf %12, %14 : vector<2x256xf32>
      %cst_14 = arith.constant 0.000000e+00 : f32
      %16 = vector.broadcast %cst_14 : f32 to vector<2x256xf32>
      %17 = arith.cmpf ogt, %15, %16 : vector<2x256xf32>
      %cst_15 = arith.constant 1.000000e-01 : f32
      %18 = vector.broadcast %cst_15 : f32 to vector<2x256xf32>
      %19 = arith.mulf %18, %15 : vector<2x256xf32>
      %20 = arith.select %17, %15, %19 : vector<2x256xi1>, vector<2x256xf32>
      %21 = arith.truncf %20 : vector<2x256xf32> to vector<2x256xbf16>
      %c0_16 = arith.constant 0 : index
      %c0_17 = arith.constant 0 : index
      %22 = vector.load %arg6[%c0_16, %c0_17] : memref<2x256xbf16, #tpu.memory_space<vmem>>, vector<2x256xbf16>
      tpu.vector_store %arg6[%c0_16, %c0_17], %21 {strides = array<i32>} : memref<2x256xbf16, #tpu.memory_space<vmem>>, vector<2x256xbf16>,
    } else {
    }
    return
  }
  func.func @transform_0(%arg0: i32, %arg1: i32, %arg2: i32) -> (i32, i32) {
    %c0_i32 = arith.constant 0 : i32
    return %arg0, %arg2 : i32, i32
  }
  func.func @transform_1(%arg0: i32, %arg1: i32, %arg2: i32) -> (i32, i32) {
    %c0_i32 = arith.constant 0 : i32
    return %arg2, %arg1 : i32, i32
  }
  func.func @transform_2(%arg0: i32, %arg1: i32, %arg2: i32) -> (i32, i32) {
    %c0_i32 = arith.constant 0 : i32
    %c0_i32_0 = arith.constant 0 : i32
    return %c0_i32, %arg1 : i32, i32
  }
  func.func @transform_3(%arg0: i32, %arg1: i32, %arg2: i32) -> (i32, i32) {
    %c0_i32 = arith.constant 0 : i32
    return %arg0, %arg1 : i32, i32
  }
}

module attributes {stable_mosaic.version = 11 : i64} {
  func.func @_conv_block_kernel(%arg0: i32, %arg1: i32, %arg2: i32, %arg3: memref<2x256xbf16, #tpu.memory_space<vmem>>, %arg4: memref<256x256xbf16, #tpu.memory_space<vmem>>, %arg5: memref<1x256xf32, #tpu.memory_space<vmem>>, %arg6: memref<2x256xbf16, #tpu.memory_space<vmem>>, %arg7: memref<2x256xf32, #tpu.memory_space<vmem>>) attributes {dimension_semantics = [#tpu.dimension_semantics<parallel>, #tpu.dimension_semantics<parallel>, #tpu.dimension_semantics<arbitrary>], iteration_bounds = array<i64: 1, 2, 1>, scalar_prefetch = 0 : i64, scratch_operands = 1 : i64, tpu.core_type = #tpu.core_type<tc>, window_params = [{transform_indices = @transform_0, window_bounds = array<i64: 2, 256>}, {transform_indices = @transform_1, window_bounds = array<i64: 256, 256>}, {transform_indices = @transform_2, window_bounds = array<i64: 1, 256>}, {transform_indices = @transform_3, window_bounds = array<i64: 2, 256>}]} {
    %c0_i32 = arith.constant 0 : i32
    %0 = arith.cmpi eq, %arg2, %c0_i32 : i32
    %1 = arith.extui %0 : i1 to i32
    %c0_i32_0 = arith.constant 0 : i32
    %2 = arith.cmpi ne, %1, %c0_i32_0 : i32
    scf.if %2 {
      %cst_10 = arith.constant 0.000000e+00 : f32
      %12 = vector.broadcast %cst_10 : f32 to vector<2x256xf32>
      %c0_11 = arith.constant 0 : index
      %c0_12 = arith.constant 0 : index
      %13 = vector.load %arg7[%c0_11, %c0_12] : memref<2x256xf32, #tpu.memory_space<vmem>>, vector<2x256xf32>
      tpu.vector_store %arg7[%c0_11, %c0_12], %12 {strides = array<i32>} : memref<2x256xf32, #tpu.memory_space<vmem>>, vector<2x256xf32>,
    } else {
    }
    %c0 = arith.constant 0 : index
    %c0_1 = arith.constant 0 : index
    %3 = vector.load %arg7[%c0, %c0_1] : memref<2x256xf32, #tpu.memory_space<vmem>>, vector<2x256xf32>
    %c0_2 = arith.constant 0 : index
    %c0_3 = arith.constant 0 : index
    %4 = vector.load %arg3[%c0_2, %c0_3] : memref<2x256xbf16, #tpu.memory_space<vmem>>, vector<2x256xbf16>
    %c0_4 = arith.constant 0 : index
    %c0_5 = arith.constant 0 : index
    %5 = vector.load %arg4[%c0_4, %c0_5] : memref<256x256xbf16, #tpu.memory_space<vmem>>, vector<256x256xbf16>
    %cst = arith.constant dense<0.000000e+00> : vector<2x256xf32>
    %6 = tpu.matmul %4, %5, %cst {dimension_numbers = #tpu.dot_dimension_numbers<[1], [0], [0], [1], [0, 0, 1, 1], [], []>} : vector<2x256xbf16>, vector<256x256xbf16>, vector<2x256xf32> -> vector<2x256xf32>
    %7 = arith.addf %3, %6 : vector<2x256xf32>
    %c0_6 = arith.constant 0 : index
    %c0_7 = arith.constant 0 : index
    %8 = vector.load %arg7[%c0_6, %c0_7] : memref<2x256xf32, #tpu.memory_space<vmem>>, vector<2x256xf32>
    tpu.vector_store %arg7[%c0_6, %c0_7], %7 {strides = array<i32>} : memref<2x256xf32, #tpu.memory_space<vmem>>, vector<2x256xf32>,
    %c0_i32_8 = arith.constant 0 : i32
    %9 = arith.cmpi eq, %arg2, %c0_i32_8 : i32
    %10 = arith.extui %9 : i1 to i32
    %c0_i32_9 = arith.constant 0 : i32
    %11 = arith.cmpi ne, %10, %c0_i32_9 : i32
    scf.if %11 {
      %c0_10 = arith.constant 0 : index
      %c0_11 = arith.constant 0 : index
      %12 = vector.load %arg7[%c0_10, %c0_11] : memref<2x256xf32, #tpu.memory_space<vmem>>, vector<2x256xf32>
      %c0_12 = arith.constant 0 : index
      %c0_13 = arith.constant 0 : index
      %13 = vector.load %arg5[%c0_12, %c0_13] : memref<1x256xf32, #tpu.memory_space<vmem>>, vector<1x256xf32>
      %14 = vector.broadcast %13 : vector<1x256xf32> to vector<2x256xf32>
      %15 = arith.addf %12, %14 : vector<2x256xf32>
      %cst_14 = arith.constant 0.000000e+00 : f32
      %16 = vector.broadcast %cst_14 : f32 to vector<2x256xf32>
      %17 = arith.cmpf ogt, %15, %16 : vector<2x256xf32>
      %cst_15 = arith.constant 1.000000e-01 : f32
      %18 = vector.broadcast %cst_15 : f32 to vector<2x256xf32>
      %19 = arith.mulf %18, %15 : vector<2x256xf32>
      %20 = arith.select %17, %15, %19 : vector<2x256xi1>, vector<2x256xf32>
      %21 = arith.truncf %20 : vector<2x256xf32> to vector<2x256xbf16>
      %c0_16 = arith.constant 0 : index
      %c0_17 = arith.constant 0 : index
      %22 = vector.load %arg6[%c0_16, %c0_17] : memref<2x256xbf16, #tpu.memory_space<vmem>>, vector<2x256xbf16>
      tpu.vector_store %arg6[%c0_16, %c0_17], %21 {strides = array<i32>} : memref<2x256xbf16, #tpu.memory_space<vmem>>, vector<2x256xbf16>,
    } else {
    }
    return
  }
  func.func @transform_0(%arg0: i32, %arg1: i32, %arg2: i32) -> (i32, i32) {
    %c0_i32 = arith.constant 0 : i32
    return %arg0, %arg2 : i32, i32
  }
  func.func @transform_1(%arg0: i32, %arg1: i32, %arg2: i32) -> (i32, i32) {
    %c0_i32 = arith.constant 0 : i32
    return %arg2, %arg1 : i32, i32
  }
  func.func @transform_2(%arg0: i32, %arg1: i32, %arg2: i32) -> (i32, i32) {
    %c0_i32 = arith.constant 0 : i32
    %c0_i32_0 = arith.constant 0 : i32
    return %c0_i32, %arg1 : i32, i32
  }
  func.func @transform_3(%arg0: i32, %arg1: i32, %arg2: i32) -> (i32, i32) {
    %c0_i32 = arith.constant 0 : i32
    return %arg0, %arg1 : i32, i32
  }
}

module attributes {stable_mosaic.version = 11 : i64} {
  func.func @_conv_block_kernel(%arg0: i32, %arg1: i32, %arg2: i32, %arg3: memref<2x512xbf16, #tpu.memory_space<vmem>>, %arg4: memref<512x256xbf16, #tpu.memory_space<vmem>>, %arg5: memref<1x256xf32, #tpu.memory_space<vmem>>, %arg6: memref<2x256xbf16, #tpu.memory_space<vmem>>, %arg7: memref<2x256xf32, #tpu.memory_space<vmem>>) attributes {dimension_semantics = [#tpu.dimension_semantics<parallel>, #tpu.dimension_semantics<parallel>, #tpu.dimension_semantics<arbitrary>], iteration_bounds = array<i64: 1, 4, 1>, scalar_prefetch = 0 : i64, scratch_operands = 1 : i64, tpu.core_type = #tpu.core_type<tc>, window_params = [{transform_indices = @transform_0, window_bounds = array<i64: 2, 512>}, {transform_indices = @transform_1, window_bounds = array<i64: 512, 256>}, {transform_indices = @transform_2, window_bounds = array<i64: 1, 256>}, {transform_indices = @transform_3, window_bounds = array<i64: 2, 256>}]} {
    %c0_i32 = arith.constant 0 : i32
    %0 = arith.cmpi eq, %arg2, %c0_i32 : i32
    %1 = arith.extui %0 : i1 to i32
    %c0_i32_0 = arith.constant 0 : i32
    %2 = arith.cmpi ne, %1, %c0_i32_0 : i32
    scf.if %2 {
      %cst_10 = arith.constant 0.000000e+00 : f32
      %12 = vector.broadcast %cst_10 : f32 to vector<2x256xf32>
      %c0_11 = arith.constant 0 : index
      %c0_12 = arith.constant 0 : index
      %13 = vector.load %arg7[%c0_11, %c0_12] : memref<2x256xf32, #tpu.memory_space<vmem>>, vector<2x256xf32>
      tpu.vector_store %arg7[%c0_11, %c0_12], %12 {strides = array<i32>} : memref<2x256xf32, #tpu.memory_space<vmem>>, vector<2x256xf32>,
    } else {
    }
    %c0 = arith.constant 0 : index
    %c0_1 = arith.constant 0 : index
    %3 = vector.load %arg7[%c0, %c0_1] : memref<2x256xf32, #tpu.memory_space<vmem>>, vector<2x256xf32>
    %c0_2 = arith.constant 0 : index
    %c0_3 = arith.constant 0 : index
    %4 = vector.load %arg3[%c0_2, %c0_3] : memref<2x512xbf16, #tpu.memory_space<vmem>>, vector<2x512xbf16>
    %c0_4 = arith.constant 0 : index
    %c0_5 = arith.constant 0 : index
    %5 = vector.load %arg4[%c0_4, %c0_5] : memref<512x256xbf16, #tpu.memory_space<vmem>>, vector<512x256xbf16>
    %cst = arith.constant dense<0.000000e+00> : vector<2x256xf32>
    %6 = tpu.matmul %4, %5, %cst {dimension_numbers = #tpu.dot_dimension_numbers<[1], [0], [0], [1], [0, 0, 1, 1], [], []>} : vector<2x512xbf16>, vector<512x256xbf16>, vector<2x256xf32> -> vector<2x256xf32>
    %7 = arith.addf %3, %6 : vector<2x256xf32>
    %c0_6 = arith.constant 0 : index
    %c0_7 = arith.constant 0 : index
    %8 = vector.load %arg7[%c0_6, %c0_7] : memref<2x256xf32, #tpu.memory_space<vmem>>, vector<2x256xf32>
    tpu.vector_store %arg7[%c0_6, %c0_7], %7 {strides = array<i32>} : memref<2x256xf32, #tpu.memory_space<vmem>>, vector<2x256xf32>,
    %c0_i32_8 = arith.constant 0 : i32
    %9 = arith.cmpi eq, %arg2, %c0_i32_8 : i32
    %10 = arith.extui %9 : i1 to i32
    %c0_i32_9 = arith.constant 0 : i32
    %11 = arith.cmpi ne, %10, %c0_i32_9 : i32
    scf.if %11 {
      %c0_10 = arith.constant 0 : index
      %c0_11 = arith.constant 0 : index
      %12 = vector.load %arg7[%c0_10, %c0_11] : memref<2x256xf32, #tpu.memory_space<vmem>>, vector<2x256xf32>
      %c0_12 = arith.constant 0 : index
      %c0_13 = arith.constant 0 : index
      %13 = vector.load %arg5[%c0_12, %c0_13] : memref<1x256xf32, #tpu.memory_space<vmem>>, vector<1x256xf32>
      %14 = vector.broadcast %13 : vector<1x256xf32> to vector<2x256xf32>
      %15 = arith.addf %12, %14 : vector<2x256xf32>
      %cst_14 = arith.constant 0.000000e+00 : f32
      %16 = vector.broadcast %cst_14 : f32 to vector<2x256xf32>
      %17 = arith.cmpf ogt, %15, %16 : vector<2x256xf32>
      %cst_15 = arith.constant 1.000000e-01 : f32
      %18 = vector.broadcast %cst_15 : f32 to vector<2x256xf32>
      %19 = arith.mulf %18, %15 : vector<2x256xf32>
      %20 = arith.select %17, %15, %19 : vector<2x256xi1>, vector<2x256xf32>
      %21 = arith.truncf %20 : vector<2x256xf32> to vector<2x256xbf16>
      %c0_16 = arith.constant 0 : index
      %c0_17 = arith.constant 0 : index
      %22 = vector.load %arg6[%c0_16, %c0_17] : memref<2x256xbf16, #tpu.memory_space<vmem>>, vector<2x256xbf16>
      tpu.vector_store %arg6[%c0_16, %c0_17], %21 {strides = array<i32>} : memref<2x256xbf16, #tpu.memory_space<vmem>>, vector<2x256xbf16>,
    } else {
    }
    return
  }
  func.func @transform_0(%arg0: i32, %arg1: i32, %arg2: i32) -> (i32, i32) {
    %c0_i32 = arith.constant 0 : i32
    return %arg0, %arg2 : i32, i32
  }
  func.func @transform_1(%arg0: i32, %arg1: i32, %arg2: i32) -> (i32, i32) {
    %c0_i32 = arith.constant 0 : i32
    return %arg2, %arg1 : i32, i32
  }
  func.func @transform_2(%arg0: i32, %arg1: i32, %arg2: i32) -> (i32, i32) {
    %c0_i32 = arith.constant 0 : i32
    %c0_i32_0 = arith.constant 0 : i32
    return %c0_i32, %arg1 : i32, i32
  }
  func.func @transform_3(%arg0: i32, %arg1: i32, %arg2: i32) -> (i32, i32) {
    %c0_i32 = arith.constant 0 : i32
    return %arg0, %arg1 : i32, i32
  }
}

module attributes {stable_mosaic.version = 11 : i64} {
  func.func @_conv_block_kernel(%arg0: i32, %arg1: i32, %arg2: i32, %arg3: memref<2x1024xbf16, #tpu.memory_space<vmem>>, %arg4: memref<1024x256xbf16, #tpu.memory_space<vmem>>, %arg5: memref<1x256xf32, #tpu.memory_space<vmem>>, %arg6: memref<2x256xbf16, #tpu.memory_space<vmem>>, %arg7: memref<2x256xf32, #tpu.memory_space<vmem>>) attributes {dimension_semantics = [#tpu.dimension_semantics<parallel>, #tpu.dimension_semantics<parallel>, #tpu.dimension_semantics<arbitrary>], iteration_bounds = array<i64: 1, 2, 1>, scalar_prefetch = 0 : i64, scratch_operands = 1 : i64, tpu.core_type = #tpu.core_type<tc>, window_params = [{transform_indices = @transform_0, window_bounds = array<i64: 2, 1024>}, {transform_indices = @transform_1, window_bounds = array<i64: 1024, 256>}, {transform_indices = @transform_2, window_bounds = array<i64: 1, 256>}, {transform_indices = @transform_3, window_bounds = array<i64: 2, 256>}]} {
    %c0_i32 = arith.constant 0 : i32
    %0 = arith.cmpi eq, %arg2, %c0_i32 : i32
    %1 = arith.extui %0 : i1 to i32
    %c0_i32_0 = arith.constant 0 : i32
    %2 = arith.cmpi ne, %1, %c0_i32_0 : i32
    scf.if %2 {
      %cst_10 = arith.constant 0.000000e+00 : f32
      %12 = vector.broadcast %cst_10 : f32 to vector<2x256xf32>
      %c0_11 = arith.constant 0 : index
      %c0_12 = arith.constant 0 : index
      %13 = vector.load %arg7[%c0_11, %c0_12] : memref<2x256xf32, #tpu.memory_space<vmem>>, vector<2x256xf32>
      tpu.vector_store %arg7[%c0_11, %c0_12], %12 {strides = array<i32>} : memref<2x256xf32, #tpu.memory_space<vmem>>, vector<2x256xf32>,
    } else {
    }
    %c0 = arith.constant 0 : index
    %c0_1 = arith.constant 0 : index
    %3 = vector.load %arg7[%c0, %c0_1] : memref<2x256xf32, #tpu.memory_space<vmem>>, vector<2x256xf32>
    %c0_2 = arith.constant 0 : index
    %c0_3 = arith.constant 0 : index
    %4 = vector.load %arg3[%c0_2, %c0_3] : memref<2x1024xbf16, #tpu.memory_space<vmem>>, vector<2x1024xbf16>
    %c0_4 = arith.constant 0 : index
    %c0_5 = arith.constant 0 : index
    %5 = vector.load %arg4[%c0_4, %c0_5] : memref<1024x256xbf16, #tpu.memory_space<vmem>>, vector<1024x256xbf16>
    %cst = arith.constant dense<0.000000e+00> : vector<2x256xf32>
    %6 = tpu.matmul %4, %5, %cst {dimension_numbers = #tpu.dot_dimension_numbers<[1], [0], [0], [1], [0, 0, 1, 1], [], []>} : vector<2x1024xbf16>, vector<1024x256xbf16>, vector<2x256xf32> -> vector<2x256xf32>
    %7 = arith.addf %3, %6 : vector<2x256xf32>
    %c0_6 = arith.constant 0 : index
    %c0_7 = arith.constant 0 : index
    %8 = vector.load %arg7[%c0_6, %c0_7] : memref<2x256xf32, #tpu.memory_space<vmem>>, vector<2x256xf32>
    tpu.vector_store %arg7[%c0_6, %c0_7], %7 {strides = array<i32>} : memref<2x256xf32, #tpu.memory_space<vmem>>, vector<2x256xf32>,
    %c0_i32_8 = arith.constant 0 : i32
    %9 = arith.cmpi eq, %arg2, %c0_i32_8 : i32
    %10 = arith.extui %9 : i1 to i32
    %c0_i32_9 = arith.constant 0 : i32
    %11 = arith.cmpi ne, %10, %c0_i32_9 : i32
    scf.if %11 {
      %c0_10 = arith.constant 0 : index
      %c0_11 = arith.constant 0 : index
      %12 = vector.load %arg7[%c0_10, %c0_11] : memref<2x256xf32, #tpu.memory_space<vmem>>, vector<2x256xf32>
      %c0_12 = arith.constant 0 : index
      %c0_13 = arith.constant 0 : index
      %13 = vector.load %arg5[%c0_12, %c0_13] : memref<1x256xf32, #tpu.memory_space<vmem>>, vector<1x256xf32>
      %14 = vector.broadcast %13 : vector<1x256xf32> to vector<2x256xf32>
      %15 = arith.addf %12, %14 : vector<2x256xf32>
      %cst_14 = arith.constant 0.000000e+00 : f32
      %16 = vector.broadcast %cst_14 : f32 to vector<2x256xf32>
      %17 = arith.cmpf ogt, %15, %16 : vector<2x256xf32>
      %cst_15 = arith.constant 1.000000e-01 : f32
      %18 = vector.broadcast %cst_15 : f32 to vector<2x256xf32>
      %19 = arith.mulf %18, %15 : vector<2x256xf32>
      %20 = arith.select %17, %15, %19 : vector<2x256xi1>, vector<2x256xf32>
      %21 = arith.truncf %20 : vector<2x256xf32> to vector<2x256xbf16>
      %c0_16 = arith.constant 0 : index
      %c0_17 = arith.constant 0 : index
      %22 = vector.load %arg6[%c0_16, %c0_17] : memref<2x256xbf16, #tpu.memory_space<vmem>>, vector<2x256xbf16>
      tpu.vector_store %arg6[%c0_16, %c0_17], %21 {strides = array<i32>} : memref<2x256xbf16, #tpu.memory_space<vmem>>, vector<2x256xbf16>,
    } else {
    }
    return
  }
  func.func @transform_0(%arg0: i32, %arg1: i32, %arg2: i32) -> (i32, i32) {
    %c0_i32 = arith.constant 0 : i32
    return %arg0, %arg2 : i32, i32
  }
  func.func @transform_1(%arg0: i32, %arg1: i32, %arg2: i32) -> (i32, i32) {
    %c0_i32 = arith.constant 0 : i32
    return %arg2, %arg1 : i32, i32
  }
  func.func @transform_2(%arg0: i32, %arg1: i32, %arg2: i32) -> (i32, i32) {
    %c0_i32 = arith.constant 0 : i32
    %c0_i32_0 = arith.constant 0 : i32
    return %c0_i32, %arg1 : i32, i32
  }
  func.func @transform_3(%arg0: i32, %arg1: i32, %arg2: i32) -> (i32, i32) {
    %c0_i32 = arith.constant 0 : i32
    return %arg0, %arg1 : i32, i32
  }
}

module attributes {stable_mosaic.version = 11 : i64} {
  func.func @_conv_block_kernel(%arg0: i32, %arg1: i32, %arg2: i32, %arg3: memref<2x512xbf16, #tpu.memory_space<vmem>>, %arg4: memref<512x256xbf16, #tpu.memory_space<vmem>>, %arg5: memref<1x256xf32, #tpu.memory_space<vmem>>, %arg6: memref<2x256xbf16, #tpu.memory_space<vmem>>, %arg7: memref<2x256xf32, #tpu.memory_space<vmem>>) attributes {dimension_semantics = [#tpu.dimension_semantics<parallel>, #tpu.dimension_semantics<parallel>, #tpu.dimension_semantics<arbitrary>], iteration_bounds = array<i64: 1, 2, 1>, scalar_prefetch = 0 : i64, scratch_operands = 1 : i64, tpu.core_type = #tpu.core_type<tc>, window_params = [{transform_indices = @transform_0, window_bounds = array<i64: 2, 512>}, {transform_indices = @transform_1, window_bounds = array<i64: 512, 256>}, {transform_indices = @transform_2, window_bounds = array<i64: 1, 256>}, {transform_indices = @transform_3, window_bounds = array<i64: 2, 256>}]} {
    %c0_i32 = arith.constant 0 : i32
    %0 = arith.cmpi eq, %arg2, %c0_i32 : i32
    %1 = arith.extui %0 : i1 to i32
    %c0_i32_0 = arith.constant 0 : i32
    %2 = arith.cmpi ne, %1, %c0_i32_0 : i32
    scf.if %2 {
      %cst_10 = arith.constant 0.000000e+00 : f32
      %12 = vector.broadcast %cst_10 : f32 to vector<2x256xf32>
      %c0_11 = arith.constant 0 : index
      %c0_12 = arith.constant 0 : index
      %13 = vector.load %arg7[%c0_11, %c0_12] : memref<2x256xf32, #tpu.memory_space<vmem>>, vector<2x256xf32>
      tpu.vector_store %arg7[%c0_11, %c0_12], %12 {strides = array<i32>} : memref<2x256xf32, #tpu.memory_space<vmem>>, vector<2x256xf32>,
    } else {
    }
    %c0 = arith.constant 0 : index
    %c0_1 = arith.constant 0 : index
    %3 = vector.load %arg7[%c0, %c0_1] : memref<2x256xf32, #tpu.memory_space<vmem>>, vector<2x256xf32>
    %c0_2 = arith.constant 0 : index
    %c0_3 = arith.constant 0 : index
    %4 = vector.load %arg3[%c0_2, %c0_3] : memref<2x512xbf16, #tpu.memory_space<vmem>>, vector<2x512xbf16>
    %c0_4 = arith.constant 0 : index
    %c0_5 = arith.constant 0 : index
    %5 = vector.load %arg4[%c0_4, %c0_5] : memref<512x256xbf16, #tpu.memory_space<vmem>>, vector<512x256xbf16>
    %cst = arith.constant dense<0.000000e+00> : vector<2x256xf32>
    %6 = tpu.matmul %4, %5, %cst {dimension_numbers = #tpu.dot_dimension_numbers<[1], [0], [0], [1], [0, 0, 1, 1], [], []>} : vector<2x512xbf16>, vector<512x256xbf16>, vector<2x256xf32> -> vector<2x256xf32>
    %7 = arith.addf %3, %6 : vector<2x256xf32>
    %c0_6 = arith.constant 0 : index
    %c0_7 = arith.constant 0 : index
    %8 = vector.load %arg7[%c0_6, %c0_7] : memref<2x256xf32, #tpu.memory_space<vmem>>, vector<2x256xf32>
    tpu.vector_store %arg7[%c0_6, %c0_7], %7 {strides = array<i32>} : memref<2x256xf32, #tpu.memory_space<vmem>>, vector<2x256xf32>,
    %c0_i32_8 = arith.constant 0 : i32
    %9 = arith.cmpi eq, %arg2, %c0_i32_8 : i32
    %10 = arith.extui %9 : i1 to i32
    %c0_i32_9 = arith.constant 0 : i32
    %11 = arith.cmpi ne, %10, %c0_i32_9 : i32
    scf.if %11 {
      %c0_10 = arith.constant 0 : index
      %c0_11 = arith.constant 0 : index
      %12 = vector.load %arg7[%c0_10, %c0_11] : memref<2x256xf32, #tpu.memory_space<vmem>>, vector<2x256xf32>
      %c0_12 = arith.constant 0 : index
      %c0_13 = arith.constant 0 : index
      %13 = vector.load %arg5[%c0_12, %c0_13] : memref<1x256xf32, #tpu.memory_space<vmem>>, vector<1x256xf32>
      %14 = vector.broadcast %13 : vector<1x256xf32> to vector<2x256xf32>
      %15 = arith.addf %12, %14 : vector<2x256xf32>
      %cst_14 = arith.constant 0.000000e+00 : f32
      %16 = vector.broadcast %cst_14 : f32 to vector<2x256xf32>
      %17 = arith.cmpf ogt, %15, %16 : vector<2x256xf32>
      %cst_15 = arith.constant 1.000000e-01 : f32
      %18 = vector.broadcast %cst_15 : f32 to vector<2x256xf32>
      %19 = arith.mulf %18, %15 : vector<2x256xf32>
      %20 = arith.select %17, %15, %19 : vector<2x256xi1>, vector<2x256xf32>
      %21 = arith.truncf %20 : vector<2x256xf32> to vector<2x256xbf16>
      %c0_16 = arith.constant 0 : index
      %c0_17 = arith.constant 0 : index
      %22 = vector.load %arg6[%c0_16, %c0_17] : memref<2x256xbf16, #tpu.memory_space<vmem>>, vector<2x256xbf16>
      tpu.vector_store %arg6[%c0_16, %c0_17], %21 {strides = array<i32>} : memref<2x256xbf16, #tpu.memory_space<vmem>>, vector<2x256xbf16>,
    } else {
    }
    return
  }
  func.func @transform_0(%arg0: i32, %arg1: i32, %arg2: i32) -> (i32, i32) {
    %c0_i32 = arith.constant 0 : i32
    return %arg0, %arg2 : i32, i32
  }
  func.func @transform_1(%arg0: i32, %arg1: i32, %arg2: i32) -> (i32, i32) {
    %c0_i32 = arith.constant 0 : i32
    return %arg2, %arg1 : i32, i32
  }
  func.func @transform_2(%arg0: i32, %arg1: i32, %arg2: i32) -> (i32, i32) {
    %c0_i32 = arith.constant 0 : i32
    %c0_i32_0 = arith.constant 0 : i32
    return %c0_i32, %arg1 : i32, i32
  }
  func.func @transform_3(%arg0: i32, %arg1: i32, %arg2: i32) -> (i32, i32) {
    %c0_i32 = arith.constant 0 : i32
    return %arg0, %arg1 : i32, i32
  }
}

module attributes {stable_mosaic.version = 11 : i64} {
  func.func @_head_kernel(%arg0: i32, %arg1: memref<2x1x512xbf16, #tpu.memory_space<vmem>>, %arg2: memref<512x512xbf16, #tpu.memory_space<vmem>>, %arg3: memref<1x512xf32, #tpu.memory_space<vmem>>, %arg4: memref<512x128xbf16, #tpu.memory_space<vmem>>, %arg5: memref<1x128xf32, #tpu.memory_space<vmem>>, %arg6: memref<2x128xf32, #tpu.memory_space<vmem>>) attributes {dimension_semantics = [#tpu.dimension_semantics<parallel>], iteration_bounds = array<i64: 1>, scalar_prefetch = 0 : i64, scratch_operands = 0 : i64, tpu.core_type = #tpu.core_type<tc>, window_params = [{transform_indices = @transform_0, window_bounds = array<i64: 2, 1, 512>}, {pipeline_mode = #tpu.pipeline_mode<synchronous>, transform_indices = @transform_1, window_bounds = array<i64: 512, 512>}, {pipeline_mode = #tpu.pipeline_mode<synchronous>, transform_indices = @transform_2, window_bounds = array<i64: 1, 512>}, {pipeline_mode = #tpu.pipeline_mode<synchronous>, transform_indices = @transform_3, window_bounds = array<i64: 512, 128>}, {pipeline_mode = #tpu.pipeline_mode<synchronous>, transform_indices = @transform_4, window_bounds = array<i64: 1, 128>}, {transform_indices = @transform_5, window_bounds = array<i64: 2, 128>}]} {
    %c0 = arith.constant 0 : index
    %c0_0 = arith.constant 0 : index
    %c0_1 = arith.constant 0 : index
    %0 = vector.load %arg1[%c0, %c0_0, %c0_1] : memref<2x1x512xbf16, #tpu.memory_space<vmem>>, vector<2x1x512xbf16>
    %1 = arith.extf %0 : vector<2x1x512xbf16> to vector<2x1x512xf32>
    %cst = arith.constant dense<0.000000e+00> : vector<2x512xf32>
    %2 = vector.multi_reduction <add>, %1, %cst [1] : vector<2x1x512xf32> to vector<2x512xf32>
    %cst_2 = arith.constant 1.000000e+00 : f32
    %3 = vector.broadcast %cst_2 : f32 to vector<2x512xf32>
    %4 = arith.mulf %2, %3 : vector<2x512xf32>
    %5 = arith.truncf %4 : vector<2x512xf32> to vector<2x512xbf16>
    %c0_3 = arith.constant 0 : index
    %c0_4 = arith.constant 0 : index
    %6 = vector.load %arg2[%c0_3, %c0_4] : memref<512x512xbf16, #tpu.memory_space<vmem>>, vector<512x512xbf16>
    %cst_5 = arith.constant dense<0.000000e+00> : vector<2x512xf32>
    %7 = tpu.matmul %5, %6, %cst_5 {dimension_numbers = #tpu.dot_dimension_numbers<[1], [0], [0], [1], [0, 0, 1, 1], [], []>} : vector<2x512xbf16>, vector<512x512xbf16>, vector<2x512xf32> -> vector<2x512xf32>
    %c0_6 = arith.constant 0 : index
    %c0_7 = arith.constant 0 : index
    %8 = vector.load %arg3[%c0_6, %c0_7] : memref<1x512xf32, #tpu.memory_space<vmem>>, vector<1x512xf32>
    %9 = vector.broadcast %8 : vector<1x512xf32> to vector<2x512xf32>
    %10 = arith.addf %7, %9 : vector<2x512xf32>
    %cst_8 = arith.constant 0.000000e+00 : f32
    %11 = vector.broadcast %cst_8 : f32 to vector<2x512xf32>
    %12 = arith.cmpf ogt, %10, %11 : vector<2x512xf32>
    %cst_9 = arith.constant 1.000000e-01 : f32
    %13 = vector.broadcast %cst_9 : f32 to vector<2x512xf32>
    %14 = arith.mulf %13, %10 : vector<2x512xf32>
    %15 = arith.select %12, %10, %14 : vector<2x512xi1>, vector<2x512xf32>
    %16 = arith.truncf %15 : vector<2x512xf32> to vector<2x512xbf16>
    %c0_10 = arith.constant 0 : index
    %c0_11 = arith.constant 0 : index
    %17 = vector.load %arg4[%c0_10, %c0_11] : memref<512x128xbf16, #tpu.memory_space<vmem>>, vector<512x128xbf16>
    %cst_12 = arith.constant dense<0.000000e+00> : vector<2x128xf32>
    %18 = tpu.matmul %16, %17, %cst_12 {dimension_numbers = #tpu.dot_dimension_numbers<[1], [0], [0], [1], [0, 0, 1, 1], [], []>} : vector<2x512xbf16>, vector<512x128xbf16>, vector<2x128xf32> -> vector<2x128xf32>
    %c0_13 = arith.constant 0 : index
    %c0_14 = arith.constant 0 : index
    %19 = vector.load %arg5[%c0_13, %c0_14] : memref<1x128xf32, #tpu.memory_space<vmem>>, vector<1x128xf32>
    %20 = vector.broadcast %19 : vector<1x128xf32> to vector<2x128xf32>
    %21 = arith.addf %18, %20 : vector<2x128xf32>
    %c0_15 = arith.constant 0 : index
    %c0_16 = arith.constant 0 : index
    %22 = vector.load %arg6[%c0_15, %c0_16] : memref<2x128xf32, #tpu.memory_space<vmem>>, vector<2x128xf32>
    tpu.vector_store %arg6[%c0_15, %c0_16], %21 {strides = array<i32>} : memref<2x128xf32, #tpu.memory_space<vmem>>, vector<2x128xf32>,
    return
  }
  func.func @transform_0(%arg0: i32) -> (i32, i32, i32) {
    %c0_i32 = arith.constant 0 : i32
    %c0_i32_0 = arith.constant 0 : i32
    %c0_i32_1 = arith.constant 0 : i32
    return %arg0, %c0_i32, %c0_i32_0 : i32, i32, i32
  }
  func.func @transform_1(%arg0: i32) -> (i32, i32) {
    %c0_i32 = arith.constant 0 : i32
    %c0_i32_0 = arith.constant 0 : i32
    %c0_i32_1 = arith.constant 0 : i32
    return %c0_i32, %c0_i32_0 : i32, i32
  }
  func.func @transform_2(%arg0: i32) -> (i32, i32) {
    %c0_i32 = arith.constant 0 : i32
    %c0_i32_0 = arith.constant 0 : i32
    %c0_i32_1 = arith.constant 0 : i32
    return %c0_i32, %c0_i32_0 : i32, i32
  }
  func.func @transform_3(%arg0: i32) -> (i32, i32) {
    %c0_i32 = arith.constant 0 : i32
    %c0_i32_0 = arith.constant 0 : i32
    %c0_i32_1 = arith.constant 0 : i32
    return %c0_i32, %c0_i32_0 : i32, i32
  }
  func.func @transform_4(%arg0: i32) -> (i32, i32) {
    %c0_i32 = arith.constant 0 : i32
    %c0_i32_0 = arith.constant 0 : i32
    %c0_i32_1 = arith.constant 0 : i32
    return %c0_i32, %c0_i32_0 : i32, i32
  }
  func.func @transform_5(%arg0: i32) -> (i32, i32) {
    %c0_i32 = arith.constant 0 : i32
    %c0_i32_0 = arith.constant 0 : i32
    return %arg0, %c0_i32 : i32, i32
  }
}

</mosaic_0001>

<bundles_post_ra>
// kernel: simple_10cnn_forward.11
= control target key start
LH: loop header
LB: loop body
LE: loop exit
PB: predicated region body
PF: predicated region fallthrough
CT: control target
= control target key end

     0   :  { %s2337_s12 = smov 0   ;;  %s2339_s13 = smov 0   ;;  %s2984_s0 = inlined_call_operand.vmem [shape: bf16[2048,27], index: 0, kind: input, shape index: {}]   ;;  %s2985_s1 = inlined_call_operand.vmem [shape: bf16[27,16], index: 1, kind: input, shape index: {}]   ;;  %s2986_s2 = inlined_call_operand.vmem [shape: f32[1,16], index: 2, kind: input, shape index: {}]   ;;  %s2987_s3 = inlined_call_operand.vmem [shape: bf16[2048,16], index: 3, kind: output, shape index: {}]  }
   0x1   :  { %s2341_s14 = smov 0  }
   0x2 LB: > { %s32_s15 = sadd.s32 1, %s2309_s13  ;;  %p1922_p0 = scmp.ge.s32.totalorder %s2313_s14, 1  ;;  %s2313_s14 = sphi %s2341_s14, %s13_s14   ;;  %s2309_s13 = sphi %s2339_s13, %s2990_s13   ;;  %s2305_s12 = sphi %s2337_s12, %s2989_s12  }
   0x3   : > { %p34_p1 = scmp.ge.s32.totalorder %s32_s15, 4  ;;  %p188_p2 = scmp.lt.s32.totalorder %s2313_s14, 5 }
   0x5   : > { %s2992_s15 = smov (%p34_p1, %s32_s15), 0  ;;  %p189_p3 = pnand %p1922_p0, %p188_p2 }
   0x6   : > { %v2256_v0 = vld [vmem:[%s2985_s1] sm:$0xff] (!%p189_p3)   ;;  %vm729_vm0 = vcmask (!%p189_p3), 1044480   ;;  %v2363_v1 = vld [vmem:[%s2985_s1 + $0x8] sm:$0x3f] (!%p189_p3)   ;;  %vm730_vm1 = vcmask (!%p189_p3), 1045504   ;;  %s1923_s20 = sshll.u32 (!%p189_p3), %s2305_s12, 6 }
   0x7   : > { %192 = sbr.rel (%p189_p3) target bundleno = 346 (0x15a), region = 32  ;;  %2158 = vmatprep.subr.bf16.mxu0 (!%p189_p3), %v2256_v0  ;;  %2226 = vmatprep.subr.bf16.mxu1 (!%p189_p3), %v2256_v0  ;;  %vm264_vm2 = vcmask (!%p189_p3), 130048   ;;  %v2315_v2 = vmov (!%p189_p3), 65535   ;;  %p2368_p4 = scmp.lt.s32.totalorder (!%p189_p3), %s1923_s20, 255  ;;  %v2316_v5 = vmov (!%p189_p3), 0.0   ;;  %vm632_vm3 = vcmask (!%p189_p3), 220160  }
   0x8   : > { %2159 = vmatpush3.bf16.msra.mxu0 (!%p189_p3), %v2256_v0  ;;  %2228 = vmatpush3.bf16.msra.mxu1 (!%p189_p3), %v2256_v0  ;;  %v731_v3 = vsel (!%p189_p3), %vm729_vm0, 4294967295, %v2315_v2  ;;  %267 = vst.msk [vmem:[#allocation2 + $0x10] sm:$0xff] (!%p189_p3), %vm264_vm2, %v2316_v5  ;;  %265 = vst.msk [vmem:[#allocation2] sm:$0xff] (!%p189_p3), %vm264_vm2, %v2316_v5  ;;  %v2593_v2 = vld [vmem:[%s2986_s2] ss:$0 sm:$0xff] (!%p189_p3)  ;;  %vm1740_vm4 = vcmask (!%p189_p3), 125952  }
   0x9   : > { %v2372_v4 = vsel (!%p189_p3), %vm730_vm1, %v731_v3, 0  ;;  %266 = vst.msk [vmem:[#allocation2 + $0x8] sm:$0xff] (!%p189_p3), %vm264_vm2, %v2316_v5  ;;  %268 = vst.msk [vmem:[#allocation2 + $0x18] sm:$0xff] (!%p189_p3), %vm264_vm2, %v2316_v5 }
   0xa   : > { %269 = vst.msk [vmem:[#allocation2 + $0x20] sm:$0xff] (!%p189_p3), %vm264_vm2, %v2316_v5  ;;  %270 = vst.msk [vmem:[#allocation2 + $0x28] sm:$0xff] (!%p189_p3), %vm264_vm2, %v2316_v5  ;;  %v734_v6 = vand.u32 (!%p189_p3), %v2363_v1, %v2372_v4 }
   0xb   : > { %271 = vst.msk [vmem:[#allocation2 + $0x30] sm:$0xff] (!%p189_p3), %vm264_vm2, %v2316_v5  ;;  %272 = vst.msk [vmem:[#allocation2 + $0x38] sm:$0xff] (!%p189_p3), %vm264_vm2, %v2316_v5 }
   0xc   : > { %273 = vst.msk [vmem:[#allocation2 + $0x40] sm:$0xff] (!%p189_p3), %vm264_vm2, %v2316_v5  ;;  %274 = vst.msk [vmem:[#allocation2 + $0x48] sm:$0xff] (!%p189_p3), %vm264_vm2, %v2316_v5  ;;  %2160 = vmatprep.subr.bf16.mxu0 (!%p189_p3), %v734_v6  ;;  %2227 = vmatprep.subr.bf16.mxu1 (!%p189_p3), %v734_v6 }
   0xd   : > { %275 = vst.msk [vmem:[#allocation2 + $0x50] sm:$0xff] (!%p189_p3), %vm264_vm2, %v2316_v5  ;;  %276 = vst.msk [vmem:[#allocation2 + $0x58] sm:$0xff] (!%p189_p3), %vm264_vm2, %v2316_v5  ;;  %2161 = vmatpush3.bf16.msra.mxu0 (!%p189_p3), %v734_v6  ;;  %2229 = vmatpush3.bf16.msra.mxu1 (!%p189_p3), %v734_v6 }
   0xe   : > { %277 = vst.msk [vmem:[#allocation2 + $0x60] sm:$0xff] %vm264_vm2, %v2316_v5  ;;  %278 = vst.msk [vmem:[#allocation2 + $0x68] sm:$0xff] %vm264_vm2, %v2316_v5  ;;  %s2994_s20 = smov (!%p2368_p4, %s1923_s20), 255 }
   0xf   : > { %279 = vst.msk [vmem:[#allocation2 + $0x70] sm:$0xff] %vm264_vm2, %v2316_v5  ;;  %280 = vst.msk [vmem:[#allocation2 + $0x78] sm:$0xff] %vm264_vm2, %v2316_v5  ;;  %s1924_s22 = sshll.u32 %s2994_s20, 2  ;;  %v331_v39 = vld [vmem:[#allocation2 + $0x10] sm:$0xff]  ;;  %v329_v41 = vld [vmem:[#allocation2] sm:$0xff] }
  0x10   : > { %281 = vst.msk [vmem:[#allocation2 + $0x80] sm:$0xff] %vm264_vm2, %v2316_v5  ;;  %282 = vst.msk [vmem:[#allocation2 + $0x88] sm:$0xff] %vm264_vm2, %v2316_v5  ;;  %s2516_s25 = scalar_lea.vmem %s2984_s0, %s1924_s22  ;;  %v332_v44 = vld [vmem:[#allocation2 + $0x18] sm:$0xff]  ;;  %v330_v49 = vld [vmem:[#allocation2 + $0x8] sm:$0xff]  ;;  %s2614_s30 = scalar_lea.vmem %s2987_s3, %s1924_s22 }
  0x11   : > { %283 = vst.msk [vmem:[#allocation2 + $0x90] sm:$0xff] %vm264_vm2, %v2316_v5  ;;  %284 = vst.msk [vmem:[#allocation2 + $0x98] sm:$0xff] %vm264_vm2, %v2316_v5  ;;  %v2258_v7 = vld [vmem:[%s2516_s25] sm:$0xff]   ;;  %v2260_v9 = vld [vmem:[%s2516_s25 + $0x8] sm:$0xff]  }
  0x12   : > { %285 = vst.msk [vmem:[#allocation2 + $0xa0] sm:$0xff] %vm264_vm2, %v2316_v5  ;;  %286 = vst.msk [vmem:[#allocation2 + $0xa8] sm:$0xff] %vm264_vm2, %v2316_v5  ;;  %v2259_v8 = vld [vmem:[%s2516_s25 + $0x80] sm:$0xff]   ;;  %2162 = vmatprep.mubr.msk.bf16.mxu0 %vm632_vm3, %v2258_v7  ;;  %v2261_v10 = vld [vmem:[%s2516_s25 + $0x88] sm:$0xff]  }
  0x13   : > { %287 = vst.msk [vmem:[#allocation2 + $0xb0] sm:$0xff] %vm264_vm2, %v2316_v5  ;;  %288 = vst.msk [vmem:[#allocation2 + $0xb8] sm:$0xff] %vm264_vm2, %v2316_v5  ;;  %2194 = vmatprep.mubr.msk.bf16.mxu1 %vm632_vm3, %v2259_v8  ;;  %2163 = vmatmul.mubr.msk.bf16.vlgmr.msra.gmra.mrb[0].mxu0 %vm632_vm3, %v2260_v9  ;;  %v2262_v11 = vld [vmem:[%s2516_s25 + $0x10] sm:$0xff]   ;;  %v2264_v13 = vld [vmem:[%s2516_s25 + $0x18] sm:$0xff]  }
  0x14   : > { %289 = vst.msk [vmem:[#allocation2 + $0xc0] sm:$0xff] %vm264_vm2, %v2316_v5  ;;  %290 = vst.msk [vmem:[#allocation2 + $0xc8] sm:$0xff] %vm264_vm2, %v2316_v5  ;;  %2195 = vmatmul.mubr.msk.bf16.vlgmr.msra.gmra.mrb[0].mxu1 %vm632_vm3, %v2261_v10  ;;  %v2263_v12 = vld [vmem:[%s2516_s25 + $0x90] sm:$0xff]   ;;  %2166 = vmatprep.mubr.msk.bf16.mxu0 %vm632_vm3, %v2262_v11  ;;  %v2265_v14 = vld [vmem:[%s2516_s25 + $0x98] sm:$0xff]  }
  0x15   : > { %291 = vst.msk [vmem:[#allocation2 + $0xd0] sm:$0xff] %vm264_vm2, %v2316_v5  ;;  %292 = vst.msk [vmem:[#allocation2 + $0xd8] sm:$0xff] %vm264_vm2, %v2316_v5  ;;  %2198 = vmatprep.mubr.msk.bf16.mxu1 %vm632_vm3, %v2263_v12  ;;  %v2266_v15 = vld [vmem:[%s2516_s25 + $0x20] sm:$0xff]   ;;  %v2268_v17 = vld [vmem:[%s2516_s25 + $0x28] sm:$0xff]  }
  0x16   : > { %293 = vst.msk [vmem:[#allocation2 + $0xe0] sm:$0xff] %vm264_vm2, %v2316_v5  ;;  %294 = vst.msk [vmem:[#allocation2 + $0xe8] sm:$0xff] %vm264_vm2, %v2316_v5  ;;  %v2267_v16 = vld [vmem:[%s2516_s25 + $0xa0] sm:$0xff]   ;;  %v2269_v18 = vld [vmem:[%s2516_s25 + $0xa8] sm:$0xff]  }
  0x17   : > { %295 = vst.msk [vmem:[#allocation2 + $0xf0] sm:$0xff] %vm264_vm2, %v2316_v5  ;;  %296 = vst.msk [vmem:[#allocation2 + $0xf8] sm:$0xff] %vm264_vm2, %v2316_v5  ;;  %v2270_v19 = vld [vmem:[%s2516_s25 + $0x30] sm:$0xff]   ;;  %v2272_v21 = vld [vmem:[%s2516_s25 + $0x38] sm:$0xff]  }
  0x18   : > { %297 = vst.msk [vmem:[#allocation2 + $0x100] sm:$0xff] %vm264_vm2, %v2316_v5  ;;  %298 = vst.msk [vmem:[#allocation2 + $0x108] sm:$0xff] %vm264_vm2, %v2316_v5  ;;  %v2271_v20 = vld [vmem:[%s2516_s25 + $0xb0] sm:$0xff]   ;;  %v2273_v22 = vld [vmem:[%s2516_s25 + $0xb8] sm:$0xff]  }
  0x19   : > { %299 = vst.msk [vmem:[#allocation2 + $0x110] sm:$0xff] %vm264_vm2, %v2316_v5  ;;  %300 = vst.msk [vmem:[#allocation2 + $0x118] sm:$0xff] %vm264_vm2, %v2316_v5  ;;  %v2274_v23 = vld [vmem:[%s2516_s25 + $0x40] sm:$0xff]   ;;  %v2276_v25 = vld [vmem:[%s2516_s25 + $0x48] sm:$0xff]  }
  0x1a   : > { %301 = vst.msk [vmem:[#allocation2 + $0x120] sm:$0xff] %vm264_vm2, %v2316_v5  ;;  %302 = vst.msk [vmem:[#allocation2 + $0x128] sm:$0xff] %vm264_vm2, %v2316_v5  ;;  %v2275_v24 = vld [vmem:[%s2516_s25 + $0xc0] sm:$0xff]   ;;  %v2277_v26 = vld [vmem:[%s2516_s25 + $0xc8] sm:$0xff]  }
  0x1b   : > { %303 = vst.msk [vmem:[#allocation2 + $0x130] sm:$0xff] %vm264_vm2, %v2316_v5  ;;  %304 = vst.msk [vmem:[#allocation2 + $0x138] sm:$0xff] %vm264_vm2, %v2316_v5  ;;  %2167 = vmatmul.mubr.msk.bf16.gmra.mrb[4].mxu0 %vm632_vm3, %v2264_v13  ;;  %v2278_v27 = vld [vmem:[%s2516_s25 + $0x50] sm:$0xff]   ;;  %v2280_v29 = vld [vmem:[%s2516_s25 + $0x58] sm:$0xff]  }
  0x1c   : > { %305 = vst.msk [vmem:[#allocation2 + $0x140] sm:$0xff] %vm264_vm2, %v2316_v5  ;;  %306 = vst.msk [vmem:[#allocation2 + $0x148] sm:$0xff] %vm264_vm2, %v2316_v5  ;;  %2199 = vmatmul.mubr.msk.bf16.gmra.mrb[4].mxu1 %vm632_vm3, %v2265_v14  ;;  %2170 = vmatprep.mubr.msk.bf16.mxu0 %vm632_vm3, %v2266_v15  ;;  %v2279_v28 = vld [vmem:[%s2516_s25 + $0xd0] sm:$0xff]   ;;  %v2281_v30 = vld [vmem:[%s2516_s25 + $0xd8] sm:$0xff]  }
  0x1d   : > { %307 = vst.msk [vmem:[#allocation2 + $0x150] sm:$0xff] %vm264_vm2, %v2316_v5  ;;  %308 = vst.msk [vmem:[#allocation2 + $0x158] sm:$0xff] %vm264_vm2, %v2316_v5  ;;  %2202 = vmatprep.mubr.msk.bf16.mxu1 %vm632_vm3, %v2267_v16  ;;  %v2282_v31 = vld [vmem:[%s2516_s25 + $0x60] sm:$0xff]   ;;  %v2284_v33 = vld [vmem:[%s2516_s25 + $0x68] sm:$0xff]  }
  0x1e   : > { %309 = vst.msk [vmem:[#allocation2 + $0x160] sm:$0xff] %vm264_vm2, %v2316_v5  ;;  %310 = vst.msk [vmem:[#allocation2 + $0x168] sm:$0xff] %vm264_vm2, %v2316_v5  ;;  %v2283_v32 = vld [vmem:[%s2516_s25 + $0xe0] sm:$0xff]   ;;  %v2285_v34 = vld [vmem:[%s2516_s25 + $0xe8] sm:$0xff]  }
  0x1f   : > { %311 = vst.msk [vmem:[#allocation2 + $0x170] sm:$0xff] %vm264_vm2, %v2316_v5  ;;  %312 = vst.msk [vmem:[#allocation2 + $0x178] sm:$0xff] %vm264_vm2, %v2316_v5  ;;  %v2286_v35 = vld [vmem:[%s2516_s25 + $0x70] sm:$0xff]   ;;  %v2288_v37 = vld [vmem:[%s2516_s25 + $0x78] sm:$0xff]  }
  0x20   : > { %313 = vst.msk [vmem:[#allocation2 + $0x180] sm:$0xff] %vm264_vm2, %v2316_v5  ;;  %314 = vst.msk [vmem:[#allocation2 + $0x188] sm:$0xff] %vm264_vm2, %v2316_v5  ;;  %v2287_v36 = vld [vmem:[%s2516_s25 + $0xf0] sm:$0xff]   ;;  %v2289_v38 = vld [vmem:[%s2516_s25 + $0xf8] sm:$0xff]  }
  0x21   : > { %315 = vst.msk [vmem:[#allocation2 + $0x190] sm:$0xff] %vm264_vm2, %v2316_v5  ;;  %316 = vst.msk [vmem:[#allocation2 + $0x198] sm:$0xff] %vm264_vm2, %v2316_v5  ;;  %v363_v40 = vld [vmem:[#allocation2 + $0x110] sm:$0xff]  ;;  %v361_v43 = vld [vmem:[#allocation2 + $0x100] sm:$0xff] }
  0x22   : > { %317 = vst.msk [vmem:[#allocation2 + $0x1a0] sm:$0xff] %vm264_vm2, %v2316_v5  ;;  %318 = vst.msk [vmem:[#allocation2 + $0x1a8] sm:$0xff] %vm264_vm2, %v2316_v5  ;;  %v364_v48 = vld [vmem:[#allocation2 + $0x118] sm:$0xff]  ;;  %v362_v54 = vld [vmem:[#allocation2 + $0x108] sm:$0xff] }
  0x23   : > { %319 = vst.msk [vmem:[#allocation2 + $0x1b0] sm:$0xff] %vm264_vm2, %v2316_v5  ;;  %320 = vst.msk [vmem:[#allocation2 + $0x1b8] sm:$0xff] %vm264_vm2, %v2316_v5  ;;  %2171 = vmatmul.mubr.msk.bf16.gmra.mrb[8].mxu0 %vm632_vm3, %v2268_v17  ;;  %v335_v63 = vld [vmem:[#allocation2 + $0x30] sm:$0xff]  ;;  %v333_v1 = vld [vmem:[#allocation2 + $0x20] sm:$0xff] }
  0x24   : > { %321 = vst.msk [vmem:[#allocation2 + $0x1c0] sm:$0xff] %vm264_vm2, %v2316_v5  ;;  %322 = vst.msk [vmem:[#allocation2 + $0x1c8] sm:$0xff] %vm264_vm2, %v2316_v5  ;;  %2203 = vmatmul.mubr.msk.bf16.gmra.mrb[8].mxu1 %vm632_vm3, %v2269_v18  ;;  %2174 = vmatprep.mubr.msk.bf16.mxu0 %vm632_vm3, %v2270_v19  ;;  %v367_v0 = vld [vmem:[#allocation2 + $0x130] sm:$0xff]  ;;  %v365_v4 = vld [vmem:[#allocation2 + $0x120] sm:$0xff] }
  0x25   : > { %323 = vst.msk [vmem:[#allocation2 + $0x1d0] sm:$0xff] %vm264_vm2, %v2316_v5  ;;  %324 = vst.msk [vmem:[#allocation2 + $0x1d8] sm:$0xff] %vm264_vm2, %v2316_v5  ;;  %2206 = vmatprep.mubr.msk.bf16.mxu1 %vm632_vm3, %v2271_v20  ;;  %v368_v9 = vld [vmem:[#allocation2 + $0x138] sm:$0xff]  ;;  %v334_v10 = vld [vmem:[#allocation2 + $0x28] sm:$0xff] }
  0x26   : > { %325 = vst.msk [vmem:[#allocation2 + $0x1e0] sm:$0xff] %vm264_vm2, %v2316_v5  ;;  %326 = vst.msk [vmem:[#allocation2 + $0x1e8] sm:$0xff] %vm264_vm2, %v2316_v5 }
  0x27   : > { %327 = vst.msk [vmem:[#allocation2 + $0x1f0] sm:$0xff] %vm264_vm2, %v2316_v5  ;;  %328 = vst.msk [vmem:[#allocation2 + $0x1f8] sm:$0xff] %vm264_vm2, %v2316_v5  ;;  %v336_v5 = vld [vmem:[#allocation2 + $0x38] sm:$0xff] }
  0x2b   : > { %2175 = vmatmul.mubr.msk.bf16.gmra.mrb[12].mxu0 %vm632_vm3, %v2272_v21 }
  0x2c   : > { %2207 = vmatmul.mubr.msk.bf16.gmra.mrb[12].mxu1 %vm632_vm3, %v2273_v22  ;;  %2178 = vmatprep.mubr.msk.bf16.mxu0 %vm632_vm3, %v2274_v23 }
  0x2d   : > { %2210 = vmatprep.mubr.msk.bf16.mxu1 %vm632_vm3, %v2275_v24 }
  0x33   : > { %2179 = vmatmul.mubr.msk.bf16.gmra.mrb[16].mxu0 %vm632_vm3, %v2276_v25 }
  0x34   : > { %2211 = vmatmul.mubr.msk.bf16.gmra.mrb[16].mxu1 %vm632_vm3, %v2277_v26  ;;  %2182 = vmatprep.mubr.msk.bf16.mxu0 %vm632_vm3, %v2278_v27 }
  0x35   : > { %2214 = vmatprep.mubr.msk.bf16.mxu1 %vm632_vm3, %v2279_v28 }
  0x3b   : > { %2183 = vmatmul.mubr.msk.bf16.gmra.mrb[20].mxu0 %vm632_vm3, %v2280_v29 }
  0x3c   : > { %2215 = vmatmul.mubr.msk.bf16.gmra.mrb[20].mxu1 %vm632_vm3, %v2281_v30  ;;  %2186 = vmatprep.mubr.msk.bf16.mxu0 %vm632_vm3, %v2282_v31 }
  0x3d   : > { %2218 = vmatprep.mubr.msk.bf16.mxu1 %vm632_vm3, %v2283_v32 }
  0x43   : > { %2187 = vmatmul.mubr.msk.bf16.gmra.mrb[24].mxu0 %vm632_vm3, %v2284_v33 }
  0x44   : > { %2219 = vmatmul.mubr.msk.bf16.gmra.mrb[24].mxu1 %vm632_vm3, %v2285_v34  ;;  %2190 = vmatprep.mubr.msk.bf16.mxu0 %vm632_vm3, %v2286_v35 }
  0x45   : > { %2222 = vmatprep.mubr.msk.bf16.mxu1 %vm632_vm3, %v2287_v36 }
  0x4b   : > { %2191 = vmatmul.mubr.msk.bf16.gmra.mrb[28].mxu0 %vm632_vm3, %v2288_v37 }
  0x4c   : > { %2223 = vmatmul.mubr.msk.bf16.gmra.mrb[28].mxu1 %vm632_vm3, %v2289_v38 }
  0xe6   : > { %v2164_v42 = vpop.f32.mrb[0].mxu0 }
  0xe7   : > { %v1027_v45 = vadd.f32 %v2164_v42, %v331_v39  ;;  %v2196_v46 = vpop.f32.mrb[0].mxu1  ;;  %v770_v47 = vpop.f32.mrb[1].mxu0 }
  0xe8   : > { %v1059_v50 = vadd.f32 %v2196_v46, %v363_v40  ;;  %v1025_v51 = vadd.f32 %v770_v47, %v329_v41  ;;  %v898_v52 = vpop.f32.mrb[1].mxu1  ;;  %v2165_v53 = vpop.f32.mrb[2].mxu0 }
  0xe9   : > { %1092 = vst.msk [vmem:[#allocation2 + $0x10] sm:$0xff] %vm264_vm2, %v1027_v45  ;;  %v1057_v55 = vadd.f32 %v898_v52, %v361_v43  ;;  %v1028_v56 = vadd.f32 %v2165_v53, %v332_v44  ;;  %v2197_v57 = vpop.f32.mrb[2].mxu1  ;;  %v773_v58 = vpop.f32.mrb[3].mxu0 }
  0xea   : > { %1124 = vst.msk [vmem:[#allocation2 + $0x110] sm:$0xff] %vm264_vm2, %v1059_v50  ;;  %1090 = vst.msk [vmem:[#allocation2] sm:$0xff] %vm264_vm2, %v1025_v51  ;;  %v1060_v59 = vadd.f32 %v2197_v57, %v364_v48  ;;  %v1026_v60 = vadd.f32 %v773_v58, %v330_v49  ;;  %v901_v61 = vpop.f32.mrb[3].mxu1 }
  0xeb   : > { %1122 = vst.msk [vmem:[#allocation2 + $0x100] sm:$0xff] %vm264_vm2, %v1057_v55  ;;  %1093 = vst.msk [vmem:[#allocation2 + $0x18] sm:$0xff] %vm264_vm2, %v1028_v56  ;;  %v1058_v62 = vadd.f32 %v901_v61, %v362_v54 }
  0xec   : > { %1125 = vst.msk [vmem:[#allocation2 + $0x118] sm:$0xff] %vm264_vm2, %v1060_v59  ;;  %1091 = vst.msk [vmem:[#allocation2 + $0x8] sm:$0xff] %vm264_vm2, %v1026_v60 }
  0xed   : > { %1123 = vst.msk [vmem:[#allocation2 + $0x108] sm:$0xff] %vm264_vm2, %v1058_v62 }
  0xee   : > { %v2168_v3 = vpop.f32.mrb[4].mxu0 }
  0xef   : > { %v1031_v6 = vadd.f32 %v2168_v3, %v335_v63  ;;  %v2200_v7 = vpop.f32.mrb[4].mxu1  ;;  %v786_v8 = vpop.f32.mrb[5].mxu0 }
  0xf0   : > { %v1159_v11 = vld [vmem:[#allocation2 + $0x10] sm:$0xff]  ;;  %v1063_v12 = vadd.f32 %v2200_v7, %v367_v0  ;;  %v1029_v13 = vadd.f32 %v786_v8, %v333_v1  ;;  %v914_v14 = vpop.f32.mrb[5].mxu1  ;;  %v2169_v15 = vpop.f32.mrb[6].mxu0 }
  0xf1   : > { %v1230_v16 = vadd.f32 %v2593_v2, %v1159_v11  ;;  %v1191_v17 = vld [vmem:[#allocation2 + $0x110] sm:$0xff]  ;;  %v1157_v18 = vld [vmem:[#allocation2] sm:$0xff]  ;;  %1096 = vst.msk [vmem:[#allocation2 + $0x30] sm:$0xff] %vm264_vm2, %v1031_v6  ;;  %v1061_v19 = vadd.f32 %v914_v14, %v365_v4  ;;  %v1032_v20 = vadd.f32 %v2169_v15, %v336_v5  ;;  %v2201_v21 = vpop.f32.mrb[6].mxu1  ;;  %v789_v22 = vpop.f32.mrb[7].mxu0 }
  0xf2   : > { %v1262_v23 = vadd.f32 %v2593_v2, %v1191_v17  ;;  %v1228_v24 = vadd.f32 %v2593_v2, %v1157_v18  ;;  %v1189_v25 = vld [vmem:[#allocation2 + $0x100] sm:$0xff]  ;;  %v1160_v26 = vld [vmem:[#allocation2 + $0x18] sm:$0xff]  ;;  %1128 = vst.msk [vmem:[#allocation2 + $0x130] sm:$0xff] %vm264_vm2, %v1063_v12  ;;  %1094 = vst.msk [vmem:[#allocation2 + $0x20] sm:$0xff] %vm264_vm2, %v1029_v13  ;;  %v1064_v27 = vadd.f32 %v2201_v21, %v368_v9  ;;  %v2601_v29 = vpop.f32.mrb[7].mxu1 }
  0xf3   : > { %v1030_v28 = vadd.f32 %v789_v22, %v334_v10  ;;  %vm1294_vm5 = vcmp.gt.f32.partialorder %v1230_v16, 0.0  ;;  %v1358_v30 = vmul.f32 0.1, %v1230_v16  ;;  %v1260_v31 = vadd.f32 %v2593_v2, %v1189_v25  ;;  %v1192_v33 = vld [vmem:[#allocation2 + $0x118] sm:$0xff]  ;;  %1126 = vst.msk [vmem:[#allocation2 + $0x120] sm:$0xff] %vm264_vm2, %v1061_v19  ;;  %1097 = vst.msk [vmem:[#allocation2 + $0x38] sm:$0xff] %vm264_vm2, %v1032_v20 }
  0xf4   : > { %v1231_v32 = vadd.f32 %v2593_v2, %v1160_v26  ;;  %vm1326_vm6 = vcmp.gt.f32.partialorder %v1262_v23, 0.0  ;;  %v1390_v34 = vmul.f32 0.1, %v1262_v23  ;;  %vm1292_vm7 = vcmp.gt.f32.partialorder %v1228_v24, 0.0  ;;  %1129 = vst.msk [vmem:[#allocation2 + $0x138] sm:$0xff] %vm264_vm2, %v1064_v27  ;;  %v1158_v38 = vld [vmem:[#allocation2 + $0x8] sm:$0xff] }
  0xf5   : > { %v1356_v35 = vmul.f32 0.1, %v1228_v24  ;;  %1095 = vst.msk [vmem:[#allocation2 + $0x28] sm:$0xff] %vm264_vm2, %v1030_v28  ;;  %v1422_v36 = vsel %vm1294_vm5, %v1230_v16, %v1358_v30  ;;  %vm1324_vm8 = vcmp.gt.f32.partialorder %v1260_v31, 0.0  ;;  %v1388_v37 = vmul.f32 0.1, %v1260_v31 }
  0xf6   : > { %vm1295_vm9 = vcmp.gt.f32.partialorder %v1231_v32, 0.0  ;;  %v1190_v39 = vld [vmem:[#allocation2 + $0x108] sm:$0xff]  ;;  %v2062_v40 = vpack.c.bf16 %v1422_v36, %v1422_v36  ;;  %v1454_v41 = vsel %vm1326_vm6, %v1262_v23, %v1390_v34  ;;  %v1359_v43 = vmul.f32 0.1, %v1231_v32  ;;  %v2616_v44 = vpop.f32.mrb[8].mxu0  ;;  %v339_v20 = vld [vmem:[#allocation2 + $0x50] sm:$0xff] }
  0xf7   : > { %v1420_v42 = vsel %vm1292_vm7, %v1228_v24, %v1356_v35  ;;  %v2094_v45 = vpack.c.bf16 %v1454_v41, %v1454_v41  ;;  %v1452_v47 = vsel %vm1324_vm8, %v1260_v31, %v1388_v37  ;;  %v1263_v48 = vadd.f32 %v2593_v2, %v1192_v33  ;;  %v2619_v49 = vpop.f32.mrb[8].mxu1  ;;  %v2621_v50 = vpop.f32.mrb[9].mxu0  ;;  %v366_v19 = vld [vmem:[#allocation2 + $0x128] sm:$0xff]  ;;  %v371_v36 = vld [vmem:[#allocation2 + $0x150] sm:$0xff]  ;;  %v337_v37 = vld [vmem:[#allocation2 + $0x40] sm:$0xff] }
  0xf8   : > { %v2060_v46 = vpack.c.bf16 %v1420_v42, %v1420_v42  ;;  %1743 = vst.msk [vmem:[%s2614_s30 + $0x8] sm:$0xf] %vm1740_vm4, %v2062_v40  ;;  %v2092_v51 = vpack.c.bf16 %v1452_v47, %v1452_v47  ;;  %v1423_v52 = vsel %vm1295_vm9, %v1231_v32, %v1359_v43  ;;  %v1229_v53 = vadd.f32 %v2593_v2, %v1158_v38  ;;  %v1163_v55 = vld [vmem:[#allocation2 + $0x30] sm:$0xff]  ;;  %v2628_v56 = vpop.f32.mrb[9].mxu1  ;;  %v2630_v57 = vpop.f32.mrb[10].mxu0  ;;  %v369_v38 = vld [vmem:[#allocation2 + $0x140] sm:$0xff] }
  0xf9   : > { %v1261_v54 = vadd.f32 %v2593_v2, %v1190_v39  ;;  %1775 = vst.msk [vmem:[%s2614_s30 + $0x88] sm:$0xf] %vm1740_vm4, %v2094_v45  ;;  %v2063_v58 = vpack.c.bf16 %v1423_v52, %v1423_v52  ;;  %vm1327_vm10 = vcmp.gt.f32.partialorder %v1263_v48, 0.0  ;;  %v1391_v59 = vmul.f32 0.1, %v1263_v48  ;;  %v1195_v61 = vld [vmem:[#allocation2 + $0x130] sm:$0xff] }
  0xfa   : > { %1741 = vst.msk [vmem:[%s2614_s30] sm:$0xf] %vm1740_vm4, %v2060_v46  ;;  %v1234_v60 = vadd.f32 %v2593_v2, %v1163_v55  ;;  %v1161_v62 = vld [vmem:[#allocation2 + $0x20] sm:$0xff]  ;;  %v2637_v63 = vpop.f32.mrb[10].mxu1  ;;  %1773 = vst.msk [vmem:[%s2614_s30 + $0x80] sm:$0xf] %vm1740_vm4, %v2092_v51  ;;  %v1266_v5 = vadd.f32 %v2593_v2, %v1195_v61  ;;  %v1062_v34 = vadd.f32 %v2601_v29, %v366_v19 }
  0xfb   : > { %vm1293_vm11 = vcmp.gt.f32.partialorder %v1229_v53, 0.0  ;;  %v1357_v0 = vmul.f32 0.1, %v1229_v53  ;;  %vm1325_vm12 = vcmp.gt.f32.partialorder %v1261_v54, 0.0  ;;  %v1389_v1 = vmul.f32 0.1, %v1261_v54 }
  0xfc   : > { %1744 = vst.msk [vmem:[%s2614_s30 + $0xc] sm:$0xf] %vm1740_vm4, %v2063_v58  ;;  %v1455_v3 = vsel %vm1327_vm10, %v1263_v48, %v1391_v59  ;;  %vm1298_vm13 = vcmp.gt.f32.partialorder %v1234_v60, 0.0  ;;  %v1362_v4 = vmul.f32 0.1, %v1234_v60  ;;  %v1193_v6 = vld [vmem:[#allocation2 + $0x120] sm:$0xff]  ;;  %v1232_v10 = vadd.f32 %v2593_v2, %v1161_v62 }
  0xfd   : > { %v2095_v7 = vpack.c.bf16 %v1455_v3, %v1455_v3  ;;  %v1421_v8 = vsel %vm1293_vm11, %v1229_v53, %v1357_v0  ;;  %v1453_v9 = vsel %vm1325_vm12, %v1261_v54, %v1389_v1  ;;  %v1164_v11 = vld [vmem:[#allocation2 + $0x38] sm:$0xff]  ;;  %v1162_v13 = vld [vmem:[#allocation2 + $0x28] sm:$0xff]  ;;  %v2645_v14 = vpop.f32.mrb[11].mxu0  ;;  %v2647_v15 = vpop.f32.mrb[11].mxu1  ;;  %vm1330_vm14 = vcmp.gt.f32.partialorder %v1266_v5, 0.0  ;;  %1127 = vst.msk [vmem:[#allocation2 + $0x128] sm:$0xff] %vm264_vm2, %v1062_v34 }
  0xfe   : > { %v1196_v12 = vld [vmem:[#allocation2 + $0x138] sm:$0xff]  ;;  %v2061_v16 = vpack.c.bf16 %v1421_v8, %v1421_v8  ;;  %v2093_v17 = vpack.c.bf16 %v1453_v9, %v1453_v9  ;;  %v1426_v18 = vsel %vm1298_vm13, %v1234_v60, %v1362_v4  ;;  %v1394_v22 = vmul.f32 0.1, %v1266_v5  ;;  %v2651_v24 = vpop.f32.mrb[12].mxu0  ;;  %v338_v47 = vld [vmem:[#allocation2 + $0x48] sm:$0xff]  ;;  %v343_v58 = vld [vmem:[#allocation2 + $0x70] sm:$0xff] }
  0xff   : > { %1776 = vst.msk [vmem:[%s2614_s30 + $0x8c] sm:$0xf] %vm1740_vm4, %v2095_v7  ;;  %v2066_v21 = vpack.c.bf16 %v1426_v18, %v1426_v18  ;;  %vm1296_vm15 = vcmp.gt.f32.partialorder %v1232_v10, 0.0  ;;  %v1360_v23 = vmul.f32 0.1, %v1232_v10  ;;  %v1264_v25 = vadd.f32 %v2593_v2, %v1193_v6  ;;  %v2661_v30 = vpop.f32.mrb[12].mxu1 }
 0x100   : > { %1742 = vst.msk [vmem:[%s2614_s30 + $0x4] sm:$0xf] %vm1740_vm4, %v2061_v16  ;;  %1774 = vst.msk [vmem:[%s2614_s30 + $0x84] sm:$0xf] %vm1740_vm4, %v2093_v17  ;;  %v1235_v26 = vadd.f32 %v2593_v2, %v1164_v11  ;;  %v1267_v27 = vadd.f32 %v2593_v2, %v1196_v12  ;;  %v1233_v28 = vadd.f32 %v2593_v2, %v1162_v13  ;;  %v2663_v31 = vpop.f32.mrb[13].mxu0  ;;  %v2670_v39 = vpop.f32.mrb[13].mxu1 }
 0x101   : > { %1747 = vst.msk [vmem:[%s2614_s30 + $0x18] sm:$0xf] %vm1740_vm4, %v2066_v21  ;;  %v1458_v32 = vsel %vm1330_vm14, %v1266_v5, %v1394_v22  ;;  %v1424_v33 = vsel %vm1296_vm15, %v1232_v10, %v1360_v23  ;;  %v1035_v35 = vadd.f32 %v2616_v44, %v339_v20  ;;  %v2672_v40 = vpop.f32.mrb[14].mxu0  ;;  %vm1328_vm0 = vcmp.gt.f32.partialorder %v1264_v25, 0.0  ;;  %v340_v45 = vld [vmem:[#allocation2 + $0x58] sm:$0xff]  ;;  %v2209_v48 = vpop.f32.mrb[14].mxu1 }
 0x102   : > { %v2098_v41 = vpack.c.bf16 %v1458_v32, %v1458_v32  ;;  %v2064_v42 = vpack.c.bf16 %v1424_v33, %v1424_v33  ;;  %v1392_v43 = vmul.f32 0.1, %v1264_v25  ;;  %v372_v46 = vld [vmem:[#allocation2 + $0x158] sm:$0xff]  ;;  %v821_v29 = vpop.f32.mrb[15].mxu0  ;;  %vm1299_vm1 = vcmp.gt.f32.partialorder %v1235_v26, 0.0  ;;  %v370_v52 = vld [vmem:[#allocation2 + $0x148] sm:$0xff] }
 0x103   : > { %v1363_v44 = vmul.f32 0.1, %v1235_v26  ;;  %vm1331_vm3 = vcmp.gt.f32.partialorder %v1267_v27, 0.0  ;;  %v1395_v51 = vmul.f32 0.1, %v1267_v27  ;;  %1100 = vst.msk [vmem:[#allocation2 + $0x50] sm:$0xff] %vm264_vm2, %v1035_v35  ;;  %v1067_v55 = vadd.f32 %v2619_v49, %v371_v36 }
 0x104   : > { %1779 = vst.msk [vmem:[%s2614_s30 + $0x98] sm:$0xf] %vm1740_vm4, %v2098_v41  ;;  %1745 = vst.msk [vmem:[%s2614_s30 + $0x10] sm:$0xf] %vm1740_vm4, %v2064_v42  ;;  %v1456_v53 = vsel %vm1328_vm0, %v1264_v25, %v1392_v43  ;;  %vm1297_vm5 = vcmp.gt.f32.partialorder %v1233_v28, 0.0  ;;  %v375_v59 = vld [vmem:[#allocation2 + $0x170] sm:$0xff]  ;;  %v1033_v1 = vadd.f32 %v2621_v50, %v337_v37  ;;  %v1065_v49 = vadd.f32 %v2628_v56, %v369_v38 }
 0x105   : > { %v1361_v54 = vmul.f32 0.1, %v1233_v28  ;;  %v949_v60 = vpop.f32.mrb[15].mxu1  ;;  %v2096_v61 = vpack.c.bf16 %v1456_v53, %v1456_v53  ;;  %v1427_v62 = vsel %vm1299_vm1, %v1235_v26, %v1363_v44  ;;  %v1459_v0 = vsel %vm1331_vm3, %v1267_v27, %v1395_v51  ;;  %v341_v3 = vld [vmem:[#allocation2 + $0x60] sm:$0xff]  ;;  %v344_v5 = vld [vmem:[#allocation2 + $0x78] sm:$0xff]  ;;  %1132 = vst.msk [vmem:[#allocation2 + $0x150] sm:$0xff] %vm264_vm2, %v1067_v55 }
 0x106   : > { %v373_v4 = vld [vmem:[#allocation2 + $0x160] sm:$0xff]  ;;  %v2067_v6 = vpack.c.bf16 %v1427_v62, %v1427_v62  ;;  %v2099_v7 = vpack.c.bf16 %v1459_v0, %v1459_v0  ;;  %v376_v9 = vld [vmem:[#allocation2 + $0x178] sm:$0xff]  ;;  %v342_v10 = vld [vmem:[#allocation2 + $0x68] sm:$0xff]  ;;  %1098 = vst.msk [vmem:[#allocation2 + $0x40] sm:$0xff] %vm264_vm2, %v1033_v1  ;;  %v1036_v50 = vadd.f32 %v2630_v57, %v340_v45  ;;  %v1068_v13 = vadd.f32 %v2637_v63, %v372_v46  ;;  %v2180_v18 = vpop.f32.mrb[16].mxu0 }
 0x107   : > { %v1425_v8 = vsel %vm1297_vm5, %v1233_v28, %v1361_v54  ;;  %v374_v11 = vld [vmem:[#allocation2 + $0x168] sm:$0xff]  ;;  %1777 = vst.msk [vmem:[%s2614_s30 + $0x90] sm:$0xf] %vm1740_vm4, %v2096_v61  ;;  %v1034_v16 = vadd.f32 %v2645_v14, %v338_v47  ;;  %v347_v17 = vld [vmem:[#allocation2 + $0x90] sm:$0xff]  ;;  %v345_v20 = vld [vmem:[#allocation2 + $0x80] sm:$0xff]  ;;  %v1066_v56 = vadd.f32 %v2647_v15, %v370_v52  ;;  %v1039_v21 = vadd.f32 %v2651_v24, %v343_v58  ;;  %v2212_v14 = vpop.f32.mrb[16].mxu1 }
 0x108   : > { %v2065_v12 = vpack.c.bf16 %v1425_v8, %v1425_v8  ;;  %v379_v19 = vld [vmem:[#allocation2 + $0x190] sm:$0xff]  ;;  %1748 = vst.msk [vmem:[%s2614_s30 + $0x1c] sm:$0xf] %vm1740_vm4, %v2067_v6  ;;  %1780 = vst.msk [vmem:[%s2614_s30 + $0x9c] sm:$0xf] %vm1740_vm4, %v2099_v7  ;;  %v1071_v57 = vadd.f32 %v2661_v30, %v375_v59  ;;  %v1037_v63 = vadd.f32 %v2663_v31, %v341_v3  ;;  %v834_v22 = vpop.f32.mrb[17].mxu0 }
 0x109   : > { %1130 = vst.msk [vmem:[#allocation2 + $0x140] sm:$0xff] %vm264_vm2, %v1065_v49  ;;  %v377_v23 = vld [vmem:[#allocation2 + $0x180] sm:$0xff]  ;;  %v348_v25 = vld [vmem:[#allocation2 + $0x98] sm:$0xff]  ;;  %1101 = vst.msk [vmem:[#allocation2 + $0x58] sm:$0xff] %vm264_vm2, %v1036_v50  ;;  %v1069_v15 = vadd.f32 %v2670_v39, %v373_v4  ;;  %v1040_v24 = vadd.f32 %v2672_v40, %v344_v5  ;;  %v1072_v26 = vadd.f32 %v2209_v48, %v376_v9  ;;  %v962_v28 = vpop.f32.mrb[17].mxu1  ;;  %v2181_v30 = vpop.f32.mrb[18].mxu0 }
 0x10a   : > { %1746 = vst.msk [vmem:[%s2614_s30 + $0x14] sm:$0xf] %vm1740_vm4, %v2065_v12  ;;  %v1038_v27 = vadd.f32 %v821_v29, %v342_v10  ;;  %v380_v31 = vld [vmem:[#allocation2 + $0x198] sm:$0xff]  ;;  %v346_v32 = vld [vmem:[#allocation2 + $0x88] sm:$0xff]  ;;  %v1167_v35 = vld [vmem:[#allocation2 + $0x50] sm:$0xff]  ;;  %v1070_v36 = vadd.f32 %v949_v60, %v374_v11  ;;  %v1043_v37 = vadd.f32 %v2180_v18, %v347_v17  ;;  %v1075_v38 = vadd.f32 %v2212_v14, %v379_v19  ;;  %v2213_v40 = vpop.f32.mrb[18].mxu1 }
 0x10b   : > { %1133 = vst.msk [vmem:[#allocation2 + $0x158] sm:$0xff] %vm264_vm2, %v1068_v13  ;;  %1099 = vst.msk [vmem:[#allocation2 + $0x48] sm:$0xff] %vm264_vm2, %v1034_v16  ;;  %v378_v33 = vld [vmem:[#allocation2 + $0x188] sm:$0xff]  ;;  %v1041_v39 = vadd.f32 %v834_v22, %v345_v20  ;;  %v837_v41 = vpop.f32.mrb[19].mxu0  ;;  %v1238_v43 = vadd.f32 %v2593_v2, %v1167_v35  ;;  %v1073_v45 = vadd.f32 %v962_v28, %v377_v23  ;;  %v965_v47 = vpop.f32.mrb[19].mxu1  ;;  %v351_v51 = vld [vmem:[#allocation2 + $0xb0] sm:$0xff] }
 0x10c   : > { %v1194_v34 = vld [vmem:[#allocation2 + $0x128] sm:$0xff]  ;;  %1131 = vst.msk [vmem:[#allocation2 + $0x148] sm:$0xff] %vm264_vm2, %v1066_v56  ;;  %1104 = vst.msk [vmem:[#allocation2 + $0x70] sm:$0xff] %vm264_vm2, %v1039_v21  ;;  %v1044_v46 = vadd.f32 %v2181_v30, %v348_v25  ;;  %v1076_v48 = vadd.f32 %v2213_v40, %v380_v31  ;;  %v1042_v29 = vadd.f32 %v837_v41, %v346_v32  ;;  %v1199_v54 = vld [vmem:[#allocation2 + $0x150] sm:$0xff] }
 0x10d   : > { %1136 = vst.msk [vmem:[#allocation2 + $0x170] sm:$0xff] %vm264_vm2, %v1071_v57  ;;  %1102 = vst.msk [vmem:[#allocation2 + $0x60] sm:$0xff] %vm264_vm2, %v1037_v63  ;;  %v1265_v42 = vadd.f32 %v2593_v2, %v1194_v34  ;;  %v1074_v44 = vadd.f32 %v965_v47, %v378_v33  ;;  %vm1302_vm7 = vcmp.gt.f32.partialorder %v1238_v43, 0.0  ;;  %v1366_v53 = vmul.f32 0.1, %v1238_v43  ;;  %v1165_v55 = vld [vmem:[#allocation2 + $0x40] sm:$0xff] }
 0x10e   : > { %1134 = vst.msk [vmem:[#allocation2 + $0x160] sm:$0xff] %vm264_vm2, %v1069_v15  ;;  %1105 = vst.msk [vmem:[#allocation2 + $0x78] sm:$0xff] %vm264_vm2, %v1040_v24  ;;  %v1270_v60 = vadd.f32 %v2593_v2, %v1199_v54  ;;  %v1236_v61 = vadd.f32 %v2593_v2, %v1165_v55  ;;  %v2184_v0 = vpop.f32.mrb[20].mxu0 }
 0x10f   : > { %1137 = vst.msk [vmem:[#allocation2 + $0x178] sm:$0xff] %vm264_vm2, %v1072_v26  ;;  %1103 = vst.msk [vmem:[#allocation2 + $0x68] sm:$0xff] %vm264_vm2, %v1038_v27  ;;  %vm1329_vm6 = vcmp.gt.f32.partialorder %v1265_v42, 0.0  ;;  %v1393_v52 = vmul.f32 0.1, %v1265_v42  ;;  %v1430_v59 = vsel %vm1302_vm7, %v1238_v43, %v1366_v53  ;;  %v1047_v8 = vadd.f32 %v2184_v0, %v351_v51  ;;  %v2731_v49 = vpop.f32.mrb[20].mxu1 }
 0x110   : > { %1135 = vst.msk [vmem:[#allocation2 + $0x168] sm:$0xff] %vm264_vm2, %v1070_v36  ;;  %1108 = vst.msk [vmem:[#allocation2 + $0x90] sm:$0xff] %vm264_vm2, %v1043_v37  ;;  %v1197_v62 = vld [vmem:[#allocation2 + $0x140] sm:$0xff]  ;;  %v2070_v3 = vpack.c.bf16 %v1430_v59, %v1430_v59  ;;  %v1168_v5 = vld [vmem:[#allocation2 + $0x58] sm:$0xff]  ;;  %v2733_v9 = vpop.f32.mrb[21].mxu0  ;;  %vm1334_vm8 = vcmp.gt.f32.partialorder %v1270_v60, 0.0 }
 0x111   : > { %1140 = vst.msk [vmem:[#allocation2 + $0x190] sm:$0xff] %vm264_vm2, %v1075_v38  ;;  %1106 = vst.msk [vmem:[#allocation2 + $0x80] sm:$0xff] %vm264_vm2, %v1041_v39  ;;  %v1457_v58 = vsel %vm1329_vm6, %v1265_v42, %v1393_v52  ;;  %v1268_v4 = vadd.f32 %v2593_v2, %v1197_v62  ;;  %v1398_v10 = vmul.f32 0.1, %v1270_v60  ;;  %vm1300_vm9 = vcmp.gt.f32.partialorder %v1236_v61, 0.0  ;;  %v2744_v56 = vpop.f32.mrb[21].mxu1 }
 0x112   : > { %1138 = vst.msk [vmem:[#allocation2 + $0x180] sm:$0xff] %vm264_vm2, %v1073_v45  ;;  %1109 = vst.msk [vmem:[#allocation2 + $0x98] sm:$0xff] %vm264_vm2, %v1044_v46  ;;  %v2097_v1 = vpack.c.bf16 %v1457_v58, %v1457_v58  ;;  %v1200_v6 = vld [vmem:[#allocation2 + $0x158] sm:$0xff]  ;;  %v1166_v7 = vld [vmem:[#allocation2 + $0x48] sm:$0xff]  ;;  %v1364_v11 = vmul.f32 0.1, %v1236_v61  ;;  %v1239_v50 = vadd.f32 %v2593_v2, %v1168_v5 }
 0x113   : > { %1141 = vst.msk [vmem:[#allocation2 + $0x198] sm:$0xff] %vm264_vm2, %v1076_v48  ;;  %1107 = vst.msk [vmem:[#allocation2 + $0x88] sm:$0xff] %vm264_vm2, %v1042_v29  ;;  %vm1332_vm10 = vcmp.gt.f32.partialorder %v1268_v4, 0.0  ;;  %v1396_v12 = vmul.f32 0.1, %v1268_v4  ;;  %v1271_v13 = vadd.f32 %v2593_v2, %v1200_v6  ;;  %v1198_v16 = vld [vmem:[#allocation2 + $0x148] sm:$0xff]  ;;  %v1462_v17 = vsel %vm1334_vm8, %v1270_v60, %v1398_v10 }
 0x114   : > { %1139 = vst.msk [vmem:[#allocation2 + $0x188] sm:$0xff] %vm264_vm2, %v1074_v44  ;;  %1112 = vst.msk [vmem:[#allocation2 + $0xb0] sm:$0xff] %vm264_vm2, %v1047_v8  ;;  %v1428_v18 = vsel %vm1300_vm9, %v1236_v61, %v1364_v11  ;;  %v1237_v19 = vadd.f32 %v2593_v2, %v1166_v7  ;;  %v1269_v20 = vadd.f32 %v2593_v2, %v1198_v16  ;;  %v2746_v21 = vpop.f32.mrb[22].mxu0  ;;  %vm1303_vm11 = vcmp.gt.f32.partialorder %v1239_v50, 0.0  ;;  %v1171_v22 = vld [vmem:[#allocation2 + $0x70] sm:$0xff]  ;;  %v2748_v25 = vpop.f32.mrb[22].mxu1 }
 0x115   : > { %1778 = vst.msk [vmem:[%s2614_s30 + $0x94] sm:$0xf] %vm1740_vm4, %v2097_v1  ;;  %1751 = vst.msk [vmem:[%s2614_s30 + $0x28] sm:$0xf] %vm1740_vm4, %v2070_v3  ;;  %v2102_v57 = vpack.c.bf16 %v1462_v17, %v1462_v17  ;;  %v2068_v63 = vpack.c.bf16 %v1428_v18, %v1428_v18  ;;  %v1460_v14 = vsel %vm1332_vm10, %v1268_v4, %v1396_v12  ;;  %v1203_v23 = vld [vmem:[#allocation2 + $0x170] sm:$0xff]  ;;  %v2750_v15 = vpop.f32.mrb[23].mxu0 }
 0x116   : > { %v2100_v24 = vpack.c.bf16 %v1460_v14, %v1460_v14  ;;  %v1367_v26 = vmul.f32 0.1, %v1239_v50  ;;  %vm1335_vm12 = vcmp.gt.f32.partialorder %v1271_v13, 0.0  ;;  %v1399_v27 = vmul.f32 0.1, %v1271_v13  ;;  %v1169_v35 = vld [vmem:[#allocation2 + $0x60] sm:$0xff] }
 0x117   : > { %1783 = vst.msk [vmem:[%s2614_s30 + $0xa8] sm:$0xf] %vm1740_vm4, %v2102_v57  ;;  %1749 = vst.msk [vmem:[%s2614_s30 + $0x20] sm:$0xf] %vm1740_vm4, %v2068_v63  ;;  %vm1301_vm13 = vcmp.gt.f32.partialorder %v1237_v19, 0.0  ;;  %vm1333_vm14 = vcmp.gt.f32.partialorder %v1269_v20, 0.0  ;;  %v1242_v33 = vadd.f32 %v2593_v2, %v1171_v22  ;;  %v1274_v34 = vadd.f32 %v2593_v2, %v1203_v23 }
 0x118   : > { %v1365_v28 = vmul.f32 0.1, %v1237_v19  ;;  %v1397_v30 = vmul.f32 0.1, %v1269_v20  ;;  %1781 = vst.msk [vmem:[%s2614_s30 + $0xa0] sm:$0xf] %vm1740_vm4, %v2100_v24  ;;  %v1431_v31 = vsel %vm1303_vm11, %v1239_v50, %v1367_v26  ;;  %v1463_v32 = vsel %vm1335_vm12, %v1271_v13, %v1399_v27 }
 0x119   : > { %v1201_v36 = vld [vmem:[#allocation2 + $0x160] sm:$0xff]  ;;  %v2761_v37 = vpop.f32.mrb[23].mxu1  ;;  %v2763_v38 = vpop.f32.mrb[24].mxu0  ;;  %v2071_v39 = vpack.c.bf16 %v1431_v31, %v1431_v31  ;;  %v2103_v40 = vpack.c.bf16 %v1463_v32, %v1463_v32  ;;  %v1172_v43 = vld [vmem:[#allocation2 + $0x78] sm:$0xff]  ;;  %v1170_v46 = vld [vmem:[#allocation2 + $0x68] sm:$0xff]  ;;  %vm1306_vm15 = vcmp.gt.f32.partialorder %v1242_v33, 0.0  ;;  %v1240_v54 = vadd.f32 %v2593_v2, %v1169_v35 }
 0x11a   : > { %v1429_v41 = vsel %vm1301_vm13, %v1237_v19, %v1365_v28  ;;  %v1461_v42 = vsel %vm1333_vm14, %v1269_v20, %v1397_v30  ;;  %v1204_v45 = vld [vmem:[#allocation2 + $0x178] sm:$0xff]  ;;  %v2765_v47 = vpop.f32.mrb[24].mxu1  ;;  %v2767_v48 = vpop.f32.mrb[25].mxu0  ;;  %v1370_v51 = vmul.f32 0.1, %v1242_v33  ;;  %vm1338_vm0 = vcmp.gt.f32.partialorder %v1274_v34, 0.0 }
 0x11b   : > { %v2069_v29 = vpack.c.bf16 %v1429_v41, %v1429_v41  ;;  %v2101_v44 = vpack.c.bf16 %v1461_v42, %v1461_v42  ;;  %v2769_v52 = vpop.f32.mrb[25].mxu1  ;;  %1752 = vst.msk [vmem:[%s2614_s30 + $0x2c] sm:$0xf] %vm1740_vm4, %v2071_v39  ;;  %1784 = vst.msk [vmem:[%s2614_s30 + $0xac] sm:$0xf] %vm1740_vm4, %v2103_v40  ;;  %v1272_v55 = vadd.f32 %v2593_v2, %v1201_v36  ;;  %v2777_v58 = vpop.f32.mrb[26].mxu0 }
 0x11c   : > { %v1402_v53 = vmul.f32 0.1, %v1274_v34  ;;  %v2779_v59 = vpop.f32.mrb[26].mxu1  ;;  %v1434_v60 = vsel %vm1306_vm15, %v1242_v33, %v1370_v51  ;;  %v1243_v61 = vadd.f32 %v2593_v2, %v1172_v43  ;;  %v1275_v62 = vadd.f32 %v2593_v2, %v1204_v45  ;;  %v2788_v1 = vpop.f32.mrb[27].mxu0  ;;  %v1202_v10 = vld [vmem:[#allocation2 + $0x168] sm:$0xff]  ;;  %v1175_v13 = vld [vmem:[#allocation2 + $0x90] sm:$0xff] }
 0x11d   : > { %1750 = vst.msk [vmem:[%s2614_s30 + $0x24] sm:$0xf] %vm1740_vm4, %v2069_v29  ;;  %1782 = vst.msk [vmem:[%s2614_s30 + $0xa4] sm:$0xf] %vm1740_vm4, %v2101_v44  ;;  %v1241_v0 = vadd.f32 %v2593_v2, %v1170_v46  ;;  %v2790_v3 = vpop.f32.mrb[27].mxu1  ;;  %v2074_v4 = vpack.c.bf16 %v1434_v60, %v1434_v60  ;;  %vm1304_vm1 = vcmp.gt.f32.partialorder %v1240_v54, 0.0  ;;  %v1273_v22 = vadd.f32 %v2593_v2, %v1202_v10 }
 0x11e   : > { %v1466_v5 = vsel %vm1338_vm0, %v1274_v34, %v1402_v53  ;;  %v1368_v6 = vmul.f32 0.1, %v1240_v54  ;;  %vm1336_vm3 = vcmp.gt.f32.partialorder %v1272_v55, 0.0  ;;  %v1400_v8 = vmul.f32 0.1, %v1272_v55  ;;  %v1207_v19 = vld [vmem:[#allocation2 + $0x190] sm:$0xff] }
 0x11f   : > { %v2106_v7 = vpack.c.bf16 %v1466_v5, %v1466_v5  ;;  %vm1307_vm5 = vcmp.gt.f32.partialorder %v1243_v61, 0.0  ;;  %1755 = vst.msk [vmem:[%s2614_s30 + $0x38] sm:$0xf] %vm1740_vm4, %v2074_v4  ;;  %v1371_v12 = vmul.f32 0.1, %v1243_v61  ;;  %vm1339_vm6 = vcmp.gt.f32.partialorder %v1275_v62, 0.0 }
 0x120   : > { %v1432_v11 = vsel %vm1304_vm1, %v1240_v54, %v1368_v6  ;;  %v1403_v50 = vmul.f32 0.1, %v1275_v62  ;;  %v1464_v17 = vsel %vm1336_vm3, %v1272_v55, %v1400_v8  ;;  %vm1305_vm7 = vcmp.gt.f32.partialorder %v1241_v0, 0.0  ;;  %v2796_v20 = vpop.f32.mrb[28].mxu0  ;;  %v1173_v23 = vld [vmem:[#allocation2 + $0x80] sm:$0xff]  ;;  %v2800_v26 = vpop.f32.mrb[28].mxu1 }
 0x121   : > { %1787 = vst.msk [vmem:[%s2614_s30 + $0xb8] sm:$0xf] %vm1740_vm4, %v2106_v7  ;;  %v2072_v16 = vpack.c.bf16 %v1432_v11, %v1432_v11  ;;  %v1369_v18 = vmul.f32 0.1, %v1241_v0  ;;  %v2104_v57 = vpack.c.bf16 %v1464_v17, %v1464_v17  ;;  %v1435_v63 = vsel %vm1307_vm5, %v1243_v61, %v1371_v12  ;;  %v1205_v24 = vld [vmem:[#allocation2 + $0x180] sm:$0xff]  ;;  %v2802_v27 = vpop.f32.mrb[29].mxu0 }
 0x122   : > { %v1467_v14 = vsel %vm1339_vm6, %v1275_v62, %v1403_v50  ;;  %v2075_v28 = vpack.c.bf16 %v1435_v63, %v1435_v63  ;;  %v1246_v32 = vadd.f32 %v2593_v2, %v1175_v13  ;;  %v1176_v33 = vld [vmem:[#allocation2 + $0x98] sm:$0xff]  ;;  %v2807_v34 = vpop.f32.mrb[29].mxu1  ;;  %v2809_v35 = vpop.f32.mrb[30].mxu0  ;;  %vm1337_vm8 = vcmp.gt.f32.partialorder %v1273_v22, 0.0  ;;  %v1174_v62 = vld [vmem:[#allocation2 + $0x88] sm:$0xff]  ;;  %v1179_v7 = vld [vmem:[#allocation2 + $0xb0] sm:$0xff] }
 0x123   : > { %1753 = vst.msk [vmem:[%s2614_s30 + $0x30] sm:$0xf] %vm1740_vm4, %v2072_v16  ;;  %v2107_v30 = vpack.c.bf16 %v1467_v14, %v1467_v14  ;;  %v1433_v31 = vsel %vm1305_vm7, %v1241_v0, %v1369_v18  ;;  %1785 = vst.msk [vmem:[%s2614_s30 + $0xb0] sm:$0xf] %vm1740_vm4, %v2104_v57  ;;  %v1401_v39 = vmul.f32 0.1, %v1273_v22  ;;  %v1278_v40 = vadd.f32 %v2593_v2, %v1207_v19 }
 0x124   : > { %v2073_v36 = vpack.c.bf16 %v1433_v31, %v1433_v31  ;;  %v2814_v41 = vpop.f32.mrb[30].mxu1  ;;  %v2816_v42 = vpop.f32.mrb[31].mxu0  ;;  %1756 = vst.msk [vmem:[%s2614_s30 + $0x3c] sm:$0xf] %vm1740_vm4, %v2075_v28  ;;  %vm1310_vm9 = vcmp.gt.f32.partialorder %v1246_v32, 0.0  ;;  %v1244_v45 = vadd.f32 %v2593_v2, %v1173_v23  ;;  %v1276_v46 = vadd.f32 %v2593_v2, %v1205_v24  ;;  %v1208_v61 = vld [vmem:[#allocation2 + $0x198] sm:$0xff] }
 0x125   : > { %1788 = vst.msk [vmem:[%s2614_s30 + $0xbc] sm:$0xf] %vm1740_vm4, %v2107_v30  ;;  %v1374_v43 = vmul.f32 0.1, %v1246_v32  ;;  %v2824_v29 = vpop.f32.mrb[31].mxu1  ;;  %v1465_v44 = vsel %vm1337_vm8, %v1273_v22, %v1401_v39  ;;  %vm1342_vm10 = vcmp.gt.f32.partialorder %v1278_v40, 0.0  ;;  %v1247_v53 = vadd.f32 %v2593_v2, %v1176_v33 }
 0x126   : > { %1754 = vst.msk [vmem:[%s2614_s30 + $0x34] sm:$0xf] %vm1740_vm4, %v2073_v36  ;;  %v1406_v51 = vmul.f32 0.1, %v1278_v40  ;;  %v2105_v54 = vpack.c.bf16 %v1465_v44, %v1465_v44  ;;  %vm1308_vm11 = vcmp.gt.f32.partialorder %v1244_v45, 0.0  ;;  %vm1340_vm12 = vcmp.gt.f32.partialorder %v1276_v46, 0.0 }
 0x127   : > { %v1438_v55 = vsel %vm1310_vm9, %v1246_v32, %v1374_v43  ;;  %v1372_v60 = vmul.f32 0.1, %v1244_v45  ;;  %v1404_v5 = vmul.f32 0.1, %v1276_v46  ;;  %v1206_v6 = vld [vmem:[#allocation2 + $0x188] sm:$0xff]  ;;  %vm1311_vm13 = vcmp.gt.f32.partialorder %v1247_v53, 0.0 }
 0x128   : > { %v2078_v0 = vpack.c.bf16 %v1438_v55, %v1438_v55  ;;  %v1470_v4 = vsel %vm1342_vm10, %v1278_v40, %v1406_v51  ;;  %1786 = vst.msk [vmem:[%s2614_s30 + $0xb4] sm:$0xf] %vm1740_vm4, %v2105_v54  ;;  %v1375_v11 = vmul.f32 0.1, %v1247_v53  ;;  %v1279_v13 = vadd.f32 %v2593_v2, %v1208_v61  ;;  %v383_v17 = vld [vmem:[#allocation2 + $0x1b0] sm:$0xff]  ;;  %v349_v14 = vld [vmem:[#allocation2 + $0xa0] sm:$0xff] }
 0x129   : > { %v2110_v8 = vpack.c.bf16 %v1470_v4, %v1470_v4  ;;  %v1436_v10 = vsel %vm1308_vm11, %v1244_v45, %v1372_v60  ;;  %v1468_v50 = vsel %vm1340_vm12, %v1276_v46, %v1404_v5  ;;  %v1245_v16 = vadd.f32 %v2593_v2, %v1174_v62  ;;  %v381_v22 = vld [vmem:[#allocation2 + $0x1a0] sm:$0xff]  ;;  %v352_v23 = vld [vmem:[#allocation2 + $0xb8] sm:$0xff]  ;;  %v350_v31 = vld [vmem:[#allocation2 + $0xa8] sm:$0xff] }
 0x12a   : > { %1759 = vst.msk [vmem:[%s2614_s30 + $0x48] sm:$0xf] %vm1740_vm4, %v2078_v0  ;;  %v2076_v12 = vpack.c.bf16 %v1436_v10, %v1436_v10  ;;  %v2108_v18 = vpack.c.bf16 %v1468_v50, %v1468_v50  ;;  %v1439_v19 = vsel %vm1311_vm13, %v1247_v53, %v1375_v11  ;;  %v1277_v57 = vadd.f32 %v2593_v2, %v1206_v6  ;;  %v384_v30 = vld [vmem:[#allocation2 + $0x1b8] sm:$0xff]  ;;  %v382_v32 = vld [vmem:[#allocation2 + $0x1a8] sm:$0xff]  ;;  %v387_v46 = vld [vmem:[#allocation2 + $0x1d0] sm:$0xff] }
 0x12b   : > { %1791 = vst.msk [vmem:[%s2614_s30 + $0xc8] sm:$0xf] %vm1740_vm4, %v2110_v8  ;;  %v1250_v63 = vadd.f32 %v2593_v2, %v1179_v7  ;;  %v2079_v24 = vpack.c.bf16 %v1439_v19, %v1439_v19  ;;  %vm1343_vm14 = vcmp.gt.f32.partialorder %v1279_v13, 0.0  ;;  %v1407_v28 = vmul.f32 0.1, %v1279_v13  ;;  %v355_v2 = vld [vmem:[#allocation2 + $0xd0] sm:$0xff] }
 0x12c   : > { %1757 = vst.msk [vmem:[%s2614_s30 + $0x40] sm:$0xf] %vm1740_vm4, %v2076_v12  ;;  %vm1309_vm15 = vcmp.gt.f32.partialorder %v1245_v16, 0.0  ;;  %1789 = vst.msk [vmem:[%s2614_s30 + $0xc0] sm:$0xf] %vm1740_vm4, %v2108_v18  ;;  %vm1341_vm0 = vcmp.gt.f32.partialorder %v1277_v57, 0.0  ;;  %v1079_v43 = vadd.f32 %v2731_v49, %v383_v17  ;;  %v1045_v45 = vadd.f32 %v2733_v9, %v349_v14 }
 0x12d   : > { %v1373_v33 = vmul.f32 0.1, %v1245_v16  ;;  %v1405_v36 = vmul.f32 0.1, %v1277_v57  ;;  %vm1314_vm1 = vcmp.gt.f32.partialorder %v1250_v63, 0.0  ;;  %v1471_v39 = vsel %vm1343_vm14, %v1279_v13, %v1407_v28  ;;  %v353_v44 = vld [vmem:[#allocation2 + $0xc0] sm:$0xff] }
 0x12e   : > { %1760 = vst.msk [vmem:[%s2614_s30 + $0x4c] sm:$0xf] %vm1740_vm4, %v2079_v24  ;;  %v1378_v40 = vmul.f32 0.1, %v1250_v63  ;;  %v385_v51 = vld [vmem:[#allocation2 + $0x1c0] sm:$0xff]  ;;  %v2111_v53 = vpack.c.bf16 %v1471_v39, %v1471_v39  ;;  %v1077_v60 = vadd.f32 %v2744_v56, %v381_v22  ;;  %v356_v61 = vld [vmem:[#allocation2 + $0xd8] sm:$0xff]  ;;  %v1048_v49 = vadd.f32 %v2746_v21, %v352_v23 }
 0x12f   : > { %v1437_v54 = vsel %vm1309_vm15, %v1245_v16, %v1373_v33  ;;  %v1469_v55 = vsel %vm1341_vm0, %v1277_v57, %v1405_v36  ;;  %v388_v62 = vld [vmem:[#allocation2 + $0x1d8] sm:$0xff]  ;;  %v354_v0 = vld [vmem:[#allocation2 + $0xc8] sm:$0xff]  ;;  %1144 = vst.msk [vmem:[#allocation2 + $0x1b0] sm:$0xff] %vm264_vm2, %v1079_v43  ;;  %1110 = vst.msk [vmem:[#allocation2 + $0xa0] sm:$0xff] %vm264_vm2, %v1045_v45  ;;  %v1080_v10 = vadd.f32 %v2748_v25, %v384_v30 }
 0x130   : > { %v2077_v4 = vpack.c.bf16 %v1437_v54, %v1437_v54  ;;  %v2109_v5 = vpack.c.bf16 %v1469_v55, %v1469_v55  ;;  %v1442_v6 = vsel %vm1314_vm1, %v1250_v63, %v1378_v40  ;;  %v386_v9 = vld [vmem:[#allocation2 + $0x1c8] sm:$0xff]  ;;  %v359_v7 = vld [vmem:[#allocation2 + $0xf0] sm:$0xff]  ;;  %1792 = vst.msk [vmem:[%s2614_s30 + $0xcc] sm:$0xf] %vm1740_vm4, %v2111_v53  ;;  %v1046_v11 = vadd.f32 %v2750_v15, %v350_v31  ;;  %v357_v50 = vld [vmem:[#allocation2 + $0xe0] sm:$0xff] }
 0x131   : > { %v391_v8 = vld [vmem:[#allocation2 + $0x1f0] sm:$0xff]  ;;  %v2082_v56 = vpack.c.bf16 %v1442_v6, %v1442_v6  ;;  %1142 = vst.msk [vmem:[#allocation2 + $0x1a0] sm:$0xff] %vm264_vm2, %v1077_v60  ;;  %v1078_v12 = vadd.f32 %v2761_v37, %v382_v32  ;;  %v389_v13 = vld [vmem:[#allocation2 + $0x1e0] sm:$0xff]  ;;  %v360_v16 = vld [vmem:[#allocation2 + $0xf8] sm:$0xff]  ;;  %v1051_v21 = vadd.f32 %v2763_v38, %v355_v2  ;;  %v1083_v17 = vadd.f32 %v2765_v47, %v387_v46 }
 0x132   : > { %1758 = vst.msk [vmem:[%s2614_s30 + $0x44] sm:$0xf] %vm1740_vm4, %v2077_v4  ;;  %1790 = vst.msk [vmem:[%s2614_s30 + $0xc4] sm:$0xf] %vm1740_vm4, %v2109_v5  ;;  %v1049_v25 = vadd.f32 %v2767_v48, %v353_v44  ;;  %v1081_v18 = vadd.f32 %v2769_v52, %v385_v51  ;;  %v392_v15 = vld [vmem:[#allocation2 + $0x1f8] sm:$0xff]  ;;  %v358_v19 = vld [vmem:[#allocation2 + $0xe8] sm:$0xff]  ;;  %v1052_v57 = vadd.f32 %v2777_v58, %v356_v61 }
 0x133   : > { %1113 = vst.msk [vmem:[#allocation2 + $0xb8] sm:$0xff] %vm264_vm2, %v1048_v49  ;;  %v390_v37 = vld [vmem:[#allocation2 + $0x1e8] sm:$0xff]  ;;  %1145 = vst.msk [vmem:[#allocation2 + $0x1b8] sm:$0xff] %vm264_vm2, %v1080_v10  ;;  %v1084_v38 = vadd.f32 %v2779_v59, %v388_v62  ;;  %v1050_v47 = vadd.f32 %v2788_v1, %v354_v0  ;;  %v1082_v48 = vadd.f32 %v2790_v3, %v386_v9 }
 0x134   : > { %1763 = vst.msk [vmem:[%s2614_s30 + $0x58] sm:$0xf] %vm1740_vm4, %v2082_v56  ;;  %v1055_v52 = vadd.f32 %v2796_v20, %v359_v7  ;;  %v1087_v63 = vadd.f32 %v2800_v26, %v391_v8  ;;  %v1053_v58 = vadd.f32 %v2802_v27, %v357_v50  ;;  %v1085_v59 = vadd.f32 %v2807_v34, %v389_v13 }
 0x135   : > { %1111 = vst.msk [vmem:[#allocation2 + $0xa8] sm:$0xff] %vm264_vm2, %v1046_v11  ;;  %1143 = vst.msk [vmem:[#allocation2 + $0x1a8] sm:$0xff] %vm264_vm2, %v1078_v12  ;;  %v1056_v1 = vadd.f32 %v2809_v35, %v360_v16  ;;  %v1088_v3 = vadd.f32 %v2814_v41, %v392_v15  ;;  %v1054_v20 = vadd.f32 %v2816_v42, %v358_v19  ;;  %v2904_v35 = vld [vmem:[%s2986_s2] ss:$0 sm:$0xff] }
 0x136   : > { %1116 = vst.msk [vmem:[#allocation2 + $0xd0] sm:$0xff] %vm264_vm2, %v1051_v21  ;;  %1148 = vst.msk [vmem:[#allocation2 + $0x1d0] sm:$0xff] %vm264_vm2, %v1083_v17  ;;  %v1086_v26 = vadd.f32 %v2824_v29, %v390_v37  ;;  %v1211_v27 = vld [vmem:[#allocation2 + $0x1b0] sm:$0xff]  ;;  %v1177_v34 = vld [vmem:[#allocation2 + $0xa0] sm:$0xff] }
 0x137   : > { %1114 = vst.msk [vmem:[#allocation2 + $0xc0] sm:$0xff] %vm264_vm2, %v1049_v25  ;;  %1146 = vst.msk [vmem:[#allocation2 + $0x1c0] sm:$0xff] %vm264_vm2, %v1081_v18  ;;  %v1282_v41 = vadd.f32 %v2904_v35, %v1211_v27  ;;  %v1248_v42 = vadd.f32 %v2904_v35, %v1177_v34 }
 0x138   : > { %1117 = vst.msk [vmem:[#allocation2 + $0xd8] sm:$0xff] %vm264_vm2, %v1052_v57  ;;  %1149 = vst.msk [vmem:[#allocation2 + $0x1d8] sm:$0xff] %vm264_vm2, %v1084_v38  ;;  %v1209_v29 = vld [vmem:[#allocation2 + $0x1a0] sm:$0xff] }
 0x139   : > { %1115 = vst.msk [vmem:[#allocation2 + $0xc8] sm:$0xff] %vm264_vm2, %v1050_v47  ;;  %1147 = vst.msk [vmem:[#allocation2 + $0x1c8] sm:$0xff] %vm264_vm2, %v1082_v48  ;;  %v1280_v14 = vadd.f32 %v2904_v35, %v1209_v29  ;;  %vm1346_vm3 = vcmp.gt.f32.partialorder %v1282_v41, 0.0  ;;  %v1410_v23 = vmul.f32 0.1, %v1282_v41  ;;  %vm1312_vm5 = vcmp.gt.f32.partialorder %v1248_v42, 0.0 }
 0x13a   : > { %1120 = vst.msk [vmem:[#allocation2 + $0xf0] sm:$0xff] %vm264_vm2, %v1055_v52  ;;  %1152 = vst.msk [vmem:[#allocation2 + $0x1f0] sm:$0xff] %vm264_vm2, %v1087_v63  ;;  %v1180_v22 = vld [vmem:[#allocation2 + $0xb8] sm:$0xff]  ;;  %v1376_v24 = vmul.f32 0.1, %v1248_v42 }
 0x13b   : > { %1118 = vst.msk [vmem:[#allocation2 + $0xe0] sm:$0xff] %vm264_vm2, %v1053_v58  ;;  %1150 = vst.msk [vmem:[#allocation2 + $0x1e0] sm:$0xff] %vm264_vm2, %v1085_v59  ;;  %vm1344_vm6 = vcmp.gt.f32.partialorder %v1280_v14, 0.0  ;;  %v1408_v28 = vmul.f32 0.1, %v1280_v14  ;;  %v1251_v30 = vadd.f32 %v2904_v35, %v1180_v22  ;;  %v1212_v31 = vld [vmem:[#allocation2 + $0x1b8] sm:$0xff]  ;;  %v1474_v33 = vsel %vm1346_vm3, %v1282_v41, %v1410_v23 }
 0x13c   : > { %1121 = vst.msk [vmem:[#allocation2 + $0xf8] sm:$0xff] %vm264_vm2, %v1056_v1  ;;  %1153 = vst.msk [vmem:[#allocation2 + $0x1f8] sm:$0xff] %vm264_vm2, %v1088_v3  ;;  %v1178_v32 = vld [vmem:[#allocation2 + $0xa8] sm:$0xff]  ;;  %v1440_v36 = vsel %vm1312_vm5, %v1248_v42, %v1376_v24  ;;  %v1283_v2 = vadd.f32 %v2904_v35, %v1212_v31  ;;  %v2114_v45 = vpack.c.bf16 %v1474_v33, %v1474_v33 }
 0x13d   : > { %1119 = vst.msk [vmem:[#allocation2 + $0xe8] sm:$0xff] %vm264_vm2, %v1054_v20  ;;  %1151 = vst.msk [vmem:[#allocation2 + $0x1e8] sm:$0xff] %vm264_vm2, %v1086_v26  ;;  %v1249_v39 = vadd.f32 %v2904_v35, %v1178_v32  ;;  %v1210_v40 = vld [vmem:[#allocation2 + $0x1a8] sm:$0xff]  ;;  %v1183_v43 = vld [vmem:[#allocation2 + $0xd0] sm:$0xff]  ;;  %v2080_v46 = vpack.c.bf16 %v1440_v36, %v1440_v36  ;;  %v1472_v44 = vsel %vm1344_vm6, %v1280_v14, %v1408_v28  ;;  %vm1315_vm2 = vcmp.gt.f32.partialorder %v1251_v30, 0.0 }
 0x13e   : > { %v1215_v51 = vld [vmem:[#allocation2 + $0x1d0] sm:$0xff]  ;;  %v1181_v53 = vld [vmem:[#allocation2 + $0xc0] sm:$0xff]  ;;  %v2112_v54 = vpack.c.bf16 %v1472_v44, %v1472_v44  ;;  %v1379_v55 = vmul.f32 0.1, %v1251_v30  ;;  %vm1347_vm7 = vcmp.gt.f32.partialorder %v1283_v2, 0.0  ;;  %v1281_v62 = vadd.f32 %v2904_v35, %v1210_v40 }
 0x13f   : > { %v1411_v60 = vmul.f32 0.1, %v1283_v2  ;;  %1795 = vst.msk [vmem:[%s2614_s30 + $0xd8] sm:$0xf] %vm1740_vm4, %v2114_v45  ;;  %1761 = vst.msk [vmem:[%s2614_s30 + $0x50] sm:$0xf] %vm1740_vm4, %v2080_v46  ;;  %v1254_v0 = vadd.f32 %v2904_v35, %v1183_v43  ;;  %v1286_v6 = vadd.f32 %v2904_v35, %v1215_v51  ;;  %v1252_v49 = vadd.f32 %v2904_v35, %v1181_v53 }
 0x140   : > { %vm1313_vm8 = vcmp.gt.f32.partialorder %v1249_v39, 0.0  ;;  %v1377_v61 = vmul.f32 0.1, %v1249_v39  ;;  %1793 = vst.msk [vmem:[%s2614_s30 + $0xd0] sm:$0xf] %vm1740_vm4, %v2112_v54  ;;  %v1443_v4 = vsel %vm1315_vm2, %v1251_v30, %v1379_v55  ;;  %vm1345_vm9 = vcmp.gt.f32.partialorder %v1281_v62, 0.0 }
 0x141   : > { %v1475_v5 = vsel %vm1347_vm7, %v1283_v2, %v1411_v60  ;;  %v2083_v9 = vpack.c.bf16 %v1443_v4, %v1443_v4  ;;  %v1213_v56 = vld [vmem:[#allocation2 + $0x1c0] sm:$0xff]  ;;  %v1184_v10 = vld [vmem:[#allocation2 + $0xd8] sm:$0xff]  ;;  %v1409_v12 = vmul.f32 0.1, %v1281_v62  ;;  %vm1318_vm10 = vcmp.gt.f32.partialorder %v1254_v0, 0.0  ;;  %v1182_v19 = vld [vmem:[#allocation2 + $0xc8] sm:$0xff] }
 0x142   : > { %v2115_v7 = vpack.c.bf16 %v1475_v5, %v1475_v5  ;;  %v1441_v8 = vsel %vm1313_vm8, %v1249_v39, %v1377_v61  ;;  %v1382_v50 = vmul.f32 0.1, %v1254_v0  ;;  %vm1350_vm11 = vcmp.gt.f32.partialorder %v1286_v6, 0.0  ;;  %v1216_v15 = vld [vmem:[#allocation2 + $0x1d8] sm:$0xff]  ;;  %v1214_v48 = vld [vmem:[#allocation2 + $0x1c8] sm:$0xff]  ;;  %v1187_v52 = vld [vmem:[#allocation2 + $0xf0] sm:$0xff] }
 0x143   : > { %v2081_v11 = vpack.c.bf16 %v1441_v8, %v1441_v8  ;;  %1764 = vst.msk [vmem:[%s2614_s30 + $0x5c] sm:$0xf] %vm1740_vm4, %v2083_v9  ;;  %v1414_v13 = vmul.f32 0.1, %v1286_v6  ;;  %vm1316_vm12 = vcmp.gt.f32.partialorder %v1252_v49, 0.0  ;;  %v1473_v21 = vsel %vm1345_vm9, %v1281_v62, %v1409_v12  ;;  %v1219_v63 = vld [vmem:[#allocation2 + $0x1f0] sm:$0xff] }
 0x144   : > { %1796 = vst.msk [vmem:[%s2614_s30 + $0xdc] sm:$0xf] %vm1740_vm4, %v2115_v7  ;;  %v1380_v16 = vmul.f32 0.1, %v1252_v49  ;;  %v1446_v17 = vsel %vm1318_vm10, %v1254_v0, %v1382_v50  ;;  %v1284_v25 = vadd.f32 %v2904_v35, %v1213_v56  ;;  %v1255_v18 = vadd.f32 %v2904_v35, %v1184_v10  ;;  %v1185_v28 = vld [vmem:[#allocation2 + $0xe0] sm:$0xff]  ;;  %v1188_v40 = vld [vmem:[#allocation2 + $0xf8] sm:$0xff] }
 0x145   : > { %1762 = vst.msk [vmem:[%s2614_s30 + $0x54] sm:$0xf] %vm1740_vm4, %v2081_v11  ;;  %v2113_v37 = vpack.c.bf16 %v1473_v21, %v1473_v21  ;;  %v2086_v57 = vpack.c.bf16 %v1446_v17, %v1446_v17  ;;  %v1478_v38 = vsel %vm1350_vm11, %v1286_v6, %v1414_v13  ;;  %v1287_v20 = vadd.f32 %v2904_v35, %v1216_v15  ;;  %v1217_v33 = vld [vmem:[#allocation2 + $0x1e0] sm:$0xff]  ;;  %v1220_v51 = vld [vmem:[#allocation2 + $0x1f8] sm:$0xff]  ;;  %v1186_v53 = vld [vmem:[#allocation2 + $0xe8] sm:$0xff] }
 0x146   : > { %v1444_v47 = vsel %vm1316_vm12, %v1252_v49, %v1380_v16  ;;  %v2118_v58 = vpack.c.bf16 %v1478_v38, %v1478_v38  ;;  %vm1348_vm13 = vcmp.gt.f32.partialorder %v1284_v25, 0.0  ;;  %v1412_v1 = vmul.f32 0.1, %v1284_v25  ;;  %v1218_v62 = vld [vmem:[#allocation2 + $0x1e8] sm:$0xff] }
 0x147   : > { %v2084_v59 = vpack.c.bf16 %v1444_v47, %v1444_v47  ;;  %1794 = vst.msk [vmem:[%s2614_s30 + $0xd4] sm:$0xf] %vm1740_vm4, %v2113_v37  ;;  %1767 = vst.msk [vmem:[%s2614_s30 + $0x68] sm:$0xf] %vm1740_vm4, %v2086_v57  ;;  %vm1319_vm14 = vcmp.gt.f32.partialorder %v1255_v18, 0.0  ;;  %v1253_v26 = vadd.f32 %v2904_v35, %v1182_v19  ;;  %v1285_v34 = vadd.f32 %v2904_v35, %v1214_v48 }
 0x148   : > { %v1383_v3 = vmul.f32 0.1, %v1255_v18  ;;  %1799 = vst.msk [vmem:[%s2614_s30 + $0xe8] sm:$0xf] %vm1740_vm4, %v2118_v58  ;;  %v1476_v27 = vsel %vm1348_vm13, %v1284_v25, %v1412_v1  ;;  %v1258_v41 = vadd.f32 %v2904_v35, %v1187_v52  ;;  %v1290_v42 = vadd.f32 %v2904_v35, %v1219_v63 }
 0x149   : > { %1765 = vst.msk [vmem:[%s2614_s30 + $0x60] sm:$0xf] %vm1740_vm4, %v2084_v59  ;;  %v2116_v29 = vpack.c.bf16 %v1476_v27, %v1476_v27  ;;  %vm1351_vm15 = vcmp.gt.f32.partialorder %v1287_v20, 0.0  ;;  %v1415_v22 = vmul.f32 0.1, %v1287_v20  ;;  %vm1317_vm0 = vcmp.gt.f32.partialorder %v1253_v26, 0.0 }
 0x14a   : > { %v1447_v14 = vsel %vm1319_vm14, %v1255_v18, %v1383_v3  ;;  %v1381_v24 = vmul.f32 0.1, %v1253_v26  ;;  %vm1349_vm1 = vcmp.gt.f32.partialorder %v1285_v34, 0.0  ;;  %v1413_v31 = vmul.f32 0.1, %v1285_v34 }
 0x14b   : > { %v2087_v23 = vpack.c.bf16 %v1447_v14, %v1447_v14  ;;  %1797 = vst.msk [vmem:[%s2614_s30 + $0xe0] sm:$0xf] %vm1740_vm4, %v2116_v29  ;;  %v1479_v30 = vsel %vm1351_vm15, %v1287_v20, %v1415_v22  ;;  %vm1322_vm3 = vcmp.gt.f32.partialorder %v1258_v41, 0.0  ;;  %v1386_v32 = vmul.f32 0.1, %v1258_v41 }
 0x14c   : > { %v2119_v36 = vpack.c.bf16 %v1479_v30, %v1479_v30  ;;  %v1445_v2 = vsel %vm1317_vm0, %v1253_v26, %v1381_v24  ;;  %vm1354_vm5 = vcmp.gt.f32.partialorder %v1290_v42, 0.0  ;;  %v1418_v39 = vmul.f32 0.1, %v1290_v42 }
 0x14d   : > { %1768 = vst.msk [vmem:[%s2614_s30 + $0x6c] sm:$0xf] %vm1740_vm4, %v2087_v23  ;;  %v2085_v43 = vpack.c.bf16 %v1445_v2, %v1445_v2  ;;  %v1477_v45 = vsel %vm1349_vm1, %v1285_v34, %v1413_v31  ;;  %v1450_v46 = vsel %vm1322_vm3, %v1258_v41, %v1386_v32  ;;  %v1256_v44 = vadd.f32 %v2904_v35, %v1185_v28 }
 0x14e   : > { %1800 = vst.msk [vmem:[%s2614_s30 + $0xec] sm:$0xf] %vm1740_vm4, %v2119_v36  ;;  %v2117_v54 = vpack.c.bf16 %v1477_v45, %v1477_v45  ;;  %v2090_v55 = vpack.c.bf16 %v1450_v46, %v1450_v46  ;;  %v1482_v60 = vsel %vm1354_vm5, %v1290_v42, %v1418_v39  ;;  %v1288_v61 = vadd.f32 %v2904_v35, %v1217_v33 }
 0x14f   : > { %1766 = vst.msk [vmem:[%s2614_s30 + $0x64] sm:$0xf] %vm1740_vm4, %v2085_v43  ;;  %v2122_v0 = vpack.c.bf16 %v1482_v60, %v1482_v60  ;;  %vm1320_vm6 = vcmp.gt.f32.partialorder %v1256_v44, 0.0  ;;  %v1384_v4 = vmul.f32 0.1, %v1256_v44  ;;  %v1259_v5 = vadd.f32 %v2904_v35, %v1188_v40 }
 0x150   : > { %1798 = vst.msk [vmem:[%s2614_s30 + $0xe4] sm:$0xf] %vm1740_vm4, %v2117_v54  ;;  %1771 = vst.msk [vmem:[%s2614_s30 + $0x78] sm:$0xf] %vm1740_vm4, %v2090_v55  ;;  %vm1352_vm2 = vcmp.gt.f32.partialorder %v1288_v61, 0.0  ;;  %v1291_v49 = vadd.f32 %v2904_v35, %v1220_v51  ;;  %v1257_v9 = vadd.f32 %v2904_v35, %v1186_v53  ;;  %v1289_v56 = vadd.f32 %v2904_v35, %v1218_v62 }
 0x151   : > { %v1416_v6 = vmul.f32 0.1, %v1288_v61  ;;  %1803 = vst.msk [vmem:[%s2614_s30 + $0xf8] sm:$0xf] %vm1740_vm4, %v2122_v0  ;;  %v1448_v7 = vsel %vm1320_vm6, %v1256_v44, %v1384_v4  ;;  %vm1323_vm7 = vcmp.gt.f32.partialorder %v1259_v5, 0.0 }
 0x152   : > { %v1387_v8 = vmul.f32 0.1, %v1259_v5  ;;  %v2088_v10 = vpack.c.bf16 %v1448_v7, %v1448_v7  ;;  %vm1355_vm8 = vcmp.gt.f32.partialorder %v1291_v49, 0.0  ;;  %v1419_v12 = vmul.f32 0.1, %v1291_v49 }
 0x153   : > { %v1480_v11 = vsel %vm1352_vm2, %v1288_v61, %v1416_v6  ;;  %vm1321_vm9 = vcmp.gt.f32.partialorder %v1257_v9, 0.0  ;;  %v1385_v16 = vmul.f32 0.1, %v1257_v9  ;;  %vm1353_vm10 = vcmp.gt.f32.partialorder %v1289_v56, 0.0 }
 0x154   : > { %v2120_v50 = vpack.c.bf16 %v1480_v11, %v1480_v11  ;;  %v1451_v13 = vsel %vm1323_vm7, %v1259_v5, %v1387_v8  ;;  %1769 = vst.msk [vmem:[%s2614_s30 + $0x70] sm:$0xf] %vm1740_vm4, %v2088_v10  ;;  %v1483_v17 = vsel %vm1355_vm8, %v1291_v49, %v1419_v12  ;;  %v1417_v25 = vmul.f32 0.1, %v1289_v56 }
 0x155   : > { %v2091_v21 = vpack.c.bf16 %v1451_v13, %v1451_v13  ;;  %v2123_v35 = vpack.c.bf16 %v1483_v17, %v1483_v17  ;;  %v1449_v18 = vsel %vm1321_vm9, %v1257_v9, %v1385_v16 }
 0x156   : > { %1801 = vst.msk [vmem:[%s2614_s30 + $0xf0] sm:$0xf] %vm1740_vm4, %v2120_v50  ;;  %v2089_v15 = vpack.c.bf16 %v1449_v18, %v1449_v18  ;;  %v1481_v19 = vsel %vm1353_vm10, %v1289_v56, %v1417_v25 }
 0x157   : > { %1772 = vst.msk [vmem:[%s2614_s30 + $0x7c] sm:$0xf] %vm1740_vm4, %v2091_v21  ;;  %1804 = vst.msk [vmem:[%s2614_s30 + $0xfc] sm:$0xf] %vm1740_vm4, %v2123_v35  ;;  %v2121_v37 = vpack.c.bf16 %v1481_v19, %v1481_v19 }
 0x158   : > { %1770 = vst.msk [vmem:[%s2614_s30 + $0x74] sm:$0xf] %vm1740_vm4, %v2089_v15 }
 0x159   : > { %1802 = vst.msk [vmem:[%s2614_s30 + $0xf4] sm:$0xf] %vm1740_vm4, %v2121_v37 }
 0x15a PF: > { %s13_s14 = sadd.s32 1, %s2313_s14   ;;  %s2989_s12 = smov %s2309_s13 }
 0x15b   : > { %p10_p5 = scmp.ge.s32.totalorder %s13_s14, 6   ;;  %s2990_s13 = smov %s2992_s15 }
 0x15d   :  { %12 = sbr.rel (!%p10_p5) target bundleno = 2 (0x2), region = 76 }

// kernel: simple_10cnn_forward.12
= control target key start
LH: loop header
LB: loop body
LE: loop exit
PB: predicated region body
PF: predicated region fallthrough
CT: control target
= control target key end

     0   :  { %vm19_vm0 = vcmask 261120   ;;  %v661_v0 = vmov 0   ;;  %v662_v2 = vmov 0.0   ;;  %vm212_vm1 = vcmask 130048   ;;  %s901_s1 = inlined_call_operand.vmem [shape: bf16[144,32], index: 1, kind: input, shape index: {}]   ;;  %s902_s0 = inlined_call_operand.vmem [shape: bf16[128,144], index: 0, kind: input, shape index: {}]   ;;  %s903_s2 = inlined_call_operand.vmem [shape: f32[1,32], index: 2, kind: input, shape index: {}]   ;;  %s904_s3 = inlined_call_operand.vmem [shape: bf16[128,32], index: 3, kind: output, shape index: {}]  }
   0x1   :  { %237 = vmatprep.subr.bf16.mxu0 %v661_v0  ;;  %608 = vmatprep.subr.bf16.mxu1 %v661_v0  ;;  %v628_v1 = vld [vmem:[%s901_s1] sm:$0xff]   ;;  %20 = vst.msk [vmem:[#allocation2] sm:$0xff] %vm19_vm0, %v662_v2  ;;  %21 = vst.msk [vmem:[#allocation2 + $0x8] sm:$0xff] %vm19_vm0, %v662_v2  ;;  %v629_v3 = vld [vmem:[%s901_s1 + $0x8] sm:$0xff]   ;;  %vm521_vm4 = vcmask 257024  }
   0x2   :  { %22 = vst.msk [vmem:[#allocation2 + $0x10] sm:$0xff] %vm19_vm0, %v662_v2  ;;  %23 = vst.msk [vmem:[#allocation2 + $0x18] sm:$0xff] %vm19_vm0, %v662_v2  ;;  %238 = vmatpush1.bf16.msra.mxu0 %v628_v1  ;;  %617 = vmatpush1.bf16.msra.mxu1 %v628_v1  ;;  %v630_v4 = vld [vmem:[%s901_s1 + $0x10] sm:$0xff]   ;;  %v631_v5 = vld [vmem:[%s901_s1 + $0x18] sm:$0xff]  }
   0x3   :  { %24 = vst.msk [vmem:[#allocation2 + $0x20] sm:$0xff] %vm19_vm0, %v662_v2  ;;  %25 = vst.msk [vmem:[#allocation2 + $0x28] sm:$0xff] %vm19_vm0, %v662_v2  ;;  %239 = vmatprep.subr.bf16.mxu0 %v661_v0  ;;  %609 = vmatprep.subr.bf16.mxu1 %v661_v0  ;;  %v639_v6 = vld [vmem:[%s902_s0 + $0x4] ss:$8 sps:$4 sm:$0xff]   ;;  %v634_v10 = vld [vmem:[%s901_s1 + $0x30] sm:$0xff]  }
   0x4   :  { %26 = vst.msk [vmem:[#allocation2 + $0x30] sm:$0xff] %vm19_vm0, %v662_v2  ;;  %27 = vst.msk [vmem:[#allocation2 + $0x38] sm:$0xff] %vm19_vm0, %v662_v2  ;;  %v642_v7 = vld [vmem:[%s902_s0 + $0x44] ss:$8 sps:$4 sm:$0xff]   ;;  %567 = vmatprep.mubr.msk.bf16.mxu0 %vm212_vm1, %v639_v6  ;;  %v635_v11 = vld [vmem:[%s901_s1 + $0x38] sm:$0xff]  }
   0x5   :  { %28 = vst.msk [vmem:[#allocation2 + $0x40] sm:$0xff] %vm19_vm0, %v662_v2  ;;  %29 = vst.msk [vmem:[#allocation2 + $0x48] sm:$0xff] %vm19_vm0, %v662_v2  ;;  %571 = vmatprep.mubr.msk.bf16.mxu1 %vm212_vm1, %v642_v7  ;;  %v632_v8 = vld [vmem:[%s901_s1 + $0x20] sm:$0xff]   ;;  %v633_v9 = vld [vmem:[%s901_s1 + $0x28] sm:$0xff]  }
   0x6   :  { %30 = vst.msk [vmem:[#allocation2 + $0x50] sm:$0xff] %vm19_vm0, %v662_v2  ;;  %31 = vst.msk [vmem:[#allocation2 + $0x58] sm:$0xff] %vm19_vm0, %v662_v2  ;;  %240 = vmatpush1.bf16.msra.mxu0 %v629_v3  ;;  %618 = vmatpush1.bf16.msra.mxu1 %v629_v3  ;;  %v636_v12 = vld [vmem:[%s901_s1 + $0x40] sm:$0xff]   ;;  %v643_v15 = vld [vmem:[%s902_s0 + $0x14] ss:$8 sps:$4 sm:$0xff]  }
   0x7   :  { %32 = vst.msk [vmem:[#allocation2 + $0x60] sm:$0xff] %vm19_vm0, %v662_v2  ;;  %33 = vst.msk [vmem:[#allocation2 + $0x68] sm:$0xff] %vm19_vm0, %v662_v2  ;;  %241 = vmatprep.subr.bf16.mxu0 %v661_v0  ;;  %610 = vmatprep.subr.bf16.mxu1 %v661_v0  ;;  %v637_v13 = vld [vmem:[%s902_s0] ss:$8 sps:$4 sm:$0xff]   ;;  %v645_v16 = vld [vmem:[%s902_s0 + $0x54] ss:$8 sps:$4 sm:$0xff]  }
   0x8   :  { %34 = vst.msk [vmem:[#allocation2 + $0x70] sm:$0xff] %vm19_vm0, %v662_v2  ;;  %35 = vst.msk [vmem:[#allocation2 + $0x78] sm:$0xff] %vm19_vm0, %v662_v2  ;;  %v640_v14 = vld [vmem:[%s902_s0 + $0x40] ss:$8 sps:$4 sm:$0xff]   ;;  %v647_v17 = vld [vmem:[%s902_s0 + $0x10] ss:$8 sps:$4 sm:$0xff]  }
   0x9   :  { %v648_v18 = vld [vmem:[%s902_s0 + $0x50] ss:$8 sps:$4 sm:$0xff]   ;;  %v649_v19 = vld [vmem:[%s902_s0 + $0x24] ss:$8 sps:$4 sm:$0xff]   ;;  %v653_v21 = vld [vmem:[%s902_s0 + $0x20] ss:$8 sps:$4 sm:$0xff]  }
   0xa   :  { %242 = vmatpush1.bf16.msra.mxu0 %v630_v4  ;;  %619 = vmatpush1.bf16.msra.mxu1 %v630_v4  ;;  %v651_v20 = vld [vmem:[%s902_s0 + $0x64] ss:$8 sps:$4 sm:$0xff]   ;;  %v654_v22 = vld [vmem:[%s902_s0 + $0x60] ss:$8 sps:$4 sm:$0xff]   ;;  %v655_v23 = vld [vmem:[%s902_s0 + $0x34] ss:$8 sps:$4 sm:$0xff]  }
   0xb   :  { %243 = vmatprep.subr.bf16.mxu0 %v661_v0  ;;  %611 = vmatprep.subr.bf16.mxu1 %v661_v0  ;;  %v657_v24 = vld [vmem:[%s902_s0 + $0x74] ss:$8 sps:$4 sm:$0xff]   ;;  %v659_v25 = vld [vmem:[%s902_s0 + $0x30] ss:$8 sps:$4 sm:$0xff]   ;;  %v36_v27 = vld [vmem:[#allocation2] sm:$0xff] }
   0xc   :  { %v660_v26 = vld [vmem:[%s902_s0 + $0x70] ss:$8 sps:$4 sm:$0xff]   ;;  %v44_v28 = vld [vmem:[#allocation2 + $0x40] sm:$0xff]  ;;  %v37_v31 = vld [vmem:[#allocation2 + $0x8] sm:$0xff] }
   0xd   :  { %v45_v32 = vld [vmem:[#allocation2 + $0x48] sm:$0xff]  ;;  %v38_v43 = vld [vmem:[#allocation2 + $0x10] sm:$0xff]  ;;  %v807_v45 = vld [vmem:[%s903_s2] ss:$0 sm:$0xff] }
   0xe   :  { %244 = vmatpush1.bf16.msra.mxu0 %v631_v5  ;;  %620 = vmatpush1.bf16.msra.mxu1 %v631_v5  ;;  %v46_v44 = vld [vmem:[#allocation2 + $0x50] sm:$0xff]  ;;  %v39_v48 = vld [vmem:[#allocation2 + $0x18] sm:$0xff]  ;;  %v40_v6 = vld [vmem:[#allocation2 + $0x20] sm:$0xff] }
   0xf   :  { %245 = vmatprep.subr.bf16.mxu0 %v661_v0  ;;  %612 = vmatprep.subr.bf16.mxu1 %v661_v0  ;;  %v47_v49 = vld [vmem:[#allocation2 + $0x58] sm:$0xff]  ;;  %v48_v7 = vld [vmem:[#allocation2 + $0x60] sm:$0xff] }
  0x12   :  { %246 = vmatpush1.bf16.msra.mxu0 %v632_v8  ;;  %621 = vmatpush1.bf16.msra.mxu1 %v632_v8 }
  0x13   :  { %247 = vmatprep.subr.bf16.mxu0 %v661_v0  ;;  %613 = vmatprep.subr.bf16.mxu1 %v661_v0 }
  0x16   :  { %248 = vmatpush1.bf16.msra.mxu0 %v633_v9  ;;  %622 = vmatpush1.bf16.msra.mxu1 %v633_v9 }
  0x17   :  { %249 = vmatprep.subr.bf16.mxu0 %v661_v0  ;;  %614 = vmatprep.subr.bf16.mxu1 %v661_v0 }
  0x1a   :  { %250 = vmatpush1.bf16.msra.mxu0 %v634_v10  ;;  %623 = vmatpush1.bf16.msra.mxu1 %v634_v10 }
  0x1b   :  { %251 = vmatprep.subr.bf16.mxu0 %v661_v0  ;;  %615 = vmatprep.subr.bf16.mxu1 %v661_v0 }
  0x1e   :  { %252 = vmatpush1.bf16.msra.mxu0 %v635_v11  ;;  %624 = vmatpush1.bf16.msra.mxu1 %v635_v11 }
  0x1f   :  { %253 = vmatprep.subr.bf16.mxu0 %v661_v0  ;;  %616 = vmatprep.subr.bf16.mxu1 %v661_v0 }
  0x22   :  { %254 = vmatpush1.bf16.msra.mxu0 %v636_v12  ;;  %625 = vmatpush1.bf16.msra.mxu1 %v636_v12 }
  0x25   :  { %270 = vmatmul.mubr.bf16.vlgmr.msra.gmra.mrb[0].mxu0 %v637_v13  ;;  %302 = vmatmul.mubr.bf16.vlgmr.msra.gmra.mrb[0].mxu1 %v640_v14 }
  0x26   :  { %568 = vmatprep.mubr.msk.bf16.mxu0 %vm212_vm1, %v643_v15  ;;  %572 = vmatprep.mubr.msk.bf16.mxu1 %vm212_vm1, %v645_v16  ;;  %v41_v15 = vld [vmem:[#allocation2 + $0x28] sm:$0xff] }
  0x2d   :  { %278 = vmatmul.mubr.bf16.gmra.mrb[4].mxu0 %v647_v17  ;;  %310 = vmatmul.mubr.bf16.gmra.mrb[4].mxu1 %v648_v18 }
  0x2e   :  { %569 = vmatprep.mubr.msk.bf16.mxu0 %vm212_vm1, %v649_v19  ;;  %573 = vmatprep.mubr.msk.bf16.mxu1 %vm212_vm1, %v651_v20 }
  0x35   :  { %286 = vmatmul.mubr.bf16.gmra.mrb[8].mxu0 %v653_v21  ;;  %318 = vmatmul.mubr.bf16.gmra.mrb[8].mxu1 %v654_v22  ;;  %v49_v21 = vld [vmem:[#allocation2 + $0x68] sm:$0xff] }
  0x36   :  { %570 = vmatprep.mubr.msk.bf16.mxu0 %vm212_vm1, %v655_v23  ;;  %574 = vmatprep.mubr.msk.bf16.mxu1 %vm212_vm1, %v657_v24 }
  0x3d   :  { %294 = vmatmul.mubr.bf16.gmra.mrb[12].mxu0 %v659_v25  ;;  %326 = vmatmul.mubr.bf16.gmra.mrb[12].mxu1 %v660_v26 }
  0xf8   :  { %v271_v29 = vpop.f32.mrb[0].mxu0  ;;  %v303_v30 = vpop.f32.mrb[0].mxu1 }
  0xf9   :  { %v334_v33 = vadd.f32 %v271_v29, %v36_v27  ;;  %v342_v34 = vadd.f32 %v303_v30, %v44_v28  ;;  %v273_v35 = vpop.f32.mrb[1].mxu0  ;;  %v305_v36 = vpop.f32.mrb[1].mxu1 }
  0xfa   :  { %v274_v37 = vpop.f32.mrb[2].mxu0  ;;  %v306_v38 = vpop.f32.mrb[2].mxu1 }
  0xfb   :  { %351 = vst.msk [vmem:[#allocation2] sm:$0xff] %vm19_vm0, %v334_v33  ;;  %359 = vst.msk [vmem:[#allocation2 + $0x40] sm:$0xff] %vm19_vm0, %v342_v34  ;;  %v335_v39 = vadd.f32 %v274_v37, %v37_v31  ;;  %v343_v40 = vadd.f32 %v306_v38, %v45_v32  ;;  %v276_v41 = vpop.f32.mrb[3].mxu0  ;;  %v308_v42 = vpop.f32.mrb[3].mxu1 }
  0xfc   :  { %v42_v42 = vld [vmem:[#allocation2 + $0x30] sm:$0xff] }
  0xfd   :  { %352 = vst.msk [vmem:[#allocation2 + $0x8] sm:$0xff] %vm19_vm0, %v335_v39  ;;  %360 = vst.msk [vmem:[#allocation2 + $0x48] sm:$0xff] %vm19_vm0, %v343_v40 }
 0x100   :  { %v279_v46 = vpop.f32.mrb[4].mxu0  ;;  %v311_v47 = vpop.f32.mrb[4].mxu1 }
 0x101   :  { %v336_v50 = vadd.f32 %v279_v46, %v38_v43  ;;  %v344_v51 = vadd.f32 %v311_v47, %v46_v44  ;;  %v281_v52 = vpop.f32.mrb[5].mxu0  ;;  %v313_v53 = vpop.f32.mrb[5].mxu1  ;;  %v50_v43 = vld [vmem:[#allocation2 + $0x70] sm:$0xff] }
 0x102   :  { %v370_v54 = vld [vmem:[#allocation2] sm:$0xff]  ;;  %v282_v56 = vpop.f32.mrb[6].mxu0  ;;  %v314_v57 = vpop.f32.mrb[6].mxu1  ;;  %v43_v52 = vld [vmem:[#allocation2 + $0x38] sm:$0xff] }
 0x103   :  { %v378_v55 = vld [vmem:[#allocation2 + $0x40] sm:$0xff]  ;;  %v393_v58 = vadd.f32 %v807_v45, %v370_v54  ;;  %353 = vst.msk [vmem:[#allocation2 + $0x10] sm:$0xff] %vm19_vm0, %v336_v50  ;;  %361 = vst.msk [vmem:[#allocation2 + $0x50] sm:$0xff] %vm19_vm0, %v344_v51  ;;  %v337_v60 = vadd.f32 %v282_v56, %v39_v48  ;;  %v345_v61 = vadd.f32 %v314_v57, %v47_v49  ;;  %v284_v62 = vpop.f32.mrb[7].mxu0  ;;  %v316_v63 = vpop.f32.mrb[7].mxu1 }
 0x104   :  { %v401_v59 = vadd.f32 %v807_v45, %v378_v55  ;;  %v371_v0 = vld [vmem:[#allocation2 + $0x8] sm:$0xff] }
 0x105   :  { %v379_v1 = vld [vmem:[#allocation2 + $0x48] sm:$0xff]  ;;  %vm409_vm2 = vcmp.gt.f32.partialorder %v393_v58, 0.0  ;;  %v425_v2 = vmul.f32 0.1, %v393_v58  ;;  %354 = vst.msk [vmem:[#allocation2 + $0x18] sm:$0xff] %vm19_vm0, %v337_v60  ;;  %362 = vst.msk [vmem:[#allocation2 + $0x58] sm:$0xff] %vm19_vm0, %v345_v61  ;;  %v394_v4 = vadd.f32 %v807_v45, %v371_v0 }
 0x106   :  { %vm417_vm3 = vcmp.gt.f32.partialorder %v401_v59, 0.0  ;;  %v433_v3 = vmul.f32 0.1, %v401_v59  ;;  %v402_v5 = vadd.f32 %v807_v45, %v379_v1 }
 0x107   :  { %v441_v8 = vsel %vm409_vm2, %v393_v58, %v425_v2  ;;  %vm410_vm5 = vcmp.gt.f32.partialorder %v394_v4, 0.0  ;;  %v426_v12 = vmul.f32 0.1, %v394_v4  ;;  %v51_v58 = vld [vmem:[#allocation2 + $0x78] sm:$0xff] }
 0x108   :  { %v449_v9 = vsel %vm417_vm3, %v401_v59, %v433_v3  ;;  %v592_v10 = vpack.c.bf16 %v441_v8, %v441_v8  ;;  %v287_v13 = vpop.f32.mrb[8].mxu0  ;;  %v319_v14 = vpop.f32.mrb[8].mxu1  ;;  %vm418_vm6 = vcmp.gt.f32.partialorder %v402_v5, 0.0  ;;  %v434_v16 = vmul.f32 0.1, %v402_v5 }
 0x109   :  { %v600_v11 = vpack.c.bf16 %v449_v9, %v449_v9  ;;  %v338_v17 = vadd.f32 %v287_v13, %v40_v6  ;;  %v346_v18 = vadd.f32 %v319_v14, %v48_v7  ;;  %v289_v19 = vpop.f32.mrb[9].mxu0  ;;  %v321_v20 = vpop.f32.mrb[9].mxu1  ;;  %v442_v22 = vsel %vm410_vm5, %v394_v4, %v426_v12 }
 0x10a   :  { %522 = vst.msk [vmem:[%s904_s3] sm:$0xf] %vm521_vm4, %v592_v10  ;;  %v372_v23 = vld [vmem:[#allocation2 + $0x10] sm:$0xff]  ;;  %v290_v25 = vpop.f32.mrb[10].mxu0  ;;  %v322_v26 = vpop.f32.mrb[10].mxu1  ;;  %v593_v27 = vpack.c.bf16 %v442_v22, %v442_v22  ;;  %v450_v28 = vsel %vm418_vm6, %v402_v5, %v434_v16 }
 0x10b   :  { %530 = vst.msk [vmem:[%s904_s3 + $0x20] sm:$0xf] %vm521_vm4, %v600_v11  ;;  %v380_v24 = vld [vmem:[#allocation2 + $0x50] sm:$0xff]  ;;  %v395_v29 = vadd.f32 %v807_v45, %v372_v23  ;;  %v292_v31 = vpop.f32.mrb[11].mxu0  ;;  %v324_v32 = vpop.f32.mrb[11].mxu1  ;;  %v601_v33 = vpack.c.bf16 %v450_v28, %v450_v28  ;;  %v339_v36 = vadd.f32 %v290_v25, %v41_v15  ;;  %v347_v37 = vadd.f32 %v322_v26, %v49_v21 }
 0x10c   :  { %v403_v30 = vadd.f32 %v807_v45, %v380_v24  ;;  %355 = vst.msk [vmem:[#allocation2 + $0x20] sm:$0xff] %vm19_vm0, %v338_v17  ;;  %363 = vst.msk [vmem:[#allocation2 + $0x60] sm:$0xff] %vm19_vm0, %v346_v18  ;;  %v373_v34 = vld [vmem:[#allocation2 + $0x18] sm:$0xff] }
 0x10d   :  { %v381_v35 = vld [vmem:[#allocation2 + $0x58] sm:$0xff]  ;;  %523 = vst.msk [vmem:[%s904_s3 + $0x4] sm:$0xf] %vm521_vm4, %v593_v27  ;;  %vm411_vm7 = vcmp.gt.f32.partialorder %v395_v29, 0.0  ;;  %v427_v38 = vmul.f32 0.1, %v395_v29  ;;  %v396_v40 = vadd.f32 %v807_v45, %v373_v34 }
 0x10e   :  { %vm419_vm8 = vcmp.gt.f32.partialorder %v403_v30, 0.0  ;;  %v435_v39 = vmul.f32 0.1, %v403_v30  ;;  %531 = vst.msk [vmem:[%s904_s3 + $0x24] sm:$0xf] %vm521_vm4, %v601_v33  ;;  %v404_v41 = vadd.f32 %v807_v45, %v381_v35 }
 0x10f   :  { %356 = vst.msk [vmem:[#allocation2 + $0x28] sm:$0xff] %vm19_vm0, %v339_v36  ;;  %364 = vst.msk [vmem:[#allocation2 + $0x68] sm:$0xff] %vm19_vm0, %v347_v37  ;;  %v443_v44 = vsel %vm411_vm7, %v395_v29, %v427_v38  ;;  %vm412_vm9 = vcmp.gt.f32.partialorder %v396_v40, 0.0  ;;  %v428_v49 = vmul.f32 0.1, %v396_v40 }
 0x110   :  { %v451_v46 = vsel %vm419_vm8, %v403_v30, %v435_v39  ;;  %v594_v47 = vpack.c.bf16 %v443_v44, %v443_v44  ;;  %v295_v50 = vpop.f32.mrb[12].mxu0  ;;  %v327_v51 = vpop.f32.mrb[12].mxu1  ;;  %vm420_vm10 = vcmp.gt.f32.partialorder %v404_v41, 0.0  ;;  %v436_v53 = vmul.f32 0.1, %v404_v41 }
 0x111   :  { %v602_v48 = vpack.c.bf16 %v451_v46, %v451_v46  ;;  %v340_v54 = vadd.f32 %v295_v50, %v42_v42  ;;  %v348_v55 = vadd.f32 %v327_v51, %v50_v43  ;;  %v297_v56 = vpop.f32.mrb[13].mxu0  ;;  %v329_v57 = vpop.f32.mrb[13].mxu1  ;;  %v444_v59 = vsel %vm412_vm9, %v396_v40, %v428_v49 }
 0x112   :  { %524 = vst.msk [vmem:[%s904_s3 + $0x8] sm:$0xf] %vm521_vm4, %v594_v47  ;;  %v298_v62 = vpop.f32.mrb[14].mxu0  ;;  %v330_v63 = vpop.f32.mrb[14].mxu1  ;;  %v595_v0 = vpack.c.bf16 %v444_v59, %v444_v59  ;;  %v452_v1 = vsel %vm420_vm10, %v404_v41, %v436_v53 }
 0x113   :  { %532 = vst.msk [vmem:[%s904_s3 + $0x28] sm:$0xf] %vm521_vm4, %v602_v48  ;;  %v374_v60 = vld [vmem:[#allocation2 + $0x20] sm:$0xff]  ;;  %v300_v4 = vpop.f32.mrb[15].mxu0  ;;  %v332_v5 = vpop.f32.mrb[15].mxu1  ;;  %v603_v6 = vpack.c.bf16 %v452_v1, %v452_v1  ;;  %v341_v7 = vadd.f32 %v298_v62, %v43_v52  ;;  %v349_v8 = vadd.f32 %v330_v63, %v51_v58 }
 0x114   :  { %v382_v61 = vld [vmem:[#allocation2 + $0x60] sm:$0xff]  ;;  %v397_v2 = vadd.f32 %v807_v45, %v374_v60  ;;  %357 = vst.msk [vmem:[#allocation2 + $0x30] sm:$0xff] %vm19_vm0, %v340_v54  ;;  %365 = vst.msk [vmem:[#allocation2 + $0x70] sm:$0xff] %vm19_vm0, %v348_v55 }
 0x115   :  { %v405_v3 = vadd.f32 %v807_v45, %v382_v61  ;;  %525 = vst.msk [vmem:[%s904_s3 + $0xc] sm:$0xf] %vm521_vm4, %v595_v0  ;;  %533 = vst.msk [vmem:[%s904_s3 + $0x2c] sm:$0xf] %vm521_vm4, %v603_v6 }
 0x116   :  { %vm413_vm11 = vcmp.gt.f32.partialorder %v397_v2, 0.0  ;;  %v429_v9 = vmul.f32 0.1, %v397_v2  ;;  %v375_v11 = vld [vmem:[#allocation2 + $0x28] sm:$0xff]  ;;  %358 = vst.msk [vmem:[#allocation2 + $0x38] sm:$0xff] %vm19_vm0, %v341_v7  ;;  %366 = vst.msk [vmem:[#allocation2 + $0x78] sm:$0xff] %vm19_vm0, %v349_v8 }
 0x117   :  { %vm421_vm12 = vcmp.gt.f32.partialorder %v405_v3, 0.0  ;;  %v437_v10 = vmul.f32 0.1, %v405_v3  ;;  %v383_v12 = vld [vmem:[#allocation2 + $0x68] sm:$0xff]  ;;  %v398_v15 = vadd.f32 %v807_v45, %v375_v11 }
 0x118   :  { %v445_v13 = vsel %vm413_vm11, %v397_v2, %v429_v9  ;;  %v406_v16 = vadd.f32 %v807_v45, %v383_v12 }
 0x119   :  { %v453_v14 = vsel %vm421_vm12, %v405_v3, %v437_v10  ;;  %v596_v17 = vpack.c.bf16 %v445_v13, %v445_v13  ;;  %vm414_vm13 = vcmp.gt.f32.partialorder %v398_v15, 0.0  ;;  %v430_v19 = vmul.f32 0.1, %v398_v15 }
 0x11a   :  { %v604_v18 = vpack.c.bf16 %v453_v14, %v453_v14  ;;  %vm422_vm14 = vcmp.gt.f32.partialorder %v406_v16, 0.0  ;;  %v438_v20 = vmul.f32 0.1, %v406_v16 }
 0x11b   :  { %526 = vst.msk [vmem:[%s904_s3 + $0x10] sm:$0xf] %vm521_vm4, %v596_v17  ;;  %v376_v21 = vld [vmem:[#allocation2 + $0x30] sm:$0xff]  ;;  %v446_v23 = vsel %vm414_vm13, %v398_v15, %v430_v19 }
 0x11c   :  { %534 = vst.msk [vmem:[%s904_s3 + $0x30] sm:$0xf] %vm521_vm4, %v604_v18  ;;  %v384_v22 = vld [vmem:[#allocation2 + $0x70] sm:$0xff]  ;;  %v454_v24 = vsel %vm422_vm14, %v406_v16, %v438_v20  ;;  %v399_v25 = vadd.f32 %v807_v45, %v376_v21  ;;  %v597_v27 = vpack.c.bf16 %v446_v23, %v446_v23 }
 0x11d   :  { %v407_v26 = vadd.f32 %v807_v45, %v384_v22  ;;  %v605_v28 = vpack.c.bf16 %v454_v24, %v454_v24  ;;  %v377_v31 = vld [vmem:[#allocation2 + $0x38] sm:$0xff] }
 0x11e   :  { %vm415_vm15 = vcmp.gt.f32.partialorder %v399_v25, 0.0  ;;  %v431_v29 = vmul.f32 0.1, %v399_v25  ;;  %527 = vst.msk [vmem:[%s904_s3 + $0x14] sm:$0xf] %vm521_vm4, %v597_v27  ;;  %v385_v32 = vld [vmem:[#allocation2 + $0x78] sm:$0xff]  ;;  %v400_v35 = vadd.f32 %v807_v45, %v377_v31 }
 0x11f   :  { %vm423_vm0 = vcmp.gt.f32.partialorder %v407_v26, 0.0  ;;  %v439_v30 = vmul.f32 0.1, %v407_v26  ;;  %535 = vst.msk [vmem:[%s904_s3 + $0x34] sm:$0xf] %vm521_vm4, %v605_v28  ;;  %v408_v36 = vadd.f32 %v807_v45, %v385_v32 }
 0x120   :  { %v447_v33 = vsel %vm415_vm15, %v399_v25, %v431_v29  ;;  %vm416_vm1 = vcmp.gt.f32.partialorder %v400_v35, 0.0  ;;  %v432_v39 = vmul.f32 0.1, %v400_v35 }
 0x121   :  { %v455_v34 = vsel %vm423_vm0, %v407_v26, %v439_v30  ;;  %v598_v37 = vpack.c.bf16 %v447_v33, %v447_v33  ;;  %vm424_vm2 = vcmp.gt.f32.partialorder %v408_v36, 0.0  ;;  %v440_v40 = vmul.f32 0.1, %v408_v36 }
 0x122   :  { %v606_v38 = vpack.c.bf16 %v455_v34, %v455_v34  ;;  %v448_v41 = vsel %vm416_vm1, %v400_v35, %v432_v39 }
 0x123   :  { %528 = vst.msk [vmem:[%s904_s3 + $0x18] sm:$0xf] %vm521_vm4, %v598_v37  ;;  %v456_v42 = vsel %vm424_vm2, %v408_v36, %v440_v40  ;;  %v599_v43 = vpack.c.bf16 %v448_v41, %v448_v41 }
 0x124   :  { %536 = vst.msk [vmem:[%s904_s3 + $0x38] sm:$0xf] %vm521_vm4, %v606_v38  ;;  %v607_v45 = vpack.c.bf16 %v456_v42, %v456_v42 }
 0x125   :  { %529 = vst.msk [vmem:[%s904_s3 + $0x1c] sm:$0xf] %vm521_vm4, %v599_v43 }
 0x126   :  { %537 = vst.msk [vmem:[%s904_s3 + $0x3c] sm:$0xf] %vm521_vm4, %v607_v45 }

// kernel: simple_10cnn_forward.13
= control target key start
LH: loop header
LB: loop body
LE: loop exit
PB: predicated region body
PF: predicated region fallthrough
CT: control target
= control target key end

     0   :  { %vm19_vm0 = vcmask 523264   ;;  %v366_v1 = vmov 0.0   ;;  %vm367_vm1 = vmmov 0   ;;  %vm178_vm2 = vcmask 261120   ;;  %s456_s1 = inlined_call_operand.vmem [shape: bf16[288,64], index: 1, kind: input, shape index: {}]   ;;  %s457_s0 = inlined_call_operand.vmem [shape: bf16[8,288], index: 0, kind: input, shape index: {}]   ;;  %s458_s2 = inlined_call_operand.vmem [shape: f32[1,64], index: 2, kind: input, shape index: {}]   ;;  %s459_s3 = inlined_call_operand.vmem [shape: bf16[8,64], index: 3, kind: output, shape index: {}]  }
   0x1   :  { %v345_v0 = vld [vmem:[%s456_s1 + $0x40] sm:$0xff]   ;;  %20 = vst.msk [vmem:[#allocation2] sm:$0xff] %vm19_vm0, %v366_v1  ;;  %335 = vmatprep.subr.bf16.mxu1 %v366_v1  ;;  %339 = vmatprep.mubr.msk.bf16.mxu1 %vm367_vm1, %v366_v1  ;;  %v347_v3 = vld [vmem:[%s456_s1 + $0x48] sm:$0xff]   ;;  %v349_v5 = vld [vmem:[%s456_s1 + $0x50] sm:$0xff]   ;;  %vm281_vm4 = vcmask 519168  }
   0x2   :  { %v346_v2 = vld [vmem:[%s456_s1] sm:$0xff]   ;;  %310 = vmatprep.subr.bf16.mxu0 %v345_v0  ;;  %v348_v4 = vld [vmem:[%s456_s1 + $0x8] sm:$0xff]   ;;  %v350_v6 = vld [vmem:[%s456_s1 + $0x10] sm:$0xff]  }
   0x3   :  { %311 = vmatpush3.bf16.msra.mxu0 %v346_v2  ;;  %v351_v7 = vld [vmem:[%s456_s1 + $0x58] sm:$0xff]   ;;  %v353_v9 = vld [vmem:[%s456_s1 + $0x60] sm:$0xff]   ;;  %v355_v12 = vld [vmem:[%s456_s1 + $0x68] sm:$0xff]  }
   0x4   :  { %312 = vmatprep.subr.bf16.mxu0 %v347_v3  ;;  %v352_v8 = vld [vmem:[%s456_s1 + $0x18] sm:$0xff]   ;;  %v359_v10 = vld [vmem:[%s456_s1 + $0x80] sm:$0xff]   ;;  %v362_v13 = vld [vmem:[%s456_s1 + $0x88] sm:$0xff]  }
   0x5   :  { %v354_v11 = vld [vmem:[%s456_s1 + $0x20] sm:$0xff]   ;;  %336 = vmatpush3.bf16.msra.mxu1 %v359_v10  ;;  %v356_v15 = vld [vmem:[%s456_s1 + $0x28] sm:$0xff]   ;;  %v357_v18 = vld [vmem:[%s456_s1 + $0x70] sm:$0xff]  }
   0x6   :  { %337 = vmatprep.subr.bf16.mxu1 %v366_v1  ;;  %v22_v14 = vld [vmem:[%s457_s0] sm:$0xff]  ;;  %v365_v17 = vld [vmem:[%s457_s0 + $0x8] ss:$0 sps:$4 sm:$0xff]   ;;  %v358_v19 = vld [vmem:[%s456_s1 + $0x30] sm:$0xff]  }
   0x7   :  { %313 = vmatpush3.bf16.msra.mxu0 %v348_v4  ;;  %v288_v16 = vcombine.high %v22_v14, %v22_v14  ;;  %v360_v20 = vld [vmem:[%s456_s1 + $0x78] sm:$0xff]   ;;  %v287_v22 = vcombine.low %v22_v14, %v22_v14  ;;  %v309_v35 = vld [vmem:[%s458_s2] ss:$0 sm:$0xff] }
   0x8   :  { %314 = vmatprep.subr.bf16.mxu0 %v349_v5  ;;  %v361_v21 = vld [vmem:[%s456_s1 + $0x38] sm:$0xff]   ;;  %v21_v31 = vld [vmem:[#allocation2] sm:$0xff] }
   0x9   :  { %338 = vmatpush3.bf16.msra.mxu1 %v362_v13  ;;  %214 = vmatprep.mubr.bf16.mxu0 %v288_v16 }
   0xb   :  { %315 = vmatpush3.bf16.msra.mxu0 %v350_v6 }
   0xc   :  { %316 = vmatprep.subr.bf16.mxu0 %v351_v7  ;;  %340 = vmatmul.mubr.msk.bf16.vlgmr.msra.gmra.mrb[0].mxu1 %vm178_vm2, %v365_v17 }
   0xf   :  { %317 = vmatpush3.bf16.msra.mxu0 %v352_v8 }
  0x10   :  { %318 = vmatprep.subr.bf16.mxu0 %v353_v9 }
  0x13   :  { %319 = vmatpush3.bf16.msra.mxu0 %v354_v11 }
  0x14   :  { %320 = vmatprep.subr.bf16.mxu0 %v355_v12 }
  0x17   :  { %321 = vmatpush3.bf16.msra.mxu0 %v356_v15 }
  0x18   :  { %322 = vmatprep.subr.bf16.mxu0 %v357_v18 }
  0x1b   :  { %323 = vmatpush3.bf16.msra.mxu0 %v358_v19 }
  0x1c   :  { %324 = vmatprep.subr.bf16.mxu0 %v360_v20 }
  0x1f   :  { %325 = vmatpush3.bf16.msra.mxu0 %v361_v21 }
  0x22   :  { %215 = vmatmul.mubr.bf16.vlgmr.msra.gmra.mrb[0].mxu0 %v287_v22 }
  0xdf   :  { %v256_v23 = vpop.f32.mrb[0].mxu1 }
  0xe0   :  { %v341_v24 = vpop.f32.mrb[1].mxu1 }
  0xe1   :  { %v259_v25 = vpop.f32.mrb[2].mxu1 }
  0xe2   :  { %v342_v26 = vpop.f32.mrb[3].mxu1 }
  0xf5   :  { %v326_v27 = vpop.f32.mrb[0].mxu0 }
  0xf6   :  { %v327_v28 = vpop.f32.mrb[1].mxu0 }
  0xf7   :  { %v328_v29 = vadd.f32 %v327_v28, %v326_v27  ;;  %v329_v30 = vpop.f32.mrb[2].mxu0 }
  0xf8   :  { %v330_v32 = vpop.f32.mrb[3].mxu0 }
  0xf9   :  { %v257_v33 = vadd.f32 %v328_v29, %v256_v23 }
  0xfb   :  { %v262_v34 = vadd.f32 %v257_v33, %v21_v31 }
  0xfd   :  { %264 = vst.msk [vmem:[#allocation2] sm:$0xff] %vm19_vm0, %v262_v34 }
 0x104   :  { %v268_v36 = vld [vmem:[#allocation2] sm:$0xff] }
 0x105   :  { %v276_v37 = vadd.f32 %v309_v35, %v268_v36 }
 0x107   :  { %vm277_vm3 = vcmp.gt.f32.partialorder %v276_v37, 0.0  ;;  %v278_v38 = vmul.f32 0.1, %v276_v37 }
 0x109   :  { %v279_v39 = vsel %vm277_vm3, %v276_v37, %v278_v38 }
 0x10a   :  { %v280_v40 = vpack.c.bf16 %v279_v39, %v279_v39 }
 0x10c   :  { %282 = vst.msk [vmem:[%s459_s3] sm:$0xf] %vm281_vm4, %v280_v40 }

// kernel: simple_10cnn_forward.14
= control target key start
LH: loop header
LB: loop body
LE: loop exit
PB: predicated region body
PF: predicated region fallthrough
CT: control target
= control target key end

     0   :  { %v643_v22 = vmov 1966171168   ;;  %v100_v24 = vlaneseq  ;;  %v644_v40 = vmov 0.0   ;;  %vm645_vm0 = vmmov 0   ;;  %s785_s1 = inlined_call_operand.vmem [shape: bf16[576,64], index: 1, kind: input, shape index: {}]   ;;  %s786_s0 = inlined_call_operand.vmem [shape: bf16[2,576], index: 0, kind: input, shape index: {}]   ;;  %s787_s2 = inlined_call_operand.vmem [shape: f32[1,64], index: 2, kind: input, shape index: {}]   ;;  %s788_s3 = inlined_call_operand.vmem [shape: bf16[2,64], index: 3, kind: output, shape index: {}]  }
   0x1   :  { %v606_v0 = vld [vmem:[%s785_s1 + $0x40] sm:$0xff]   ;;  %v610_v4 = vld [vmem:[%s785_s1 + $0x48] sm:$0xff]   ;;  %v614_v8 = vld [vmem:[%s785_s1 + $0x50] sm:$0xff]   ;;  %v98_v23 = vunpack.c.l.s4 %v643_v22  ;;  %vm355_vm1 = vcmask 523264   ;;  %vm19_vm2 = vcmask 517120   ;;  %vm498_vm4 = vcmask 516096  }
   0x2   :  { %v607_v1 = vld [vmem:[%s785_s1 + $0xc0] sm:$0xff]   ;;  %542 = vmatprep.subr.bf16.mxu0 %v606_v0  ;;  %v611_v5 = vld [vmem:[%s785_s1 + $0xc8] sm:$0xff]   ;;  %v615_v9 = vld [vmem:[%s785_s1 + $0xd0] sm:$0xff]   ;;  %v101_v30 = vshrl.u32 %v100_v24, 7  ;;  %20 = vst.msk [vmem:[#allocation2] sm:$0x3] %vm19_vm2, %v644_v40 }
   0x3   :  { %v608_v2 = vld [vmem:[%s785_s1] sm:$0xff]   ;;  %564 = vmatprep.subr.bf16.mxu1 %v607_v1  ;;  %v612_v6 = vld [vmem:[%s785_s1 + $0x8] sm:$0xff]   ;;  %v616_v10 = vld [vmem:[%s785_s1 + $0x10] sm:$0xff]   ;;  %v99_v29 = vunpack.c.0.s8 %v98_v23 }
   0x4   :  { %v609_v3 = vld [vmem:[%s785_s1 + $0x80] sm:$0xff]   ;;  %543 = vmatpush3.bf16.msra.mxu0 %v608_v2  ;;  %v613_v7 = vld [vmem:[%s785_s1 + $0x88] sm:$0xff]   ;;  %v617_v11 = vld [vmem:[%s785_s1 + $0x90] sm:$0xff]  }
   0x5   :  { %565 = vmatpush3.bf16.msra.mxu1 %v609_v3  ;;  %544 = vmatprep.subr.bf16.mxu0 %v610_v4  ;;  %v618_v12 = vld [vmem:[%s785_s1 + $0x58] sm:$0xff]   ;;  %v622_v16 = vld [vmem:[%s785_s1 + $0x60] sm:$0xff]   ;;  %v626_v20 = vld [vmem:[%s785_s1 + $0x68] sm:$0xff]   ;;  %v102_v35 = vsub.s32 %v99_v29, %v101_v30 }
   0x6   :  { %566 = vmatprep.subr.bf16.mxu1 %v611_v5  ;;  %v619_v13 = vld [vmem:[%s785_s1 + $0xd8] sm:$0xff]   ;;  %v623_v17 = vld [vmem:[%s785_s1 + $0xe0] sm:$0xff]   ;;  %v627_v21 = vld [vmem:[%s785_s1 + $0xe8] sm:$0xff]  }
   0x7   :  { %v620_v14 = vld [vmem:[%s785_s1 + $0x18] sm:$0xff]   ;;  %v624_v18 = vld [vmem:[%s785_s1 + $0x20] sm:$0xff]   ;;  %v628_v25 = vld [vmem:[%s785_s1 + $0x28] sm:$0xff]  }
   0x8   :  { %545 = vmatpush3.bf16.msra.mxu0 %v612_v6  ;;  %v621_v15 = vld [vmem:[%s785_s1 + $0x98] sm:$0xff]   ;;  %v625_v19 = vld [vmem:[%s785_s1 + $0xa0] sm:$0xff]   ;;  %v629_v26 = vld [vmem:[%s785_s1 + $0xa8] sm:$0xff]  }
   0x9   :  { %567 = vmatpush3.bf16.msra.mxu1 %v613_v7  ;;  %546 = vmatprep.subr.bf16.mxu0 %v614_v8  ;;  %v630_v27 = vld [vmem:[%s785_s1 + $0x70] sm:$0xff]   ;;  %v634_v33 = vld [vmem:[%s785_s1 + $0x78] sm:$0xff]   ;;  %v22_v38 = vld [vmem:[%s786_s0] sm:$0x1f] }
   0xa   :  { %568 = vmatprep.subr.bf16.mxu1 %v615_v9  ;;  %v631_v28 = vld [vmem:[%s785_s1 + $0xf0] sm:$0xff]   ;;  %v635_v34 = vld [vmem:[%s785_s1 + $0xf8] sm:$0xff]   ;;  %v103_v39 = vrot.slane %v22_v38, %v102_v35  ;;  %v639_v44 = vld [vmem:[%s785_s1 + $0x100] sm:$0xff]   ;;  %v96_v48 = vcombine.high %v22_v38, %v22_v38 }
   0xb   :  { %v632_v31 = vld [vmem:[%s785_s1 + $0x30] sm:$0xff]   ;;  %v636_v36 = vld [vmem:[%s785_s1 + $0x38] sm:$0xff]   ;;  %v640_v47 = vld [vmem:[%s785_s1 + $0x108] sm:$0xff]  }
   0xc   :  { %547 = vmatpush3.bf16.msra.mxu0 %v616_v10  ;;  %v633_v32 = vld [vmem:[%s785_s1 + $0xb0] sm:$0xff]   ;;  %v637_v37 = vld [vmem:[%s785_s1 + $0xb8] sm:$0xff]   ;;  %v111_v41 = vcombine.high %v103_v39, %v103_v39  ;;  %v118_v42 = vrot.slane %v103_v39, %v102_v35  ;;  %v110_v50 = vrot.slane %v96_v48, %v102_v35  ;;  %v21_v0 = vld [vmem:[#allocation2] sm:$0x3] }
   0xd   :  { %569 = vmatpush3.bf16.msra.mxu1 %v617_v11  ;;  %548 = vmatprep.subr.bf16.mxu0 %v618_v12  ;;  %v641_v49 = vld [vmem:[%s785_s1 + $0x110] sm:$0xff]   ;;  %v642_v51 = vld [vmem:[%s785_s1 + $0x118] sm:$0xff]   ;;  %v541_v7 = vld [vmem:[%s787_s2] ss:$0 sm:$0xff] }
   0xe   :  { %570 = vmatprep.subr.bf16.mxu1 %v619_v13  ;;  %v132_v43 = vrot.slane %v111_v41, %v102_v35  ;;  %v133_v45 = vcombine.high %v118_v42, %v118_v42  ;;  %v125_v52 = vrot.slane %v110_v50, %v102_v35 }
  0x10   :  { %549 = vmatpush3.bf16.msra.mxu0 %v620_v14  ;;  %391 = vmatprep.mubr.bf16.mxu0 %v132_v43  ;;  %v134_v46 = vcombine.high %v132_v43, %v132_v43 }
  0x11   :  { %571 = vmatpush3.bf16.msra.mxu1 %v621_v15  ;;  %550 = vmatprep.subr.bf16.mxu0 %v622_v16 }
  0x12   :  { %572 = vmatprep.subr.bf16.mxu1 %v623_v17  ;;  %431 = vmatprep.mubr.bf16.mxu1 %v134_v46 }
  0x14   :  { %551 = vmatpush3.bf16.msra.mxu0 %v624_v18 }
  0x15   :  { %573 = vmatpush3.bf16.msra.mxu1 %v625_v19  ;;  %552 = vmatprep.subr.bf16.mxu0 %v626_v20 }
  0x16   :  { %574 = vmatprep.subr.bf16.mxu1 %v627_v21 }
  0x18   :  { %553 = vmatpush3.bf16.msra.mxu0 %v628_v25 }
  0x19   :  { %575 = vmatpush3.bf16.msra.mxu1 %v629_v26  ;;  %554 = vmatprep.subr.bf16.mxu0 %v630_v27 }
  0x1a   :  { %576 = vmatprep.subr.bf16.mxu1 %v631_v28 }
  0x1c   :  { %555 = vmatpush3.bf16.msra.mxu0 %v632_v31 }
  0x1d   :  { %577 = vmatpush3.bf16.msra.mxu1 %v633_v32  ;;  %556 = vmatprep.subr.bf16.mxu0 %v634_v33 }
  0x1e   :  { %578 = vmatprep.subr.bf16.mxu1 %v635_v34 }
  0x20   :  { %557 = vmatpush3.bf16.msra.mxu0 %v636_v36 }
  0x21   :  { %579 = vmatpush3.bf16.msra.mxu1 %v637_v37  ;;  %591 = vmatprep.subr.bf16.mxu0 %v644_v40 }
  0x23   :  { %392 = vmatmul.mubr.bf16.vlgmr.msra.gmra.mrb[0].mxu0 %v118_v42 }
  0x24   :  { %592 = vmatpush3.bf16.msra.mxu0 %v639_v44  ;;  %432 = vmatmul.mubr.bf16.vlgmr.msra.gmra.mrb[0].mxu1 %v133_v45 }
  0x25   :  { %593 = vmatprep.subr.bf16.mxu0 %v644_v40  ;;  %599 = vmatprep.mubr.msk.bf16.mxu0 %vm645_vm0, %v644_v40 }
  0x28   :  { %594 = vmatpush3.bf16.msra.mxu0 %v640_v47 }
  0x29   :  { %595 = vmatprep.subr.bf16.mxu0 %v644_v40 }
  0x2c   :  { %596 = vmatpush3.bf16.msra.mxu0 %v641_v49 }
  0x2d   :  { %597 = vmatprep.subr.bf16.mxu0 %v644_v40 }
  0x30   :  { %598 = vmatpush3.bf16.msra.mxu0 %v642_v51 }
  0x33   :  { %600 = vmatmul.mubr.msk.bf16.vlgmr.msra.gmra.mrb[4].mxu0 %vm355_vm1, %v125_v52 }
  0xf6   :  { %v558_v53 = vpop.f32.mrb[0].mxu0 }
  0xf7   :  { %v559_v54 = vpop.f32.mrb[1].mxu0  ;;  %v580_v55 = vpop.f32.mrb[0].mxu1 }
  0xf8   :  { %v560_v56 = vadd.f32 %v559_v54, %v558_v53  ;;  %v561_v57 = vpop.f32.mrb[2].mxu0  ;;  %v581_v58 = vpop.f32.mrb[1].mxu1 }
  0xf9   :  { %v562_v59 = vpop.f32.mrb[3].mxu0  ;;  %v582_v60 = vadd.f32 %v581_v58, %v580_v55  ;;  %v583_v61 = vpop.f32.mrb[2].mxu1 }
  0xfa   :  { %v584_v62 = vpop.f32.mrb[3].mxu1 }
  0xfb   :  { %v434_v63 = vadd.f32 %v582_v60, %v560_v56 }
 0x106   :  { %v473_v1 = vpop.f32.mrb[4].mxu0 }
 0x107   :  { %v474_v2 = vadd.f32 %v473_v1, %v434_v63  ;;  %v601_v3 = vpop.f32.mrb[5].mxu0 }
 0x108   :  { %v476_v4 = vpop.f32.mrb[6].mxu0 }
 0x109   :  { %v479_v5 = vadd.f32 %v474_v2, %v21_v0  ;;  %v602_v6 = vpop.f32.mrb[7].mxu0 }
 0x10b   :  { %481 = vst.msk [vmem:[#allocation2] sm:$0x3] %vm19_vm2, %v479_v5 }
 0x112   :  { %v485_v8 = vld [vmem:[#allocation2] sm:$0x3] }
 0x113   :  { %v493_v9 = vadd.f32 %v541_v7, %v485_v8 }
 0x115   :  { %vm494_vm3 = vcmp.gt.f32.partialorder %v493_v9, 0.0  ;;  %v495_v10 = vmul.f32 0.1, %v493_v9 }
 0x117   :  { %v496_v11 = vsel %vm494_vm3, %v493_v9, %v495_v10 }
 0x118   :  { %v497_v12 = vpack.c.bf16 %v496_v11, %v496_v11 }
 0x11a   :  { %499 = vst.msk [vmem:[%s788_s3] sm:$0x1] %vm498_vm4, %v497_v12 }

// kernel: simple_10cnn_forward.15
= control target key start
LH: loop header
LB: loop body
LE: loop exit
PB: predicated region body
PF: predicated region fallthrough
CT: control target
= control target key end

     0   :  { %v150_v0 = vmov 0.0   ;;  %vm151_vm0 = vmmov 0   ;;  %vm54_vm1 = vcmask 523264   ;;  %s193_s1 = inlined_call_operand.vmem [shape: bf16[64,128], index: 1, kind: input, shape index: {}]   ;;  %s194_s0 = inlined_call_operand.vmem [shape: bf16[2,64], index: 0, kind: input, shape index: {}]   ;;  %s195_s2 = inlined_call_operand.vmem [shape: f32[1,128], index: 2, kind: input, shape index: {}]   ;;  %s196_s3 = inlined_call_operand.vmem [shape: bf16[2,128], index: 3, kind: output, shape index: {}]  }
   0x1   :  { %132 = vmatprep.subr.bf16.mxu0 %v150_v0  ;;  %19 = vst [vmem:[#allocation2] sm:$0x3] %v150_v0  ;;  %v146_v1 = vld [vmem:[%s193_s1] sm:$0xff]   ;;  %140 = vmatprep.mubr.msk.bf16.mxu0 %vm151_vm0, %v150_v0  ;;  %v147_v2 = vld [vmem:[%s193_s1 + $0x8] sm:$0xff]   ;;  %v148_v3 = vld [vmem:[%s193_s1 + $0x10] sm:$0xff]  }
   0x2   :  { %133 = vmatpush3.bf16.msra.mxu0 %v146_v1  ;;  %v149_v4 = vld [vmem:[%s193_s1 + $0x18] sm:$0xff]   ;;  %v21_v5 = vld [vmem:[%s194_s0] sm:$0x1] }
   0x3   :  { %134 = vmatprep.subr.bf16.mxu0 %v150_v0  ;;  %v126_v12 = vld [vmem:[%s195_s2] ss:$0 sm:$0xff] }
   0x6   :  { %135 = vmatpush3.bf16.msra.mxu0 %v147_v2 }
   0x7   :  { %136 = vmatprep.subr.bf16.mxu0 %v150_v0 }
   0x8   :  { %v20_v6 = vld [vmem:[#allocation2] sm:$0x3] }
   0xa   :  { %137 = vmatpush3.bf16.msra.mxu0 %v148_v3 }
   0xb   :  { %138 = vmatprep.subr.bf16.mxu0 %v150_v0 }
   0xe   :  { %139 = vmatpush3.bf16.msra.mxu0 %v149_v4 }
  0x11   :  { %141 = vmatmul.mubr.msk.bf16.vlgmr.msra.gmra.mrb[0].mxu0 %vm54_vm1, %v21_v5 }
  0xe4   :  { %v92_v7 = vpop.f32.mrb[0].mxu0 }
  0xe5   :  { %v98_v8 = vadd.f32 %v92_v7, %v20_v6  ;;  %v142_v9 = vpop.f32.mrb[1].mxu0 }
  0xe6   :  { %v95_v10 = vpop.f32.mrb[2].mxu0 }
  0xe7   :  { %99 = vst [vmem:[#allocation2] sm:$0x3] %v98_v8  ;;  %v143_v11 = vpop.f32.mrb[3].mxu0 }
  0xee   :  { %v103_v13 = vld [vmem:[#allocation2] sm:$0x3] }
  0xef   :  { %v111_v14 = vadd.f32 %v126_v12, %v103_v13 }
  0xf1   :  { %vm112_vm2 = vcmp.gt.f32.partialorder %v111_v14, 0.0  ;;  %v113_v15 = vmul.f32 0.1, %v111_v14 }
  0xf3   :  { %v114_v16 = vsel %vm112_vm2, %v111_v14, %v113_v15 }
  0xf4   :  { %v115_v17 = vpack.c.bf16 %v114_v16, %v114_v16 }
  0xf6   :  { %116 = vst [vmem:[%s196_s3] sm:$0x1] %v115_v17 }

// kernel: simple_10cnn_forward.16
= control target key start
LH: loop header
LB: loop body
LE: loop exit
PB: predicated region body
PF: predicated region fallthrough
CT: control target
= control target key end

     0   :  { %v281_v1 = vmov 0   ;;  %v282_v18 = vmov 0.0   ;;  %v283_v19 = vmov 1983009808   ;;  %v165_v21 = vlaneseq  ;;  %s362_s1 = inlined_call_operand.vmem [shape: bf16[128,256], index: 1, kind: input, shape index: {}]   ;;  %s363_s0 = inlined_call_operand.vmem [shape: bf16[2,128], index: 0, kind: input, shape index: {}]   ;;  %s364_s2 = inlined_call_operand.vmem [shape: f32[1,256], index: 2, kind: input, shape index: {}]   ;;  %s365_s3 = inlined_call_operand.vmem [shape: bf16[2,256], index: 3, kind: output, shape index: {}]  }
   0x1   :  { %v257_v0 = vld [vmem:[%s362_s1 + $0x4] ss:$8 sps:$4 sm:$0xff]   ;;  %150 = vmatprep.mubr.bf16.mxu0 %v281_v1  ;;  %v259_v2 = vld [vmem:[%s362_s1] ss:$8 sps:$4 sm:$0xff]   ;;  %v260_v3 = vld [vmem:[%s362_s1 + $0x14] ss:$8 sps:$4 sm:$0xff]   ;;  %v163_v20 = vunpack.c.l.s4 %v283_v19 }
   0x2   :  { %118 = vmatprep.subr.bf16.mxu0 %v257_v0  ;;  %v262_v4 = vld [vmem:[%s362_s1 + $0x10] ss:$8 sps:$4 sm:$0xff]   ;;  %v263_v5 = vld [vmem:[%s362_s1 + $0x24] ss:$8 sps:$4 sm:$0xff]   ;;  %v265_v6 = vld [vmem:[%s362_s1 + $0x20] ss:$8 sps:$4 sm:$0xff]  }
   0x3   :  { %119 = vmatpush1.bf16.msra.mxu0 %v259_v2  ;;  %v266_v7 = vld [vmem:[%s362_s1 + $0x34] ss:$8 sps:$4 sm:$0xff]   ;;  %v268_v8 = vld [vmem:[%s362_s1 + $0x30] ss:$8 sps:$4 sm:$0xff]   ;;  %v269_v9 = vld [vmem:[%s362_s1 + $0x44] ss:$8 sps:$4 sm:$0xff]   ;;  %v164_v22 = vunpack.c.0.s8 %v163_v20 }
   0x4   :  { %120 = vmatprep.subr.bf16.mxu0 %v260_v3  ;;  %v271_v10 = vld [vmem:[%s362_s1 + $0x40] ss:$8 sps:$4 sm:$0xff]   ;;  %v272_v11 = vld [vmem:[%s362_s1 + $0x54] ss:$8 sps:$4 sm:$0xff]   ;;  %v274_v12 = vld [vmem:[%s362_s1 + $0x50] ss:$8 sps:$4 sm:$0xff]  }
   0x5   :  { %v275_v13 = vld [vmem:[%s362_s1 + $0x64] ss:$8 sps:$4 sm:$0xff]   ;;  %v277_v14 = vld [vmem:[%s362_s1 + $0x60] ss:$8 sps:$4 sm:$0xff]   ;;  %v278_v15 = vld [vmem:[%s362_s1 + $0x74] ss:$8 sps:$4 sm:$0xff]  }
   0x6   :  { %v280_v16 = vld [vmem:[%s362_s1 + $0x70] ss:$8 sps:$4 sm:$0xff]   ;;  %v21_v17 = vld [vmem:[%s363_s0] sm:$0x1]  ;;  %19 = vst [vmem:[#allocation2] sm:$0xf] %v282_v18 }
   0x7   :  { %121 = vmatpush1.bf16.msra.mxu0 %v262_v4  ;;  %v166_v23 = vshrl.u32 %v165_v21, 7  ;;  %v176_v29 = vld [vmem:[%s364_s2] sm:$0x3]  ;;  %v284_v41 = vmov 1966171168  }
   0x8   :  { %122 = vmatprep.subr.bf16.mxu0 %v263_v5  ;;  %v216_v42 = vunpack.c.l.s4 %v284_v41 }
   0x9   :  { %v167_v25 = vsub.s32 %v164_v22, %v166_v23  ;;  %v180_v26 = vsub.s32 0, %v166_v23  ;;  %v184_v27 = vsub.s32 1, %v166_v23 }
   0xa   :  { %v217_v45 = vunpack.c.0.s8 %v216_v42 }
   0xb   :  { %123 = vmatpush1.bf16.msra.mxu0 %v265_v6  ;;  %v181_v35 = vrot.slane %v176_v29, %v180_v26  ;;  %v185_v36 = vrot.slane %v176_v29, %v184_v27 }
   0xc   :  { %124 = vmatprep.subr.bf16.mxu0 %v266_v7  ;;  %v220_v49 = vsub.s32 %v217_v45, %v166_v23 }
   0xd   :  { %v20_v32 = vld [vmem:[#allocation2] sm:$0xf]  ;;  %v186_v38 = vcombine.low %v181_v35, %v185_v36 }
   0xf   :  { %125 = vmatpush1.bf16.msra.mxu0 %v268_v8  ;;  %v193_v39 = vrot.slane %v186_v38, %v167_v25 }
  0x10   :  { %126 = vmatprep.subr.bf16.mxu0 %v269_v9 }
  0x13   :  { %127 = vmatpush1.bf16.msra.mxu0 %v271_v10 }
  0x14   :  { %128 = vmatprep.subr.bf16.mxu0 %v272_v11 }
  0x17   :  { %129 = vmatpush1.bf16.msra.mxu0 %v274_v12 }
  0x18   :  { %130 = vmatprep.subr.bf16.mxu0 %v275_v13 }
  0x1b   :  { %131 = vmatpush1.bf16.msra.mxu0 %v277_v14 }
  0x1c   :  { %132 = vmatprep.subr.bf16.mxu0 %v278_v15 }
  0x1f   :  { %133 = vmatpush1.bf16.msra.mxu0 %v280_v16 }
  0x22   :  { %151 = vmatmul.mubr.bf16.vlgmr.msra.gmra.mrb[0].mxu0 %v21_v17 }
  0xf5   :  { %v152_v24 = vpop.f32.mrb[0].mxu0 }
  0xf6   :  { %v154_v28 = vpop.f32.mrb[1].mxu0 }
  0xf7   :  { %v161_v30 = vcombine.low %v152_v24, %v154_v28  ;;  %v156_v31 = vpop.f32.mrb[2].mxu0 }
  0xf8   :  { %v157_v33 = vpop.f32.mrb[3].mxu0 }
  0xf9   :  { %v168_v34 = vrot.slane %v161_v30, %v167_v25 }
  0xfb   :  { %v170_v37 = vadd.f32 %v168_v34, %v20_v32 }
  0xfd   :  { %171 = vst [vmem:[#allocation2] sm:$0xf] %v170_v37 }
 0x104   :  { %v175_v40 = vld [vmem:[#allocation2] sm:$0xf] }
 0x105   :  { %v195_v43 = vadd.f32 %v193_v39, %v175_v40 }
 0x107   :  { %vm196_vm0 = vcmp.gt.f32.partialorder %v195_v43, 0.0  ;;  %v197_v44 = vmul.f32 0.1, %v195_v43 }
 0x109   :  { %v198_v46 = vsel %vm196_vm0, %v195_v43, %v197_v44 }
 0x10a   :  { %v206_v47 = vrot.slane %v198_v46, %v167_v25 }
 0x10c   :  { %v207_v48 = vcombine.high %v206_v47, %v206_v47 }
 0x10e   :  { %v251_v50 = vpack.c.bf16 %v207_v48, %v206_v47 }
 0x110   :  { %v221_v51 = vrot.slane %v251_v50, %v220_v49 }
 0x112   :  { %252 = vst.sshfl [vmem:[%s365_s3] sm:$0x5 pattern:$0x73625140] %v221_v51 }

// kernel: simple_10cnn_forward.17
= control target key start
LH: loop header
LB: loop body
LE: loop exit
PB: predicated region body
PF: predicated region fallthrough
CT: control target
= control target key end

     0   :  { %s1072_s12 = smov 0   ;;  %s1074_s13 = smov 0   ;;  %s1265_s0 = inlined_call_operand.vmem [shape: bf16[2,256], index: 0, kind: input, shape index: {}]   ;;  %s1266_s1 = inlined_call_operand.vmem [shape: bf16[256,512], index: 1, kind: input, shape index: {}]   ;;  %s1267_s2 = inlined_call_operand.vmem [shape: f32[1,512], index: 2, kind: input, shape index: {}]   ;;  %s1268_s3 = inlined_call_operand.vmem [shape: bf16[2,512], index: 3, kind: output, shape index: {}]  }
   0x1   :  { %s1076_s14 = smov 0   ;;  %s1078_s15 = smov 0  }
   0x2   :  { %s1080_s16 = smov 0  }
   0x3 LB: > { %s28_s17 = sadd.s32 1, %s1043_s15  ;;  %p76_p1 = scmp.ne.s32.totalorder %s1035_s13, %s1031_s12  ;;  %s1047_s16 = sphi %s1080_s16, %s13_s16   ;;  %s1043_s15 = sphi %s1078_s15, %s1272_s15   ;;  %s1039_s14 = sphi %s1076_s14, %s1271_s14   ;;  %s1035_s13 = sphi %s1074_s13, %s1270_s13   ;;  %s1031_s12 = sphi %s1072_s12, %s1269_s12  }
   0x4   : > { %p30_p0 = scmp.ge.s32.totalorder %s28_s17, 2  ;;  %p77_p2 = scmp.eq.s32.totalorder %s1047_s16, 0 }
   0x5   : > { %s69_s19 = sadd.s32 1, %s1035_s13  ;;  %p872_p5 = scmp.ge.s32.totalorder %s1047_s16, 2 }
   0x6   : > { %s1274_s17 = smov (%p30_p0, %s28_s17), 0  ;;  %p78_p3 = por %p77_p2, %p76_p1 }
   0x7   : > { %s65_s18 = ssub.s32 %s1043_s15, %s1274_s17  ;;  %168 = sbr.rel (%p872_p5) target bundleno = 34 (0x22), region = 20 }
   0x8   : > { %p67_p4 = scmp.eq.s32.totalorder %s65_s18, 0 }
   0xa   : > { %s1107_s20 = scalar_select %p67_p4, %s1035_s13, %s69_s19  }
   0xe   : > { %171 = sbr.rel (!%p78_p3) target bundleno = 34 (0x22), region = 24  ;;  %s173_s21 = sand.u32 (%p78_p3), 1, %s1035_s13  }
   0xf   : > { %s917_s22 = sshll.u32 (%p78_p3), %s1043_s15, 3  ;;  %s873_s23 = sshll.u32 (%p78_p3), %s173_s21, 8 }
  0x10   : > { %s1115_s26 = scalar_lea.vmem (%p78_p3), %s1266_s1, %s917_s22  ;;  %s1120_s27 = scalar_lea.vmem (%p78_p3), [#allocation3], %s873_s23 }
  0x11   : > { %v271_v0 = vld [vmem:[%s1115_s26] sm:$0xff] (%p78_p3)  ;;  %v273_v1 = vld [vmem:[%s1115_s26 + $0x10] sm:$0xff] (%p78_p3) }
  0x12   : > { %v275_v2 = vld [vmem:[%s1115_s26 + $0x20] sm:$0xff] (%p78_p3)  ;;  %272 = vst [vmem:[%s1120_s27] sm:$0xff] (%p78_p3), %v271_v0  ;;  %274 = vst [vmem:[%s1120_s27 + $0x8] sm:$0xff] (%p78_p3), %v273_v1  ;;  %v277_v3 = vld [vmem:[%s1115_s26 + $0x30] sm:$0xff] (%p78_p3) }
  0x13   : > { %276 = vst [vmem:[%s1120_s27 + $0x10] sm:$0xff] (%p78_p3), %v275_v2  ;;  %v279_v4 = vld [vmem:[%s1115_s26 + $0x40] sm:$0xff] (%p78_p3)  ;;  %v281_v5 = vld [vmem:[%s1115_s26 + $0x50] sm:$0xff] (%p78_p3)  ;;  %278 = vst [vmem:[%s1120_s27 + $0x18] sm:$0xff] (%p78_p3), %v277_v3 }
  0x14   : > { %280 = vst [vmem:[%s1120_s27 + $0x20] sm:$0xff] (%p78_p3), %v279_v4  ;;  %282 = vst [vmem:[%s1120_s27 + $0x28] sm:$0xff] (%p78_p3), %v281_v5  ;;  %v283_v6 = vld [vmem:[%s1115_s26 + $0x60] sm:$0xff] (%p78_p3)  ;;  %v285_v7 = vld [vmem:[%s1115_s26 + $0x70] sm:$0xff] (%p78_p3) }
  0x15   : > { %v287_v8 = vld [vmem:[%s1115_s26 + $0x80] sm:$0xff]  ;;  %284 = vst [vmem:[%s1120_s27 + $0x30] sm:$0xff] %v283_v6  ;;  %286 = vst [vmem:[%s1120_s27 + $0x38] sm:$0xff] %v285_v7  ;;  %v289_v9 = vld [vmem:[%s1115_s26 + $0x90] sm:$0xff] }
  0x16   : > { %288 = vst [vmem:[%s1120_s27 + $0x40] sm:$0xff] %v287_v8  ;;  %v291_v10 = vld [vmem:[%s1115_s26 + $0xa0] sm:$0xff]  ;;  %v293_v11 = vld [vmem:[%s1115_s26 + $0xb0] sm:$0xff]  ;;  %290 = vst [vmem:[%s1120_s27 + $0x48] sm:$0xff] %v289_v9 }
  0x17   : > { %292 = vst [vmem:[%s1120_s27 + $0x50] sm:$0xff] %v291_v10  ;;  %294 = vst [vmem:[%s1120_s27 + $0x58] sm:$0xff] %v293_v11  ;;  %v295_v12 = vld [vmem:[%s1115_s26 + $0xc0] sm:$0xff]  ;;  %v297_v13 = vld [vmem:[%s1115_s26 + $0xd0] sm:$0xff] }
  0x18   : > { %v299_v14 = vld [vmem:[%s1115_s26 + $0xe0] sm:$0xff]  ;;  %296 = vst [vmem:[%s1120_s27 + $0x60] sm:$0xff] %v295_v12  ;;  %298 = vst [vmem:[%s1120_s27 + $0x68] sm:$0xff] %v297_v13  ;;  %v301_v15 = vld [vmem:[%s1115_s26 + $0xf0] sm:$0xff] }
  0x19   : > { %300 = vst [vmem:[%s1120_s27 + $0x70] sm:$0xff] %v299_v14  ;;  %v303_v16 = vld [vmem:[%s1115_s26 + $0x100] sm:$0xff]  ;;  %v305_v17 = vld [vmem:[%s1115_s26 + $0x110] sm:$0xff]  ;;  %302 = vst [vmem:[%s1120_s27 + $0x78] sm:$0xff] %v301_v15 }
  0x1a   : > { %304 = vst [vmem:[%s1120_s27 + $0x80] sm:$0xff] %v303_v16  ;;  %306 = vst [vmem:[%s1120_s27 + $0x88] sm:$0xff] %v305_v17  ;;  %v307_v18 = vld [vmem:[%s1115_s26 + $0x120] sm:$0xff]  ;;  %v309_v19 = vld [vmem:[%s1115_s26 + $0x130] sm:$0xff] }
  0x1b   : > { %v311_v20 = vld [vmem:[%s1115_s26 + $0x140] sm:$0xff]  ;;  %308 = vst [vmem:[%s1120_s27 + $0x90] sm:$0xff] %v307_v18  ;;  %310 = vst [vmem:[%s1120_s27 + $0x98] sm:$0xff] %v309_v19  ;;  %v313_v21 = vld [vmem:[%s1115_s26 + $0x150] sm:$0xff] }
  0x1c   : > { %312 = vst [vmem:[%s1120_s27 + $0xa0] sm:$0xff] %v311_v20  ;;  %v315_v22 = vld [vmem:[%s1115_s26 + $0x160] sm:$0xff]  ;;  %v317_v23 = vld [vmem:[%s1115_s26 + $0x170] sm:$0xff]  ;;  %314 = vst [vmem:[%s1120_s27 + $0xa8] sm:$0xff] %v313_v21 }
  0x1d   : > { %316 = vst [vmem:[%s1120_s27 + $0xb0] sm:$0xff] %v315_v22  ;;  %318 = vst [vmem:[%s1120_s27 + $0xb8] sm:$0xff] %v317_v23  ;;  %v319_v24 = vld [vmem:[%s1115_s26 + $0x180] sm:$0xff]  ;;  %v321_v25 = vld [vmem:[%s1115_s26 + $0x190] sm:$0xff] }
  0x1e   : > { %v323_v26 = vld [vmem:[%s1115_s26 + $0x1a0] sm:$0xff]  ;;  %320 = vst [vmem:[%s1120_s27 + $0xc0] sm:$0xff] %v319_v24  ;;  %322 = vst [vmem:[%s1120_s27 + $0xc8] sm:$0xff] %v321_v25  ;;  %v325_v27 = vld [vmem:[%s1115_s26 + $0x1b0] sm:$0xff] }
  0x1f   : > { %324 = vst [vmem:[%s1120_s27 + $0xd0] sm:$0xff] %v323_v26  ;;  %v327_v28 = vld [vmem:[%s1115_s26 + $0x1c0] sm:$0xff]  ;;  %v329_v29 = vld [vmem:[%s1115_s26 + $0x1d0] sm:$0xff]  ;;  %326 = vst [vmem:[%s1120_s27 + $0xd8] sm:$0xff] %v325_v27 }
  0x20   : > { %328 = vst [vmem:[%s1120_s27 + $0xe0] sm:$0xff] %v327_v28  ;;  %330 = vst [vmem:[%s1120_s27 + $0xe8] sm:$0xff] %v329_v29  ;;  %v331_v30 = vld [vmem:[%s1115_s26 + $0x1e0] sm:$0xff]  ;;  %v333_v31 = vld [vmem:[%s1115_s26 + $0x1f0] sm:$0xff] }
  0x21   : > { %332 = vst [vmem:[%s1120_s27 + $0xf0] sm:$0xff] %v331_v30  ;;  %334 = vst [vmem:[%s1120_s27 + $0xf8] sm:$0xff] %v333_v31 }
  0x22 PF: > { %p876_p6 = scmp.ge.s32.totalorder %s1047_s16, 1  ;;  %p347_p7 = scmp.lt.s32.totalorder %s1047_s16, 3 }
  0x24   : > { %p348_p8 = pnand %p876_p6, %p347_p7 }
  0x25   : > { %s354_s28 = sand.u32 (!%p348_p8), 1, %s1031_s12   ;;  %v1189_v32 = vld.sshfl [vmem:[%s1265_s0] sm:$0x11 pattern:$0x75316420] (!%p348_p8)  ;;  %v468_v33 = vlaneseq (!%p348_p8)  ;;  %v1050_v10 = vmov (!%p348_p8), 0.0  }
  0x26   : > { %351 = sbr.rel (%p348_p8) target bundleno = 346 (0x15a), region = 66  ;;  %s877_s4 = sshll.u32 (!%p348_p8), %s354_s28, 8  ;;  %v1049_v34 = vmov (!%p348_p8), 1966171168   ;;  %v464_v39 = vcombine.high (!%p348_p8), %v1189_v32, %v1189_v32  ;;  %421 = vst [vmem:[#allocation2] sm:$0xf] (!%p348_p8), %v1050_v10 }
  0x27   : > { %v466_v35 = vunpack.c.l.s4 (!%p348_p8), %v1049_v34  ;;  %v1191_v36 = vshrl.u32 (!%p348_p8), %v468_v33, 7  ;;  %s1193_s5 = scalar_lea.vmem (!%p348_p8), [#allocation3], %s877_s4  ;;  %s878_s6 = sshll.u32 (!%p348_p8), %s1039_s14, 1  ;;  %v1051_v11 = vmov (!%p348_p8), 1983009808  }
  0x28   : > { %v961_v37 = vld [vmem:[%s1193_s5 + $0x4] ss:$8 sps:$4 sm:$0xff] (!%p348_p8)   ;;  %v963_v38 = vld [vmem:[%s1193_s5] ss:$8 sps:$4 sm:$0xff] (!%p348_p8)   ;;  %v964_v41 = vld [vmem:[%s1193_s5 + $0x14] ss:$8 sps:$4 sm:$0xff] (!%p348_p8)   ;;  %v686_v12 = vunpack.c.l.s4 (!%p348_p8), %v1051_v11 }
  0x29   : > { %v467_v40 = vunpack.c.0.s8 (!%p348_p8), %v466_v35  ;;  %641 = vmatprep.subr.bf16.mxu0 (!%p348_p8), %v961_v37  ;;  %v966_v42 = vld [vmem:[%s1193_s5 + $0x10] ss:$8 sps:$4 sm:$0xff] (!%p348_p8)   ;;  %v967_v44 = vld [vmem:[%s1193_s5 + $0x24] ss:$8 sps:$4 sm:$0xff] (!%p348_p8)   ;;  %v969_v46 = vld [vmem:[%s1193_s5 + $0x20] ss:$8 sps:$4 sm:$0xff] (!%p348_p8)  }
  0x2a   : > { %642 = vmatpush1.bf16.msra.mxu0 (!%p348_p8), %v963_v38  ;;  %v970_v47 = vld [vmem:[%s1193_s5 + $0x34] ss:$8 sps:$4 sm:$0xff] (!%p348_p8)   ;;  %v972_v48 = vld [vmem:[%s1193_s5 + $0x30] ss:$8 sps:$4 sm:$0xff] (!%p348_p8)   ;;  %v973_v49 = vld [vmem:[%s1193_s5 + $0x44] ss:$8 sps:$4 sm:$0xff] (!%p348_p8)   ;;  %v687_v13 = vunpack.c.0.s8 (!%p348_p8), %v686_v12 }
  0x2b   : > { %v1202_v43 = vsub.s32 (!%p348_p8), %v467_v40, %v1191_v36  ;;  %643 = vmatprep.subr.bf16.mxu0 (!%p348_p8), %v964_v41  ;;  %v975_v50 = vld [vmem:[%s1193_s5 + $0x40] ss:$8 sps:$4 sm:$0xff] (!%p348_p8)   ;;  %v976_v51 = vld [vmem:[%s1193_s5 + $0x54] ss:$8 sps:$4 sm:$0xff] (!%p348_p8)   ;;  %v978_v52 = vld [vmem:[%s1193_s5 + $0x50] ss:$8 sps:$4 sm:$0xff] (!%p348_p8)  }
  0x2c   : > { %v979_v53 = vld [vmem:[%s1193_s5 + $0x64] ss:$8 sps:$4 sm:$0xff] (!%p348_p8)   ;;  %v981_v54 = vld [vmem:[%s1193_s5 + $0x60] ss:$8 sps:$4 sm:$0xff] (!%p348_p8)   ;;  %v982_v55 = vld [vmem:[%s1193_s5 + $0x74] ss:$8 sps:$4 sm:$0xff] (!%p348_p8)   ;;  %v690_v15 = vsub.s32 (!%p348_p8), %v687_v13, %v1191_v36 }
  0x2d   : > { %v478_v45 = vrot.slane %v464_v39, %v1202_v43  ;;  %v984_v56 = vld [vmem:[%s1193_s5 + $0x70] ss:$8 sps:$4 sm:$0xff]   ;;  %v985_v57 = vld [vmem:[%s1193_s5 + $0x84] ss:$8 sps:$4 sm:$0xff]   ;;  %v987_v58 = vld [vmem:[%s1193_s5 + $0x80] ss:$8 sps:$4 sm:$0xff]   ;;  %v471_v9 = vrot.slane %v1189_v32, %v1202_v43 }
  0x2e   : > { %644 = vmatpush1.bf16.msra.mxu0 %v966_v42  ;;  %v988_v59 = vld [vmem:[%s1193_s5 + $0x94] ss:$8 sps:$4 sm:$0xff]   ;;  %v990_v60 = vld [vmem:[%s1193_s5 + $0x90] ss:$8 sps:$4 sm:$0xff]   ;;  %v991_v61 = vld [vmem:[%s1193_s5 + $0xa4] ss:$8 sps:$4 sm:$0xff]  }
  0x2f   : > { %673 = vmatprep.mubr.bf16.mxu0 %v478_v45  ;;  %645 = vmatprep.subr.bf16.mxu0 %v967_v44  ;;  %v993_v62 = vld [vmem:[%s1193_s5 + $0xa0] ss:$8 sps:$4 sm:$0xff]   ;;  %v994_v63 = vld [vmem:[%s1193_s5 + $0xb4] ss:$8 sps:$4 sm:$0xff]   ;;  %v996_v0 = vld [vmem:[%s1193_s5 + $0xb0] ss:$8 sps:$4 sm:$0xff]  }
  0x30   : > { %v997_v1 = vld [vmem:[%s1193_s5 + $0xc4] ss:$8 sps:$4 sm:$0xff]   ;;  %v999_v2 = vld [vmem:[%s1193_s5 + $0xc0] ss:$8 sps:$4 sm:$0xff]   ;;  %v1000_v3 = vld [vmem:[%s1193_s5 + $0xd4] ss:$8 sps:$4 sm:$0xff]  }
  0x31   : > { %v1002_v4 = vld [vmem:[%s1193_s5 + $0xd0] ss:$8 sps:$4 sm:$0xff]   ;;  %v1003_v5 = vld [vmem:[%s1193_s5 + $0xe4] ss:$8 sps:$4 sm:$0xff]   ;;  %v1005_v6 = vld [vmem:[%s1193_s5 + $0xe0] ss:$8 sps:$4 sm:$0xff]  }
  0x32   : > { %646 = vmatpush1.bf16.msra.mxu0 %v969_v46  ;;  %v1006_v7 = vld [vmem:[%s1193_s5 + $0xf4] ss:$8 sps:$4 sm:$0xff]   ;;  %v1008_v8 = vld [vmem:[%s1193_s5 + $0xf0] ss:$8 sps:$4 sm:$0xff]   ;;  %p404_p9 = scmp.lt.s32.totalorder %s878_s6, 3  ;;  %v703_v16 = vsub.s32 0, %v1191_v36 }
  0x33   : > { %647 = vmatprep.subr.bf16.mxu0 %v970_v47  ;;  %v707_v17 = vsub.s32 1, %v1191_v36  ;;  %v422_v22 = vld [vmem:[#allocation2] sm:$0xf] }
  0x34   : > { %s1276_s6 = smov (!%p404_p9, %s878_s6), 3 }
  0x35   : > { %s406_s9 = scalar_lea.vmem %s1267_s2, %s1276_s6  ;;  %s415_s12 = scalar_lea.vmem %s1268_s3, %s1276_s6 }
  0x36   : > { %648 = vmatpush1.bf16.msra.mxu0 %v972_v48  ;;  %v699_v19 = vld [vmem:[%s406_s9] sm:$0x3] }
  0x37   : > { %649 = vmatprep.subr.bf16.mxu0 %v973_v49  ;;  %v704_v25 = vrot.slane %v699_v19, %v703_v16  ;;  %v708_v26 = vrot.slane %v699_v19, %v707_v17 }
  0x39   : > { %v709_v28 = vcombine.low %v704_v25, %v708_v26 }
  0x3a   : > { %650 = vmatpush1.bf16.msra.mxu0 %v975_v50 }
  0x3b   : > { %651 = vmatprep.subr.bf16.mxu0 %v976_v51  ;;  %v716_v29 = vrot.slane %v709_v28, %v690_v15 }
  0x3e   : > { %652 = vmatpush1.bf16.msra.mxu0 %v978_v52 }
  0x3f   : > { %653 = vmatprep.subr.bf16.mxu0 %v979_v53 }
  0x42   : > { %654 = vmatpush1.bf16.msra.mxu0 %v981_v54 }
  0x43   : > { %655 = vmatprep.subr.bf16.mxu0 %v982_v55 }
  0x46   : > { %656 = vmatpush1.bf16.msra.mxu0 %v984_v56 }
  0x47   : > { %657 = vmatprep.subr.bf16.mxu0 %v985_v57 }
  0x4a   : > { %658 = vmatpush1.bf16.msra.mxu0 %v987_v58 }
  0x4b   : > { %659 = vmatprep.subr.bf16.mxu0 %v988_v59 }
  0x4e   : > { %660 = vmatpush1.bf16.msra.mxu0 %v990_v60 }
  0x4f   : > { %661 = vmatprep.subr.bf16.mxu0 %v991_v61 }
  0x52   : > { %662 = vmatpush1.bf16.msra.mxu0 %v993_v62 }
  0x53   : > { %663 = vmatprep.subr.bf16.mxu0 %v994_v63 }
  0x56   : > { %664 = vmatpush1.bf16.msra.mxu0 %v996_v0 }
  0x57   : > { %665 = vmatprep.subr.bf16.mxu0 %v997_v1 }
  0x5a   : > { %666 = vmatpush1.bf16.msra.mxu0 %v999_v2 }
  0x5b   : > { %667 = vmatprep.subr.bf16.mxu0 %v1000_v3 }
  0x5e   : > { %668 = vmatpush1.bf16.msra.mxu0 %v1002_v4 }
  0x5f   : > { %669 = vmatprep.subr.bf16.mxu0 %v1003_v5 }
  0x62   : > { %670 = vmatpush1.bf16.msra.mxu0 %v1005_v6 }
  0x63   : > { %671 = vmatprep.subr.bf16.mxu0 %v1006_v7 }
  0x66   : > { %672 = vmatpush1.bf16.msra.mxu0 %v1008_v8 }
  0x69   : > { %674 = vmatmul.mubr.bf16.vlgmr.msra.gmra.mrb[0].mxu0 %v471_v9 }
 0x13c   : > { %v675_v14 = vpop.f32.mrb[0].mxu0 }
 0x13d   : > { %v677_v18 = vpop.f32.mrb[1].mxu0 }
 0x13e   : > { %v684_v20 = vcombine.low %v675_v14, %v677_v18  ;;  %v679_v21 = vpop.f32.mrb[2].mxu0 }
 0x13f   : > { %v680_v23 = vpop.f32.mrb[3].mxu0 }
 0x140   : > { %v691_v24 = vrot.slane %v684_v20, %v690_v15 }
 0x142   : > { %v693_v27 = vadd.f32 %v691_v24, %v422_v22 }
 0x144   : > { %694 = vst [vmem:[#allocation2] sm:$0xf] %v693_v27 }
 0x14b   : > { %v698_v30 = vld [vmem:[#allocation2] sm:$0xf] }
 0x14c   : > { %v718_v31 = vadd.f32 %v716_v29, %v698_v30 }
 0x14e   : > { %vm719_vm0 = vcmp.gt.f32.partialorder %v718_v31, 0.0  ;;  %v720_v32 = vmul.f32 0.1, %v718_v31 }
 0x150   : > { %v721_v33 = vsel %vm719_vm0, %v718_v31, %v720_v32 }
 0x151   : > { %v729_v34 = vrot.slane %v721_v33, %v690_v15 }
 0x153   : > { %v730_v35 = vcombine.high %v729_v34, %v729_v34 }
 0x155   : > { %v913_v36 = vpack.c.bf16 %v730_v35, %v729_v34 }
 0x157   : > { %v744_v37 = vrot.slane %v913_v36, %v1202_v43 }
 0x159   : > { %914 = vst.sshfl [vmem:[%s415_s12] sm:$0x5 pattern:$0x73625140] %v744_v37 }
 0x15a PF: > { %s13_s16 = sadd.s32 1, %s1047_s16   ;;  %s1269_s12 = smov %s1035_s13 }
 0x15b   : > { %p10_p10 = scmp.ge.s32.totalorder %s13_s16, 4   ;;  %s1270_s13 = smov %s1107_s20 }
 0x15c   : > { %s1271_s14 = smov %s1043_s15  ;;  %s1272_s15 = smov %s1274_s17 }
 0x15d   :  { %12 = sbr.rel (!%p10_p10) target bundleno = 3 (0x3), region = 119 }

// kernel: simple_10cnn_forward.18
= control target key start
LH: loop header
LB: loop body
LE: loop exit
PB: predicated region body
PF: predicated region fallthrough
CT: control target
= control target key end

     0   :  { %s1519_s12 = smov 0   ;;  %s1521_s13 = smov 0   ;;  %s1808_s0 = inlined_call_operand.vmem [shape: bf16[2,512], index: 0, kind: input, shape index: {}]   ;;  %s1809_s1 = inlined_call_operand.vmem [shape: bf16[512,1024], index: 1, kind: input, shape index: {}]   ;;  %s1810_s2 = inlined_call_operand.vmem [shape: f32[1,1024], index: 2, kind: input, shape index: {}]   ;;  %s1811_s3 = inlined_call_operand.vmem [shape: bf16[2,1024], index: 3, kind: output, shape index: {}]  }
   0x1   :  { %s1523_s14 = smov 0   ;;  %s1525_s15 = smov 0  }
   0x2   :  { %s1527_s16 = smov 0  }
   0x3 LB: > { %s28_s17 = sadd.s32 1, %s1490_s15  ;;  %p76_p1 = scmp.ne.s32.totalorder %s1482_s13, %s1478_s12  ;;  %s1494_s16 = sphi %s1527_s16, %s13_s16   ;;  %s1490_s15 = sphi %s1525_s15, %s1815_s15   ;;  %s1486_s14 = sphi %s1523_s14, %s1814_s14   ;;  %s1482_s13 = sphi %s1521_s13, %s1813_s13   ;;  %s1478_s12 = sphi %s1519_s12, %s1812_s12  }
   0x4   : > { %p30_p0 = scmp.ge.s32.totalorder %s28_s17, 4  ;;  %p77_p2 = scmp.eq.s32.totalorder %s1494_s16, 0 }
   0x5   : > { %s69_s19 = sadd.s32 1, %s1482_s13  ;;  %p1237_p5 = scmp.ge.s32.totalorder %s1494_s16, 4 }
   0x6   : > { %s1817_s17 = smov (%p30_p0, %s28_s17), 0  ;;  %p78_p3 = por %p77_p2, %p76_p1 }
   0x7   : > { %s65_s18 = ssub.s32 %s1490_s15, %s1817_s17  ;;  %168 = sbr.rel (%p1237_p5) target bundleno = 82 (0x52), region = 20 }
   0x8   : > { %p67_p4 = scmp.eq.s32.totalorder %s65_s18, 0 }
   0xa   : > { %s1554_s20 = scalar_select %p67_p4, %s1482_s13, %s69_s19  }
   0xe   : > { %171 = sbr.rel (!%p78_p3) target bundleno = 82 (0x52), region = 24  ;;  %s173_s21 = sand.u32 (%p78_p3), 1, %s1482_s13  }
   0xf   : > { %s1314_s22 = sshll.u32 (%p78_p3), %s1490_s15, 3  ;;  %s1238_s23 = sshll.u32 (%p78_p3), %s173_s21, 9 }
  0x10   : > { %s1562_s26 = scalar_lea.vmem (%p78_p3), %s1809_s1, %s1314_s22  ;;  %s1567_s27 = scalar_lea.vmem (%p78_p3), [#allocation3], %s1238_s23 }
  0x11   : > { %v335_v0 = vld [vmem:[%s1562_s26] sm:$0xff] (%p78_p3) }
  0x12   : > { %v337_v1 = vld [vmem:[%s1562_s26 + $0x20] sm:$0xff] (%p78_p3)  ;;  %336 = vst [vmem:[%s1567_s27] sm:$0xff] (%p78_p3), %v335_v0 }
  0x13   : > { %v339_v2 = vld [vmem:[%s1562_s26 + $0x40] sm:$0xff] (%p78_p3)  ;;  %338 = vst [vmem:[%s1567_s27 + $0x8] sm:$0xff] (%p78_p3), %v337_v1 }
  0x14   : > { %340 = vst [vmem:[%s1567_s27 + $0x10] sm:$0xff] (%p78_p3), %v339_v2  ;;  %v341_v3 = vld [vmem:[%s1562_s26 + $0x60] sm:$0xff] (%p78_p3) }
  0x15   : > { %v343_v4 = vld [vmem:[%s1562_s26 + $0x80] sm:$0xff]  ;;  %342 = vst [vmem:[%s1567_s27 + $0x18] sm:$0xff] %v341_v3 }
  0x16   : > { %v345_v5 = vld [vmem:[%s1562_s26 + $0xa0] sm:$0xff]  ;;  %344 = vst [vmem:[%s1567_s27 + $0x20] sm:$0xff] %v343_v4 }
  0x17   : > { %346 = vst [vmem:[%s1567_s27 + $0x28] sm:$0xff] %v345_v5  ;;  %v347_v6 = vld [vmem:[%s1562_s26 + $0xc0] sm:$0xff] }
  0x18   : > { %v349_v7 = vld [vmem:[%s1562_s26 + $0xe0] sm:$0xff]  ;;  %348 = vst [vmem:[%s1567_s27 + $0x30] sm:$0xff] %v347_v6 }
  0x19   : > { %v351_v8 = vld [vmem:[%s1562_s26 + $0x100] sm:$0xff]  ;;  %350 = vst [vmem:[%s1567_s27 + $0x38] sm:$0xff] %v349_v7 }
  0x1a   : > { %352 = vst [vmem:[%s1567_s27 + $0x40] sm:$0xff] %v351_v8  ;;  %v353_v9 = vld [vmem:[%s1562_s26 + $0x120] sm:$0xff] }
  0x1b   : > { %v355_v10 = vld [vmem:[%s1562_s26 + $0x140] sm:$0xff]  ;;  %354 = vst [vmem:[%s1567_s27 + $0x48] sm:$0xff] %v353_v9 }
  0x1c   : > { %v357_v11 = vld [vmem:[%s1562_s26 + $0x160] sm:$0xff]  ;;  %356 = vst [vmem:[%s1567_s27 + $0x50] sm:$0xff] %v355_v10 }
  0x1d   : > { %358 = vst [vmem:[%s1567_s27 + $0x58] sm:$0xff] %v357_v11  ;;  %v359_v12 = vld [vmem:[%s1562_s26 + $0x180] sm:$0xff] }
  0x1e   : > { %v361_v13 = vld [vmem:[%s1562_s26 + $0x1a0] sm:$0xff]  ;;  %360 = vst [vmem:[%s1567_s27 + $0x60] sm:$0xff] %v359_v12 }
  0x1f   : > { %v363_v14 = vld [vmem:[%s1562_s26 + $0x1c0] sm:$0xff]  ;;  %362 = vst [vmem:[%s1567_s27 + $0x68] sm:$0xff] %v361_v13 }
  0x20   : > { %364 = vst [vmem:[%s1567_s27 + $0x70] sm:$0xff] %v363_v14  ;;  %v365_v15 = vld [vmem:[%s1562_s26 + $0x1e0] sm:$0xff] }
  0x21   : > { %v367_v16 = vld [vmem:[%s1562_s26 + $0x200] sm:$0xff]  ;;  %366 = vst [vmem:[%s1567_s27 + $0x78] sm:$0xff] %v365_v15 }
  0x22   : > { %v369_v17 = vld [vmem:[%s1562_s26 + $0x220] sm:$0xff]  ;;  %368 = vst [vmem:[%s1567_s27 + $0x80] sm:$0xff] %v367_v16 }
  0x23   : > { %370 = vst [vmem:[%s1567_s27 + $0x88] sm:$0xff] %v369_v17  ;;  %v371_v18 = vld [vmem:[%s1562_s26 + $0x240] sm:$0xff] }
  0x24   : > { %v373_v19 = vld [vmem:[%s1562_s26 + $0x260] sm:$0xff]  ;;  %372 = vst [vmem:[%s1567_s27 + $0x90] sm:$0xff] %v371_v18 }
  0x25   : > { %v375_v20 = vld [vmem:[%s1562_s26 + $0x280] sm:$0xff]  ;;  %374 = vst [vmem:[%s1567_s27 + $0x98] sm:$0xff] %v373_v19 }
  0x26   : > { %376 = vst [vmem:[%s1567_s27 + $0xa0] sm:$0xff] %v375_v20  ;;  %v377_v21 = vld [vmem:[%s1562_s26 + $0x2a0] sm:$0xff] }
  0x27   : > { %v379_v22 = vld [vmem:[%s1562_s26 + $0x2c0] sm:$0xff]  ;;  %378 = vst [vmem:[%s1567_s27 + $0xa8] sm:$0xff] %v377_v21 }
  0x28   : > { %v381_v23 = vld [vmem:[%s1562_s26 + $0x2e0] sm:$0xff]  ;;  %380 = vst [vmem:[%s1567_s27 + $0xb0] sm:$0xff] %v379_v22 }
  0x29   : > { %382 = vst [vmem:[%s1567_s27 + $0xb8] sm:$0xff] %v381_v23  ;;  %v383_v24 = vld [vmem:[%s1562_s26 + $0x300] sm:$0xff] }
  0x2a   : > { %v385_v25 = vld [vmem:[%s1562_s26 + $0x320] sm:$0xff]  ;;  %384 = vst [vmem:[%s1567_s27 + $0xc0] sm:$0xff] %v383_v24 }
  0x2b   : > { %v387_v26 = vld [vmem:[%s1562_s26 + $0x340] sm:$0xff]  ;;  %386 = vst [vmem:[%s1567_s27 + $0xc8] sm:$0xff] %v385_v25 }
  0x2c   : > { %388 = vst [vmem:[%s1567_s27 + $0xd0] sm:$0xff] %v387_v26  ;;  %v389_v27 = vld [vmem:[%s1562_s26 + $0x360] sm:$0xff] }
  0x2d   : > { %v391_v28 = vld [vmem:[%s1562_s26 + $0x380] sm:$0xff]  ;;  %390 = vst [vmem:[%s1567_s27 + $0xd8] sm:$0xff] %v389_v27 }
  0x2e   : > { %v393_v29 = vld [vmem:[%s1562_s26 + $0x3a0] sm:$0xff]  ;;  %392 = vst [vmem:[%s1567_s27 + $0xe0] sm:$0xff] %v391_v28 }
  0x2f   : > { %394 = vst [vmem:[%s1567_s27 + $0xe8] sm:$0xff] %v393_v29  ;;  %v395_v30 = vld [vmem:[%s1562_s26 + $0x3c0] sm:$0xff] }
  0x30   : > { %v397_v31 = vld [vmem:[%s1562_s26 + $0x3e0] sm:$0xff]  ;;  %396 = vst [vmem:[%s1567_s27 + $0xf0] sm:$0xff] %v395_v30 }
  0x31   : > { %v399_v32 = vld [vmem:[%s1562_s26 + $0x400] sm:$0xff]  ;;  %398 = vst [vmem:[%s1567_s27 + $0xf8] sm:$0xff] %v397_v31 }
  0x32   : > { %400 = vst [vmem:[%s1567_s27 + $0x100] sm:$0xff] %v399_v32  ;;  %v401_v33 = vld [vmem:[%s1562_s26 + $0x420] sm:$0xff] }
  0x33   : > { %v403_v34 = vld [vmem:[%s1562_s26 + $0x440] sm:$0xff]  ;;  %402 = vst [vmem:[%s1567_s27 + $0x108] sm:$0xff] %v401_v33 }
  0x34   : > { %v405_v35 = vld [vmem:[%s1562_s26 + $0x460] sm:$0xff]  ;;  %404 = vst [vmem:[%s1567_s27 + $0x110] sm:$0xff] %v403_v34 }
  0x35   : > { %406 = vst [vmem:[%s1567_s27 + $0x118] sm:$0xff] %v405_v35  ;;  %v407_v36 = vld [vmem:[%s1562_s26 + $0x480] sm:$0xff] }
  0x36   : > { %v409_v37 = vld [vmem:[%s1562_s26 + $0x4a0] sm:$0xff]  ;;  %408 = vst [vmem:[%s1567_s27 + $0x120] sm:$0xff] %v407_v36 }
  0x37   : > { %v411_v38 = vld [vmem:[%s1562_s26 + $0x4c0] sm:$0xff]  ;;  %410 = vst [vmem:[%s1567_s27 + $0x128] sm:$0xff] %v409_v37 }
  0x38   : > { %412 = vst [vmem:[%s1567_s27 + $0x130] sm:$0xff] %v411_v38  ;;  %v413_v39 = vld [vmem:[%s1562_s26 + $0x4e0] sm:$0xff] }
  0x39   : > { %v415_v40 = vld [vmem:[%s1562_s26 + $0x500] sm:$0xff]  ;;  %414 = vst [vmem:[%s1567_s27 + $0x138] sm:$0xff] %v413_v39 }
  0x3a   : > { %v417_v41 = vld [vmem:[%s1562_s26 + $0x520] sm:$0xff]  ;;  %416 = vst [vmem:[%s1567_s27 + $0x140] sm:$0xff] %v415_v40 }
  0x3b   : > { %418 = vst [vmem:[%s1567_s27 + $0x148] sm:$0xff] %v417_v41  ;;  %v419_v42 = vld [vmem:[%s1562_s26 + $0x540] sm:$0xff] }
  0x3c   : > { %v421_v43 = vld [vmem:[%s1562_s26 + $0x560] sm:$0xff]  ;;  %420 = vst [vmem:[%s1567_s27 + $0x150] sm:$0xff] %v419_v42 }
  0x3d   : > { %v423_v44 = vld [vmem:[%s1562_s26 + $0x580] sm:$0xff]  ;;  %422 = vst [vmem:[%s1567_s27 + $0x158] sm:$0xff] %v421_v43 }
  0x3e   : > { %424 = vst [vmem:[%s1567_s27 + $0x160] sm:$0xff] %v423_v44  ;;  %v425_v45 = vld [vmem:[%s1562_s26 + $0x5a0] sm:$0xff] }
  0x3f   : > { %v427_v46 = vld [vmem:[%s1562_s26 + $0x5c0] sm:$0xff]  ;;  %426 = vst [vmem:[%s1567_s27 + $0x168] sm:$0xff] %v425_v45 }
  0x40   : > { %v429_v47 = vld [vmem:[%s1562_s26 + $0x5e0] sm:$0xff]  ;;  %428 = vst [vmem:[%s1567_s27 + $0x170] sm:$0xff] %v427_v46 }
  0x41   : > { %430 = vst [vmem:[%s1567_s27 + $0x178] sm:$0xff] %v429_v47  ;;  %v431_v48 = vld [vmem:[%s1562_s26 + $0x600] sm:$0xff] }
  0x42   : > { %v433_v49 = vld [vmem:[%s1562_s26 + $0x620] sm:$0xff]  ;;  %432 = vst [vmem:[%s1567_s27 + $0x180] sm:$0xff] %v431_v48 }
  0x43   : > { %v435_v50 = vld [vmem:[%s1562_s26 + $0x640] sm:$0xff]  ;;  %434 = vst [vmem:[%s1567_s27 + $0x188] sm:$0xff] %v433_v49 }
  0x44   : > { %436 = vst [vmem:[%s1567_s27 + $0x190] sm:$0xff] %v435_v50  ;;  %v437_v51 = vld [vmem:[%s1562_s26 + $0x660] sm:$0xff] }
  0x45   : > { %v439_v52 = vld [vmem:[%s1562_s26 + $0x680] sm:$0xff]  ;;  %438 = vst [vmem:[%s1567_s27 + $0x198] sm:$0xff] %v437_v51 }
  0x46   : > { %v441_v53 = vld [vmem:[%s1562_s26 + $0x6a0] sm:$0xff]  ;;  %440 = vst [vmem:[%s1567_s27 + $0x1a0] sm:$0xff] %v439_v52 }
  0x47   : > { %442 = vst [vmem:[%s1567_s27 + $0x1a8] sm:$0xff] %v441_v53  ;;  %v443_v54 = vld [vmem:[%s1562_s26 + $0x6c0] sm:$0xff] }
  0x48   : > { %v445_v55 = vld [vmem:[%s1562_s26 + $0x6e0] sm:$0xff]  ;;  %444 = vst [vmem:[%s1567_s27 + $0x1b0] sm:$0xff] %v443_v54 }
  0x49   : > { %v447_v56 = vld [vmem:[%s1562_s26 + $0x700] sm:$0xff]  ;;  %446 = vst [vmem:[%s1567_s27 + $0x1b8] sm:$0xff] %v445_v55 }
  0x4a   : > { %448 = vst [vmem:[%s1567_s27 + $0x1c0] sm:$0xff] %v447_v56  ;;  %v449_v57 = vld [vmem:[%s1562_s26 + $0x720] sm:$0xff] }
  0x4b   : > { %v451_v58 = vld [vmem:[%s1562_s26 + $0x740] sm:$0xff]  ;;  %450 = vst [vmem:[%s1567_s27 + $0x1c8] sm:$0xff] %v449_v57 }
  0x4c   : > { %v453_v59 = vld [vmem:[%s1562_s26 + $0x760] sm:$0xff]  ;;  %452 = vst [vmem:[%s1567_s27 + $0x1d0] sm:$0xff] %v451_v58 }
  0x4d   : > { %454 = vst [vmem:[%s1567_s27 + $0x1d8] sm:$0xff] %v453_v59  ;;  %v455_v60 = vld [vmem:[%s1562_s26 + $0x780] sm:$0xff] }
  0x4e   : > { %v457_v61 = vld [vmem:[%s1562_s26 + $0x7a0] sm:$0xff]  ;;  %456 = vst [vmem:[%s1567_s27 + $0x1e0] sm:$0xff] %v455_v60 }
  0x4f   : > { %v459_v62 = vld [vmem:[%s1562_s26 + $0x7c0] sm:$0xff]  ;;  %458 = vst [vmem:[%s1567_s27 + $0x1e8] sm:$0xff] %v457_v61 }
  0x50   : > { %460 = vst [vmem:[%s1567_s27 + $0x1f0] sm:$0xff] %v459_v62  ;;  %v461_v63 = vld [vmem:[%s1562_s26 + $0x7e0] sm:$0xff] }
  0x51   : > { %462 = vst [vmem:[%s1567_s27 + $0x1f8] sm:$0xff] %v461_v63 }
  0x52 PF: > { %p1241_p6 = scmp.ge.s32.totalorder %s1494_s16, 1  ;;  %p475_p7 = scmp.lt.s32.totalorder %s1494_s16, 5 }
  0x54   : > { %p476_p8 = pnand %p1241_p6, %p475_p7 }
  0x55   : > { %s482_s28 = sand.u32 (!%p476_p8), 1, %s1478_s12   ;;  %v1700_v0 = vld.sshfl [vmem:[%s1808_s0] sm:$0x33 pattern:$0x75316420] (!%p476_p8)  ;;  %v628_v1 = vlaneseq (!%p476_p8)  ;;  %s1243_s6 = sshll.u32 (!%p476_p8), %s1486_s14, 1 }
  0x56   : > { %479 = sbr.rel (%p476_p8) target bundleno = 397 (0x18d), region = 66  ;;  %s1242_s4 = sshll.u32 (!%p476_p8), %s482_s28, 9  ;;  %v1496_v2 = vmov (!%p476_p8), 1966171168   ;;  %v624_v7 = vcombine.high (!%p476_p8), %v1700_v0, %v1700_v0 }
  0x57   : > { %v626_v3 = vunpack.c.l.s4 (!%p476_p8), %v1496_v2  ;;  %v1702_v4 = vshrl.u32 (!%p476_p8), %v628_v1, 7  ;;  %s1704_s5 = scalar_lea.vmem (!%p476_p8), [#allocation3], %s1242_s4  ;;  %p532_p9 = scmp.lt.s32.totalorder (!%p476_p8), %s1243_s6, 7 }
  0x58   : > { %v1360_v5 = vld [vmem:[%s1704_s5 + $0x4] ss:$8 sps:$4 sm:$0xff] (!%p476_p8)   ;;  %v1364_v9 = vld [vmem:[%s1704_s5] ss:$8 sps:$4 sm:$0xff] (!%p476_p8)   ;;  %v1366_v11 = vld [vmem:[%s1704_s5 + $0x14] ss:$8 sps:$4 sm:$0xff] (!%p476_p8)  }
  0x59   : > { %v1362_v6 = vld [vmem:[%s1704_s5 + $0x104] ss:$8 sps:$4 sm:$0xff] (!%p476_p8)   ;;  %v627_v8 = vunpack.c.0.s8 (!%p476_p8), %v626_v3  ;;  %965 = vmatprep.subr.bf16.mxu1 (!%p476_p8), %v1360_v5  ;;  %v1365_v10 = vld [vmem:[%s1704_s5 + $0x100] ss:$8 sps:$4 sm:$0xff] (!%p476_p8)   ;;  %v1368_v13 = vld [vmem:[%s1704_s5 + $0x114] ss:$8 sps:$4 sm:$0xff] (!%p476_p8)  }
  0x5a   : > { %1006 = vmatprep.subr.bf16.mxu0 (!%p476_p8), %v1362_v6  ;;  %966 = vmatpush1.bf16.msra.mxu1 (!%p476_p8), %v1364_v9  ;;  %v1370_v14 = vld [vmem:[%s1704_s5 + $0x10] ss:$8 sps:$4 sm:$0xff] (!%p476_p8)   ;;  %v1372_v17 = vld [vmem:[%s1704_s5 + $0x24] ss:$8 sps:$4 sm:$0xff] (!%p476_p8)   ;;  %v1376_v19 = vld [vmem:[%s1704_s5 + $0x20] ss:$8 sps:$4 sm:$0xff] (!%p476_p8)  }
  0x5b   : > { %v1714_v12 = vsub.s32 (!%p476_p8), %v627_v8, %v1702_v4  ;;  %1007 = vmatpush1.bf16.msra.mxu0 (!%p476_p8), %v1365_v10  ;;  %967 = vmatprep.subr.bf16.mxu1 (!%p476_p8), %v1366_v11  ;;  %v1371_v15 = vld [vmem:[%s1704_s5 + $0x110] ss:$8 sps:$4 sm:$0xff] (!%p476_p8)   ;;  %v1374_v18 = vld [vmem:[%s1704_s5 + $0x124] ss:$8 sps:$4 sm:$0xff] (!%p476_p8)   ;;  %v1377_v20 = vld [vmem:[%s1704_s5 + $0x120] ss:$8 sps:$4 sm:$0xff] (!%p476_p8)  }
  0x5c   : > { %1008 = vmatprep.subr.bf16.mxu0 (!%p476_p8), %v1368_v13  ;;  %v1378_v22 = vld [vmem:[%s1704_s5 + $0x34] ss:$8 sps:$4 sm:$0xff] (!%p476_p8)   ;;  %v1382_v24 = vld [vmem:[%s1704_s5 + $0x30] ss:$8 sps:$4 sm:$0xff] (!%p476_p8)   ;;  %v1384_v26 = vld [vmem:[%s1704_s5 + $0x44] ss:$8 sps:$4 sm:$0xff] (!%p476_p8)  }
  0x5d   : > { %v638_v16 = vrot.slane %v624_v7, %v1714_v12  ;;  %v1380_v23 = vld [vmem:[%s1704_s5 + $0x134] ss:$8 sps:$4 sm:$0xff]   ;;  %v1383_v25 = vld [vmem:[%s1704_s5 + $0x130] ss:$8 sps:$4 sm:$0xff]   ;;  %v1386_v27 = vld [vmem:[%s1704_s5 + $0x144] ss:$8 sps:$4 sm:$0xff]   ;;  %v631_v10 = vrot.slane %v1700_v0, %v1714_v12 }
  0x5e   : > { %968 = vmatpush1.bf16.msra.mxu1 %v1370_v14  ;;  %v1388_v28 = vld [vmem:[%s1704_s5 + $0x40] ss:$8 sps:$4 sm:$0xff]   ;;  %v1390_v30 = vld [vmem:[%s1704_s5 + $0x54] ss:$8 sps:$4 sm:$0xff]   ;;  %v1394_v32 = vld [vmem:[%s1704_s5 + $0x50] ss:$8 sps:$4 sm:$0xff]  }
  0x5f   : > { %997 = vmatprep.mubr.bf16.mxu1 %v638_v16  ;;  %v640_v21 = vcombine.high %v638_v16, %v638_v16  ;;  %1009 = vmatpush1.bf16.msra.mxu0 %v1371_v15  ;;  %v1389_v29 = vld [vmem:[%s1704_s5 + $0x140] ss:$8 sps:$4 sm:$0xff]   ;;  %v1392_v31 = vld [vmem:[%s1704_s5 + $0x154] ss:$8 sps:$4 sm:$0xff]   ;;  %v1395_v33 = vld [vmem:[%s1704_s5 + $0x150] ss:$8 sps:$4 sm:$0xff]   ;;  %v639_v14 = vcombine.high %v631_v10, %v631_v10 }
  0x60   : > { %969 = vmatprep.subr.bf16.mxu1 %v1372_v17  ;;  %1010 = vmatprep.subr.bf16.mxu0 %v1374_v18  ;;  %v1396_v34 = vld [vmem:[%s1704_s5 + $0x64] ss:$8 sps:$4 sm:$0xff]   ;;  %v1400_v36 = vld [vmem:[%s1704_s5 + $0x60] ss:$8 sps:$4 sm:$0xff]   ;;  %v1402_v38 = vld [vmem:[%s1704_s5 + $0x74] ss:$8 sps:$4 sm:$0xff]  }
  0x61   : > { %1038 = vmatprep.mubr.bf16.mxu0 %v640_v21  ;;  %v1398_v35 = vld [vmem:[%s1704_s5 + $0x164] ss:$8 sps:$4 sm:$0xff]   ;;  %v1401_v37 = vld [vmem:[%s1704_s5 + $0x160] ss:$8 sps:$4 sm:$0xff]   ;;  %v1404_v39 = vld [vmem:[%s1704_s5 + $0x174] ss:$8 sps:$4 sm:$0xff]  }
  0x62   : > { %970 = vmatpush1.bf16.msra.mxu1 %v1376_v19  ;;  %v1406_v40 = vld [vmem:[%s1704_s5 + $0x70] ss:$8 sps:$4 sm:$0xff]   ;;  %v1408_v42 = vld [vmem:[%s1704_s5 + $0x84] ss:$8 sps:$4 sm:$0xff]   ;;  %v1412_v44 = vld [vmem:[%s1704_s5 + $0x80] ss:$8 sps:$4 sm:$0xff]  }
  0x63   : > { %1011 = vmatpush1.bf16.msra.mxu0 %v1377_v20  ;;  %971 = vmatprep.subr.bf16.mxu1 %v1378_v22  ;;  %v1407_v41 = vld [vmem:[%s1704_s5 + $0x170] ss:$8 sps:$4 sm:$0xff]   ;;  %v1410_v43 = vld [vmem:[%s1704_s5 + $0x184] ss:$8 sps:$4 sm:$0xff]   ;;  %v1413_v45 = vld [vmem:[%s1704_s5 + $0x180] ss:$8 sps:$4 sm:$0xff]  }
  0x64   : > { %1012 = vmatprep.subr.bf16.mxu0 %v1380_v23  ;;  %v1414_v46 = vld [vmem:[%s1704_s5 + $0x94] ss:$8 sps:$4 sm:$0xff]   ;;  %v1418_v48 = vld [vmem:[%s1704_s5 + $0x90] ss:$8 sps:$4 sm:$0xff]   ;;  %v1420_v50 = vld [vmem:[%s1704_s5 + $0xa4] ss:$8 sps:$4 sm:$0xff]  }
  0x65   : > { %v1416_v47 = vld [vmem:[%s1704_s5 + $0x194] ss:$8 sps:$4 sm:$0xff]   ;;  %v1419_v49 = vld [vmem:[%s1704_s5 + $0x190] ss:$8 sps:$4 sm:$0xff]   ;;  %v1422_v51 = vld [vmem:[%s1704_s5 + $0x1a4] ss:$8 sps:$4 sm:$0xff]  }
  0x66   : > { %972 = vmatpush1.bf16.msra.mxu1 %v1382_v24  ;;  %v1424_v52 = vld [vmem:[%s1704_s5 + $0xa0] ss:$8 sps:$4 sm:$0xff]   ;;  %v1426_v54 = vld [vmem:[%s1704_s5 + $0xb4] ss:$8 sps:$4 sm:$0xff]   ;;  %v1430_v56 = vld [vmem:[%s1704_s5 + $0xb0] ss:$8 sps:$4 sm:$0xff]  }
  0x67   : > { %1013 = vmatpush1.bf16.msra.mxu0 %v1383_v25  ;;  %973 = vmatprep.subr.bf16.mxu1 %v1384_v26  ;;  %v1425_v53 = vld [vmem:[%s1704_s5 + $0x1a0] ss:$8 sps:$4 sm:$0xff]   ;;  %v1428_v55 = vld [vmem:[%s1704_s5 + $0x1b4] ss:$8 sps:$4 sm:$0xff]   ;;  %v1431_v57 = vld [vmem:[%s1704_s5 + $0x1b0] ss:$8 sps:$4 sm:$0xff]  }
  0x68   : > { %1014 = vmatprep.subr.bf16.mxu0 %v1386_v27  ;;  %v1432_v58 = vld [vmem:[%s1704_s5 + $0xc4] ss:$8 sps:$4 sm:$0xff]   ;;  %v1436_v60 = vld [vmem:[%s1704_s5 + $0xc0] ss:$8 sps:$4 sm:$0xff]   ;;  %v1438_v62 = vld [vmem:[%s1704_s5 + $0xd4] ss:$8 sps:$4 sm:$0xff]  }
  0x69   : > { %v1434_v59 = vld [vmem:[%s1704_s5 + $0x1c4] ss:$8 sps:$4 sm:$0xff]   ;;  %v1437_v61 = vld [vmem:[%s1704_s5 + $0x1c0] ss:$8 sps:$4 sm:$0xff]   ;;  %v1440_v63 = vld [vmem:[%s1704_s5 + $0x1d4] ss:$8 sps:$4 sm:$0xff]  }
  0x6a   : > { %974 = vmatpush1.bf16.msra.mxu1 %v1388_v28  ;;  %v1442_v1 = vld [vmem:[%s1704_s5 + $0xd0] ss:$8 sps:$4 sm:$0xff]   ;;  %v1444_v3 = vld [vmem:[%s1704_s5 + $0xe4] ss:$8 sps:$4 sm:$0xff]   ;;  %v1448_v6 = vld [vmem:[%s1704_s5 + $0xe0] ss:$8 sps:$4 sm:$0xff]  }
  0x6b   : > { %1015 = vmatpush1.bf16.msra.mxu0 %v1389_v29  ;;  %975 = vmatprep.subr.bf16.mxu1 %v1390_v30  ;;  %v1443_v2 = vld [vmem:[%s1704_s5 + $0x1d0] ss:$8 sps:$4 sm:$0xff]   ;;  %v1446_v5 = vld [vmem:[%s1704_s5 + $0x1e4] ss:$8 sps:$4 sm:$0xff]   ;;  %v1449_v7 = vld [vmem:[%s1704_s5 + $0x1e0] ss:$8 sps:$4 sm:$0xff]  }
  0x6c   : > { %1016 = vmatprep.subr.bf16.mxu0 %v1392_v31  ;;  %v1450_v8 = vld [vmem:[%s1704_s5 + $0xf4] ss:$8 sps:$4 sm:$0xff]   ;;  %v1454_v11 = vld [vmem:[%s1704_s5 + $0xf0] ss:$8 sps:$4 sm:$0xff]   ;;  %v1497_v15 = vmov 0.0   ;;  %s1819_s6 = smov (!%p532_p9, %s1243_s6), 7 }
  0x6d   : > { %v1452_v9 = vld [vmem:[%s1704_s5 + $0x1f4] ss:$8 sps:$4 sm:$0xff]   ;;  %v1455_v13 = vld [vmem:[%s1704_s5 + $0x1f0] ss:$8 sps:$4 sm:$0xff]   ;;  %549 = vst [vmem:[#allocation2] sm:$0xf] %v1497_v15  ;;  %s534_s9 = scalar_lea.vmem %s1810_s2, %s1819_s6  ;;  %s543_s12 = scalar_lea.vmem %s1811_s3, %s1819_s6 }
  0x6e   : > { %976 = vmatpush1.bf16.msra.mxu1 %v1394_v32  ;;  %v1498_v16 = vmov 1983009808   ;;  %v1068_v25 = vsub.s32 0, %v1702_v4  ;;  %v1072_v26 = vsub.s32 1, %v1702_v4  ;;  %v1064_v29 = vld [vmem:[%s534_s9] sm:$0x3] }
  0x6f   : > { %1017 = vmatpush1.bf16.msra.mxu0 %v1395_v33  ;;  %977 = vmatprep.subr.bf16.mxu1 %v1396_v34  ;;  %v1051_v17 = vunpack.c.l.s4 %v1498_v16 }
  0x70   : > { %1018 = vmatprep.subr.bf16.mxu0 %v1398_v35  ;;  %v1069_v35 = vrot.slane %v1064_v29, %v1068_v25 }
  0x71   : > { %v1052_v0 = vunpack.c.0.s8 %v1051_v17 }
  0x72   : > { %978 = vmatpush1.bf16.msra.mxu1 %v1400_v36  ;;  %v1073_v36 = vrot.slane %v1064_v29, %v1072_v26 }
  0x73   : > { %1019 = vmatpush1.bf16.msra.mxu0 %v1401_v37  ;;  %979 = vmatprep.subr.bf16.mxu1 %v1402_v38  ;;  %v1055_v24 = vsub.s32 %v1052_v0, %v1702_v4 }
  0x74   : > { %1020 = vmatprep.subr.bf16.mxu0 %v1404_v39  ;;  %v550_v33 = vld [vmem:[#allocation2] sm:$0xf]  ;;  %v1074_v38 = vcombine.low %v1069_v35, %v1073_v36 }
  0x76   : > { %980 = vmatpush1.bf16.msra.mxu1 %v1406_v40  ;;  %v1081_v39 = vrot.slane %v1074_v38, %v1055_v24 }
  0x77   : > { %1021 = vmatpush1.bf16.msra.mxu0 %v1407_v41  ;;  %981 = vmatprep.subr.bf16.mxu1 %v1408_v42 }
  0x78   : > { %1022 = vmatprep.subr.bf16.mxu0 %v1410_v43 }
  0x7a   : > { %982 = vmatpush1.bf16.msra.mxu1 %v1412_v44 }
  0x7b   : > { %1023 = vmatpush1.bf16.msra.mxu0 %v1413_v45  ;;  %983 = vmatprep.subr.bf16.mxu1 %v1414_v46 }
  0x7c   : > { %1024 = vmatprep.subr.bf16.mxu0 %v1416_v47 }
  0x7e   : > { %984 = vmatpush1.bf16.msra.mxu1 %v1418_v48 }
  0x7f   : > { %1025 = vmatpush1.bf16.msra.mxu0 %v1419_v49  ;;  %985 = vmatprep.subr.bf16.mxu1 %v1420_v50 }
  0x80   : > { %1026 = vmatprep.subr.bf16.mxu0 %v1422_v51 }
  0x82   : > { %986 = vmatpush1.bf16.msra.mxu1 %v1424_v52 }
  0x83   : > { %1027 = vmatpush1.bf16.msra.mxu0 %v1425_v53  ;;  %987 = vmatprep.subr.bf16.mxu1 %v1426_v54 }
  0x84   : > { %1028 = vmatprep.subr.bf16.mxu0 %v1428_v55 }
  0x86   : > { %988 = vmatpush1.bf16.msra.mxu1 %v1430_v56 }
  0x87   : > { %1029 = vmatpush1.bf16.msra.mxu0 %v1431_v57  ;;  %989 = vmatprep.subr.bf16.mxu1 %v1432_v58 }
  0x88   : > { %1030 = vmatprep.subr.bf16.mxu0 %v1434_v59 }
  0x8a   : > { %990 = vmatpush1.bf16.msra.mxu1 %v1436_v60 }
  0x8b   : > { %1031 = vmatpush1.bf16.msra.mxu0 %v1437_v61  ;;  %991 = vmatprep.subr.bf16.mxu1 %v1438_v62 }
  0x8c   : > { %1032 = vmatprep.subr.bf16.mxu0 %v1440_v63 }
  0x8e   : > { %992 = vmatpush1.bf16.msra.mxu1 %v1442_v1 }
  0x8f   : > { %1033 = vmatpush1.bf16.msra.mxu0 %v1443_v2  ;;  %993 = vmatprep.subr.bf16.mxu1 %v1444_v3 }
  0x90   : > { %1034 = vmatprep.subr.bf16.mxu0 %v1446_v5 }
  0x92   : > { %994 = vmatpush1.bf16.msra.mxu1 %v1448_v6 }
  0x93   : > { %1035 = vmatpush1.bf16.msra.mxu0 %v1449_v7  ;;  %995 = vmatprep.subr.bf16.mxu1 %v1450_v8 }
  0x94   : > { %1036 = vmatprep.subr.bf16.mxu0 %v1452_v9 }
  0x96   : > { %996 = vmatpush1.bf16.msra.mxu1 %v1454_v11 }
  0x97   : > { %1037 = vmatpush1.bf16.msra.mxu0 %v1455_v13 }
  0x99   : > { %998 = vmatmul.mubr.bf16.vlgmr.msra.gmra.mrb[0].mxu1 %v631_v10 }
  0x9a   : > { %1039 = vmatmul.mubr.bf16.vlgmr.msra.gmra.mrb[0].mxu0 %v639_v14 }
 0x16c   : > { %v999_v18 = vpop.f32.mrb[0].mxu1 }
 0x16d   : > { %v1040_v19 = vpop.f32.mrb[0].mxu0  ;;  %v1001_v21 = vpop.f32.mrb[1].mxu1 }
 0x16e   : > { %v1041_v20 = vadd.f32 %v1040_v19, %v999_v18  ;;  %v1042_v22 = vpop.f32.mrb[1].mxu0  ;;  %v1003_v27 = vpop.f32.mrb[2].mxu1 }
 0x16f   : > { %v1043_v23 = vadd.f32 %v1042_v22, %v1001_v21  ;;  %v1044_v28 = vpop.f32.mrb[2].mxu0  ;;  %v1004_v30 = vpop.f32.mrb[3].mxu1 }
 0x170   : > { %v1045_v31 = vpop.f32.mrb[3].mxu0 }
 0x171   : > { %v1049_v32 = vcombine.low %v1041_v20, %v1043_v23 }
 0x173   : > { %v1056_v34 = vrot.slane %v1049_v32, %v1055_v24 }
 0x175   : > { %v1058_v37 = vadd.f32 %v1056_v34, %v550_v33 }
 0x177   : > { %1059 = vst [vmem:[#allocation2] sm:$0xf] %v1058_v37 }
 0x17e   : > { %v1063_v40 = vld [vmem:[#allocation2] sm:$0xf] }
 0x17f   : > { %v1083_v41 = vadd.f32 %v1081_v39, %v1063_v40 }
 0x181   : > { %vm1084_vm0 = vcmp.gt.f32.partialorder %v1083_v41, 0.0  ;;  %v1085_v42 = vmul.f32 0.1, %v1083_v41 }
 0x183   : > { %v1086_v4 = vsel %vm1084_vm0, %v1083_v41, %v1085_v42 }
 0x184   : > { %v1094_v43 = vrot.slane %v1086_v4, %v1055_v24 }
 0x186   : > { %v1095_v44 = vcombine.high %v1094_v43, %v1094_v43 }
 0x188   : > { %v1310_v45 = vpack.c.bf16 %v1095_v44, %v1094_v43 }
 0x18a   : > { %v1109_v46 = vrot.slane %v1310_v45, %v1714_v12 }
 0x18c   : > { %1311 = vst.sshfl [vmem:[%s543_s12] sm:$0x5 pattern:$0x73625140] %v1109_v46 }
 0x18d PF: > { %s13_s16 = sadd.s32 1, %s1494_s16   ;;  %s1812_s12 = smov %s1482_s13 }
 0x18e   : > { %p10_p10 = scmp.ge.s32.totalorder %s13_s16, 6   ;;  %s1813_s13 = smov %s1554_s20 }
 0x18f   : > { %s1814_s14 = smov %s1490_s15  ;;  %s1815_s15 = smov %s1817_s17 }
 0x190   :  { %12 = sbr.rel (!%p10_p10) target bundleno = 3 (0x3), region = 119 }

// kernel: simple_10cnn_forward.19
= control target key start
LH: loop header
LB: loop body
LE: loop exit
PB: predicated region body
PF: predicated region fallthrough
CT: control target
= control target key end

     0   :  { %s2438_s12 = smov 0   ;;  %s2440_s13 = smov 0   ;;  %s2948_s0 = inlined_call_operand.vmem [shape: bf16[2,1024], index: 0, kind: input, shape index: {}]   ;;  %s2949_s1 = inlined_call_operand.vmem [shape: bf16[1024,512], index: 1, kind: input, shape index: {}]   ;;  %s2950_s2 = inlined_call_operand.vmem [shape: f32[1,512], index: 2, kind: input, shape index: {}]   ;;  %s2951_s3 = inlined_call_operand.vmem [shape: bf16[2,512], index: 3, kind: output, shape index: {}]  }
   0x1   :  { %s2442_s14 = smov 0   ;;  %s2444_s15 = smov 0  }
   0x2   :  { %s2446_s16 = smov 0  }
   0x3 LB: > { %s28_s17 = sadd.s32 1, %s2409_s15  ;;  %p76_p1 = scmp.ne.s32.totalorder %s2401_s13, %s2397_s12  ;;  %s2413_s16 = sphi %s2446_s16, %s13_s16   ;;  %s2409_s15 = sphi %s2444_s15, %s2955_s15   ;;  %s2405_s14 = sphi %s2442_s14, %s2954_s14   ;;  %s2401_s13 = sphi %s2440_s13, %s2953_s13   ;;  %s2397_s12 = sphi %s2438_s12, %s2952_s12  }
   0x4   : > { %p30_p0 = scmp.ge.s32.totalorder %s28_s17, 2  ;;  %p77_p2 = scmp.eq.s32.totalorder %s2413_s16, 0 }
   0x5   : > { %s69_s19 = sadd.s32 1, %s2401_s13  ;;  %p1988_p5 = scmp.ge.s32.totalorder %s2413_s16, 2 }
   0x6   : > { %s2957_s17 = smov (%p30_p0, %s28_s17), 0  ;;  %p78_p3 = por %p77_p2, %p76_p1 }
   0x7   : > { %s65_s18 = ssub.s32 %s2409_s15, %s2957_s17  ;;  %168 = sbr.rel (%p1988_p5) target bundleno = 82 (0x52), region = 20 }
   0x8   : > { %p67_p4 = scmp.eq.s32.totalorder %s65_s18, 0 }
   0xa   : > { %s2473_s20 = scalar_select %p67_p4, %s2401_s13, %s69_s19  }
   0xe   : > { %171 = sbr.rel (!%p78_p3) target bundleno = 82 (0x52), region = 24  ;;  %s173_s21 = sand.u32 (%p78_p3), 1, %s2401_s13  }
   0xf   : > { %s2128_s22 = sshll.u32 (%p78_p3), %s2409_s15, 3  ;;  %s1989_s23 = sshll.u32 (%p78_p3), %s173_s21, 10 }
  0x10   : > { %s2481_s26 = scalar_lea.vmem (%p78_p3), %s2949_s1, %s2128_s22  ;;  %s2486_s27 = scalar_lea.vmem (%p78_p3), [#allocation3], %s1989_s23 }
  0x11   : > { %v463_v0 = vld [vmem:[%s2481_s26] sm:$0xff] (%p78_p3)  ;;  %v465_v1 = vld [vmem:[%s2481_s26 + $0x10] sm:$0xff] (%p78_p3) }
  0x12   : > { %v467_v2 = vld [vmem:[%s2481_s26 + $0x20] sm:$0xff] (%p78_p3)  ;;  %464 = vst [vmem:[%s2486_s27] sm:$0xff] (%p78_p3), %v463_v0  ;;  %466 = vst [vmem:[%s2486_s27 + $0x8] sm:$0xff] (%p78_p3), %v465_v1  ;;  %v469_v3 = vld [vmem:[%s2481_s26 + $0x30] sm:$0xff] (%p78_p3) }
  0x13   : > { %468 = vst [vmem:[%s2486_s27 + $0x10] sm:$0xff] (%p78_p3), %v467_v2  ;;  %v471_v4 = vld [vmem:[%s2481_s26 + $0x40] sm:$0xff] (%p78_p3)  ;;  %v473_v5 = vld [vmem:[%s2481_s26 + $0x50] sm:$0xff] (%p78_p3)  ;;  %470 = vst [vmem:[%s2486_s27 + $0x18] sm:$0xff] (%p78_p3), %v469_v3 }
  0x14   : > { %472 = vst [vmem:[%s2486_s27 + $0x20] sm:$0xff] (%p78_p3), %v471_v4  ;;  %474 = vst [vmem:[%s2486_s27 + $0x28] sm:$0xff] (%p78_p3), %v473_v5  ;;  %v475_v6 = vld [vmem:[%s2481_s26 + $0x60] sm:$0xff] (%p78_p3)  ;;  %v477_v7 = vld [vmem:[%s2481_s26 + $0x70] sm:$0xff] (%p78_p3) }
  0x15   : > { %v479_v8 = vld [vmem:[%s2481_s26 + $0x80] sm:$0xff]  ;;  %476 = vst [vmem:[%s2486_s27 + $0x30] sm:$0xff] %v475_v6  ;;  %478 = vst [vmem:[%s2486_s27 + $0x38] sm:$0xff] %v477_v7  ;;  %v481_v9 = vld [vmem:[%s2481_s26 + $0x90] sm:$0xff] }
  0x16   : > { %480 = vst [vmem:[%s2486_s27 + $0x40] sm:$0xff] %v479_v8  ;;  %v483_v10 = vld [vmem:[%s2481_s26 + $0xa0] sm:$0xff]  ;;  %v485_v11 = vld [vmem:[%s2481_s26 + $0xb0] sm:$0xff]  ;;  %482 = vst [vmem:[%s2486_s27 + $0x48] sm:$0xff] %v481_v9 }
  0x17   : > { %484 = vst [vmem:[%s2486_s27 + $0x50] sm:$0xff] %v483_v10  ;;  %486 = vst [vmem:[%s2486_s27 + $0x58] sm:$0xff] %v485_v11  ;;  %v487_v12 = vld [vmem:[%s2481_s26 + $0xc0] sm:$0xff]  ;;  %v489_v13 = vld [vmem:[%s2481_s26 + $0xd0] sm:$0xff] }
  0x18   : > { %v491_v14 = vld [vmem:[%s2481_s26 + $0xe0] sm:$0xff]  ;;  %488 = vst [vmem:[%s2486_s27 + $0x60] sm:$0xff] %v487_v12  ;;  %490 = vst [vmem:[%s2486_s27 + $0x68] sm:$0xff] %v489_v13  ;;  %v493_v15 = vld [vmem:[%s2481_s26 + $0xf0] sm:$0xff] }
  0x19   : > { %492 = vst [vmem:[%s2486_s27 + $0x70] sm:$0xff] %v491_v14  ;;  %v495_v16 = vld [vmem:[%s2481_s26 + $0x100] sm:$0xff]  ;;  %v497_v17 = vld [vmem:[%s2481_s26 + $0x110] sm:$0xff]  ;;  %494 = vst [vmem:[%s2486_s27 + $0x78] sm:$0xff] %v493_v15 }
  0x1a   : > { %496 = vst [vmem:[%s2486_s27 + $0x80] sm:$0xff] %v495_v16  ;;  %498 = vst [vmem:[%s2486_s27 + $0x88] sm:$0xff] %v497_v17  ;;  %v499_v18 = vld [vmem:[%s2481_s26 + $0x120] sm:$0xff]  ;;  %v501_v19 = vld [vmem:[%s2481_s26 + $0x130] sm:$0xff] }
  0x1b   : > { %v503_v20 = vld [vmem:[%s2481_s26 + $0x140] sm:$0xff]  ;;  %500 = vst [vmem:[%s2486_s27 + $0x90] sm:$0xff] %v499_v18  ;;  %502 = vst [vmem:[%s2486_s27 + $0x98] sm:$0xff] %v501_v19  ;;  %v505_v21 = vld [vmem:[%s2481_s26 + $0x150] sm:$0xff] }
  0x1c   : > { %504 = vst [vmem:[%s2486_s27 + $0xa0] sm:$0xff] %v503_v20  ;;  %v507_v22 = vld [vmem:[%s2481_s26 + $0x160] sm:$0xff]  ;;  %v509_v23 = vld [vmem:[%s2481_s26 + $0x170] sm:$0xff]  ;;  %506 = vst [vmem:[%s2486_s27 + $0xa8] sm:$0xff] %v505_v21 }
  0x1d   : > { %508 = vst [vmem:[%s2486_s27 + $0xb0] sm:$0xff] %v507_v22  ;;  %510 = vst [vmem:[%s2486_s27 + $0xb8] sm:$0xff] %v509_v23  ;;  %v511_v24 = vld [vmem:[%s2481_s26 + $0x180] sm:$0xff]  ;;  %v513_v25 = vld [vmem:[%s2481_s26 + $0x190] sm:$0xff] }
  0x1e   : > { %v515_v26 = vld [vmem:[%s2481_s26 + $0x1a0] sm:$0xff]  ;;  %512 = vst [vmem:[%s2486_s27 + $0xc0] sm:$0xff] %v511_v24  ;;  %514 = vst [vmem:[%s2486_s27 + $0xc8] sm:$0xff] %v513_v25  ;;  %v517_v27 = vld [vmem:[%s2481_s26 + $0x1b0] sm:$0xff] }
  0x1f   : > { %516 = vst [vmem:[%s2486_s27 + $0xd0] sm:$0xff] %v515_v26  ;;  %v519_v28 = vld [vmem:[%s2481_s26 + $0x1c0] sm:$0xff]  ;;  %v521_v29 = vld [vmem:[%s2481_s26 + $0x1d0] sm:$0xff]  ;;  %518 = vst [vmem:[%s2486_s27 + $0xd8] sm:$0xff] %v517_v27 }
  0x20   : > { %520 = vst [vmem:[%s2486_s27 + $0xe0] sm:$0xff] %v519_v28  ;;  %522 = vst [vmem:[%s2486_s27 + $0xe8] sm:$0xff] %v521_v29  ;;  %v523_v30 = vld [vmem:[%s2481_s26 + $0x1e0] sm:$0xff]  ;;  %v525_v31 = vld [vmem:[%s2481_s26 + $0x1f0] sm:$0xff] }
  0x21   : > { %v527_v32 = vld [vmem:[%s2481_s26 + $0x200] sm:$0xff]  ;;  %524 = vst [vmem:[%s2486_s27 + $0xf0] sm:$0xff] %v523_v30  ;;  %526 = vst [vmem:[%s2486_s27 + $0xf8] sm:$0xff] %v525_v31  ;;  %v529_v33 = vld [vmem:[%s2481_s26 + $0x210] sm:$0xff] }
  0x22   : > { %528 = vst [vmem:[%s2486_s27 + $0x100] sm:$0xff] %v527_v32  ;;  %v531_v34 = vld [vmem:[%s2481_s26 + $0x220] sm:$0xff]  ;;  %v533_v35 = vld [vmem:[%s2481_s26 + $0x230] sm:$0xff]  ;;  %530 = vst [vmem:[%s2486_s27 + $0x108] sm:$0xff] %v529_v33 }
  0x23   : > { %532 = vst [vmem:[%s2486_s27 + $0x110] sm:$0xff] %v531_v34  ;;  %534 = vst [vmem:[%s2486_s27 + $0x118] sm:$0xff] %v533_v35  ;;  %v535_v36 = vld [vmem:[%s2481_s26 + $0x240] sm:$0xff]  ;;  %v537_v37 = vld [vmem:[%s2481_s26 + $0x250] sm:$0xff] }
  0x24   : > { %v539_v38 = vld [vmem:[%s2481_s26 + $0x260] sm:$0xff]  ;;  %536 = vst [vmem:[%s2486_s27 + $0x120] sm:$0xff] %v535_v36  ;;  %538 = vst [vmem:[%s2486_s27 + $0x128] sm:$0xff] %v537_v37  ;;  %v541_v39 = vld [vmem:[%s2481_s26 + $0x270] sm:$0xff] }
  0x25   : > { %540 = vst [vmem:[%s2486_s27 + $0x130] sm:$0xff] %v539_v38  ;;  %v543_v40 = vld [vmem:[%s2481_s26 + $0x280] sm:$0xff]  ;;  %v545_v41 = vld [vmem:[%s2481_s26 + $0x290] sm:$0xff]  ;;  %542 = vst [vmem:[%s2486_s27 + $0x138] sm:$0xff] %v541_v39 }
  0x26   : > { %544 = vst [vmem:[%s2486_s27 + $0x140] sm:$0xff] %v543_v40  ;;  %546 = vst [vmem:[%s2486_s27 + $0x148] sm:$0xff] %v545_v41  ;;  %v547_v42 = vld [vmem:[%s2481_s26 + $0x2a0] sm:$0xff]  ;;  %v549_v43 = vld [vmem:[%s2481_s26 + $0x2b0] sm:$0xff] }
  0x27   : > { %v551_v44 = vld [vmem:[%s2481_s26 + $0x2c0] sm:$0xff]  ;;  %548 = vst [vmem:[%s2486_s27 + $0x150] sm:$0xff] %v547_v42  ;;  %550 = vst [vmem:[%s2486_s27 + $0x158] sm:$0xff] %v549_v43  ;;  %v553_v45 = vld [vmem:[%s2481_s26 + $0x2d0] sm:$0xff] }
  0x28   : > { %552 = vst [vmem:[%s2486_s27 + $0x160] sm:$0xff] %v551_v44  ;;  %v555_v46 = vld [vmem:[%s2481_s26 + $0x2e0] sm:$0xff]  ;;  %v557_v47 = vld [vmem:[%s2481_s26 + $0x2f0] sm:$0xff]  ;;  %554 = vst [vmem:[%s2486_s27 + $0x168] sm:$0xff] %v553_v45 }
  0x29   : > { %556 = vst [vmem:[%s2486_s27 + $0x170] sm:$0xff] %v555_v46  ;;  %558 = vst [vmem:[%s2486_s27 + $0x178] sm:$0xff] %v557_v47  ;;  %v559_v48 = vld [vmem:[%s2481_s26 + $0x300] sm:$0xff]  ;;  %v561_v49 = vld [vmem:[%s2481_s26 + $0x310] sm:$0xff] }
  0x2a   : > { %v563_v50 = vld [vmem:[%s2481_s26 + $0x320] sm:$0xff]  ;;  %560 = vst [vmem:[%s2486_s27 + $0x180] sm:$0xff] %v559_v48  ;;  %562 = vst [vmem:[%s2486_s27 + $0x188] sm:$0xff] %v561_v49  ;;  %v565_v51 = vld [vmem:[%s2481_s26 + $0x330] sm:$0xff] }
  0x2b   : > { %564 = vst [vmem:[%s2486_s27 + $0x190] sm:$0xff] %v563_v50  ;;  %v567_v52 = vld [vmem:[%s2481_s26 + $0x340] sm:$0xff]  ;;  %v569_v53 = vld [vmem:[%s2481_s26 + $0x350] sm:$0xff]  ;;  %566 = vst [vmem:[%s2486_s27 + $0x198] sm:$0xff] %v565_v51 }
  0x2c   : > { %568 = vst [vmem:[%s2486_s27 + $0x1a0] sm:$0xff] %v567_v52  ;;  %570 = vst [vmem:[%s2486_s27 + $0x1a8] sm:$0xff] %v569_v53  ;;  %v571_v54 = vld [vmem:[%s2481_s26 + $0x360] sm:$0xff]  ;;  %v573_v55 = vld [vmem:[%s2481_s26 + $0x370] sm:$0xff] }
  0x2d   : > { %v575_v56 = vld [vmem:[%s2481_s26 + $0x380] sm:$0xff]  ;;  %572 = vst [vmem:[%s2486_s27 + $0x1b0] sm:$0xff] %v571_v54  ;;  %574 = vst [vmem:[%s2486_s27 + $0x1b8] sm:$0xff] %v573_v55  ;;  %v577_v57 = vld [vmem:[%s2481_s26 + $0x390] sm:$0xff] }
  0x2e   : > { %576 = vst [vmem:[%s2486_s27 + $0x1c0] sm:$0xff] %v575_v56  ;;  %v579_v58 = vld [vmem:[%s2481_s26 + $0x3a0] sm:$0xff]  ;;  %v581_v59 = vld [vmem:[%s2481_s26 + $0x3b0] sm:$0xff]  ;;  %578 = vst [vmem:[%s2486_s27 + $0x1c8] sm:$0xff] %v577_v57 }
  0x2f   : > { %580 = vst [vmem:[%s2486_s27 + $0x1d0] sm:$0xff] %v579_v58  ;;  %582 = vst [vmem:[%s2486_s27 + $0x1d8] sm:$0xff] %v581_v59  ;;  %v583_v60 = vld [vmem:[%s2481_s26 + $0x3c0] sm:$0xff]  ;;  %v585_v61 = vld [vmem:[%s2481_s26 + $0x3d0] sm:$0xff] }
  0x30   : > { %v587_v62 = vld [vmem:[%s2481_s26 + $0x3e0] sm:$0xff]  ;;  %584 = vst [vmem:[%s2486_s27 + $0x1e0] sm:$0xff] %v583_v60  ;;  %586 = vst [vmem:[%s2486_s27 + $0x1e8] sm:$0xff] %v585_v61  ;;  %v589_v63 = vld [vmem:[%s2481_s26 + $0x3f0] sm:$0xff] }
  0x31   : > { %588 = vst [vmem:[%s2486_s27 + $0x1f0] sm:$0xff] %v587_v62  ;;  %v591_v0 = vld [vmem:[%s2481_s26 + $0x400] sm:$0xff]  ;;  %v593_v1 = vld [vmem:[%s2481_s26 + $0x410] sm:$0xff]  ;;  %590 = vst [vmem:[%s2486_s27 + $0x1f8] sm:$0xff] %v589_v63 }
  0x32   : > { %592 = vst [vmem:[%s2486_s27 + $0x200] sm:$0xff] %v591_v0  ;;  %594 = vst [vmem:[%s2486_s27 + $0x208] sm:$0xff] %v593_v1  ;;  %v595_v2 = vld [vmem:[%s2481_s26 + $0x420] sm:$0xff]  ;;  %v597_v3 = vld [vmem:[%s2481_s26 + $0x430] sm:$0xff] }
  0x33   : > { %v599_v4 = vld [vmem:[%s2481_s26 + $0x440] sm:$0xff]  ;;  %596 = vst [vmem:[%s2486_s27 + $0x210] sm:$0xff] %v595_v2  ;;  %598 = vst [vmem:[%s2486_s27 + $0x218] sm:$0xff] %v597_v3  ;;  %v601_v5 = vld [vmem:[%s2481_s26 + $0x450] sm:$0xff] }
  0x34   : > { %600 = vst [vmem:[%s2486_s27 + $0x220] sm:$0xff] %v599_v4  ;;  %v603_v6 = vld [vmem:[%s2481_s26 + $0x460] sm:$0xff]  ;;  %v605_v7 = vld [vmem:[%s2481_s26 + $0x470] sm:$0xff]  ;;  %602 = vst [vmem:[%s2486_s27 + $0x228] sm:$0xff] %v601_v5 }
  0x35   : > { %604 = vst [vmem:[%s2486_s27 + $0x230] sm:$0xff] %v603_v6  ;;  %606 = vst [vmem:[%s2486_s27 + $0x238] sm:$0xff] %v605_v7  ;;  %v607_v8 = vld [vmem:[%s2481_s26 + $0x480] sm:$0xff]  ;;  %v609_v9 = vld [vmem:[%s2481_s26 + $0x490] sm:$0xff] }
  0x36   : > { %v611_v10 = vld [vmem:[%s2481_s26 + $0x4a0] sm:$0xff]  ;;  %608 = vst [vmem:[%s2486_s27 + $0x240] sm:$0xff] %v607_v8  ;;  %610 = vst [vmem:[%s2486_s27 + $0x248] sm:$0xff] %v609_v9  ;;  %v613_v11 = vld [vmem:[%s2481_s26 + $0x4b0] sm:$0xff] }
  0x37   : > { %612 = vst [vmem:[%s2486_s27 + $0x250] sm:$0xff] %v611_v10  ;;  %v615_v12 = vld [vmem:[%s2481_s26 + $0x4c0] sm:$0xff]  ;;  %v617_v13 = vld [vmem:[%s2481_s26 + $0x4d0] sm:$0xff]  ;;  %614 = vst [vmem:[%s2486_s27 + $0x258] sm:$0xff] %v613_v11 }
  0x38   : > { %616 = vst [vmem:[%s2486_s27 + $0x260] sm:$0xff] %v615_v12  ;;  %618 = vst [vmem:[%s2486_s27 + $0x268] sm:$0xff] %v617_v13  ;;  %v619_v14 = vld [vmem:[%s2481_s26 + $0x4e0] sm:$0xff]  ;;  %v621_v15 = vld [vmem:[%s2481_s26 + $0x4f0] sm:$0xff] }
  0x39   : > { %v623_v16 = vld [vmem:[%s2481_s26 + $0x500] sm:$0xff]  ;;  %620 = vst [vmem:[%s2486_s27 + $0x270] sm:$0xff] %v619_v14  ;;  %622 = vst [vmem:[%s2486_s27 + $0x278] sm:$0xff] %v621_v15  ;;  %v625_v17 = vld [vmem:[%s2481_s26 + $0x510] sm:$0xff] }
  0x3a   : > { %624 = vst [vmem:[%s2486_s27 + $0x280] sm:$0xff] %v623_v16  ;;  %v627_v18 = vld [vmem:[%s2481_s26 + $0x520] sm:$0xff]  ;;  %v629_v19 = vld [vmem:[%s2481_s26 + $0x530] sm:$0xff]  ;;  %626 = vst [vmem:[%s2486_s27 + $0x288] sm:$0xff] %v625_v17 }
  0x3b   : > { %628 = vst [vmem:[%s2486_s27 + $0x290] sm:$0xff] %v627_v18  ;;  %630 = vst [vmem:[%s2486_s27 + $0x298] sm:$0xff] %v629_v19  ;;  %v631_v20 = vld [vmem:[%s2481_s26 + $0x540] sm:$0xff]  ;;  %v633_v21 = vld [vmem:[%s2481_s26 + $0x550] sm:$0xff] }
  0x3c   : > { %v635_v22 = vld [vmem:[%s2481_s26 + $0x560] sm:$0xff]  ;;  %632 = vst [vmem:[%s2486_s27 + $0x2a0] sm:$0xff] %v631_v20  ;;  %634 = vst [vmem:[%s2486_s27 + $0x2a8] sm:$0xff] %v633_v21  ;;  %v637_v23 = vld [vmem:[%s2481_s26 + $0x570] sm:$0xff] }
  0x3d   : > { %636 = vst [vmem:[%s2486_s27 + $0x2b0] sm:$0xff] %v635_v22  ;;  %v639_v24 = vld [vmem:[%s2481_s26 + $0x580] sm:$0xff]  ;;  %v641_v25 = vld [vmem:[%s2481_s26 + $0x590] sm:$0xff]  ;;  %638 = vst [vmem:[%s2486_s27 + $0x2b8] sm:$0xff] %v637_v23 }
  0x3e   : > { %640 = vst [vmem:[%s2486_s27 + $0x2c0] sm:$0xff] %v639_v24  ;;  %642 = vst [vmem:[%s2486_s27 + $0x2c8] sm:$0xff] %v641_v25  ;;  %v643_v26 = vld [vmem:[%s2481_s26 + $0x5a0] sm:$0xff]  ;;  %v645_v27 = vld [vmem:[%s2481_s26 + $0x5b0] sm:$0xff] }
  0x3f   : > { %v647_v28 = vld [vmem:[%s2481_s26 + $0x5c0] sm:$0xff]  ;;  %644 = vst [vmem:[%s2486_s27 + $0x2d0] sm:$0xff] %v643_v26  ;;  %646 = vst [vmem:[%s2486_s27 + $0x2d8] sm:$0xff] %v645_v27  ;;  %v649_v29 = vld [vmem:[%s2481_s26 + $0x5d0] sm:$0xff] }
  0x40   : > { %648 = vst [vmem:[%s2486_s27 + $0x2e0] sm:$0xff] %v647_v28  ;;  %v651_v30 = vld [vmem:[%s2481_s26 + $0x5e0] sm:$0xff]  ;;  %v653_v31 = vld [vmem:[%s2481_s26 + $0x5f0] sm:$0xff]  ;;  %650 = vst [vmem:[%s2486_s27 + $0x2e8] sm:$0xff] %v649_v29 }
  0x41   : > { %652 = vst [vmem:[%s2486_s27 + $0x2f0] sm:$0xff] %v651_v30  ;;  %654 = vst [vmem:[%s2486_s27 + $0x2f8] sm:$0xff] %v653_v31  ;;  %v655_v32 = vld [vmem:[%s2481_s26 + $0x600] sm:$0xff]  ;;  %v657_v33 = vld [vmem:[%s2481_s26 + $0x610] sm:$0xff] }
  0x42   : > { %v659_v34 = vld [vmem:[%s2481_s26 + $0x620] sm:$0xff]  ;;  %656 = vst [vmem:[%s2486_s27 + $0x300] sm:$0xff] %v655_v32  ;;  %658 = vst [vmem:[%s2486_s27 + $0x308] sm:$0xff] %v657_v33  ;;  %v661_v35 = vld [vmem:[%s2481_s26 + $0x630] sm:$0xff] }
  0x43   : > { %660 = vst [vmem:[%s2486_s27 + $0x310] sm:$0xff] %v659_v34  ;;  %v663_v36 = vld [vmem:[%s2481_s26 + $0x640] sm:$0xff]  ;;  %v665_v37 = vld [vmem:[%s2481_s26 + $0x650] sm:$0xff]  ;;  %662 = vst [vmem:[%s2486_s27 + $0x318] sm:$0xff] %v661_v35 }
  0x44   : > { %664 = vst [vmem:[%s2486_s27 + $0x320] sm:$0xff] %v663_v36  ;;  %666 = vst [vmem:[%s2486_s27 + $0x328] sm:$0xff] %v665_v37  ;;  %v667_v38 = vld [vmem:[%s2481_s26 + $0x660] sm:$0xff]  ;;  %v669_v39 = vld [vmem:[%s2481_s26 + $0x670] sm:$0xff] }
  0x45   : > { %v671_v40 = vld [vmem:[%s2481_s26 + $0x680] sm:$0xff]  ;;  %668 = vst [vmem:[%s2486_s27 + $0x330] sm:$0xff] %v667_v38  ;;  %670 = vst [vmem:[%s2486_s27 + $0x338] sm:$0xff] %v669_v39  ;;  %v673_v41 = vld [vmem:[%s2481_s26 + $0x690] sm:$0xff] }
  0x46   : > { %672 = vst [vmem:[%s2486_s27 + $0x340] sm:$0xff] %v671_v40  ;;  %v675_v42 = vld [vmem:[%s2481_s26 + $0x6a0] sm:$0xff]  ;;  %v677_v43 = vld [vmem:[%s2481_s26 + $0x6b0] sm:$0xff]  ;;  %674 = vst [vmem:[%s2486_s27 + $0x348] sm:$0xff] %v673_v41 }
  0x47   : > { %676 = vst [vmem:[%s2486_s27 + $0x350] sm:$0xff] %v675_v42  ;;  %678 = vst [vmem:[%s2486_s27 + $0x358] sm:$0xff] %v677_v43  ;;  %v679_v44 = vld [vmem:[%s2481_s26 + $0x6c0] sm:$0xff]  ;;  %v681_v45 = vld [vmem:[%s2481_s26 + $0x6d0] sm:$0xff] }
  0x48   : > { %v683_v46 = vld [vmem:[%s2481_s26 + $0x6e0] sm:$0xff]  ;;  %680 = vst [vmem:[%s2486_s27 + $0x360] sm:$0xff] %v679_v44  ;;  %682 = vst [vmem:[%s2486_s27 + $0x368] sm:$0xff] %v681_v45  ;;  %v685_v47 = vld [vmem:[%s2481_s26 + $0x6f0] sm:$0xff] }
  0x49   : > { %684 = vst [vmem:[%s2486_s27 + $0x370] sm:$0xff] %v683_v46  ;;  %v687_v48 = vld [vmem:[%s2481_s26 + $0x700] sm:$0xff]  ;;  %v689_v49 = vld [vmem:[%s2481_s26 + $0x710] sm:$0xff]  ;;  %686 = vst [vmem:[%s2486_s27 + $0x378] sm:$0xff] %v685_v47 }
  0x4a   : > { %688 = vst [vmem:[%s2486_s27 + $0x380] sm:$0xff] %v687_v48  ;;  %690 = vst [vmem:[%s2486_s27 + $0x388] sm:$0xff] %v689_v49  ;;  %v691_v50 = vld [vmem:[%s2481_s26 + $0x720] sm:$0xff]  ;;  %v693_v51 = vld [vmem:[%s2481_s26 + $0x730] sm:$0xff] }
  0x4b   : > { %v695_v52 = vld [vmem:[%s2481_s26 + $0x740] sm:$0xff]  ;;  %692 = vst [vmem:[%s2486_s27 + $0x390] sm:$0xff] %v691_v50  ;;  %694 = vst [vmem:[%s2486_s27 + $0x398] sm:$0xff] %v693_v51  ;;  %v697_v53 = vld [vmem:[%s2481_s26 + $0x750] sm:$0xff] }
  0x4c   : > { %696 = vst [vmem:[%s2486_s27 + $0x3a0] sm:$0xff] %v695_v52  ;;  %v699_v54 = vld [vmem:[%s2481_s26 + $0x760] sm:$0xff]  ;;  %v701_v55 = vld [vmem:[%s2481_s26 + $0x770] sm:$0xff]  ;;  %698 = vst [vmem:[%s2486_s27 + $0x3a8] sm:$0xff] %v697_v53 }
  0x4d   : > { %700 = vst [vmem:[%s2486_s27 + $0x3b0] sm:$0xff] %v699_v54  ;;  %702 = vst [vmem:[%s2486_s27 + $0x3b8] sm:$0xff] %v701_v55  ;;  %v703_v56 = vld [vmem:[%s2481_s26 + $0x780] sm:$0xff]  ;;  %v705_v57 = vld [vmem:[%s2481_s26 + $0x790] sm:$0xff] }
  0x4e   : > { %v707_v58 = vld [vmem:[%s2481_s26 + $0x7a0] sm:$0xff]  ;;  %704 = vst [vmem:[%s2486_s27 + $0x3c0] sm:$0xff] %v703_v56  ;;  %706 = vst [vmem:[%s2486_s27 + $0x3c8] sm:$0xff] %v705_v57  ;;  %v709_v59 = vld [vmem:[%s2481_s26 + $0x7b0] sm:$0xff] }
  0x4f   : > { %708 = vst [vmem:[%s2486_s27 + $0x3d0] sm:$0xff] %v707_v58  ;;  %v711_v60 = vld [vmem:[%s2481_s26 + $0x7c0] sm:$0xff]  ;;  %v713_v61 = vld [vmem:[%s2481_s26 + $0x7d0] sm:$0xff]  ;;  %710 = vst [vmem:[%s2486_s27 + $0x3d8] sm:$0xff] %v709_v59 }
  0x50   : > { %712 = vst [vmem:[%s2486_s27 + $0x3e0] sm:$0xff] %v711_v60  ;;  %714 = vst [vmem:[%s2486_s27 + $0x3e8] sm:$0xff] %v713_v61  ;;  %v715_v62 = vld [vmem:[%s2481_s26 + $0x7e0] sm:$0xff]  ;;  %v717_v63 = vld [vmem:[%s2481_s26 + $0x7f0] sm:$0xff] }
  0x51   : > { %716 = vst [vmem:[%s2486_s27 + $0x3f0] sm:$0xff] %v715_v62  ;;  %718 = vst [vmem:[%s2486_s27 + $0x3f8] sm:$0xff] %v717_v63 }
  0x52 PF: > { %p1992_p6 = scmp.ge.s32.totalorder %s2413_s16, 1  ;;  %p731_p7 = scmp.lt.s32.totalorder %s2413_s16, 3 }
  0x54   : > { %p732_p8 = pnand %p1992_p6, %p731_p7 }
  0x55   : > { %s738_s28 = sand.u32 (!%p732_p8), 1, %s2397_s12   ;;  %v807_v0 = vld [vmem:[%s2948_s0] sm:$0xff] (!%p732_p8)  ;;  %v941_v1 = vlaneseq (!%p732_p8)  ;;  %v2415_v2 = vmov (!%p732_p8), 1966171168   ;;  %s1994_s6 = sshll.u32 (!%p732_p8), %s2405_s14, 1 }
  0x56   : > { %735 = sbr.rel (%p732_p8) target bundleno = 461 (0x1cd), region = 66  ;;  %s1993_s4 = sshll.u32 (!%p732_p8), %s738_s28, 10  ;;  %v939_v3 = vunpack.c.l.s4 (!%p732_p8), %v2415_v2  ;;  %v937_v7 = vcombine.high (!%p732_p8), %v807_v0, %v807_v0 }
  0x57   : > { %v2747_v4 = vshrl.u32 (!%p732_p8), %v941_v1, 7  ;;  %s2749_s5 = scalar_lea.vmem (!%p732_p8), [#allocation3], %s1993_s4  ;;  %p788_p9 = scmp.lt.s32.totalorder (!%p732_p8), %s1994_s6, 3 }
  0x58   : > { %v2182_v5 = vld [vmem:[%s2749_s5 + $0x4] ss:$8 sps:$4 sm:$0xff] (!%p732_p8)   ;;  %v940_v6 = vunpack.c.0.s8 (!%p732_p8), %v939_v3  ;;  %v2186_v9 = vld [vmem:[%s2749_s5] ss:$8 sps:$4 sm:$0xff] (!%p732_p8)   ;;  %v2188_v12 = vld [vmem:[%s2749_s5 + $0x14] ss:$8 sps:$4 sm:$0xff] (!%p732_p8)  }
  0x59   : > { %v2184_v8 = vld [vmem:[%s2749_s5 + $0x204] ss:$8 sps:$4 sm:$0xff] (!%p732_p8)   ;;  %1634 = vmatprep.subr.bf16.mxu1 (!%p732_p8), %v2182_v5  ;;  %v2187_v10 = vld [vmem:[%s2749_s5 + $0x200] ss:$8 sps:$4 sm:$0xff] (!%p732_p8)   ;;  %v2190_v13 = vld [vmem:[%s2749_s5 + $0x214] ss:$8 sps:$4 sm:$0xff] (!%p732_p8)  }
  0x5a   : > { %v2756_v11 = vsub.s32 (!%p732_p8), %v940_v6, %v2747_v4  ;;  %1716 = vmatprep.subr.bf16.mxu0 (!%p732_p8), %v2184_v8  ;;  %1635 = vmatpush1.bf16.msra.mxu1 (!%p732_p8), %v2186_v9  ;;  %v2192_v14 = vld [vmem:[%s2749_s5 + $0x10] ss:$8 sps:$4 sm:$0xff] (!%p732_p8)   ;;  %v2194_v18 = vld [vmem:[%s2749_s5 + $0x24] ss:$8 sps:$4 sm:$0xff] (!%p732_p8)   ;;  %v2198_v22 = vld [vmem:[%s2749_s5 + $0x20] ss:$8 sps:$4 sm:$0xff] (!%p732_p8)  }
  0x5b   : > { %1717 = vmatpush1.bf16.msra.mxu0 (!%p732_p8), %v2187_v10  ;;  %1636 = vmatprep.subr.bf16.mxu1 (!%p732_p8), %v2188_v12  ;;  %v2193_v17 = vld [vmem:[%s2749_s5 + $0x210] ss:$8 sps:$4 sm:$0xff] (!%p732_p8)   ;;  %v2196_v21 = vld [vmem:[%s2749_s5 + $0x224] ss:$8 sps:$4 sm:$0xff] (!%p732_p8)   ;;  %v2199_v23 = vld [vmem:[%s2749_s5 + $0x220] ss:$8 sps:$4 sm:$0xff] (!%p732_p8)  }
  0x5c   : > { %v2762_v15 = vrot.slane (!%p732_p8), %v807_v0, %v2756_v11  ;;  %v2765_v16 = vrot.slane (!%p732_p8), %v937_v7, %v2756_v11  ;;  %1718 = vmatprep.subr.bf16.mxu0 (!%p732_p8), %v2190_v13  ;;  %v2200_v24 = vld [vmem:[%s2749_s5 + $0x34] ss:$8 sps:$4 sm:$0xff] (!%p732_p8)   ;;  %v2204_v28 = vld [vmem:[%s2749_s5 + $0x30] ss:$8 sps:$4 sm:$0xff] (!%p732_p8)   ;;  %v2206_v30 = vld [vmem:[%s2749_s5 + $0x44] ss:$8 sps:$4 sm:$0xff] (!%p732_p8)  }
  0x5d   : > { %v2202_v27 = vld [vmem:[%s2749_s5 + $0x234] ss:$8 sps:$4 sm:$0xff]   ;;  %v2205_v29 = vld [vmem:[%s2749_s5 + $0x230] ss:$8 sps:$4 sm:$0xff]   ;;  %v2208_v31 = vld [vmem:[%s2749_s5 + $0x244] ss:$8 sps:$4 sm:$0xff]  }
  0x5e   : > { %v952_v19 = vcombine.high %v2762_v15, %v2762_v15  ;;  %v953_v20 = vcombine.high %v2765_v16, %v2765_v16  ;;  %1637 = vmatpush1.bf16.msra.mxu1 %v2192_v14  ;;  %v2210_v32 = vld [vmem:[%s2749_s5 + $0x40] ss:$8 sps:$4 sm:$0xff]   ;;  %v2212_v34 = vld [vmem:[%s2749_s5 + $0x54] ss:$8 sps:$4 sm:$0xff]   ;;  %v2216_v36 = vld [vmem:[%s2749_s5 + $0x50] ss:$8 sps:$4 sm:$0xff]  }
  0x5f   : > { %1719 = vmatpush1.bf16.msra.mxu0 %v2193_v17  ;;  %1638 = vmatprep.subr.bf16.mxu1 %v2194_v18  ;;  %v2211_v33 = vld [vmem:[%s2749_s5 + $0x240] ss:$8 sps:$4 sm:$0xff]   ;;  %v2214_v35 = vld [vmem:[%s2749_s5 + $0x254] ss:$8 sps:$4 sm:$0xff]   ;;  %v2217_v37 = vld [vmem:[%s2749_s5 + $0x250] ss:$8 sps:$4 sm:$0xff]  }
  0x60   : > { %v2778_v25 = vrot.slane %v952_v19, %v2756_v11  ;;  %v2781_v26 = vrot.slane %v953_v20, %v2756_v11  ;;  %1720 = vmatprep.subr.bf16.mxu0 %v2196_v21  ;;  %v2218_v38 = vld [vmem:[%s2749_s5 + $0x64] ss:$8 sps:$4 sm:$0xff]   ;;  %v2222_v40 = vld [vmem:[%s2749_s5 + $0x60] ss:$8 sps:$4 sm:$0xff]   ;;  %v2224_v42 = vld [vmem:[%s2749_s5 + $0x74] ss:$8 sps:$4 sm:$0xff]  }
  0x61   : > { %v2220_v39 = vld [vmem:[%s2749_s5 + $0x264] ss:$8 sps:$4 sm:$0xff]   ;;  %v2223_v41 = vld [vmem:[%s2749_s5 + $0x260] ss:$8 sps:$4 sm:$0xff]   ;;  %v2226_v43 = vld [vmem:[%s2749_s5 + $0x274] ss:$8 sps:$4 sm:$0xff]  }
  0x62   : > { %1666 = vmatprep.mubr.bf16.mxu1 %v2778_v25  ;;  %1748 = vmatprep.mubr.bf16.mxu0 %v2781_v26  ;;  %v2228_v44 = vld [vmem:[%s2749_s5 + $0x70] ss:$8 sps:$4 sm:$0xff]   ;;  %v2230_v46 = vld [vmem:[%s2749_s5 + $0x84] ss:$8 sps:$4 sm:$0xff]   ;;  %v2234_v48 = vld [vmem:[%s2749_s5 + $0x80] ss:$8 sps:$4 sm:$0xff]  }
  0x63   : > { %1639 = vmatpush1.bf16.msra.mxu1 %v2198_v22  ;;  %1721 = vmatpush1.bf16.msra.mxu0 %v2199_v23  ;;  %v2229_v45 = vld [vmem:[%s2749_s5 + $0x270] ss:$8 sps:$4 sm:$0xff]   ;;  %v2232_v47 = vld [vmem:[%s2749_s5 + $0x284] ss:$8 sps:$4 sm:$0xff]   ;;  %v2235_v49 = vld [vmem:[%s2749_s5 + $0x280] ss:$8 sps:$4 sm:$0xff]   ;;  %v2842_v22 = vrot.slane %v2762_v15, %v2756_v11  ;;  %v2846_v23 = vrot.slane %v2765_v16, %v2756_v11  ;;  %v985_v15 = vcombine.high %v2781_v26, %v2781_v26 }
  0x64   : > { %1640 = vmatprep.subr.bf16.mxu1 %v2200_v24  ;;  %1722 = vmatprep.subr.bf16.mxu0 %v2202_v27  ;;  %v2236_v50 = vld [vmem:[%s2749_s5 + $0x94] ss:$8 sps:$4 sm:$0xff]   ;;  %v2240_v52 = vld [vmem:[%s2749_s5 + $0x90] ss:$8 sps:$4 sm:$0xff]   ;;  %v2242_v54 = vld [vmem:[%s2749_s5 + $0xa4] ss:$8 sps:$4 sm:$0xff]  }
  0x65   : > { %v2238_v51 = vld [vmem:[%s2749_s5 + $0x294] ss:$8 sps:$4 sm:$0xff]   ;;  %v2241_v53 = vld [vmem:[%s2749_s5 + $0x290] ss:$8 sps:$4 sm:$0xff]   ;;  %v2244_v55 = vld [vmem:[%s2749_s5 + $0x2a4] ss:$8 sps:$4 sm:$0xff]  }
  0x66   : > { %v2246_v56 = vld [vmem:[%s2749_s5 + $0xa0] ss:$8 sps:$4 sm:$0xff]   ;;  %v2248_v58 = vld [vmem:[%s2749_s5 + $0xb4] ss:$8 sps:$4 sm:$0xff]   ;;  %v2252_v60 = vld [vmem:[%s2749_s5 + $0xb0] ss:$8 sps:$4 sm:$0xff]  }
  0x67   : > { %1641 = vmatpush1.bf16.msra.mxu1 %v2204_v28  ;;  %1723 = vmatpush1.bf16.msra.mxu0 %v2205_v29  ;;  %v2247_v57 = vld [vmem:[%s2749_s5 + $0x2a0] ss:$8 sps:$4 sm:$0xff]   ;;  %v2250_v59 = vld [vmem:[%s2749_s5 + $0x2b4] ss:$8 sps:$4 sm:$0xff]   ;;  %v2253_v61 = vld [vmem:[%s2749_s5 + $0x2b0] ss:$8 sps:$4 sm:$0xff]   ;;  %v984_v28 = vcombine.high %v2778_v25, %v2778_v25 }
  0x68   : > { %1642 = vmatprep.subr.bf16.mxu1 %v2206_v30  ;;  %1724 = vmatprep.subr.bf16.mxu0 %v2208_v31  ;;  %v2254_v62 = vld [vmem:[%s2749_s5 + $0xc4] ss:$8 sps:$4 sm:$0xff]   ;;  %v2258_v0 = vld [vmem:[%s2749_s5 + $0xc0] ss:$8 sps:$4 sm:$0xff]   ;;  %v2260_v2 = vld [vmem:[%s2749_s5 + $0xd4] ss:$8 sps:$4 sm:$0xff]  }
  0x69   : > { %v2256_v63 = vld [vmem:[%s2749_s5 + $0x2c4] ss:$8 sps:$4 sm:$0xff]   ;;  %v2259_v1 = vld [vmem:[%s2749_s5 + $0x2c0] ss:$8 sps:$4 sm:$0xff]   ;;  %v2262_v3 = vld [vmem:[%s2749_s5 + $0x2d4] ss:$8 sps:$4 sm:$0xff]  }
  0x6a   : > { %v2264_v5 = vld [vmem:[%s2749_s5 + $0xd0] ss:$8 sps:$4 sm:$0xff]   ;;  %v2266_v7 = vld [vmem:[%s2749_s5 + $0xe4] ss:$8 sps:$4 sm:$0xff]   ;;  %v2270_v9 = vld [vmem:[%s2749_s5 + $0xe0] ss:$8 sps:$4 sm:$0xff]  }
  0x6b   : > { %1643 = vmatpush1.bf16.msra.mxu1 %v2210_v32  ;;  %1725 = vmatpush1.bf16.msra.mxu0 %v2211_v33  ;;  %v2265_v6 = vld [vmem:[%s2749_s5 + $0x2d0] ss:$8 sps:$4 sm:$0xff]   ;;  %v2268_v8 = vld [vmem:[%s2749_s5 + $0x2e4] ss:$8 sps:$4 sm:$0xff]   ;;  %v2271_v10 = vld [vmem:[%s2749_s5 + $0x2e0] ss:$8 sps:$4 sm:$0xff]  }
  0x6c   : > { %1644 = vmatprep.subr.bf16.mxu1 %v2212_v34  ;;  %1726 = vmatprep.subr.bf16.mxu0 %v2214_v35  ;;  %v2272_v12 = vld [vmem:[%s2749_s5 + $0xf4] ss:$8 sps:$4 sm:$0xff]   ;;  %v2276_v14 = vld [vmem:[%s2749_s5 + $0xf0] ss:$8 sps:$4 sm:$0xff]   ;;  %v2280_v18 = vld [vmem:[%s2749_s5 + $0x104] ss:$8 sps:$4 sm:$0xff]  }
  0x6d   : > { %v2274_v13 = vld [vmem:[%s2749_s5 + $0x2f4] ss:$8 sps:$4 sm:$0xff]   ;;  %v2277_v17 = vld [vmem:[%s2749_s5 + $0x2f0] ss:$8 sps:$4 sm:$0xff]   ;;  %v2284_v19 = vld [vmem:[%s2749_s5 + $0x304] ss:$8 sps:$4 sm:$0xff]  }
  0x6e   : > { %v2278_v20 = vld [vmem:[%s2749_s5 + $0x100] ss:$8 sps:$4 sm:$0xff]   ;;  %v2287_v24 = vld [vmem:[%s2749_s5 + $0x114] ss:$8 sps:$4 sm:$0xff]   ;;  %v2285_v16 = vld [vmem:[%s2749_s5 + $0x110] ss:$8 sps:$4 sm:$0xff]  }
  0x6f   : > { %1645 = vmatpush1.bf16.msra.mxu1 %v2216_v36  ;;  %1727 = vmatpush1.bf16.msra.mxu0 %v2217_v37  ;;  %v2282_v21 = vld [vmem:[%s2749_s5 + $0x300] ss:$8 sps:$4 sm:$0xff]   ;;  %v2290_v27 = vld [vmem:[%s2749_s5 + $0x314] ss:$8 sps:$4 sm:$0xff]   ;;  %v2288_v29 = vld [vmem:[%s2749_s5 + $0x310] ss:$8 sps:$4 sm:$0xff]  }
  0x70   : > { %1646 = vmatprep.subr.bf16.mxu1 %v2218_v38  ;;  %1728 = vmatprep.subr.bf16.mxu0 %v2220_v39  ;;  %v2293_v30 = vld [vmem:[%s2749_s5 + $0x124] ss:$8 sps:$4 sm:$0xff]   ;;  %v2291_v26 = vld [vmem:[%s2749_s5 + $0x120] ss:$8 sps:$4 sm:$0xff]   ;;  %v2299_v32 = vld [vmem:[%s2749_s5 + $0x134] ss:$8 sps:$4 sm:$0xff]  }
  0x71   : > { %v2296_v25 = vld [vmem:[%s2749_s5 + $0x324] ss:$8 sps:$4 sm:$0xff]   ;;  %v2294_v31 = vld [vmem:[%s2749_s5 + $0x320] ss:$8 sps:$4 sm:$0xff]   ;;  %v2302_v33 = vld [vmem:[%s2749_s5 + $0x334] ss:$8 sps:$4 sm:$0xff]  }
  0x72   : > { %v2297_v34 = vld [vmem:[%s2749_s5 + $0x130] ss:$8 sps:$4 sm:$0xff]   ;;  %v2305_v36 = vld [vmem:[%s2749_s5 + $0x144] ss:$8 sps:$4 sm:$0xff]   ;;  %v2303_v38 = vld [vmem:[%s2749_s5 + $0x140] ss:$8 sps:$4 sm:$0xff]  }
  0x73   : > { %1647 = vmatpush1.bf16.msra.mxu1 %v2222_v40  ;;  %1729 = vmatpush1.bf16.msra.mxu0 %v2223_v41  ;;  %v2300_v35 = vld [vmem:[%s2749_s5 + $0x330] ss:$8 sps:$4 sm:$0xff]   ;;  %v2308_v37 = vld [vmem:[%s2749_s5 + $0x344] ss:$8 sps:$4 sm:$0xff]   ;;  %v2306_v39 = vld [vmem:[%s2749_s5 + $0x340] ss:$8 sps:$4 sm:$0xff]  }
  0x74   : > { %1648 = vmatprep.subr.bf16.mxu1 %v2224_v42  ;;  %1730 = vmatprep.subr.bf16.mxu0 %v2226_v43  ;;  %v2311_v40 = vld [vmem:[%s2749_s5 + $0x154] ss:$8 sps:$4 sm:$0xff]   ;;  %v2309_v42 = vld [vmem:[%s2749_s5 + $0x150] ss:$8 sps:$4 sm:$0xff]   ;;  %s2959_s6 = smov (!%p788_p9, %s1994_s6), 3 }
  0x75   : > { %v2314_v41 = vld [vmem:[%s2749_s5 + $0x354] ss:$8 sps:$4 sm:$0xff]   ;;  %v2312_v43 = vld [vmem:[%s2749_s5 + $0x350] ss:$8 sps:$4 sm:$0xff]   ;;  %s790_s9 = scalar_lea.vmem %s2950_s2, %s2959_s6  ;;  %s799_s12 = scalar_lea.vmem %s2951_s3, %s2959_s6 }
  0x77   : > { %1649 = vmatpush1.bf16.msra.mxu1 %v2228_v44  ;;  %1731 = vmatpush1.bf16.msra.mxu0 %v2229_v45  ;;  %v2317_v44 = vld [vmem:[%s2749_s5 + $0x164] ss:$8 sps:$4 sm:$0xff]  }
  0x78   : > { %1650 = vmatprep.subr.bf16.mxu1 %v2230_v46  ;;  %1732 = vmatprep.subr.bf16.mxu0 %v2232_v47  ;;  %v2320_v45 = vld [vmem:[%s2749_s5 + $0x364] ss:$8 sps:$4 sm:$0xff]   ;;  %v2315_v46 = vld [vmem:[%s2749_s5 + $0x160] ss:$8 sps:$4 sm:$0xff]  }
  0x79   : > { %v2318_v47 = vld [vmem:[%s2749_s5 + $0x360] ss:$8 sps:$4 sm:$0xff]  }
  0x7b   : > { %1651 = vmatpush1.bf16.msra.mxu1 %v2234_v48  ;;  %1733 = vmatpush1.bf16.msra.mxu0 %v2235_v49  ;;  %v2323_v48 = vld [vmem:[%s2749_s5 + $0x174] ss:$8 sps:$4 sm:$0xff]  }
  0x7c   : > { %1652 = vmatprep.subr.bf16.mxu1 %v2236_v50  ;;  %1734 = vmatprep.subr.bf16.mxu0 %v2238_v51  ;;  %v2326_v49 = vld [vmem:[%s2749_s5 + $0x374] ss:$8 sps:$4 sm:$0xff]   ;;  %v2321_v50 = vld [vmem:[%s2749_s5 + $0x170] ss:$8 sps:$4 sm:$0xff]  }
  0x7d   : > { %v2324_v51 = vld [vmem:[%s2749_s5 + $0x370] ss:$8 sps:$4 sm:$0xff]  }
  0x7f   : > { %1653 = vmatpush1.bf16.msra.mxu1 %v2240_v52  ;;  %1735 = vmatpush1.bf16.msra.mxu0 %v2241_v53  ;;  %v2329_v52 = vld [vmem:[%s2749_s5 + $0x184] ss:$8 sps:$4 sm:$0xff]  }
  0x80   : > { %1654 = vmatprep.subr.bf16.mxu1 %v2242_v54  ;;  %1736 = vmatprep.subr.bf16.mxu0 %v2244_v55  ;;  %v2332_v53 = vld [vmem:[%s2749_s5 + $0x384] ss:$8 sps:$4 sm:$0xff]   ;;  %v2327_v54 = vld [vmem:[%s2749_s5 + $0x180] ss:$8 sps:$4 sm:$0xff]  }
  0x81   : > { %v2330_v55 = vld [vmem:[%s2749_s5 + $0x380] ss:$8 sps:$4 sm:$0xff]  }
  0x83   : > { %1655 = vmatpush1.bf16.msra.mxu1 %v2246_v56  ;;  %1737 = vmatpush1.bf16.msra.mxu0 %v2247_v57  ;;  %v2335_v56 = vld [vmem:[%s2749_s5 + $0x194] ss:$8 sps:$4 sm:$0xff]  }
  0x84   : > { %1656 = vmatprep.subr.bf16.mxu1 %v2248_v58  ;;  %1738 = vmatprep.subr.bf16.mxu0 %v2250_v59  ;;  %v2338_v57 = vld [vmem:[%s2749_s5 + $0x394] ss:$8 sps:$4 sm:$0xff]   ;;  %v2333_v58 = vld [vmem:[%s2749_s5 + $0x190] ss:$8 sps:$4 sm:$0xff]  }
  0x85   : > { %v2336_v59 = vld [vmem:[%s2749_s5 + $0x390] ss:$8 sps:$4 sm:$0xff]  }
  0x87   : > { %1657 = vmatpush1.bf16.msra.mxu1 %v2252_v60  ;;  %1739 = vmatpush1.bf16.msra.mxu0 %v2253_v61  ;;  %v2341_v60 = vld [vmem:[%s2749_s5 + $0x1a4] ss:$8 sps:$4 sm:$0xff]  }
  0x88   : > { %1658 = vmatprep.subr.bf16.mxu1 %v2254_v62  ;;  %1740 = vmatprep.subr.bf16.mxu0 %v2256_v63  ;;  %v2344_v61 = vld [vmem:[%s2749_s5 + $0x3a4] ss:$8 sps:$4 sm:$0xff]   ;;  %v2339_v62 = vld [vmem:[%s2749_s5 + $0x1a0] ss:$8 sps:$4 sm:$0xff]  }
  0x89   : > { %v2342_v63 = vld [vmem:[%s2749_s5 + $0x3a0] ss:$8 sps:$4 sm:$0xff]  }
  0x8b   : > { %1659 = vmatpush1.bf16.msra.mxu1 %v2258_v0  ;;  %1741 = vmatpush1.bf16.msra.mxu0 %v2259_v1  ;;  %v2347_v0 = vld [vmem:[%s2749_s5 + $0x1b4] ss:$8 sps:$4 sm:$0xff]  }
  0x8c   : > { %1660 = vmatprep.subr.bf16.mxu1 %v2260_v2  ;;  %1742 = vmatprep.subr.bf16.mxu0 %v2262_v3  ;;  %v2350_v1 = vld [vmem:[%s2749_s5 + $0x3b4] ss:$8 sps:$4 sm:$0xff]   ;;  %v2345_v2 = vld [vmem:[%s2749_s5 + $0x1b0] ss:$8 sps:$4 sm:$0xff]  }
  0x8d   : > { %v2348_v3 = vld [vmem:[%s2749_s5 + $0x3b0] ss:$8 sps:$4 sm:$0xff]  }
  0x8f   : > { %1661 = vmatpush1.bf16.msra.mxu1 %v2264_v5  ;;  %1743 = vmatpush1.bf16.msra.mxu0 %v2265_v6  ;;  %v2353_v5 = vld [vmem:[%s2749_s5 + $0x1c4] ss:$8 sps:$4 sm:$0xff]  }
  0x90   : > { %1662 = vmatprep.subr.bf16.mxu1 %v2266_v7  ;;  %1744 = vmatprep.subr.bf16.mxu0 %v2268_v8  ;;  %v2356_v6 = vld [vmem:[%s2749_s5 + $0x3c4] ss:$8 sps:$4 sm:$0xff]   ;;  %v2351_v7 = vld [vmem:[%s2749_s5 + $0x1c0] ss:$8 sps:$4 sm:$0xff]  }
  0x91   : > { %v2354_v8 = vld [vmem:[%s2749_s5 + $0x3c0] ss:$8 sps:$4 sm:$0xff]  }
  0x93   : > { %1663 = vmatpush1.bf16.msra.mxu1 %v2270_v9  ;;  %1745 = vmatpush1.bf16.msra.mxu0 %v2271_v10  ;;  %v2359_v9 = vld [vmem:[%s2749_s5 + $0x1d4] ss:$8 sps:$4 sm:$0xff]  }
  0x94   : > { %1664 = vmatprep.subr.bf16.mxu1 %v2272_v12  ;;  %1746 = vmatprep.subr.bf16.mxu0 %v2274_v13  ;;  %v2362_v10 = vld [vmem:[%s2749_s5 + $0x3d4] ss:$8 sps:$4 sm:$0xff]   ;;  %v2357_v12 = vld [vmem:[%s2749_s5 + $0x1d0] ss:$8 sps:$4 sm:$0xff]  }
  0x95   : > { %v2360_v13 = vld [vmem:[%s2749_s5 + $0x3d0] ss:$8 sps:$4 sm:$0xff]  }
  0x97   : > { %1665 = vmatpush1.bf16.msra.mxu1 %v2276_v14  ;;  %1747 = vmatpush1.bf16.msra.mxu0 %v2277_v17  ;;  %v2365_v14 = vld [vmem:[%s2749_s5 + $0x1e4] ss:$8 sps:$4 sm:$0xff]  }
  0x98   : > { %1675 = vmatprep.subr.bf16.mxu1 %v2280_v18  ;;  %1757 = vmatprep.subr.bf16.mxu0 %v2284_v19  ;;  %v2368_v17 = vld [vmem:[%s2749_s5 + $0x3e4] ss:$8 sps:$4 sm:$0xff]   ;;  %v2363_v18 = vld [vmem:[%s2749_s5 + $0x1e0] ss:$8 sps:$4 sm:$0xff]  }
  0x99   : > { %v2366_v19 = vld [vmem:[%s2749_s5 + $0x3e0] ss:$8 sps:$4 sm:$0xff]  }
  0x9a   : > { %1667 = vmatmul.mubr.bf16.vlgmr.msra.gmra.mrb[0].mxu1 %v2842_v22  ;;  %1749 = vmatmul.mubr.bf16.vlgmr.msra.gmra.mrb[0].mxu0 %v2846_v23 }
  0x9b   : > { %1676 = vmatpush1.bf16.msra.mxu1 %v2278_v20  ;;  %1758 = vmatpush1.bf16.msra.mxu0 %v2282_v21  ;;  %v2371_v20 = vld [vmem:[%s2749_s5 + $0x1f4] ss:$8 sps:$4 sm:$0xff]  }
  0x9c   : > { %1677 = vmatprep.subr.bf16.mxu1 %v2287_v24  ;;  %1759 = vmatprep.subr.bf16.mxu0 %v2290_v27  ;;  %v2374_v21 = vld [vmem:[%s2749_s5 + $0x3f4] ss:$8 sps:$4 sm:$0xff]   ;;  %v2369_v24 = vld [vmem:[%s2749_s5 + $0x1f0] ss:$8 sps:$4 sm:$0xff]  }
  0x9d   : > { %1707 = vmatprep.mubr.bf16.mxu1 %v984_v28  ;;  %1789 = vmatprep.mubr.bf16.mxu0 %v985_v15  ;;  %v2372_v27 = vld [vmem:[%s2749_s5 + $0x3f0] ss:$8 sps:$4 sm:$0xff]   ;;  %v982_v28 = vcombine.high %v2842_v22, %v2842_v22  ;;  %v983_v15 = vcombine.high %v2846_v23, %v2846_v23 }
  0x9f   : > { %1678 = vmatpush1.bf16.msra.mxu1 %v2285_v16  ;;  %1760 = vmatpush1.bf16.msra.mxu0 %v2288_v29  ;;  %v2416_v16 = vmov 0.0   ;;  %v2417_v29 = vmov 1983009808  }
  0xa0   : > { %1679 = vmatprep.subr.bf16.mxu1 %v2293_v30  ;;  %1761 = vmatprep.subr.bf16.mxu0 %v2296_v25  ;;  %805 = vst [vmem:[#allocation2] sm:$0xf] %v2416_v16  ;;  %v1802_v30 = vunpack.c.l.s4 %v2417_v29 }
  0xa2   : > { %v1803_v25 = vunpack.c.0.s8 %v1802_v30 }
  0xa3   : > { %1680 = vmatpush1.bf16.msra.mxu1 %v2291_v26  ;;  %1762 = vmatpush1.bf16.msra.mxu0 %v2294_v31 }
  0xa4   : > { %1681 = vmatprep.subr.bf16.mxu1 %v2299_v32  ;;  %1763 = vmatprep.subr.bf16.mxu0 %v2302_v33 }
  0xa7   : > { %1682 = vmatpush1.bf16.msra.mxu1 %v2297_v34  ;;  %1764 = vmatpush1.bf16.msra.mxu0 %v2300_v35  ;;  %v1806_v34 = vsub.s32 %v1803_v25, %v2747_v4  ;;  %v1819_v35 = vsub.s32 0, %v2747_v4 }
  0xa8   : > { %1683 = vmatprep.subr.bf16.mxu1 %v2305_v36  ;;  %1765 = vmatprep.subr.bf16.mxu0 %v2308_v37  ;;  %v1823_v36 = vsub.s32 1, %v2747_v4 }
  0xab   : > { %1684 = vmatpush1.bf16.msra.mxu1 %v2303_v38  ;;  %1766 = vmatpush1.bf16.msra.mxu0 %v2306_v39  ;;  %v1815_v39 = vld [vmem:[%s790_s9] sm:$0x3] }
  0xac   : > { %1685 = vmatprep.subr.bf16.mxu1 %v2311_v40  ;;  %1767 = vmatprep.subr.bf16.mxu0 %v2314_v41 }
  0xaf   : > { %1686 = vmatpush1.bf16.msra.mxu1 %v2309_v42  ;;  %1768 = vmatpush1.bf16.msra.mxu0 %v2312_v43  ;;  %v806_v43 = vld [vmem:[#allocation2] sm:$0xf] }
  0xb0   : > { %1687 = vmatprep.subr.bf16.mxu1 %v2317_v44  ;;  %1769 = vmatprep.subr.bf16.mxu0 %v2320_v45  ;;  %v1820_v45 = vrot.slane %v1815_v39, %v1819_v35 }
  0xb3   : > { %1688 = vmatpush1.bf16.msra.mxu1 %v2315_v46  ;;  %1770 = vmatpush1.bf16.msra.mxu0 %v2318_v47  ;;  %v1824_v46 = vrot.slane %v1815_v39, %v1823_v36 }
  0xb4   : > { %1689 = vmatprep.subr.bf16.mxu1 %v2323_v48  ;;  %1771 = vmatprep.subr.bf16.mxu0 %v2326_v49 }
  0xb5   : > { %v1825_v48 = vcombine.low %v1820_v45, %v1824_v46 }
  0xb7   : > { %1690 = vmatpush1.bf16.msra.mxu1 %v2321_v50  ;;  %1772 = vmatpush1.bf16.msra.mxu0 %v2324_v51  ;;  %v1832_v49 = vrot.slane %v1825_v48, %v1806_v34 }
  0xb8   : > { %1691 = vmatprep.subr.bf16.mxu1 %v2329_v52  ;;  %1773 = vmatprep.subr.bf16.mxu0 %v2332_v53 }
  0xbb   : > { %1692 = vmatpush1.bf16.msra.mxu1 %v2327_v54  ;;  %1774 = vmatpush1.bf16.msra.mxu0 %v2330_v55 }
  0xbc   : > { %1693 = vmatprep.subr.bf16.mxu1 %v2335_v56  ;;  %1775 = vmatprep.subr.bf16.mxu0 %v2338_v57 }
  0xbf   : > { %1694 = vmatpush1.bf16.msra.mxu1 %v2333_v58  ;;  %1776 = vmatpush1.bf16.msra.mxu0 %v2336_v59 }
  0xc0   : > { %1695 = vmatprep.subr.bf16.mxu1 %v2341_v60  ;;  %1777 = vmatprep.subr.bf16.mxu0 %v2344_v61 }
  0xc3   : > { %1696 = vmatpush1.bf16.msra.mxu1 %v2339_v62  ;;  %1778 = vmatpush1.bf16.msra.mxu0 %v2342_v63 }
  0xc4   : > { %1697 = vmatprep.subr.bf16.mxu1 %v2347_v0  ;;  %1779 = vmatprep.subr.bf16.mxu0 %v2350_v1 }
  0xc7   : > { %1698 = vmatpush1.bf16.msra.mxu1 %v2345_v2  ;;  %1780 = vmatpush1.bf16.msra.mxu0 %v2348_v3 }
  0xc8   : > { %1699 = vmatprep.subr.bf16.mxu1 %v2353_v5  ;;  %1781 = vmatprep.subr.bf16.mxu0 %v2356_v6 }
  0xcb   : > { %1700 = vmatpush1.bf16.msra.mxu1 %v2351_v7  ;;  %1782 = vmatpush1.bf16.msra.mxu0 %v2354_v8 }
  0xcc   : > { %1701 = vmatprep.subr.bf16.mxu1 %v2359_v9  ;;  %1783 = vmatprep.subr.bf16.mxu0 %v2362_v10 }
  0xcf   : > { %1702 = vmatpush1.bf16.msra.mxu1 %v2357_v12  ;;  %1784 = vmatpush1.bf16.msra.mxu0 %v2360_v13 }
  0xd0   : > { %1703 = vmatprep.subr.bf16.mxu1 %v2365_v14  ;;  %1785 = vmatprep.subr.bf16.mxu0 %v2368_v17 }
  0xd3   : > { %1704 = vmatpush1.bf16.msra.mxu1 %v2363_v18  ;;  %1786 = vmatpush1.bf16.msra.mxu0 %v2366_v19 }
  0xd4   : > { %1705 = vmatprep.subr.bf16.mxu1 %v2371_v20  ;;  %1787 = vmatprep.subr.bf16.mxu0 %v2374_v21 }
  0xd7   : > { %1706 = vmatpush1.bf16.msra.mxu1 %v2369_v24  ;;  %1788 = vmatpush1.bf16.msra.mxu0 %v2372_v27 }
  0xda   : > { %1708 = vmatmul.mubr.bf16.vlgmr.msra.gmra.mrb[0].mxu1 %v982_v28  ;;  %1790 = vmatmul.mubr.bf16.vlgmr.msra.gmra.mrb[0].mxu0 %v983_v15 }
 0x1ad   : > { %v1709_v26 = vpop.f32.mrb[0].mxu1  ;;  %v1791_v31 = vpop.f32.mrb[0].mxu0 }
 0x1ae   : > { %v2129_v22 = vadd.f32 %v1791_v31, %v1709_v26  ;;  %v1711_v23 = vpop.f32.mrb[1].mxu1  ;;  %v1793_v32 = vpop.f32.mrb[1].mxu0 }
 0x1af   : > { %v2130_v33 = vadd.f32 %v1793_v32, %v1711_v23  ;;  %v1713_v37 = vpop.f32.mrb[2].mxu1  ;;  %v1795_v38 = vpop.f32.mrb[2].mxu0 }
 0x1b0   : > { %v1714_v40 = vpop.f32.mrb[3].mxu1  ;;  %v1796_v41 = vpop.f32.mrb[3].mxu0 }
 0x1b1   : > { %v1800_v42 = vcombine.low %v2129_v22, %v2130_v33 }
 0x1b3   : > { %v1807_v44 = vrot.slane %v1800_v42, %v1806_v34 }
 0x1b5   : > { %v1809_v47 = vadd.f32 %v1807_v44, %v806_v43 }
 0x1b7   : > { %1810 = vst [vmem:[#allocation2] sm:$0xf] %v1809_v47 }
 0x1be   : > { %v1814_v50 = vld [vmem:[#allocation2] sm:$0xf] }
 0x1bf   : > { %v1834_v51 = vadd.f32 %v1832_v49, %v1814_v50 }
 0x1c1   : > { %vm1835_vm0 = vcmp.gt.f32.partialorder %v1834_v51, 0.0  ;;  %v1836_v52 = vmul.f32 0.1, %v1834_v51 }
 0x1c3   : > { %v1837_v4 = vsel %vm1835_vm0, %v1834_v51, %v1836_v52 }
 0x1c4   : > { %v1845_v53 = vrot.slane %v1837_v4, %v1806_v34 }
 0x1c6   : > { %v1846_v54 = vcombine.high %v1845_v53, %v1845_v53 }
 0x1c8   : > { %v2124_v55 = vpack.c.bf16 %v1846_v54, %v1845_v53 }
 0x1ca   : > { %v1860_v56 = vrot.slane %v2124_v55, %v2756_v11 }
 0x1cc   : > { %2125 = vst.sshfl [vmem:[%s799_s12] sm:$0x5 pattern:$0x73625140] %v1860_v56 }
 0x1cd PF: > { %s13_s16 = sadd.s32 1, %s2413_s16   ;;  %s2952_s12 = smov %s2401_s13 }
 0x1ce   : > { %p10_p10 = scmp.ge.s32.totalorder %s13_s16, 4   ;;  %s2953_s13 = smov %s2473_s20 }
 0x1cf   : > { %s2954_s14 = smov %s2409_s15  ;;  %s2955_s15 = smov %s2957_s17 }
 0x1d0   :  { %12 = sbr.rel (!%p10_p10) target bundleno = 3 (0x3), region = 119 }

// kernel: simple_10cnn_forward.20
= control target key start
LH: loop header
LB: loop body
LE: loop exit
PB: predicated region body
PF: predicated region fallthrough
CT: control target
= control target key end

     0   :  { %s1519_s12 = smov 0   ;;  %s1521_s13 = smov 0   ;;  %s1808_s0 = inlined_call_operand.vmem [shape: bf16[2,512], index: 0, kind: input, shape index: {}]   ;;  %s1809_s1 = inlined_call_operand.vmem [shape: bf16[512,512], index: 1, kind: input, shape index: {}]   ;;  %s1810_s2 = inlined_call_operand.vmem [shape: f32[1,512], index: 2, kind: input, shape index: {}]   ;;  %s1811_s3 = inlined_call_operand.vmem [shape: bf16[2,512], index: 3, kind: output, shape index: {}]  }
   0x1   :  { %s1523_s14 = smov 0   ;;  %s1525_s15 = smov 0  }
   0x2   :  { %s1527_s16 = smov 0  }
   0x3 LB: > { %s28_s17 = sadd.s32 1, %s1490_s15  ;;  %p76_p1 = scmp.ne.s32.totalorder %s1482_s13, %s1478_s12  ;;  %s1494_s16 = sphi %s1527_s16, %s13_s16   ;;  %s1490_s15 = sphi %s1525_s15, %s1815_s15   ;;  %s1486_s14 = sphi %s1523_s14, %s1814_s14   ;;  %s1482_s13 = sphi %s1521_s13, %s1813_s13   ;;  %s1478_s12 = sphi %s1519_s12, %s1812_s12  }
   0x4   : > { %p30_p0 = scmp.ge.s32.totalorder %s28_s17, 2  ;;  %p77_p2 = scmp.eq.s32.totalorder %s1494_s16, 0 }
   0x5   : > { %s69_s19 = sadd.s32 1, %s1482_s13  ;;  %p1237_p5 = scmp.ge.s32.totalorder %s1494_s16, 2 }
   0x6   : > { %s1817_s17 = smov (%p30_p0, %s28_s17), 0  ;;  %p78_p3 = por %p77_p2, %p76_p1 }
   0x7   : > { %s65_s18 = ssub.s32 %s1490_s15, %s1817_s17  ;;  %168 = sbr.rel (%p1237_p5) target bundleno = 50 (0x32), region = 20 }
   0x8   : > { %p67_p4 = scmp.eq.s32.totalorder %s65_s18, 0 }
   0xa   : > { %s1554_s20 = scalar_select %p67_p4, %s1482_s13, %s69_s19  }
   0xe   : > { %171 = sbr.rel (!%p78_p3) target bundleno = 50 (0x32), region = 24  ;;  %s173_s21 = sand.u32 (%p78_p3), 1, %s1482_s13  }
   0xf   : > { %s1314_s22 = sshll.u32 (%p78_p3), %s1490_s15, 3  ;;  %s1238_s23 = sshll.u32 (%p78_p3), %s173_s21, 9 }
  0x10   : > { %s1562_s26 = scalar_lea.vmem (%p78_p3), %s1809_s1, %s1314_s22  ;;  %s1567_s27 = scalar_lea.vmem (%p78_p3), [#allocation3], %s1238_s23 }
  0x11   : > { %v335_v0 = vld [vmem:[%s1562_s26] sm:$0xff] (%p78_p3)  ;;  %v337_v1 = vld [vmem:[%s1562_s26 + $0x10] sm:$0xff] (%p78_p3) }
  0x12   : > { %v339_v2 = vld [vmem:[%s1562_s26 + $0x20] sm:$0xff] (%p78_p3)  ;;  %336 = vst [vmem:[%s1567_s27] sm:$0xff] (%p78_p3), %v335_v0  ;;  %338 = vst [vmem:[%s1567_s27 + $0x8] sm:$0xff] (%p78_p3), %v337_v1  ;;  %v341_v3 = vld [vmem:[%s1562_s26 + $0x30] sm:$0xff] (%p78_p3) }
  0x13   : > { %340 = vst [vmem:[%s1567_s27 + $0x10] sm:$0xff] (%p78_p3), %v339_v2  ;;  %v343_v4 = vld [vmem:[%s1562_s26 + $0x40] sm:$0xff] (%p78_p3)  ;;  %v345_v5 = vld [vmem:[%s1562_s26 + $0x50] sm:$0xff] (%p78_p3)  ;;  %342 = vst [vmem:[%s1567_s27 + $0x18] sm:$0xff] (%p78_p3), %v341_v3 }
  0x14   : > { %344 = vst [vmem:[%s1567_s27 + $0x20] sm:$0xff] (%p78_p3), %v343_v4  ;;  %346 = vst [vmem:[%s1567_s27 + $0x28] sm:$0xff] (%p78_p3), %v345_v5  ;;  %v347_v6 = vld [vmem:[%s1562_s26 + $0x60] sm:$0xff] (%p78_p3)  ;;  %v349_v7 = vld [vmem:[%s1562_s26 + $0x70] sm:$0xff] (%p78_p3) }
  0x15   : > { %v351_v8 = vld [vmem:[%s1562_s26 + $0x80] sm:$0xff]  ;;  %348 = vst [vmem:[%s1567_s27 + $0x30] sm:$0xff] %v347_v6  ;;  %350 = vst [vmem:[%s1567_s27 + $0x38] sm:$0xff] %v349_v7  ;;  %v353_v9 = vld [vmem:[%s1562_s26 + $0x90] sm:$0xff] }
  0x16   : > { %352 = vst [vmem:[%s1567_s27 + $0x40] sm:$0xff] %v351_v8  ;;  %v355_v10 = vld [vmem:[%s1562_s26 + $0xa0] sm:$0xff]  ;;  %v357_v11 = vld [vmem:[%s1562_s26 + $0xb0] sm:$0xff]  ;;  %354 = vst [vmem:[%s1567_s27 + $0x48] sm:$0xff] %v353_v9 }
  0x17   : > { %356 = vst [vmem:[%s1567_s27 + $0x50] sm:$0xff] %v355_v10  ;;  %358 = vst [vmem:[%s1567_s27 + $0x58] sm:$0xff] %v357_v11  ;;  %v359_v12 = vld [vmem:[%s1562_s26 + $0xc0] sm:$0xff]  ;;  %v361_v13 = vld [vmem:[%s1562_s26 + $0xd0] sm:$0xff] }
  0x18   : > { %v363_v14 = vld [vmem:[%s1562_s26 + $0xe0] sm:$0xff]  ;;  %360 = vst [vmem:[%s1567_s27 + $0x60] sm:$0xff] %v359_v12  ;;  %362 = vst [vmem:[%s1567_s27 + $0x68] sm:$0xff] %v361_v13  ;;  %v365_v15 = vld [vmem:[%s1562_s26 + $0xf0] sm:$0xff] }
  0x19   : > { %364 = vst [vmem:[%s1567_s27 + $0x70] sm:$0xff] %v363_v14  ;;  %v367_v16 = vld [vmem:[%s1562_s26 + $0x100] sm:$0xff]  ;;  %v369_v17 = vld [vmem:[%s1562_s26 + $0x110] sm:$0xff]  ;;  %366 = vst [vmem:[%s1567_s27 + $0x78] sm:$0xff] %v365_v15 }
  0x1a   : > { %368 = vst [vmem:[%s1567_s27 + $0x80] sm:$0xff] %v367_v16  ;;  %370 = vst [vmem:[%s1567_s27 + $0x88] sm:$0xff] %v369_v17  ;;  %v371_v18 = vld [vmem:[%s1562_s26 + $0x120] sm:$0xff]  ;;  %v373_v19 = vld [vmem:[%s1562_s26 + $0x130] sm:$0xff] }
  0x1b   : > { %v375_v20 = vld [vmem:[%s1562_s26 + $0x140] sm:$0xff]  ;;  %372 = vst [vmem:[%s1567_s27 + $0x90] sm:$0xff] %v371_v18  ;;  %374 = vst [vmem:[%s1567_s27 + $0x98] sm:$0xff] %v373_v19  ;;  %v377_v21 = vld [vmem:[%s1562_s26 + $0x150] sm:$0xff] }
  0x1c   : > { %376 = vst [vmem:[%s1567_s27 + $0xa0] sm:$0xff] %v375_v20  ;;  %v379_v22 = vld [vmem:[%s1562_s26 + $0x160] sm:$0xff]  ;;  %v381_v23 = vld [vmem:[%s1562_s26 + $0x170] sm:$0xff]  ;;  %378 = vst [vmem:[%s1567_s27 + $0xa8] sm:$0xff] %v377_v21 }
  0x1d   : > { %380 = vst [vmem:[%s1567_s27 + $0xb0] sm:$0xff] %v379_v22  ;;  %382 = vst [vmem:[%s1567_s27 + $0xb8] sm:$0xff] %v381_v23  ;;  %v383_v24 = vld [vmem:[%s1562_s26 + $0x180] sm:$0xff]  ;;  %v385_v25 = vld [vmem:[%s1562_s26 + $0x190] sm:$0xff] }
  0x1e   : > { %v387_v26 = vld [vmem:[%s1562_s26 + $0x1a0] sm:$0xff]  ;;  %384 = vst [vmem:[%s1567_s27 + $0xc0] sm:$0xff] %v383_v24  ;;  %386 = vst [vmem:[%s1567_s27 + $0xc8] sm:$0xff] %v385_v25  ;;  %v389_v27 = vld [vmem:[%s1562_s26 + $0x1b0] sm:$0xff] }
  0x1f   : > { %388 = vst [vmem:[%s1567_s27 + $0xd0] sm:$0xff] %v387_v26  ;;  %v391_v28 = vld [vmem:[%s1562_s26 + $0x1c0] sm:$0xff]  ;;  %v393_v29 = vld [vmem:[%s1562_s26 + $0x1d0] sm:$0xff]  ;;  %390 = vst [vmem:[%s1567_s27 + $0xd8] sm:$0xff] %v389_v27 }
  0x20   : > { %392 = vst [vmem:[%s1567_s27 + $0xe0] sm:$0xff] %v391_v28  ;;  %394 = vst [vmem:[%s1567_s27 + $0xe8] sm:$0xff] %v393_v29  ;;  %v395_v30 = vld [vmem:[%s1562_s26 + $0x1e0] sm:$0xff]  ;;  %v397_v31 = vld [vmem:[%s1562_s26 + $0x1f0] sm:$0xff] }
  0x21   : > { %v399_v32 = vld [vmem:[%s1562_s26 + $0x200] sm:$0xff]  ;;  %396 = vst [vmem:[%s1567_s27 + $0xf0] sm:$0xff] %v395_v30  ;;  %398 = vst [vmem:[%s1567_s27 + $0xf8] sm:$0xff] %v397_v31  ;;  %v401_v33 = vld [vmem:[%s1562_s26 + $0x210] sm:$0xff] }
  0x22   : > { %400 = vst [vmem:[%s1567_s27 + $0x100] sm:$0xff] %v399_v32  ;;  %v403_v34 = vld [vmem:[%s1562_s26 + $0x220] sm:$0xff]  ;;  %v405_v35 = vld [vmem:[%s1562_s26 + $0x230] sm:$0xff]  ;;  %402 = vst [vmem:[%s1567_s27 + $0x108] sm:$0xff] %v401_v33 }
  0x23   : > { %404 = vst [vmem:[%s1567_s27 + $0x110] sm:$0xff] %v403_v34  ;;  %406 = vst [vmem:[%s1567_s27 + $0x118] sm:$0xff] %v405_v35  ;;  %v407_v36 = vld [vmem:[%s1562_s26 + $0x240] sm:$0xff]  ;;  %v409_v37 = vld [vmem:[%s1562_s26 + $0x250] sm:$0xff] }
  0x24   : > { %v411_v38 = vld [vmem:[%s1562_s26 + $0x260] sm:$0xff]  ;;  %408 = vst [vmem:[%s1567_s27 + $0x120] sm:$0xff] %v407_v36  ;;  %410 = vst [vmem:[%s1567_s27 + $0x128] sm:$0xff] %v409_v37  ;;  %v413_v39 = vld [vmem:[%s1562_s26 + $0x270] sm:$0xff] }
  0x25   : > { %412 = vst [vmem:[%s1567_s27 + $0x130] sm:$0xff] %v411_v38  ;;  %v415_v40 = vld [vmem:[%s1562_s26 + $0x280] sm:$0xff]  ;;  %v417_v41 = vld [vmem:[%s1562_s26 + $0x290] sm:$0xff]  ;;  %414 = vst [vmem:[%s1567_s27 + $0x138] sm:$0xff] %v413_v39 }
  0x26   : > { %416 = vst [vmem:[%s1567_s27 + $0x140] sm:$0xff] %v415_v40  ;;  %418 = vst [vmem:[%s1567_s27 + $0x148] sm:$0xff] %v417_v41  ;;  %v419_v42 = vld [vmem:[%s1562_s26 + $0x2a0] sm:$0xff]  ;;  %v421_v43 = vld [vmem:[%s1562_s26 + $0x2b0] sm:$0xff] }
  0x27   : > { %v423_v44 = vld [vmem:[%s1562_s26 + $0x2c0] sm:$0xff]  ;;  %420 = vst [vmem:[%s1567_s27 + $0x150] sm:$0xff] %v419_v42  ;;  %422 = vst [vmem:[%s1567_s27 + $0x158] sm:$0xff] %v421_v43  ;;  %v425_v45 = vld [vmem:[%s1562_s26 + $0x2d0] sm:$0xff] }
  0x28   : > { %424 = vst [vmem:[%s1567_s27 + $0x160] sm:$0xff] %v423_v44  ;;  %v427_v46 = vld [vmem:[%s1562_s26 + $0x2e0] sm:$0xff]  ;;  %v429_v47 = vld [vmem:[%s1562_s26 + $0x2f0] sm:$0xff]  ;;  %426 = vst [vmem:[%s1567_s27 + $0x168] sm:$0xff] %v425_v45 }
  0x29   : > { %428 = vst [vmem:[%s1567_s27 + $0x170] sm:$0xff] %v427_v46  ;;  %430 = vst [vmem:[%s1567_s27 + $0x178] sm:$0xff] %v429_v47  ;;  %v431_v48 = vld [vmem:[%s1562_s26 + $0x300] sm:$0xff]  ;;  %v433_v49 = vld [vmem:[%s1562_s26 + $0x310] sm:$0xff] }
  0x2a   : > { %v435_v50 = vld [vmem:[%s1562_s26 + $0x320] sm:$0xff]  ;;  %432 = vst [vmem:[%s1567_s27 + $0x180] sm:$0xff] %v431_v48  ;;  %434 = vst [vmem:[%s1567_s27 + $0x188] sm:$0xff] %v433_v49  ;;  %v437_v51 = vld [vmem:[%s1562_s26 + $0x330] sm:$0xff] }
  0x2b   : > { %436 = vst [vmem:[%s1567_s27 + $0x190] sm:$0xff] %v435_v50  ;;  %v439_v52 = vld [vmem:[%s1562_s26 + $0x340] sm:$0xff]  ;;  %v441_v53 = vld [vmem:[%s1562_s26 + $0x350] sm:$0xff]  ;;  %438 = vst [vmem:[%s1567_s27 + $0x198] sm:$0xff] %v437_v51 }
  0x2c   : > { %440 = vst [vmem:[%s1567_s27 + $0x1a0] sm:$0xff] %v439_v52  ;;  %442 = vst [vmem:[%s1567_s27 + $0x1a8] sm:$0xff] %v441_v53  ;;  %v443_v54 = vld [vmem:[%s1562_s26 + $0x360] sm:$0xff]  ;;  %v445_v55 = vld [vmem:[%s1562_s26 + $0x370] sm:$0xff] }
  0x2d   : > { %v447_v56 = vld [vmem:[%s1562_s26 + $0x380] sm:$0xff]  ;;  %444 = vst [vmem:[%s1567_s27 + $0x1b0] sm:$0xff] %v443_v54  ;;  %446 = vst [vmem:[%s1567_s27 + $0x1b8] sm:$0xff] %v445_v55  ;;  %v449_v57 = vld [vmem:[%s1562_s26 + $0x390] sm:$0xff] }
  0x2e   : > { %448 = vst [vmem:[%s1567_s27 + $0x1c0] sm:$0xff] %v447_v56  ;;  %v451_v58 = vld [vmem:[%s1562_s26 + $0x3a0] sm:$0xff]  ;;  %v453_v59 = vld [vmem:[%s1562_s26 + $0x3b0] sm:$0xff]  ;;  %450 = vst [vmem:[%s1567_s27 + $0x1c8] sm:$0xff] %v449_v57 }
  0x2f   : > { %452 = vst [vmem:[%s1567_s27 + $0x1d0] sm:$0xff] %v451_v58  ;;  %454 = vst [vmem:[%s1567_s27 + $0x1d8] sm:$0xff] %v453_v59  ;;  %v455_v60 = vld [vmem:[%s1562_s26 + $0x3c0] sm:$0xff]  ;;  %v457_v61 = vld [vmem:[%s1562_s26 + $0x3d0] sm:$0xff] }
  0x30   : > { %v459_v62 = vld [vmem:[%s1562_s26 + $0x3e0] sm:$0xff]  ;;  %456 = vst [vmem:[%s1567_s27 + $0x1e0] sm:$0xff] %v455_v60  ;;  %458 = vst [vmem:[%s1567_s27 + $0x1e8] sm:$0xff] %v457_v61  ;;  %v461_v63 = vld [vmem:[%s1562_s26 + $0x3f0] sm:$0xff] }
  0x31   : > { %460 = vst [vmem:[%s1567_s27 + $0x1f0] sm:$0xff] %v459_v62  ;;  %462 = vst [vmem:[%s1567_s27 + $0x1f8] sm:$0xff] %v461_v63 }
  0x32 PF: > { %p1241_p6 = scmp.ge.s32.totalorder %s1494_s16, 1  ;;  %p475_p7 = scmp.lt.s32.totalorder %s1494_s16, 3 }
  0x34   : > { %p476_p8 = pnand %p1241_p6, %p475_p7 }
  0x35   : > { %s482_s28 = sand.u32 (!%p476_p8), 1, %s1478_s12   ;;  %v1700_v0 = vld.sshfl [vmem:[%s1808_s0] sm:$0x33 pattern:$0x75316420] (!%p476_p8)  ;;  %v628_v1 = vlaneseq (!%p476_p8)  ;;  %s1243_s6 = sshll.u32 (!%p476_p8), %s1486_s14, 1 }
  0x36   : > { %479 = sbr.rel (%p476_p8) target bundleno = 365 (0x16d), region = 66  ;;  %s1242_s4 = sshll.u32 (!%p476_p8), %s482_s28, 9  ;;  %v1496_v2 = vmov (!%p476_p8), 1966171168   ;;  %v624_v7 = vcombine.high (!%p476_p8), %v1700_v0, %v1700_v0 }
  0x37   : > { %v626_v3 = vunpack.c.l.s4 (!%p476_p8), %v1496_v2  ;;  %v1702_v4 = vshrl.u32 (!%p476_p8), %v628_v1, 7  ;;  %s1704_s5 = scalar_lea.vmem (!%p476_p8), [#allocation3], %s1242_s4  ;;  %p532_p9 = scmp.lt.s32.totalorder (!%p476_p8), %s1243_s6, 3 }
  0x38   : > { %v1360_v5 = vld [vmem:[%s1704_s5 + $0x4] ss:$8 sps:$4 sm:$0xff] (!%p476_p8)   ;;  %v1364_v9 = vld [vmem:[%s1704_s5] ss:$8 sps:$4 sm:$0xff] (!%p476_p8)   ;;  %v1366_v11 = vld [vmem:[%s1704_s5 + $0x14] ss:$8 sps:$4 sm:$0xff] (!%p476_p8)  }
  0x39   : > { %v1362_v6 = vld [vmem:[%s1704_s5 + $0x104] ss:$8 sps:$4 sm:$0xff] (!%p476_p8)   ;;  %v627_v8 = vunpack.c.0.s8 (!%p476_p8), %v626_v3  ;;  %965 = vmatprep.subr.bf16.mxu1 (!%p476_p8), %v1360_v5  ;;  %v1365_v10 = vld [vmem:[%s1704_s5 + $0x100] ss:$8 sps:$4 sm:$0xff] (!%p476_p8)   ;;  %v1368_v13 = vld [vmem:[%s1704_s5 + $0x114] ss:$8 sps:$4 sm:$0xff] (!%p476_p8)  }
  0x3a   : > { %1006 = vmatprep.subr.bf16.mxu0 (!%p476_p8), %v1362_v6  ;;  %966 = vmatpush1.bf16.msra.mxu1 (!%p476_p8), %v1364_v9  ;;  %v1370_v14 = vld [vmem:[%s1704_s5 + $0x10] ss:$8 sps:$4 sm:$0xff] (!%p476_p8)   ;;  %v1372_v17 = vld [vmem:[%s1704_s5 + $0x24] ss:$8 sps:$4 sm:$0xff] (!%p476_p8)   ;;  %v1376_v19 = vld [vmem:[%s1704_s5 + $0x20] ss:$8 sps:$4 sm:$0xff] (!%p476_p8)  }
  0x3b   : > { %v1714_v12 = vsub.s32 (!%p476_p8), %v627_v8, %v1702_v4  ;;  %1007 = vmatpush1.bf16.msra.mxu0 (!%p476_p8), %v1365_v10  ;;  %967 = vmatprep.subr.bf16.mxu1 (!%p476_p8), %v1366_v11  ;;  %v1371_v15 = vld [vmem:[%s1704_s5 + $0x110] ss:$8 sps:$4 sm:$0xff] (!%p476_p8)   ;;  %v1374_v18 = vld [vmem:[%s1704_s5 + $0x124] ss:$8 sps:$4 sm:$0xff] (!%p476_p8)   ;;  %v1377_v20 = vld [vmem:[%s1704_s5 + $0x120] ss:$8 sps:$4 sm:$0xff] (!%p476_p8)  }
  0x3c   : > { %1008 = vmatprep.subr.bf16.mxu0 (!%p476_p8), %v1368_v13  ;;  %v1378_v22 = vld [vmem:[%s1704_s5 + $0x34] ss:$8 sps:$4 sm:$0xff] (!%p476_p8)   ;;  %v1382_v24 = vld [vmem:[%s1704_s5 + $0x30] ss:$8 sps:$4 sm:$0xff] (!%p476_p8)   ;;  %v1384_v26 = vld [vmem:[%s1704_s5 + $0x44] ss:$8 sps:$4 sm:$0xff] (!%p476_p8)  }
  0x3d   : > { %v638_v16 = vrot.slane %v624_v7, %v1714_v12  ;;  %v1380_v23 = vld [vmem:[%s1704_s5 + $0x134] ss:$8 sps:$4 sm:$0xff]   ;;  %v1383_v25 = vld [vmem:[%s1704_s5 + $0x130] ss:$8 sps:$4 sm:$0xff]   ;;  %v1386_v27 = vld [vmem:[%s1704_s5 + $0x144] ss:$8 sps:$4 sm:$0xff]   ;;  %v631_v10 = vrot.slane %v1700_v0, %v1714_v12 }
  0x3e   : > { %968 = vmatpush1.bf16.msra.mxu1 %v1370_v14  ;;  %v1388_v28 = vld [vmem:[%s1704_s5 + $0x40] ss:$8 sps:$4 sm:$0xff]   ;;  %v1390_v30 = vld [vmem:[%s1704_s5 + $0x54] ss:$8 sps:$4 sm:$0xff]   ;;  %v1394_v32 = vld [vmem:[%s1704_s5 + $0x50] ss:$8 sps:$4 sm:$0xff]  }
  0x3f   : > { %997 = vmatprep.mubr.bf16.mxu1 %v638_v16  ;;  %v640_v21 = vcombine.high %v638_v16, %v638_v16  ;;  %1009 = vmatpush1.bf16.msra.mxu0 %v1371_v15  ;;  %v1389_v29 = vld [vmem:[%s1704_s5 + $0x140] ss:$8 sps:$4 sm:$0xff]   ;;  %v1392_v31 = vld [vmem:[%s1704_s5 + $0x154] ss:$8 sps:$4 sm:$0xff]   ;;  %v1395_v33 = vld [vmem:[%s1704_s5 + $0x150] ss:$8 sps:$4 sm:$0xff]   ;;  %v639_v14 = vcombine.high %v631_v10, %v631_v10 }
  0x40   : > { %969 = vmatprep.subr.bf16.mxu1 %v1372_v17  ;;  %1010 = vmatprep.subr.bf16.mxu0 %v1374_v18  ;;  %v1396_v34 = vld [vmem:[%s1704_s5 + $0x64] ss:$8 sps:$4 sm:$0xff]   ;;  %v1400_v36 = vld [vmem:[%s1704_s5 + $0x60] ss:$8 sps:$4 sm:$0xff]   ;;  %v1402_v38 = vld [vmem:[%s1704_s5 + $0x74] ss:$8 sps:$4 sm:$0xff]  }
  0x41   : > { %1038 = vmatprep.mubr.bf16.mxu0 %v640_v21  ;;  %v1398_v35 = vld [vmem:[%s1704_s5 + $0x164] ss:$8 sps:$4 sm:$0xff]   ;;  %v1401_v37 = vld [vmem:[%s1704_s5 + $0x160] ss:$8 sps:$4 sm:$0xff]   ;;  %v1404_v39 = vld [vmem:[%s1704_s5 + $0x174] ss:$8 sps:$4 sm:$0xff]  }
  0x42   : > { %970 = vmatpush1.bf16.msra.mxu1 %v1376_v19  ;;  %v1406_v40 = vld [vmem:[%s1704_s5 + $0x70] ss:$8 sps:$4 sm:$0xff]   ;;  %v1408_v42 = vld [vmem:[%s1704_s5 + $0x84] ss:$8 sps:$4 sm:$0xff]   ;;  %v1412_v44 = vld [vmem:[%s1704_s5 + $0x80] ss:$8 sps:$4 sm:$0xff]  }
  0x43   : > { %1011 = vmatpush1.bf16.msra.mxu0 %v1377_v20  ;;  %971 = vmatprep.subr.bf16.mxu1 %v1378_v22  ;;  %v1407_v41 = vld [vmem:[%s1704_s5 + $0x170] ss:$8 sps:$4 sm:$0xff]   ;;  %v1410_v43 = vld [vmem:[%s1704_s5 + $0x184] ss:$8 sps:$4 sm:$0xff]   ;;  %v1413_v45 = vld [vmem:[%s1704_s5 + $0x180] ss:$8 sps:$4 sm:$0xff]  }
  0x44   : > { %1012 = vmatprep.subr.bf16.mxu0 %v1380_v23  ;;  %v1414_v46 = vld [vmem:[%s1704_s5 + $0x94] ss:$8 sps:$4 sm:$0xff]   ;;  %v1418_v48 = vld [vmem:[%s1704_s5 + $0x90] ss:$8 sps:$4 sm:$0xff]   ;;  %v1420_v50 = vld [vmem:[%s1704_s5 + $0xa4] ss:$8 sps:$4 sm:$0xff]  }
  0x45   : > { %v1416_v47 = vld [vmem:[%s1704_s5 + $0x194] ss:$8 sps:$4 sm:$0xff]   ;;  %v1419_v49 = vld [vmem:[%s1704_s5 + $0x190] ss:$8 sps:$4 sm:$0xff]   ;;  %v1422_v51 = vld [vmem:[%s1704_s5 + $0x1a4] ss:$8 sps:$4 sm:$0xff]  }
  0x46   : > { %972 = vmatpush1.bf16.msra.mxu1 %v1382_v24  ;;  %v1424_v52 = vld [vmem:[%s1704_s5 + $0xa0] ss:$8 sps:$4 sm:$0xff]   ;;  %v1426_v54 = vld [vmem:[%s1704_s5 + $0xb4] ss:$8 sps:$4 sm:$0xff]   ;;  %v1430_v56 = vld [vmem:[%s1704_s5 + $0xb0] ss:$8 sps:$4 sm:$0xff]  }
  0x47   : > { %1013 = vmatpush1.bf16.msra.mxu0 %v1383_v25  ;;  %973 = vmatprep.subr.bf16.mxu1 %v1384_v26  ;;  %v1425_v53 = vld [vmem:[%s1704_s5 + $0x1a0] ss:$8 sps:$4 sm:$0xff]   ;;  %v1428_v55 = vld [vmem:[%s1704_s5 + $0x1b4] ss:$8 sps:$4 sm:$0xff]   ;;  %v1431_v57 = vld [vmem:[%s1704_s5 + $0x1b0] ss:$8 sps:$4 sm:$0xff]  }
  0x48   : > { %1014 = vmatprep.subr.bf16.mxu0 %v1386_v27  ;;  %v1432_v58 = vld [vmem:[%s1704_s5 + $0xc4] ss:$8 sps:$4 sm:$0xff]   ;;  %v1436_v60 = vld [vmem:[%s1704_s5 + $0xc0] ss:$8 sps:$4 sm:$0xff]   ;;  %v1438_v62 = vld [vmem:[%s1704_s5 + $0xd4] ss:$8 sps:$4 sm:$0xff]  }
  0x49   : > { %v1434_v59 = vld [vmem:[%s1704_s5 + $0x1c4] ss:$8 sps:$4 sm:$0xff]   ;;  %v1437_v61 = vld [vmem:[%s1704_s5 + $0x1c0] ss:$8 sps:$4 sm:$0xff]   ;;  %v1440_v63 = vld [vmem:[%s1704_s5 + $0x1d4] ss:$8 sps:$4 sm:$0xff]  }
  0x4a   : > { %974 = vmatpush1.bf16.msra.mxu1 %v1388_v28  ;;  %v1442_v1 = vld [vmem:[%s1704_s5 + $0xd0] ss:$8 sps:$4 sm:$0xff]   ;;  %v1444_v3 = vld [vmem:[%s1704_s5 + $0xe4] ss:$8 sps:$4 sm:$0xff]   ;;  %v1448_v6 = vld [vmem:[%s1704_s5 + $0xe0] ss:$8 sps:$4 sm:$0xff]  }
  0x4b   : > { %1015 = vmatpush1.bf16.msra.mxu0 %v1389_v29  ;;  %975 = vmatprep.subr.bf16.mxu1 %v1390_v30  ;;  %v1443_v2 = vld [vmem:[%s1704_s5 + $0x1d0] ss:$8 sps:$4 sm:$0xff]   ;;  %v1446_v5 = vld [vmem:[%s1704_s5 + $0x1e4] ss:$8 sps:$4 sm:$0xff]   ;;  %v1449_v7 = vld [vmem:[%s1704_s5 + $0x1e0] ss:$8 sps:$4 sm:$0xff]  }
  0x4c   : > { %1016 = vmatprep.subr.bf16.mxu0 %v1392_v31  ;;  %v1450_v8 = vld [vmem:[%s1704_s5 + $0xf4] ss:$8 sps:$4 sm:$0xff]   ;;  %v1454_v11 = vld [vmem:[%s1704_s5 + $0xf0] ss:$8 sps:$4 sm:$0xff]   ;;  %v1497_v15 = vmov 0.0   ;;  %s1819_s6 = smov (!%p532_p9, %s1243_s6), 3 }
  0x4d   : > { %v1452_v9 = vld [vmem:[%s1704_s5 + $0x1f4] ss:$8 sps:$4 sm:$0xff]   ;;  %v1455_v13 = vld [vmem:[%s1704_s5 + $0x1f0] ss:$8 sps:$4 sm:$0xff]   ;;  %549 = vst [vmem:[#allocation2] sm:$0xf] %v1497_v15  ;;  %s534_s9 = scalar_lea.vmem %s1810_s2, %s1819_s6  ;;  %s543_s12 = scalar_lea.vmem %s1811_s3, %s1819_s6 }
  0x4e   : > { %976 = vmatpush1.bf16.msra.mxu1 %v1394_v32  ;;  %v1498_v16 = vmov 1983009808   ;;  %v1068_v25 = vsub.s32 0, %v1702_v4  ;;  %v1072_v26 = vsub.s32 1, %v1702_v4  ;;  %v1064_v29 = vld [vmem:[%s534_s9] sm:$0x3] }
  0x4f   : > { %1017 = vmatpush1.bf16.msra.mxu0 %v1395_v33  ;;  %977 = vmatprep.subr.bf16.mxu1 %v1396_v34  ;;  %v1051_v17 = vunpack.c.l.s4 %v1498_v16 }
  0x50   : > { %1018 = vmatprep.subr.bf16.mxu0 %v1398_v35  ;;  %v1069_v35 = vrot.slane %v1064_v29, %v1068_v25 }
  0x51   : > { %v1052_v0 = vunpack.c.0.s8 %v1051_v17 }
  0x52   : > { %978 = vmatpush1.bf16.msra.mxu1 %v1400_v36  ;;  %v1073_v36 = vrot.slane %v1064_v29, %v1072_v26 }
  0x53   : > { %1019 = vmatpush1.bf16.msra.mxu0 %v1401_v37  ;;  %979 = vmatprep.subr.bf16.mxu1 %v1402_v38  ;;  %v1055_v24 = vsub.s32 %v1052_v0, %v1702_v4 }
  0x54   : > { %1020 = vmatprep.subr.bf16.mxu0 %v1404_v39  ;;  %v550_v33 = vld [vmem:[#allocation2] sm:$0xf]  ;;  %v1074_v38 = vcombine.low %v1069_v35, %v1073_v36 }
  0x56   : > { %980 = vmatpush1.bf16.msra.mxu1 %v1406_v40  ;;  %v1081_v39 = vrot.slane %v1074_v38, %v1055_v24 }
  0x57   : > { %1021 = vmatpush1.bf16.msra.mxu0 %v1407_v41  ;;  %981 = vmatprep.subr.bf16.mxu1 %v1408_v42 }
  0x58   : > { %1022 = vmatprep.subr.bf16.mxu0 %v1410_v43 }
  0x5a   : > { %982 = vmatpush1.bf16.msra.mxu1 %v1412_v44 }
  0x5b   : > { %1023 = vmatpush1.bf16.msra.mxu0 %v1413_v45  ;;  %983 = vmatprep.subr.bf16.mxu1 %v1414_v46 }
  0x5c   : > { %1024 = vmatprep.subr.bf16.mxu0 %v1416_v47 }
  0x5e   : > { %984 = vmatpush1.bf16.msra.mxu1 %v1418_v48 }
  0x5f   : > { %1025 = vmatpush1.bf16.msra.mxu0 %v1419_v49  ;;  %985 = vmatprep.subr.bf16.mxu1 %v1420_v50 }
  0x60   : > { %1026 = vmatprep.subr.bf16.mxu0 %v1422_v51 }
  0x62   : > { %986 = vmatpush1.bf16.msra.mxu1 %v1424_v52 }
  0x63   : > { %1027 = vmatpush1.bf16.msra.mxu0 %v1425_v53  ;;  %987 = vmatprep.subr.bf16.mxu1 %v1426_v54 }
  0x64   : > { %1028 = vmatprep.subr.bf16.mxu0 %v1428_v55 }
  0x66   : > { %988 = vmatpush1.bf16.msra.mxu1 %v1430_v56 }
  0x67   : > { %1029 = vmatpush1.bf16.msra.mxu0 %v1431_v57  ;;  %989 = vmatprep.subr.bf16.mxu1 %v1432_v58 }
  0x68   : > { %1030 = vmatprep.subr.bf16.mxu0 %v1434_v59 }
  0x6a   : > { %990 = vmatpush1.bf16.msra.mxu1 %v1436_v60 }
  0x6b   : > { %1031 = vmatpush1.bf16.msra.mxu0 %v1437_v61  ;;  %991 = vmatprep.subr.bf16.mxu1 %v1438_v62 }
  0x6c   : > { %1032 = vmatprep.subr.bf16.mxu0 %v1440_v63 }
  0x6e   : > { %992 = vmatpush1.bf16.msra.mxu1 %v1442_v1 }
  0x6f   : > { %1033 = vmatpush1.bf16.msra.mxu0 %v1443_v2  ;;  %993 = vmatprep.subr.bf16.mxu1 %v1444_v3 }
  0x70   : > { %1034 = vmatprep.subr.bf16.mxu0 %v1446_v5 }
  0x72   : > { %994 = vmatpush1.bf16.msra.mxu1 %v1448_v6 }
  0x73   : > { %1035 = vmatpush1.bf16.msra.mxu0 %v1449_v7  ;;  %995 = vmatprep.subr.bf16.mxu1 %v1450_v8 }
  0x74   : > { %1036 = vmatprep.subr.bf16.mxu0 %v1452_v9 }
  0x76   : > { %996 = vmatpush1.bf16.msra.mxu1 %v1454_v11 }
  0x77   : > { %1037 = vmatpush1.bf16.msra.mxu0 %v1455_v13 }
  0x79   : > { %998 = vmatmul.mubr.bf16.vlgmr.msra.gmra.mrb[0].mxu1 %v631_v10 }
  0x7a   : > { %1039 = vmatmul.mubr.bf16.vlgmr.msra.gmra.mrb[0].mxu0 %v639_v14 }
 0x14c   : > { %v999_v18 = vpop.f32.mrb[0].mxu1 }
 0x14d   : > { %v1040_v19 = vpop.f32.mrb[0].mxu0  ;;  %v1001_v21 = vpop.f32.mrb[1].mxu1 }
 0x14e   : > { %v1041_v20 = vadd.f32 %v1040_v19, %v999_v18  ;;  %v1042_v22 = vpop.f32.mrb[1].mxu0  ;;  %v1003_v27 = vpop.f32.mrb[2].mxu1 }
 0x14f   : > { %v1043_v23 = vadd.f32 %v1042_v22, %v1001_v21  ;;  %v1044_v28 = vpop.f32.mrb[2].mxu0  ;;  %v1004_v30 = vpop.f32.mrb[3].mxu1 }
 0x150   : > { %v1045_v31 = vpop.f32.mrb[3].mxu0 }
 0x151   : > { %v1049_v32 = vcombine.low %v1041_v20, %v1043_v23 }
 0x153   : > { %v1056_v34 = vrot.slane %v1049_v32, %v1055_v24 }
 0x155   : > { %v1058_v37 = vadd.f32 %v1056_v34, %v550_v33 }
 0x157   : > { %1059 = vst [vmem:[#allocation2] sm:$0xf] %v1058_v37 }
 0x15e   : > { %v1063_v40 = vld [vmem:[#allocation2] sm:$0xf] }
 0x15f   : > { %v1083_v41 = vadd.f32 %v1081_v39, %v1063_v40 }
 0x161   : > { %vm1084_vm0 = vcmp.gt.f32.partialorder %v1083_v41, 0.0  ;;  %v1085_v42 = vmul.f32 0.1, %v1083_v41 }
 0x163   : > { %v1086_v4 = vsel %vm1084_vm0, %v1083_v41, %v1085_v42 }
 0x164   : > { %v1094_v43 = vrot.slane %v1086_v4, %v1055_v24 }
 0x166   : > { %v1095_v44 = vcombine.high %v1094_v43, %v1094_v43 }
 0x168   : > { %v1310_v45 = vpack.c.bf16 %v1095_v44, %v1094_v43 }
 0x16a   : > { %v1109_v46 = vrot.slane %v1310_v45, %v1714_v12 }
 0x16c   : > { %1311 = vst.sshfl [vmem:[%s543_s12] sm:$0x5 pattern:$0x73625140] %v1109_v46 }
 0x16d PF: > { %s13_s16 = sadd.s32 1, %s1494_s16   ;;  %s1812_s12 = smov %s1482_s13 }
 0x16e   : > { %p10_p10 = scmp.ge.s32.totalorder %s13_s16, 4   ;;  %s1813_s13 = smov %s1554_s20 }
 0x16f   : > { %s1814_s14 = smov %s1490_s15  ;;  %s1815_s15 = smov %s1817_s17 }
 0x170   :  { %12 = sbr.rel (!%p10_p10) target bundleno = 3 (0x3), region = 119 }

// kernel: simple_10cnn_forward.21
= control target key start
LH: loop header
LB: loop body
LE: loop exit
PB: predicated region body
PF: predicated region fallthrough
CT: control target
= control target key end

     0   :  { %v30_v38 = vlaneseq  ;;  %vm245_vm0 = vcmask 1041409   ;;  %s2467_s0 = inlined_call_operand.vmem [shape: bf16[2,1,512], index: 0, kind: input, shape index: {}]   ;;  %s2468_s1 = inlined_call_operand.vmem [shape: bf16[512,512], index: 1, kind: input, shape index: {}]   ;;  %s2469_s2 = inlined_call_operand.vmem [shape: f32[1,512], index: 2, kind: input, shape index: {}]   ;;  %s2470_s3 = inlined_call_operand.vmem [shape: bf16[512,128], index: 3, kind: input, shape index: {}]   ;;  %s2471_s4 = inlined_call_operand.vmem [shape: f32[1,128], index: 4, kind: input, shape index: {}]   ;;  %s2472_s5 = inlined_call_operand.hbm [shape: f32[2,128], index: 5, kind: output, shape index: {}]  }
   0x1   :  { %v1661_v0 = vld [vmem:[%s2468_s1 + $0x4] ss:$16 sps:$4 sm:$0xff]   ;;  %v1663_v1 = vld [vmem:[%s2468_s1 + $0xc] ss:$16 sps:$4 sm:$0xff]   ;;  %v1665_v2 = vld [vmem:[%s2468_s1] ss:$16 sps:$4 sm:$0xff]  }
   0x2   :  { %901 = vmatprep.subr.bf16.mxu0 %v1661_v0  ;;  %v1666_v3 = vld [vmem:[%s2468_s1 + $0x8] ss:$16 sps:$4 sm:$0xff]   ;;  %983 = vmatprep.subr.bf16.mxu1 %v1663_v1  ;;  %v1667_v4 = vld [vmem:[%s2468_s1 + $0x24] ss:$16 sps:$4 sm:$0xff]   ;;  %v1669_v5 = vld [vmem:[%s2468_s1 + $0x2c] ss:$16 sps:$4 sm:$0xff]  }
   0x3   :  { %902 = vmatpush1.bf16.msra.mxu0 %v1665_v2  ;;  %984 = vmatpush1.bf16.msra.mxu1 %v1666_v3  ;;  %v1671_v6 = vld [vmem:[%s2468_s1 + $0x20] ss:$16 sps:$4 sm:$0xff]   ;;  %v1672_v7 = vld [vmem:[%s2468_s1 + $0x28] ss:$16 sps:$4 sm:$0xff]   ;;  %v1673_v8 = vld [vmem:[%s2468_s1 + $0x44] ss:$16 sps:$4 sm:$0xff]  }
   0x4   :  { %903 = vmatprep.subr.bf16.mxu0 %v1667_v4  ;;  %985 = vmatprep.subr.bf16.mxu1 %v1669_v5  ;;  %v1675_v9 = vld [vmem:[%s2468_s1 + $0x4c] ss:$16 sps:$4 sm:$0xff]   ;;  %v1677_v10 = vld [vmem:[%s2468_s1 + $0x40] ss:$16 sps:$4 sm:$0xff]   ;;  %v1678_v11 = vld [vmem:[%s2468_s1 + $0x48] ss:$16 sps:$4 sm:$0xff]  }
   0x5   :  { %v1679_v12 = vld [vmem:[%s2468_s1 + $0x64] ss:$16 sps:$4 sm:$0xff]   ;;  %v1681_v13 = vld [vmem:[%s2468_s1 + $0x6c] ss:$16 sps:$4 sm:$0xff]   ;;  %v1683_v14 = vld [vmem:[%s2468_s1 + $0x60] ss:$16 sps:$4 sm:$0xff]  }
   0x6   :  { %v1684_v15 = vld [vmem:[%s2468_s1 + $0x68] ss:$16 sps:$4 sm:$0xff]   ;;  %v1685_v16 = vld [vmem:[%s2468_s1 + $0x84] ss:$16 sps:$4 sm:$0xff]   ;;  %v1687_v17 = vld [vmem:[%s2468_s1 + $0x8c] ss:$16 sps:$4 sm:$0xff]  }
   0x7   :  { %904 = vmatpush1.bf16.msra.mxu0 %v1671_v6  ;;  %986 = vmatpush1.bf16.msra.mxu1 %v1672_v7  ;;  %v1689_v18 = vld [vmem:[%s2468_s1 + $0x80] ss:$16 sps:$4 sm:$0xff]   ;;  %v1690_v19 = vld [vmem:[%s2468_s1 + $0x88] ss:$16 sps:$4 sm:$0xff]   ;;  %v1691_v20 = vld [vmem:[%s2468_s1 + $0xa4] ss:$16 sps:$4 sm:$0xff]  }
   0x8   :  { %905 = vmatprep.subr.bf16.mxu0 %v1673_v8  ;;  %987 = vmatprep.subr.bf16.mxu1 %v1675_v9  ;;  %v1693_v21 = vld [vmem:[%s2468_s1 + $0xac] ss:$16 sps:$4 sm:$0xff]   ;;  %v1695_v22 = vld [vmem:[%s2468_s1 + $0xa0] ss:$16 sps:$4 sm:$0xff]   ;;  %v1696_v23 = vld [vmem:[%s2468_s1 + $0xa8] ss:$16 sps:$4 sm:$0xff]  }
   0x9   :  { %v1697_v24 = vld [vmem:[%s2468_s1 + $0xc4] ss:$16 sps:$4 sm:$0xff]   ;;  %v1699_v25 = vld [vmem:[%s2468_s1 + $0xcc] ss:$16 sps:$4 sm:$0xff]   ;;  %v1701_v26 = vld [vmem:[%s2468_s1 + $0xc0] ss:$16 sps:$4 sm:$0xff]  }
   0xa   :  { %v1702_v27 = vld [vmem:[%s2468_s1 + $0xc8] ss:$16 sps:$4 sm:$0xff]   ;;  %v1703_v28 = vld [vmem:[%s2468_s1 + $0xe4] ss:$16 sps:$4 sm:$0xff]   ;;  %v1705_v29 = vld [vmem:[%s2468_s1 + $0xec] ss:$16 sps:$4 sm:$0xff]  }
   0xb   :  { %906 = vmatpush1.bf16.msra.mxu0 %v1677_v10  ;;  %988 = vmatpush1.bf16.msra.mxu1 %v1678_v11  ;;  %v1707_v30 = vld [vmem:[%s2468_s1 + $0xe0] ss:$16 sps:$4 sm:$0xff]   ;;  %v1708_v31 = vld [vmem:[%s2468_s1 + $0xe8] ss:$16 sps:$4 sm:$0xff]   ;;  %v1709_v32 = vld [vmem:[%s2468_s1 + $0x104] ss:$16 sps:$4 sm:$0xff]  }
   0xc   :  { %907 = vmatprep.subr.bf16.mxu0 %v1679_v12  ;;  %989 = vmatprep.subr.bf16.mxu1 %v1681_v13  ;;  %v1711_v33 = vld [vmem:[%s2468_s1 + $0x10c] ss:$16 sps:$4 sm:$0xff]   ;;  %v1713_v34 = vld [vmem:[%s2468_s1 + $0x100] ss:$16 sps:$4 sm:$0xff]   ;;  %v1714_v35 = vld [vmem:[%s2468_s1 + $0x108] ss:$16 sps:$4 sm:$0xff]  }
   0xd   :  { %v1715_v36 = vld [vmem:[%s2468_s1 + $0x124] ss:$16 sps:$4 sm:$0xff]   ;;  %v1717_v37 = vld [vmem:[%s2468_s1 + $0x12c] ss:$16 sps:$4 sm:$0xff]   ;;  %v1719_v39 = vld [vmem:[%s2468_s1 + $0x120] ss:$16 sps:$4 sm:$0xff]  }
   0xe   :  { %v1720_v40 = vld [vmem:[%s2468_s1 + $0x128] ss:$16 sps:$4 sm:$0xff]   ;;  %v1721_v41 = vld [vmem:[%s2468_s1 + $0x144] ss:$16 sps:$4 sm:$0xff]   ;;  %v1723_v42 = vld [vmem:[%s2468_s1 + $0x14c] ss:$16 sps:$4 sm:$0xff]  }
   0xf   :  { %908 = vmatpush1.bf16.msra.mxu0 %v1683_v14  ;;  %990 = vmatpush1.bf16.msra.mxu1 %v1684_v15  ;;  %v2066_v43 = vshrl.u32 %v30_v38, 7  ;;  %v1725_v44 = vld [vmem:[%s2468_s1 + $0x140] ss:$16 sps:$4 sm:$0xff]   ;;  %v1726_v45 = vld [vmem:[%s2468_s1 + $0x148] ss:$16 sps:$4 sm:$0xff]  }
  0x10   :  { %909 = vmatprep.subr.bf16.mxu0 %v1685_v16  ;;  %991 = vmatprep.subr.bf16.mxu1 %v1687_v17  ;;  %v1727_v46 = vld [vmem:[%s2468_s1 + $0x164] ss:$16 sps:$4 sm:$0xff]   ;;  %v1729_v47 = vld [vmem:[%s2468_s1 + $0x16c] ss:$16 sps:$4 sm:$0xff]   ;;  %v1731_v51 = vld [vmem:[%s2468_s1 + $0x160] ss:$16 sps:$4 sm:$0xff]  }
  0x11   :  { %v2081_v48 = vsub.s32 2, %v2066_v43  ;;  %v1601_v49 = vld [vmem:[%s2467_s0] sm:$0xff]   ;;  %v2087_v50 = vsub.s32 0, %v2066_v43  ;;  %v44_v54 = vsub.s32 6, %v2066_v43  ;;  %v40_v55 = vsub.s32 4, %v2066_v43 }
  0x12   :  { %v1602_v52 = vunpack.c.l.bf16 %v1601_v49  ;;  %v1603_v53 = vunpack.c.h.bf16 %v1601_v49  ;;  %v1732_v56 = vld [vmem:[%s2468_s1 + $0x168] ss:$16 sps:$4 sm:$0xff]   ;;  %v1733_v57 = vld [vmem:[%s2468_s1 + $0x184] ss:$16 sps:$4 sm:$0xff]   ;;  %v1735_v58 = vld [vmem:[%s2468_s1 + $0x18c] ss:$16 sps:$4 sm:$0xff]  }
  0x13   :  { %910 = vmatpush1.bf16.msra.mxu0 %v1689_v18  ;;  %992 = vmatpush1.bf16.msra.mxu1 %v1690_v19  ;;  %v1737_v63 = vld [vmem:[%s2468_s1 + $0x180] ss:$16 sps:$4 sm:$0xff]   ;;  %v1738_v4 = vld [vmem:[%s2468_s1 + $0x188] ss:$16 sps:$4 sm:$0xff]   ;;  %v1739_v7 = vld [vmem:[%s2468_s1 + $0x1a4] ss:$16 sps:$4 sm:$0xff]  }
  0x14   :  { %911 = vmatprep.subr.bf16.mxu0 %v1691_v20  ;;  %993 = vmatprep.subr.bf16.mxu1 %v1693_v21  ;;  %v37_v59 = vrot.slane %v1602_v52, %v2081_v48  ;;  %v53_v60 = vrot.slane %v1603_v53, %v2081_v48  ;;  %v49_v61 = vrot.slane %v1603_v53, %v2087_v50  ;;  %v1741_v8 = vld [vmem:[%s2468_s1 + $0x1ac] ss:$16 sps:$4 sm:$0xff]   ;;  %v1743_v13 = vld [vmem:[%s2468_s1 + $0x1a0] ss:$16 sps:$4 sm:$0xff]   ;;  %v1744_v17 = vld [vmem:[%s2468_s1 + $0x1a8] ss:$16 sps:$4 sm:$0xff]  }
  0x15   :  { %v41_v62 = vrot.slane %v1602_v52, %v40_v55  ;;  %v61_v2 = vrot.slane %v1603_v53, %v44_v54  ;;  %v57_v3 = vrot.slane %v1603_v53, %v40_v55  ;;  %v33_v5 = vrot.slane %v1602_v52, %v2087_v50  ;;  %v1765_v49 = vld [vmem:[%s2468_s1 + $0x224] ss:$16 sps:$4 sm:$0xff]   ;;  %v1763_v53 = vld [vmem:[%s2468_s1 + $0x220] ss:$16 sps:$4 sm:$0xff]  }
  0x16   :  { %v71_v0 = vpack.c.bf16 %v37_v59, %v37_v59  ;;  %v75_v1 = vpack.c.bf16 %v53_v60, %v53_v60  ;;  %v74_v6 = vpack.c.bf16 %v49_v61, %v49_v61  ;;  %v45_v15 = vrot.slane %v1602_v52, %v44_v54  ;;  %v1766_v54 = vld [vmem:[%s2468_s1 + $0x228] ss:$16 sps:$4 sm:$0xff]   ;;  %v1771_v55 = vld [vmem:[%s2468_s1 + $0x244] ss:$16 sps:$4 sm:$0xff]   ;;  %v1780_v60 = vld [vmem:[%s2468_s1 + $0x26c] ss:$16 sps:$4 sm:$0xff]  }
  0x17   :  { %912 = vmatpush1.bf16.msra.mxu0 %v1695_v22  ;;  %994 = vmatpush1.bf16.msra.mxu1 %v1696_v23  ;;  %v72_v11 = vpack.c.bf16 %v41_v62, %v41_v62  ;;  %v76_v12 = vpack.c.bf16 %v57_v3, %v57_v3  ;;  %v77_v16 = vpack.c.bf16 %v61_v2, %v61_v2  ;;  %v1745_v22 = vld [vmem:[%s2468_s1 + $0x1c4] ss:$16 sps:$4 sm:$0xff]   ;;  %v1747_v23 = vld [vmem:[%s2468_s1 + $0x1cc] ss:$16 sps:$4 sm:$0xff]   ;;  %v1775_v61 = vld [vmem:[%s2468_s1 + $0x260] ss:$16 sps:$4 sm:$0xff]  }
  0x18   :  { %913 = vmatprep.subr.bf16.mxu0 %v1697_v24  ;;  %995 = vmatprep.subr.bf16.mxu1 %v1699_v25  ;;  %v237_v9 = vunpack.c.l.b16 %v71_v0  ;;  %v241_v10 = vunpack.c.l.b16 %v75_v1  ;;  %v70_v18 = vpack.c.bf16 %v33_v5, %v33_v5  ;;  %v240_v19 = vunpack.c.l.b16 %v74_v6  ;;  %v1777_v59 = vld [vmem:[%s2468_s1 + $0x264] ss:$16 sps:$4 sm:$0xff]   ;;  %v1778_v62 = vld [vmem:[%s2468_s1 + $0x268] ss:$16 sps:$4 sm:$0xff]   ;;  %v1786_v0 = vld [vmem:[%s2468_s1 + $0x28c] ss:$16 sps:$4 sm:$0xff]  }
  0x19   :  { %v238_v20 = vunpack.c.l.b16 %v72_v11  ;;  %v242_v21 = vunpack.c.l.b16 %v76_v12  ;;  %v1781_v1 = vld [vmem:[%s2468_s1 + $0x280] ss:$16 sps:$4 sm:$0xff]   ;;  %v1784_v2 = vld [vmem:[%s2468_s1 + $0x288] ss:$16 sps:$4 sm:$0xff]   ;;  %v1789_v3 = vld [vmem:[%s2468_s1 + $0x2a4] ss:$16 sps:$4 sm:$0xff]  }
  0x1a   :  { %v247_v14 = vrot.slane %v241_v10, 7  ;;  %v1787_v5 = vld [vmem:[%s2468_s1 + $0x2a0] ss:$16 sps:$4 sm:$0xff]   ;;  %v1790_v6 = vld [vmem:[%s2468_s1 + $0x2a8] ss:$16 sps:$4 sm:$0xff]  }
  0x1b   :  { %914 = vmatpush1.bf16.msra.mxu0 %v1701_v26  ;;  %996 = vmatpush1.bf16.msra.mxu1 %v1702_v27  ;;  %v249_v26 = vrot.slane %v242_v21, 7  ;;  %v1749_v27 = vld [vmem:[%s2468_s1 + $0x1c0] ss:$16 sps:$4 sm:$0xff]   ;;  %v1796_v10 = vld [vmem:[%s2468_s1 + $0x2c8] ss:$16 sps:$4 sm:$0xff]  }
  0x1c   :  { %915 = vmatprep.subr.bf16.mxu0 %v1703_v28  ;;  %997 = vmatprep.subr.bf16.mxu1 %v1705_v29  ;;  %v248_v24 = vsel %vm245_vm0, %v247_v14, %v237_v9  ;;  %v73_v28 = vpack.c.bf16 %v45_v15, %v45_v15  ;;  %v243_v29 = vunpack.c.l.b16 %v77_v16  ;;  %v1793_v9 = vld [vmem:[%s2468_s1 + $0x2c0] ss:$16 sps:$4 sm:$0xff]   ;;  %v1801_v11 = vld [vmem:[%s2468_s1 + $0x2e4] ss:$16 sps:$4 sm:$0xff]   ;;  %v1804_v12 = vld [vmem:[%s2468_s1 + $0x2ec] ss:$16 sps:$4 sm:$0xff]  }
  0x1d   :  { %v254_v25 = vpack.c.b16 %v248_v24, %v248_v24  ;;  %v1802_v14 = vld [vmem:[%s2468_s1 + $0x2e8] ss:$16 sps:$4 sm:$0xff]   ;;  %v1807_v15 = vld [vmem:[%s2468_s1 + $0x304] ss:$16 sps:$4 sm:$0xff]   ;;  %v1810_v16 = vld [vmem:[%s2468_s1 + $0x30c] ss:$16 sps:$4 sm:$0xff]  }
  0x1e   :  { %v251_v38 = vrot.slane %v243_v29, 7  ;;  %v1811_v21 = vld [vmem:[%s2468_s1 + $0x320] ss:$16 sps:$4 sm:$0xff]   ;;  %v1822_v24 = vld [vmem:[%s2468_s1 + $0x34c] ss:$16 sps:$4 sm:$0xff]  }
  0x1f   :  { %916 = vmatpush1.bf16.msra.mxu0 %v1707_v30  ;;  %998 = vmatpush1.bf16.msra.mxu1 %v1708_v31  ;;  %v1750_v30 = vld [vmem:[%s2468_s1 + $0x1c8] ss:$16 sps:$4 sm:$0xff]   ;;  %v236_v31 = vunpack.c.l.b16 %v70_v18  ;;  %v1823_v29 = vld [vmem:[%s2468_s1 + $0x360] ss:$16 sps:$4 sm:$0xff]  }
  0x20   :  { %917 = vmatprep.subr.bf16.mxu0 %v1709_v32  ;;  %999 = vmatprep.subr.bf16.mxu1 %v1711_v33  ;;  %v244_v32 = vrot.slane %v240_v19, 7  ;;  %v2139_v33 = vsel %vm245_vm0, %v249_v26, %v238_v20  ;;  %v1808_v18 = vld [vmem:[%s2468_s1 + $0x308] ss:$16 sps:$4 sm:$0xff]   ;;  %v1813_v19 = vld [vmem:[%s2468_s1 + $0x324] ss:$16 sps:$4 sm:$0xff]  }
  0x21   :  { %933 = vmatprep.mubr.bf16.mxu0 %v254_v25  ;;  %1015 = vmatprep.mubr.bf16.mxu1 %v254_v25  ;;  %v1816_v20 = vld [vmem:[%s2468_s1 + $0x32c] ss:$16 sps:$4 sm:$0xff]   ;;  %v1817_v25 = vld [vmem:[%s2468_s1 + $0x340] ss:$16 sps:$4 sm:$0xff]   ;;  %v1820_v26 = vld [vmem:[%s2468_s1 + $0x348] ss:$16 sps:$4 sm:$0xff]  }
  0x23   :  { %918 = vmatpush1.bf16.msra.mxu0 %v1713_v34  ;;  %1000 = vmatpush1.bf16.msra.mxu1 %v1714_v35  ;;  %v1751_v34 = vld [vmem:[%s2468_s1 + $0x1e4] ss:$16 sps:$4 sm:$0xff]   ;;  %v1753_v35 = vld [vmem:[%s2468_s1 + $0x1ec] ss:$16 sps:$4 sm:$0xff]  }
  0x24   :  { %919 = vmatprep.subr.bf16.mxu0 %v1715_v36  ;;  %1001 = vmatprep.subr.bf16.mxu1 %v1717_v37  ;;  %v1755_v36 = vld [vmem:[%s2468_s1 + $0x1e0] ss:$16 sps:$4 sm:$0xff]   ;;  %v239_v37 = vunpack.c.l.b16 %v73_v28  ;;  %v1828_v28 = vld [vmem:[%s2468_s1 + $0x36c] ss:$16 sps:$4 sm:$0xff]  }
  0x27   :  { %920 = vmatpush1.bf16.msra.mxu0 %v1719_v39  ;;  %1002 = vmatpush1.bf16.msra.mxu1 %v1720_v40  ;;  %v1756_v39 = vld [vmem:[%s2468_s1 + $0x1e8] ss:$16 sps:$4 sm:$0xff]   ;;  %v246_v40 = vsel %vm245_vm0, %v244_v32, %v236_v31  ;;  %v1831_v31 = vld [vmem:[%s2468_s1 + $0x384] ss:$16 sps:$4 sm:$0xff]   ;;  %v1834_v32 = vld [vmem:[%s2468_s1 + $0x38c] ss:$16 sps:$4 sm:$0xff]  }
  0x28   :  { %921 = vmatprep.subr.bf16.mxu0 %v1721_v41  ;;  %1003 = vmatprep.subr.bf16.mxu1 %v1723_v42  ;;  %v1759_v41 = vld [vmem:[%s2468_s1 + $0x204] ss:$16 sps:$4 sm:$0xff]   ;;  %v1762_v42 = vld [vmem:[%s2468_s1 + $0x20c] ss:$16 sps:$4 sm:$0xff]  }
  0x2b   :  { %922 = vmatpush1.bf16.msra.mxu0 %v1725_v44  ;;  %1004 = vmatpush1.bf16.msra.mxu1 %v1726_v45  ;;  %v1757_v44 = vld [vmem:[%s2468_s1 + $0x200] ss:$16 sps:$4 sm:$0xff]   ;;  %v253_v45 = vpack.c.b16 %v246_v40, %v246_v40 }
  0x2c   :  { %923 = vmatprep.subr.bf16.mxu0 %v1727_v46  ;;  %1005 = vmatprep.subr.bf16.mxu1 %v1729_v47  ;;  %v252_v46 = vsel %vm245_vm0, %v251_v38, %v239_v37  ;;  %v1760_v47 = vld [vmem:[%s2468_s1 + $0x208] ss:$16 sps:$4 sm:$0xff]   ;;  %v1840_v37 = vld [vmem:[%s2468_s1 + $0x3ac] ss:$16 sps:$4 sm:$0xff]  }
  0x2d   :  { %v256_v52 = vpack.c.b16 %v252_v46, %v252_v46 }
  0x2f   :  { %924 = vmatpush1.bf16.msra.mxu0 %v1731_v51  ;;  %1006 = vmatpush1.bf16.msra.mxu1 %v1732_v56  ;;  %v1768_v51 = vld [vmem:[%s2468_s1 + $0x22c] ss:$16 sps:$4 sm:$0xff]  }
  0x30   :  { %925 = vmatprep.subr.bf16.mxu0 %v1733_v57  ;;  %1007 = vmatprep.subr.bf16.mxu1 %v1735_v58  ;;  %v1774_v56 = vld [vmem:[%s2468_s1 + $0x24c] ss:$16 sps:$4 sm:$0xff]   ;;  %v1769_v57 = vld [vmem:[%s2468_s1 + $0x240] ss:$16 sps:$4 sm:$0xff]   ;;  %v1772_v58 = vld [vmem:[%s2468_s1 + $0x248] ss:$16 sps:$4 sm:$0xff]  }
  0x33   :  { %926 = vmatpush1.bf16.msra.mxu0 %v1737_v63  ;;  %1008 = vmatpush1.bf16.msra.mxu1 %v1738_v4  ;;  %v1783_v63 = vld [vmem:[%s2468_s1 + $0x284] ss:$16 sps:$4 sm:$0xff]   ;;  %v1792_v4 = vld [vmem:[%s2468_s1 + $0x2ac] ss:$16 sps:$4 sm:$0xff]  }
  0x34   :  { %927 = vmatprep.subr.bf16.mxu0 %v1739_v7  ;;  %1009 = vmatprep.subr.bf16.mxu1 %v1741_v8  ;;  %v1795_v7 = vld [vmem:[%s2468_s1 + $0x2c4] ss:$16 sps:$4 sm:$0xff]   ;;  %v1798_v8 = vld [vmem:[%s2468_s1 + $0x2cc] ss:$16 sps:$4 sm:$0xff]  }
  0x37   :  { %928 = vmatpush1.bf16.msra.mxu0 %v1743_v13  ;;  %1010 = vmatpush1.bf16.msra.mxu1 %v1744_v17  ;;  %v1799_v13 = vld [vmem:[%s2468_s1 + $0x2e0] ss:$16 sps:$4 sm:$0xff]  }
  0x38   :  { %929 = vmatprep.subr.bf16.mxu0 %v1745_v22  ;;  %1011 = vmatprep.subr.bf16.mxu1 %v1747_v23  ;;  %v1805_v17 = vld [vmem:[%s2468_s1 + $0x300] ss:$16 sps:$4 sm:$0xff]   ;;  %v1814_v22 = vld [vmem:[%s2468_s1 + $0x328] ss:$16 sps:$4 sm:$0xff]   ;;  %v1819_v23 = vld [vmem:[%s2468_s1 + $0x344] ss:$16 sps:$4 sm:$0xff]  }
  0x3b   :  { %930 = vmatpush1.bf16.msra.mxu0 %v1749_v27  ;;  %1012 = vmatpush1.bf16.msra.mxu1 %v1750_v30  ;;  %v1825_v27 = vld [vmem:[%s2468_s1 + $0x364] ss:$16 sps:$4 sm:$0xff]   ;;  %v1826_v30 = vld [vmem:[%s2468_s1 + $0x368] ss:$16 sps:$4 sm:$0xff]  }
  0x3c   :  { %931 = vmatprep.subr.bf16.mxu0 %v1751_v34  ;;  %1013 = vmatprep.subr.bf16.mxu1 %v1753_v35  ;;  %v1829_v34 = vld [vmem:[%s2468_s1 + $0x380] ss:$16 sps:$4 sm:$0xff]   ;;  %v1832_v35 = vld [vmem:[%s2468_s1 + $0x388] ss:$16 sps:$4 sm:$0xff]  }
  0x3f   :  { %932 = vmatpush1.bf16.msra.mxu0 %v1755_v36  ;;  %1014 = vmatpush1.bf16.msra.mxu1 %v1756_v39  ;;  %v1837_v36 = vld [vmem:[%s2468_s1 + $0x3a4] ss:$16 sps:$4 sm:$0xff]  }
  0x40   :  { %942 = vmatprep.subr.bf16.mxu0 %v1759_v41  ;;  %1024 = vmatprep.subr.bf16.mxu1 %v1762_v42 }
  0x42   :  { %934 = vmatmul.mubr.bf16.vlgmr.msra.gmra.mrb[0].mxu0 %v253_v45  ;;  %1016 = vmatmul.mubr.bf16.vlgmr.msra.gmra.mrb[0].mxu1 %v253_v45 }
  0x43   :  { %943 = vmatpush1.bf16.msra.mxu0 %v1757_v44  ;;  %1025 = vmatpush1.bf16.msra.mxu1 %v1760_v47 }
  0x44   :  { %944 = vmatprep.subr.bf16.mxu0 %v1765_v49  ;;  %1026 = vmatprep.subr.bf16.mxu1 %v1768_v51 }
  0x45   :  { %974 = vmatprep.mubr.bf16.mxu0 %v256_v52  ;;  %1056 = vmatprep.mubr.bf16.mxu1 %v256_v52 }
  0x47   :  { %945 = vmatpush1.bf16.msra.mxu0 %v1763_v53  ;;  %1027 = vmatpush1.bf16.msra.mxu1 %v1766_v54 }
  0x48   :  { %946 = vmatprep.subr.bf16.mxu0 %v1771_v55  ;;  %1028 = vmatprep.subr.bf16.mxu1 %v1774_v56 }
  0x4b   :  { %947 = vmatpush1.bf16.msra.mxu0 %v1769_v57  ;;  %1029 = vmatpush1.bf16.msra.mxu1 %v1772_v58 }
  0x4c   :  { %948 = vmatprep.subr.bf16.mxu0 %v1777_v59  ;;  %1030 = vmatprep.subr.bf16.mxu1 %v1780_v60 }
  0x4f   :  { %949 = vmatpush1.bf16.msra.mxu0 %v1775_v61  ;;  %1031 = vmatpush1.bf16.msra.mxu1 %v1778_v62 }
  0x50   :  { %950 = vmatprep.subr.bf16.mxu0 %v1783_v63  ;;  %1032 = vmatprep.subr.bf16.mxu1 %v1786_v0 }
  0x53   :  { %951 = vmatpush1.bf16.msra.mxu0 %v1781_v1  ;;  %1033 = vmatpush1.bf16.msra.mxu1 %v1784_v2 }
  0x54   :  { %952 = vmatprep.subr.bf16.mxu0 %v1789_v3  ;;  %1034 = vmatprep.subr.bf16.mxu1 %v1792_v4 }
  0x57   :  { %953 = vmatpush1.bf16.msra.mxu0 %v1787_v5  ;;  %1035 = vmatpush1.bf16.msra.mxu1 %v1790_v6 }
  0x58   :  { %954 = vmatprep.subr.bf16.mxu0 %v1795_v7  ;;  %1036 = vmatprep.subr.bf16.mxu1 %v1798_v8 }
  0x5b   :  { %955 = vmatpush1.bf16.msra.mxu0 %v1793_v9  ;;  %1037 = vmatpush1.bf16.msra.mxu1 %v1796_v10 }
  0x5c   :  { %956 = vmatprep.subr.bf16.mxu0 %v1801_v11  ;;  %1038 = vmatprep.subr.bf16.mxu1 %v1804_v12 }
  0x5f   :  { %957 = vmatpush1.bf16.msra.mxu0 %v1799_v13  ;;  %1039 = vmatpush1.bf16.msra.mxu1 %v1802_v14 }
  0x60   :  { %958 = vmatprep.subr.bf16.mxu0 %v1807_v15  ;;  %1040 = vmatprep.subr.bf16.mxu1 %v1810_v16 }
  0x63   :  { %959 = vmatpush1.bf16.msra.mxu0 %v1805_v17  ;;  %1041 = vmatpush1.bf16.msra.mxu1 %v1808_v18 }
  0x64   :  { %960 = vmatprep.subr.bf16.mxu0 %v1813_v19  ;;  %1042 = vmatprep.subr.bf16.mxu1 %v1816_v20 }
  0x67   :  { %961 = vmatpush1.bf16.msra.mxu0 %v1811_v21  ;;  %1043 = vmatpush1.bf16.msra.mxu1 %v1814_v22 }
  0x68   :  { %962 = vmatprep.subr.bf16.mxu0 %v1819_v23  ;;  %1044 = vmatprep.subr.bf16.mxu1 %v1822_v24 }
  0x6b   :  { %963 = vmatpush1.bf16.msra.mxu0 %v1817_v25  ;;  %1045 = vmatpush1.bf16.msra.mxu1 %v1820_v26 }
  0x6c   :  { %964 = vmatprep.subr.bf16.mxu0 %v1825_v27  ;;  %1046 = vmatprep.subr.bf16.mxu1 %v1828_v28 }
  0x6f   :  { %965 = vmatpush1.bf16.msra.mxu0 %v1823_v29  ;;  %1047 = vmatpush1.bf16.msra.mxu1 %v1826_v30 }
  0x70   :  { %966 = vmatprep.subr.bf16.mxu0 %v1831_v31  ;;  %1048 = vmatprep.subr.bf16.mxu1 %v1834_v32 }
  0x71   :  { %10 = vsyncpa [#allocation3], 0  ;;  %v1835_v38 = vld [vmem:[%s2468_s1 + $0x3a0] ss:$16 sps:$4 sm:$0xff]   ;;  %v1838_v39 = vld [vmem:[%s2468_s1 + $0x3a8] ss:$16 sps:$4 sm:$0xff]   ;;  %v255_v53 = vpack.c.b16 %v2139_v33, %v2139_v33 }
  0x72   :  { %v1843_v40 = vld [vmem:[%s2468_s1 + $0x3c4] ss:$16 sps:$4 sm:$0xff]   ;;  %v1846_v41 = vld [vmem:[%s2468_s1 + $0x3cc] ss:$16 sps:$4 sm:$0xff]   ;;  %v1841_v42 = vld [vmem:[%s2468_s1 + $0x3c0] ss:$16 sps:$4 sm:$0xff]  }
  0x73   :  { %967 = vmatpush1.bf16.msra.mxu0 %v1829_v34  ;;  %1049 = vmatpush1.bf16.msra.mxu1 %v1832_v35  ;;  %v1844_v44 = vld [vmem:[%s2468_s1 + $0x3c8] ss:$16 sps:$4 sm:$0xff]   ;;  %v1849_v45 = vld [vmem:[%s2468_s1 + $0x3e4] ss:$16 sps:$4 sm:$0xff]   ;;  %v1852_v46 = vld [vmem:[%s2468_s1 + $0x3ec] ss:$16 sps:$4 sm:$0xff]  }
  0x74   :  { %968 = vmatprep.subr.bf16.mxu0 %v1837_v36  ;;  %1050 = vmatprep.subr.bf16.mxu1 %v1840_v37  ;;  %v1847_v47 = vld [vmem:[%s2468_s1 + $0x3e0] ss:$16 sps:$4 sm:$0xff]   ;;  %v1850_v49 = vld [vmem:[%s2468_s1 + $0x3e8] ss:$16 sps:$4 sm:$0xff]   ;;  %v214_v20 = vsub.s32 1, %v2066_v43  ;;  %v222_v21 = vsub.s32 3, %v2066_v43 }
  0x75   :  { %v1853_v51 = vld [vmem:[%s2470_s3 + $0x40] sm:$0xff]   ;;  %v1857_v56 = vld [vmem:[%s2470_s3 + $0x48] sm:$0xff]   ;;  %v1861_v59 = vld [vmem:[%s2470_s3 + $0x50] sm:$0xff]   ;;  %s1909_s30 = smov [#allocation2]  }
  0x76   :  { %v1854_v52 = vld [vmem:[%s2470_s3 + $0xc0] sm:$0xff]   ;;  %v1858_v33 = vld [vmem:[%s2470_s3 + $0xc8] sm:$0xff]   ;;  %v1862_v60 = vld [vmem:[%s2470_s3 + $0xd0] sm:$0xff]   ;;  %s1431_s6 = sshll.u32 %s1909_s30, 4  ;;  %s1432_s6 = int_to_ptr.vmem [resolvable:$true] %s1431_s6 }
  0x77   :  { %969 = vmatpush1.bf16.msra.mxu0 %v1835_v38  ;;  %1051 = vmatpush1.bf16.msra.mxu1 %v1838_v39  ;;  %v1855_v54 = vld [vmem:[%s2470_s3] sm:$0xff]   ;;  %v1859_v57 = vld [vmem:[%s2470_s3 + $0x8] sm:$0xff]   ;;  %v1863_v61 = vld [vmem:[%s2470_s3 + $0x10] sm:$0xff]   ;;  %s1885_s7 = scalar_lea.vmem %s1432_s6, 32  ;;  %p1890_p1 = scmp.lt.s32.totalorder %s1432_s6, %s1432_s6 }
  0x78   :  { %970 = vmatprep.subr.bf16.mxu0 %v1843_v40  ;;  %1052 = vmatprep.subr.bf16.mxu1 %v1846_v41  ;;  %v1856_v55 = vld [vmem:[%s2470_s3 + $0x80] sm:$0xff]   ;;  %v1860_v58 = vld [vmem:[%s2470_s3 + $0x88] sm:$0xff]   ;;  %v1864_v62 = vld [vmem:[%s2470_s3 + $0x90] sm:$0xff]   ;;  %p1886_p0 = scmp.ne.s32.totalorder %s1432_s6, %s1885_s7  ;;  %p1891_p2 = scmp.lt.s32.totalorder %s1885_s7, %s1885_s7 }
  0x79   :  { %v1865_v63 = vld [vmem:[%s2470_s3 + $0x58] sm:$0xff]   ;;  %v1869_v3 = vld [vmem:[%s2470_s3 + $0x60] sm:$0xff]   ;;  %v1873_v7 = vld [vmem:[%s2470_s3 + $0x68] sm:$0xff]  }
  0x7a   :  { %v1866_v0 = vld [vmem:[%s2470_s3 + $0xd8] sm:$0xff]   ;;  %v1870_v4 = vld [vmem:[%s2470_s3 + $0xe0] sm:$0xff]   ;;  %v1874_v8 = vld [vmem:[%s2470_s3 + $0xe8] sm:$0xff]   ;;  %p1892_p3 = por %p1891_p2, %p1890_p1 }
  0x7b   :  { %971 = vmatpush1.bf16.msra.mxu0 %v1841_v42  ;;  %1053 = vmatpush1.bf16.msra.mxu1 %v1844_v44  ;;  %v1867_v1 = vld [vmem:[%s2470_s3 + $0x18] sm:$0xff]   ;;  %v1871_v5 = vld [vmem:[%s2470_s3 + $0x20] sm:$0xff]   ;;  %v1875_v9 = vld [vmem:[%s2470_s3 + $0x28] sm:$0xff]  }
  0x7c   :  { %972 = vmatprep.subr.bf16.mxu0 %v1849_v45  ;;  %1054 = vmatprep.subr.bf16.mxu1 %v1852_v46  ;;  %v1868_v2 = vld [vmem:[%s2470_s3 + $0x98] sm:$0xff]   ;;  %v1872_v6 = vld [vmem:[%s2470_s3 + $0xa0] sm:$0xff]   ;;  %v1876_v10 = vld [vmem:[%s2470_s3 + $0xa8] sm:$0xff]   ;;  %p1893_p4 = pnand %p1892_p3, %p1886_p0 }
  0x7d   :  { %v1877_v11 = vld [vmem:[%s2470_s3 + $0x70] sm:$0xff]   ;;  %v1881_v15 = vld [vmem:[%s2470_s3 + $0x78] sm:$0xff]   ;;  %v206_v19 = vld [vmem:[%s2469_s2] sm:$0xf] }
  0x7e   :  { %v1878_v12 = vld [vmem:[%s2470_s3 + $0xf0] sm:$0xff]   ;;  %v1882_v16 = vld [vmem:[%s2470_s3 + $0xf8] sm:$0xff]   ;;  %v211_v22 = vrot.slane %v206_v19, %v2087_v50  ;;  %v219_v23 = vrot.slane %v206_v19, %v2081_v48  ;;  %v215_v24 = vrot.slane %v206_v19, %v214_v20  ;;  %v223_v25 = vrot.slane %v206_v19, %v222_v21 }
  0x7f   :  { %973 = vmatpush1.bf16.msra.mxu0 %v1847_v47  ;;  %1055 = vmatpush1.bf16.msra.mxu1 %v1850_v49  ;;  %v1879_v13 = vld [vmem:[%s2470_s3 + $0x30] sm:$0xff]   ;;  %v1883_v17 = vld [vmem:[%s2470_s3 + $0x38] sm:$0xff]  }
  0x80   :  { %1604 = vmatprep.subr.bf16.mxu0 %v1853_v51  ;;  %1626 = vmatprep.subr.bf16.mxu1 %v1854_v52  ;;  %v1880_v14 = vld [vmem:[%s2470_s3 + $0xb0] sm:$0xff]   ;;  %v1884_v18 = vld [vmem:[%s2470_s3 + $0xb8] sm:$0xff]  }
  0x82   :  { %975 = vmatmul.mubr.bf16.vlgmr.msra.gmra.mrb[0].mxu0 %v255_v53  ;;  %1057 = vmatmul.mubr.bf16.vlgmr.msra.gmra.mrb[0].mxu1 %v255_v53  ;;  %v1567_v53 = vld [vmem:[%s2471_s4] ss:$0 sm:$0xff] }
  0x83   :  { %1605 = vmatpush3.bf16.msra.mxu0 %v1855_v54  ;;  %1627 = vmatpush3.bf16.msra.mxu1 %v1856_v55 }
  0x84   :  { %1606 = vmatprep.subr.bf16.mxu0 %v1857_v56  ;;  %1628 = vmatprep.subr.bf16.mxu1 %v1858_v33 }
  0x87   :  { %1607 = vmatpush3.bf16.msra.mxu0 %v1859_v57  ;;  %1629 = vmatpush3.bf16.msra.mxu1 %v1860_v58 }
  0x88   :  { %1608 = vmatprep.subr.bf16.mxu0 %v1861_v59  ;;  %1630 = vmatprep.subr.bf16.mxu1 %v1862_v60 }
  0x8b   :  { %1609 = vmatpush3.bf16.msra.mxu0 %v1863_v61  ;;  %1631 = vmatpush3.bf16.msra.mxu1 %v1864_v62 }
  0x8c   :  { %1610 = vmatprep.subr.bf16.mxu0 %v1865_v63  ;;  %1632 = vmatprep.subr.bf16.mxu1 %v1866_v0 }
  0x8f   :  { %1611 = vmatpush3.bf16.msra.mxu0 %v1867_v1  ;;  %1633 = vmatpush3.bf16.msra.mxu1 %v1868_v2 }
  0x90   :  { %1612 = vmatprep.subr.bf16.mxu0 %v1869_v3  ;;  %1634 = vmatprep.subr.bf16.mxu1 %v1870_v4 }
  0x93   :  { %1613 = vmatpush3.bf16.msra.mxu0 %v1871_v5  ;;  %1635 = vmatpush3.bf16.msra.mxu1 %v1872_v6 }
  0x94   :  { %1614 = vmatprep.subr.bf16.mxu0 %v1873_v7  ;;  %1636 = vmatprep.subr.bf16.mxu1 %v1874_v8 }
  0x97   :  { %1615 = vmatpush3.bf16.msra.mxu0 %v1875_v9  ;;  %1637 = vmatpush3.bf16.msra.mxu1 %v1876_v10 }
  0x98   :  { %1616 = vmatprep.subr.bf16.mxu0 %v1877_v11  ;;  %1638 = vmatprep.subr.bf16.mxu1 %v1878_v12 }
  0x9b   :  { %1617 = vmatpush3.bf16.msra.mxu0 %v1879_v13  ;;  %1639 = vmatpush3.bf16.msra.mxu1 %v1880_v14 }
  0x9c   :  { %1618 = vmatprep.subr.bf16.mxu0 %v1881_v15  ;;  %1640 = vmatprep.subr.bf16.mxu1 %v1882_v16 }
  0x9f   :  { %1619 = vmatpush3.bf16.msra.mxu0 %v1883_v17  ;;  %1641 = vmatpush3.bf16.msra.mxu1 %v1884_v18 }
 0x155   :  { %v976_v26 = vpop.f32.mrb[0].mxu0  ;;  %v1058_v27 = vpop.f32.mrb[0].mxu1 }
 0x156   :  { %v1648_v28 = vadd.f32 %v976_v26, %v211_v22  ;;  %v1650_v29 = vadd.f32 %v1058_v27, %v219_v23  ;;  %v978_v30 = vpop.f32.mrb[1].mxu0  ;;  %v1060_v31 = vpop.f32.mrb[1].mxu1 }
 0x157   :  { %v1649_v32 = vadd.f32 %v978_v30, %v215_v24  ;;  %v1651_v34 = vadd.f32 %v1060_v31, %v223_v25  ;;  %v980_v35 = vpop.f32.mrb[2].mxu0  ;;  %v1062_v36 = vpop.f32.mrb[2].mxu1 }
 0x158   :  { %vm1065_vm1 = vcmp.gt.f32.partialorder %v1648_v28, 0.0  ;;  %v1069_v37 = vmul.f32 0.1, %v1648_v28  ;;  %vm1067_vm2 = vcmp.gt.f32.partialorder %v1650_v29, 0.0  ;;  %v1071_v43 = vmul.f32 0.1, %v1650_v29 }
 0x159   :  { %vm1066_vm3 = vcmp.gt.f32.partialorder %v1649_v32, 0.0  ;;  %v1070_v50 = vmul.f32 0.1, %v1649_v32  ;;  %vm1068_vm4 = vcmp.gt.f32.partialorder %v1651_v34, 0.0  ;;  %v1072_v48 = vmul.f32 0.1, %v1651_v34 }
 0x15a   :  { %v1073_v38 = vsel %vm1065_vm1, %v1648_v28, %v1069_v37  ;;  %v1075_v39 = vsel %vm1067_vm2, %v1650_v29, %v1071_v43  ;;  %v981_v40 = vpop.f32.mrb[3].mxu0  ;;  %v1063_v41 = vpop.f32.mrb[3].mxu1 }
 0x15b   :  { %v1074_v42 = vsel %vm1066_vm3, %v1649_v32, %v1070_v50  ;;  %v1076_v44 = vsel %vm1068_vm4, %v1651_v34, %v1072_v48  ;;  %v1077_v47 = vpack.c.bf16 %v1073_v38, %v1073_v38  ;;  %v1079_v49 = vpack.c.bf16 %v1075_v39, %v1075_v39 }
 0x15c   :  { %v1078_v45 = vpack.c.bf16 %v1074_v42, %v1074_v42  ;;  %v1080_v46 = vpack.c.bf16 %v1076_v44, %v1076_v44 }
 0x15e   :  { %1376 = vmatprep.mubr.bf16.mxu0 %v1078_v45  ;;  %1416 = vmatprep.mubr.bf16.mxu1 %v1080_v46 }
 0x15f   :  { %1377 = vmatmul.mubr.bf16.vlgmr.msra.gmra.mrb[4].mxu0 %v1077_v47  ;;  %1417 = vmatmul.mubr.bf16.vlgmr.msra.gmra.mrb[4].mxu1 %v1079_v49 }
 0x232   :  { %v1620_v51 = vpop.f32.mrb[4].mxu0  ;;  %v1642_v52 = vpop.f32.mrb[4].mxu1 }
 0x233   :  { %v1621_v54 = vpop.f32.mrb[5].mxu0  ;;  %v1643_v55 = vpop.f32.mrb[5].mxu1 }
 0x234   :  { %v1622_v56 = vadd.f32 %v1621_v54, %v1620_v51  ;;  %v1644_v33 = vadd.f32 %v1643_v55, %v1642_v52  ;;  %v1623_v57 = vpop.f32.mrb[6].mxu0  ;;  %v1645_v58 = vpop.f32.mrb[6].mxu1 }
 0x235   :  { %v1624_v59 = vpop.f32.mrb[7].mxu0  ;;  %v1646_v60 = vpop.f32.mrb[7].mxu1 }
 0x236   :  { %v1379_v61 = vadd.f32 %v1622_v56, %v1567_v53 }
 0x238   :  { %v1419_v62 = vadd.f32 %v1644_v33, %v1379_v61 }
 0x23a   :  { %1424 = vst [vmem:[#allocation2] sm:$0x3] %v1419_v62 }
 0x23b   :  { %1896 = shalt.err (!%p1893_p4)
}
 0x23c   :  { %s1897_s9 = scalar_lea.hbm %s2472_s5, 32 }
 0x23d   :  { %p1898_p5 = scmp.ne.s32.totalorder %s2472_s5, %s1897_s9  ;;  %p1901_p6 = scmp.lt.u32.totalorder %s1897_s9, %s2472_s5 }
 0x23f   :  { %p1903_p7 = pnand %p1901_p6, %p1898_p5 }
 0x241   :  { %1906 = shalt.err (!%p1903_p7)
}
 0x242   :  { %1434 = dma.vmem_to_hbm [thread:$0]  %s1432_s6, 32, %s2472_s5, [#allocation3]  }
 0x243   :  { %1907 = dma.done.wait [#allocation3], 32  }
 0x244   :  { %1908 = vsyncadd [#allocation3], 4294967264 }
 0x245   :  { %1438 = vsyncpa [#allocation3], 1 }

</bundles_post_ra>
